<compile_context>
chip_gen: v7x
topology: tpu7x:2x2x1
jax: 0.10.0
libtpu: 0.0.40
codegen_flags: <defaults>
</compile_context>

<pallas_src>
import math

import jax
import jax.numpy as jnp
from jax.experimental import pallas as pl
from jax.experimental.pallas import tpu as pltpu


_COMPILER_PARAMS = pltpu.CompilerParams(
    dimension_semantics=("parallel",),
    vmem_limit_bytes=32 * 1024 * 1024,
)


# ----------------------------- in-kernel math helpers -----------------------------

def _bf16(x):
    return x.astype(jnp.bfloat16)


def _mm(a, b):
    # bf16 operands, f32 accumulation on the MXU (weights are pre-cast to bf16).
    return jnp.dot(_bf16(a), _bf16(b), preferred_element_type=jnp.float32)


def _mmf(a, b):
    # f32 matmul for precision-sensitive paths (DFT correlation, delay aggregation).
    return jnp.dot(a, b, preferred_element_type=jnp.float32)


def _erf_approx(x):
    # Abramowitz & Stegun 7.1.26, |err| <= 1.5e-7; uses only exp (EUP-supported).
    p = 0.3275911
    a1, a2, a3, a4, a5 = 0.254829592, -0.284496736, 1.421413741, -1.453152027, 1.061405429
    s = jnp.where(x >= 0.0, 1.0, -1.0)
    ax = jnp.abs(x)
    t = 1.0 / (1.0 + p * ax)
    poly = ((((a5 * t + a4) * t + a3) * t + a2) * t + a1) * t
    return s * (1.0 - poly * jnp.exp(-ax * ax))


def _gelu(x):
    # TODO(synk): torch F.gelu uses exact erf; Mosaic has no guaranteed erf lowering,
    # so a 1.5e-7-accurate polynomial erf is used (float32-level accurate).
    return 0.5 * x * (1.0 + _erf_approx(x * 0.7071067811865476))


def _roll_rows(x, shift):
    # Static circular roll along the time axis: result[t] = x[(t - shift) % L].
    # Kept as concat-of-slices for lowering robustness; cost is negligible at these
    # shapes (the expensive per-tau correlation loop was removed separately).
    L = x.shape[0]
    s = shift % L
    if s == 0:
        return x
    return jnp.concatenate([x[L - s:, :], x[:L - s, :]], axis=0)


def _conv3_circular(x, w):
    """Circular Conv1d(kernel=3, padding=1, no bias) as a SINGLE matmul:
    concatenate the (-1, 0, +1) shifted copies along channels and multiply by the
    stacked (3*C_in, C_out) weight (3x deeper K instead of 3 tiny matmuls)."""
    xc = jnp.concatenate([_roll_rows(x, 1), x, _roll_rows(x, -1)], axis=1)
    return _mm(xc, w)


def _decomp(x, k):
    """series_decomp on an (L, D) VMEM tile: AvgPool1d(kernel=k, stride=1) with
    replicate padding, accumulated as k shifted slices (no HBM traffic)."""
    L, D = x.shape
    if k <= 1:
        return x - x, x
    p = (k - 1) // 2
    front = jnp.broadcast_to(x[0:1, :], (p, D))
    back = jnp.broadcast_to(x[L - 1:L, :], (p, D))
    xp = jnp.concatenate([front, x, back], axis=0)          # (L + k - 1, D)
    acc = xp[0:L, :]
    for i in range(1, k):
        acc = acc + xp[i:i + L, :]
    trend = acc * (1.0 / k)
    return x - trend, trend


def _my_layernorm(x, g, b):
    """my_Layernorm: LayerNorm(d_model) followed by subtraction of the time mean."""
    mu = jnp.mean(x, axis=-1, keepdims=True)
    var = jnp.mean((x - mu) * (x - mu), axis=-1, keepdims=True)
    xh = (x - mu) * jax.lax.rsqrt(var + 1e-5) * g + b
    return xh - jnp.mean(xh, axis=0, keepdims=True)


def _corr_dft(q, k, cmat, smat):
    """Channel-summed circular cross-correlation via dense DFT matmuls (MXU only):
        corr[tau] = sum_{t,c} q[t,c] * k[(t - tau) % L, c]
                  = sum_c irfft(rfft(q[:,c]) * conj(rfft(k[:,c])))[tau],
    exactly the reference AutoCorrelation math.  cmat/smat are the (L, L) cos/sin
    DFT matrices (host constants)."""
    L = q.shape[0]
    cq = _mmf(cmat, q)
    sq = _mmf(smat, q)
    ck = _mmf(cmat, k)
    sk = _mmf(smat, k)
    rr = jnp.sum(cq * ck + sq * sk, axis=1, keepdims=True)   # (L, 1) Re(cross-spectrum)
    ri = jnp.sum(cq * sk - sq * ck, axis=1, keepdims=True)   # (L, 1) Im(cross-spectrum)
    return jnp.sum(rr * cmat - ri * smat, axis=0, keepdims=True) * (1.0 / L)  # (1, L)


def _delay_agg_matrix(corr, top_k):
    """Eval-mode time_delay_agg_inference as ONE (L, L) aggregation matrix:
         W[t, s] = sum_i w_i * [(s - t) % L == d_i]    =>   out = W @ V,
    where (d_i, w_i) are the top_k delays of the channel-mean corr and their
    softmax weights.  Top-k is top_k masked arg-max passes in-kernel (rank-2 ops
    only: no HBM round trips, no SMEM tables, no dynamic slices)."""
    L = corr.shape[1]
    lane = jax.lax.broadcasted_iota(jnp.int32, (1, L), 1)
    row = jax.lax.broadcasted_iota(jnp.int32, (L, L), 0)
    col = jax.lax.broadcasted_iota(jnp.int32, (L, L), 1)
    delta = col - row
    dmat = jnp.where(delta >= 0, delta, delta + L)           # (s - t) mod L

    work = corr
    sel = jnp.zeros_like(corr)
    idxs = []
    m0 = None
    for i in range(top_k):
        m = jnp.max(work, axis=1, keepdims=True)             # (1, 1)
        idx = jnp.min(jnp.where(work == m, lane, L), axis=1, keepdims=True)
        first = lane == idx                                  # one-hot (1, L)
        sel = jnp.where(first, 1.0, sel)
        work = jnp.where(first, -jnp.inf, work)
        idxs.append(idx)
        if i == 0:
            m0 = m

    p = jnp.exp(corr - m0) * sel                             # softmax on selected lanes
    p = p * (1.0 / jnp.sum(p, axis=1, keepdims=True))
    w_mat = jnp.zeros((L, L), jnp.float32)
    for idx in idxs:
        w_i = jnp.sum(jnp.where(lane == idx, p, 0.0), axis=1, keepdims=True)  # (1, 1)
        w_mat = w_mat + w_i * (dmat == idx).astype(jnp.float32)
    return w_mat


def _autocorrelation(q, k, v, cmat, smat, top_k, wo, bo):
    """Full AutoCorrelationLayer tail: correlation -> top-k delay aggregation ->
    output projection (eval mode)."""
    D = q.shape[1]
    corr = _corr_dft(q, k, cmat, smat) * (1.0 / D)           # channel mean
    agg = _mmf(_delay_agg_matrix(corr, top_k), v)            # (L, D) on the MXU
    return _mm(agg, wo) + bo


def _pad_or_trim_rows(a, L):
    S, D = a.shape
    if S == L:
        return a
    if S > L:
        return a[:L, :]
    return jnp.concatenate([a, jnp.zeros((L - S, D), a.dtype)], axis=0)


# ----------------------------------- Pallas kernels -----------------------------------

def _full_spec(w):
    nd = w.ndim
    return pl.BlockSpec(w.shape, lambda b: (0,) * nd)


def embed_tokens(x, temporal, w_conv):
    """DataEmbedding_wo_pos: circular Conv1d(c_in, d_model, k=3, no bias) + fixed
    temporal embedding (precomputed table lookups), fused per batch."""
    B, L, C = x.shape
    D = w_conv.shape[1]

    def kernel(x_ref, t_ref, w_ref, o_ref):
        o_ref[0] = _conv3_circular(x_ref[0], w_ref[...]) + t_ref[0]

    return pl.pallas_call(
        kernel,
        out_shape=jax.ShapeDtypeStruct((B, L, D), jnp.float32),
        grid=(B,),
        in_specs=[pl.BlockSpec((1, L, C), lambda b: (b, 0, 0)),
                  pl.BlockSpec((1, L, D), lambda b: (b, 0, 0)),
                  pl.BlockSpec((3 * C, D), lambda b: (0, 0))],
        out_specs=pl.BlockSpec((1, L, D), lambda b: (b, 0, 0)),
        compiler_params=_COMPILER_PARAMS,
    )(x.astype(jnp.float32), temporal.astype(jnp.float32), w_conv)


def _enc_layer_kernel(D, top_k, moving_avg, with_norm):
    def kernel(x_ref, wqkv_ref, bqkv_ref, wo_ref, bo_ref, w1_ref, w2_ref,
               cmat_ref, smat_ref, *rest):
        if with_norm:
            g_ref, b_ref, o_ref = rest
        else:
            (o_ref,) = rest
        x = x_ref[0]
        qkv = _mm(x, wqkv_ref[...]) + bqkv_ref[...]          # fused Q|K|V projection
        attn = _autocorrelation(qkv[:, 0:D], qkv[:, D:2 * D], qkv[:, 2 * D:3 * D],
                                cmat_ref[...], smat_ref[...], top_k,
                                wo_ref[...], bo_ref[...])
        x1, _ = _decomp(x + attn, moving_avg)
        y = _mm(_gelu(_mm(x1, w1_ref[...])), w2_ref[...])
        x2, _ = _decomp(x1 + y, moving_avg)
        if with_norm:                                         # fold final my_Layernorm
            x2 = _my_layernorm(x2, g_ref[...], b_ref[...])
        o_ref[0] = x2
    return kernel


def encoder_layer(x, layer_params, norm, cmat, smat, top_k, moving_avg, with_norm):
    """One fused encoder layer (attention + top-k + aggregation + FFN + decomps),
    optionally fused with the encoder's final my_Layernorm."""
    B, L, D = x.shape
    a = layer_params['attn']
    args = [x, a['wqkv'], a['bqkv'], a['wo'], a['bo'],
            layer_params['conv1'], layer_params['conv2'], cmat, smat]
    if with_norm:
        args += [norm[0], norm[1]]
    in_specs = [pl.BlockSpec((1, L, D), lambda b: (b, 0, 0))]
    in_specs += [_full_spec(w) for w in args[1:]]
    return pl.pallas_call(
        _enc_layer_kernel(D, top_k, moving_avg, with_norm),
        out_shape=jax.ShapeDtypeStruct((B, L, D), jnp.float32),
        grid=(B,),
        in_specs=in_specs,
        out_specs=pl.BlockSpec((1, L, D), lambda b: (b, 0, 0)),
        compiler_params=_COMPILER_PARAMS,
    )(*args)


def _dec_layer_kernel(D, top_k, moving_avg, is_last):
    def kernel(x_ref, enc_ref,
               wqkv_ref, bqkv_ref, wos_ref, bos_ref,
               wq_ref, bq_ref, wkv_ref, bkv_ref, woc_ref, boc_ref,
               w1_ref, w2_ref, wtr_ref, cmat_ref, smat_ref, *rest):
        if is_last:
            trend_ref, g_ref, b_ref, wp_ref, bp_ref, out_ref = rest
        else:
            x_out_ref, rt_ref = rest

        x = x_ref[0]
        L = x.shape[0]

        # ---- self AutoCorrelation ----
        qkv = _mm(x, wqkv_ref[...]) + bqkv_ref[...]
        attn = _autocorrelation(qkv[:, 0:D], qkv[:, D:2 * D], qkv[:, 2 * D:3 * D],
                                cmat_ref[...], smat_ref[...], top_k,
                                wos_ref[...], bos_ref[...])
        x1, trend1 = _decomp(x + attn, moving_avg)

        # ---- cross AutoCorrelation (K/V from encoder output, zero-padded to L) ----
        q = _mm(x1, wq_ref[...]) + bq_ref[...]
        kv = _mm(enc_ref[0], wkv_ref[...]) + bkv_ref[...]
        k = _pad_or_trim_rows(kv[:, 0:D], L)
        v = _pad_or_trim_rows(kv[:, D:2 * D], L)
        attn = _autocorrelation(q, k, v, cmat_ref[...], smat_ref[...], top_k,
                                woc_ref[...], boc_ref[...])
        x2, trend2 = _decomp(x1 + attn, moving_avg)

        # ---- feed-forward ----
        y = _mm(_gelu(_mm(x2, w1_ref[...])), w2_ref[...])
        x3, trend3 = _decomp(x2 + y, moving_avg)

        # ---- residual-trend projection: circular Conv1d(d_model, c_out, k=3) ----
        rt = _conv3_circular(trend1 + trend2 + trend3, wtr_ref[...])

        if is_last:
            # fold my_Layernorm + Linear(d_model, c_out) + trend addition
            xn = _my_layernorm(x3, g_ref[...], b_ref[...])
            seasonal = _mm(xn, wp_ref[...]) + bp_ref[...]
            out_ref[0] = trend_ref[0] + rt + seasonal
        else:
            x_out_ref[0] = x3
            rt_ref[0] = rt
    return kernel


def decoder_layer(x, enc_out, layer_params, cmat, smat, top_k, moving_avg):
    """Non-final decoder layer: returns (x_out, residual_trend)."""
    B, L, D = x.shape
    S = enc_out.shape[1]
    C = layer_params['trend_proj'].shape[1]
    sa, ca = layer_params['self_attn'], layer_params['cross_attn']
    args = [x, enc_out,
            sa['wqkv'], sa['bqkv'], sa['wo'], sa['bo'],
            ca['wq'], ca['bq'], ca['wkv'], ca['bkv'], ca['wo'], ca['bo'],
            layer_params['conv1'], layer_params['conv2'],
            layer_params['trend_proj'], cmat, smat]
    in_specs = [pl.BlockSpec((1, L, D), lambda b: (b, 0, 0)),
                pl.BlockSpec((1, S, D), lambda b: (b, 0, 0))]
    in_specs += [_full_spec(w) for w in args[2:]]
    return pl.pallas_call(
        _dec_layer_kernel(D, top_k, moving_avg, is_last=False),
        out_shape=(jax.ShapeDtypeStruct((B, L, D), jnp.float32),
                   jax.ShapeDtypeStruct((B, L, C), jnp.float32)),
        grid=(B,),
        in_specs=in_specs,
        out_specs=(pl.BlockSpec((1, L, D), lambda b: (b, 0, 0)),
                   pl.BlockSpec((1, L, C), lambda b: (b, 0, 0))),
        compiler_params=_COMPILER_PARAMS,
    )(*args)


def decoder_layer_final(x, enc_out, trend, layer_params, norm_g, norm_b, wp, bp,
                        cmat, smat, top_k, moving_avg):
    """Final decoder layer fused with the decoder's my_Layernorm, the
    Linear(d_model, c_out) projection and the trend addition (dec_out)."""
    B, L, D = x.shape
    S = enc_out.shape[1]
    C = wp.shape[1]
    sa, ca = layer_params['self_attn'], layer_params['cross_attn']
    args = [x, enc_out,
            sa['wqkv'], sa['bqkv'], sa['wo'], sa['bo'],
            ca['wq'], ca['bq'], ca['wkv'], ca['bkv'], ca['wo'], ca['bo'],
            layer_params['conv1'], layer_params['conv2'],
            layer_params['trend_proj'], cmat, smat,
            trend, norm_g, norm_b, wp, bp]
    in_specs = [pl.BlockSpec((1, L, D), lambda b: (b, 0, 0)),
                pl.BlockSpec((1, S, D), lambda b: (b, 0, 0))]
    in_specs += [_full_spec(w) for w in args[2:17]]
    in_specs += [pl.BlockSpec((1, L, C), lambda b: (b, 0, 0))]
    in_specs += [_full_spec(w) for w in args[18:]]
    return pl.pallas_call(
        _dec_layer_kernel(D, top_k, moving_avg, is_last=True),
        out_shape=jax.ShapeDtypeStruct((B, L, C), jnp.float32),
        grid=(B,),
        in_specs=in_specs,
        out_specs=pl.BlockSpec((1, L, C), lambda b: (b, 0, 0)),
        compiler_params=_COMPILER_PARAMS,
    )(*args)


# ----------------------------------- XLA glue (tiny) -----------------------------------

def series_decomp_xla(x, k):
    """series_decomp on raw (B, L, C) inputs (tiny, done once before the kernels)."""
    if k <= 1:
        return x - x, x
    p = (k - 1) // 2
    L = x.shape[1]
    front = jnp.repeat(x[:, :1, :], p, axis=1)
    end = jnp.repeat(x[:, -1:, :], p, axis=1)
    xp = jnp.concatenate([front, x, end], axis=1)
    acc = xp[:, 0:L, :]
    for i in range(1, k):
        acc = acc + xp[:, i:i + L, :]
    trend = acc / float(k)
    return x - trend, trend


def fixed_embedding_table(n, d):
    pos = jnp.arange(n, dtype=jnp.float32)[:, None]
    div = jnp.exp(jnp.arange(0, d, 2, dtype=jnp.float32) * (-math.log(10000.0) / d))
    w = jnp.zeros((n, d), jnp.float32)
    w = w.at[:, 0::2].set(jnp.sin(pos * div))
    w = w.at[:, 1::2].set(jnp.cos(pos * div))
    return w


def temporal_embedding(tables, x_mark):
    m = x_mark.astype(jnp.int32)
    return (tables['hour'][m[..., 3]] + tables['weekday'][m[..., 2]]
            + tables['day'][m[..., 1]] + tables['month'][m[..., 0]])


def dft_matrices(L):
    f = jnp.arange(L, dtype=jnp.float32)[:, None]
    t = jnp.arange(L, dtype=jnp.float32)[None, :]
    ang = (2.0 * math.pi / L) * f * t
    return jnp.cos(ang), jnp.sin(ang)


def _top_k_count(factor, L):
    return max(1, min(int(factor * math.log(L)), L))


# ----------------------------------- forward pass -----------------------------------

def autoformer_forward(params, cfg, x_enc, x_mark_enc, x_dec, x_mark_dec):
    mavg = cfg['moving_avg']
    pred_len, label_len = cfg['pred_len'], cfg['label_len']
    B = x_enc.shape[0]
    L_enc = x_enc.shape[1]
    L_dec = label_len + pred_len

    # decomposition-based decoder init (raw-input sized -> plain XLA)
    mean = jnp.broadcast_to(jnp.mean(x_enc, axis=1, keepdims=True),
                            (B, pred_len, x_enc.shape[2]))
    zeros = jnp.zeros((x_dec.shape[0], pred_len, x_dec.shape[2]), jnp.float32)
    seasonal_init, trend_init = series_decomp_xla(x_enc, mavg)
    trend_init = jnp.concatenate([trend_init[:, -label_len:, :], mean], axis=1)
    seasonal_init = jnp.concatenate([seasonal_init[:, -label_len:, :], zeros], axis=1)

    tables = params['temporal_tables']
    enc_x = embed_tokens(x_enc, temporal_embedding(tables, x_mark_enc),
                         params['enc_emb_conv'])
    dec_x = embed_tokens(seasonal_init, temporal_embedding(tables, x_mark_dec),
                         params['dec_emb_conv'])

    cmat_e, smat_e = dft_matrices(L_enc)
    cmat_d, smat_d = dft_matrices(L_dec)
    tk_enc = _top_k_count(cfg['factor'], L_enc)
    tk_dec = _top_k_count(cfg['factor'], L_dec)

    # ---------------- encoder: one fused kernel per layer ----------------
    x = enc_x
    n_enc = len(params['enc_layers'])
    for i, lp in enumerate(params['enc_layers']):
        x = encoder_layer(x, lp, (params['enc_norm_g'], params['enc_norm_b']),
                          cmat_e, smat_e, tk_enc, mavg,
                          with_norm=(i == n_enc - 1))
    enc_out = x

    # ---------------- decoder: one fused kernel per layer ----------------
    x = dec_x
    trend = trend_init
    n_dec = len(params['dec_layers'])
    dec_out = None
    for i, lp in enumerate(params['dec_layers']):
        if i < n_dec - 1:
            x, rtrend = decoder_layer(x, enc_out, lp, cmat_d, smat_d, tk_dec, mavg)
            trend = trend + rtrend
        else:
            dec_out = decoder_layer_final(x, enc_out, trend, lp,
                                          params['dec_norm_g'], params['dec_norm_b'],
                                          params['out_proj']['w'],
                                          params['out_proj']['b'],
                                          cmat_d, smat_d, tk_dec, mavg)
    return dec_out[:, -pred_len:, :]


# -------------------------------- parameter init --------------------------------

def init_params(key, cfg):
    D, F, c_out = cfg['d_model'], cfg['d_ff'], cfg['c_out']
    enc_in, dec_in = cfg['enc_in'], cfg['dec_in']
    keys = iter(jax.random.split(key, 512))

    def nrm(shape, scale, dtype=jnp.bfloat16):
        # Weight matrices are pre-cast to bf16 once (halves weight DMA per kernel,
        # no per-grid-step casts); biases / norm params stay f32.
        return (jax.random.normal(next(keys), shape, jnp.float32) * scale).astype(dtype)

    def self_attn():
        return {'wqkv': nrm((D, 3 * D), 1.0 / math.sqrt(D)),
                'bqkv': nrm((1, 3 * D), 0.02, jnp.float32),
                'wo': nrm((D, D), 1.0 / math.sqrt(D)),
                'bo': nrm((1, D), 0.02, jnp.float32)}

    def cross_attn():
        return {'wq': nrm((D, D), 1.0 / math.sqrt(D)),
                'bq': nrm((1, D), 0.02, jnp.float32),
                'wkv': nrm((D, 2 * D), 1.0 / math.sqrt(D)),
                'bkv': nrm((1, 2 * D), 0.02, jnp.float32),
                'wo': nrm((D, D), 1.0 / math.sqrt(D)),
                'bo': nrm((1, D), 0.02, jnp.float32)}

    params = {
        'enc_emb_conv': nrm((3 * enc_in, D), 1.0 / math.sqrt(3 * enc_in)),
        'dec_emb_conv': nrm((3 * dec_in, D), 1.0 / math.sqrt(3 * dec_in)),
        'enc_layers': [{'attn': self_attn(),
                        'conv1': nrm((D, F), 1.0 / math.sqrt(D)),
                        'conv2': nrm((F, D), 1.0 / math.sqrt(F))}
                       for _ in range(cfg['e_layers'])],
        'enc_norm_g': jnp.ones((1, D), jnp.float32),
        'enc_norm_b': jnp.zeros((1, D), jnp.float32),
        'dec_layers': [{'self_attn': self_attn(), 'cross_attn': cross_attn(),
                        'conv1': nrm((D, F), 1.0 / math.sqrt(D)),
                        'conv2': nrm((F, D), 1.0 / math.sqrt(F)),
                        'trend_proj': nrm((3 * D, c_out), 1.0 / math.sqrt(3 * D))}
                       for _ in range(cfg['d_layers'])],
        'dec_norm_g': jnp.ones((1, D), jnp.float32),
        'dec_norm_b': jnp.zeros((1, D), jnp.float32),
        'out_proj': {'w': nrm((D, c_out), 1.0 / math.sqrt(D)),
                     'b': nrm((1, c_out), 0.02, jnp.float32)},
        # fixed sinusoidal temporal embedding tables (embed='fixed', freq='h')
        'temporal_tables': {'month': fixed_embedding_table(13, D),
                            'day': fixed_embedding_table(32, D),
                            'weekday': fixed_embedding_table(7, D),
                            'hour': fixed_embedding_table(24, D)},
    }
    return params


# ------------------------------------- main -------------------------------------

if __name__ == "__main__":
    cfg = dict(enc_in=4, dec_in=4, c_out=4, seq_len=16, label_len=8, pred_len=8,
               factor=5, d_model=32, n_heads=4, e_layers=2, d_layers=1, d_ff=32,
               moving_avg=5)

    key = jax.random.PRNGKey(0)
    kp, k1, k2, k3, k4 = jax.random.split(key, 5)
    params = init_params(kp, cfg)

    B = 2
    dec_len = cfg['label_len'] + cfg['pred_len']
    x_enc = jax.random.normal(k1, (B, cfg['seq_len'], cfg['enc_in']), jnp.float32)
    x_mark_enc = jax.random.randint(k2, (B, cfg['seq_len'], 4), 0, 7)   # [month,day,weekday,hour]
    x_dec = jax.random.normal(k3, (B, dec_len, cfg['dec_in']), jnp.float32)
    x_mark_dec = jax.random.randint(k4, (B, dec_len, 4), 0, 7)

    fwd = jax.jit(lambda p, a, b, c, d: autoformer_forward(p, cfg, a, b, c, d))
    out = jax.block_until_ready(fwd(params, x_enc, x_mark_enc, x_dec, x_mark_dec))
    assert out.shape == (B, cfg['pred_len'], cfg['c_out'])
    assert bool(jnp.all(jnp.isfinite(out)))
    print("KERNEL_OK")
</pallas_src>

<mosaic_0001>
module attributes {stable_mosaic.version = 11 : i64} {
  func.func @kernel(%arg0: i32, %arg1: memref<1x16x4xf32, #tpu.memory_space<vmem>>, %arg2: memref<1x16x32xf32, #tpu.memory_space<vmem>>, %arg3: memref<12x32xbf16, #tpu.memory_space<vmem>>, %arg4: memref<1x16x32xf32, #tpu.memory_space<vmem>>) attributes {dimension_semantics = [#tpu.dimension_semantics<parallel>], iteration_bounds = array<i64: 2>, scalar_prefetch = 0 : i64, scratch_operands = 0 : i64, tpu.core_type = #tpu.core_type<tc>, window_params = [{transform_indices = @transform_0, window_bounds = array<i64: 1, 16, 4>}, {transform_indices = @transform_1, window_bounds = array<i64: 1, 16, 32>}, {pipeline_mode = #tpu.pipeline_mode<synchronous>, transform_indices = @transform_2, window_bounds = array<i64: 12, 32>}, {transform_indices = @transform_3, window_bounds = array<i64: 1, 16, 32>}]} {
    %c0 = arith.constant 0 : index
    %c0_0 = arith.constant 0 : index
    %c0_1 = arith.constant 0 : index
    %0 = vector.load %arg1[%c0, %c0_0, %c0_1] : memref<1x16x4xf32, #tpu.memory_space<vmem>>, vector<1x16x4xf32>
    %1 = vector.shape_cast %0 : vector<1x16x4xf32> to vector<16x4xf32>
    %c0_2 = arith.constant 0 : index
    %c0_3 = arith.constant 0 : index
    %2 = vector.load %arg3[%c0_2, %c0_3] : memref<12x32xbf16, #tpu.memory_space<vmem>>, vector<12x32xbf16>
    %3 = vector.extract_strided_slice %1 {offsets = [15, 0], sizes = [1, 4], strides = [1, 1]} : vector<16x4xf32> to vector<1x4xf32>
    %4 = vector.extract_strided_slice %1 {offsets = [0, 0], sizes = [15, 4], strides = [1, 1]} : vector<16x4xf32> to vector<15x4xf32>
    %5 = tpu.concatenate %3, %4 in 0 : vector<1x4xf32>, vector<15x4xf32> -> vector<16x4xf32>
    %6 = vector.extract_strided_slice %1 {offsets = [1, 0], sizes = [15, 4], strides = [1, 1]} : vector<16x4xf32> to vector<15x4xf32>
    %7 = vector.extract_strided_slice %1 {offsets = [0, 0], sizes = [1, 4], strides = [1, 1]} : vector<16x4xf32> to vector<1x4xf32>
    %8 = tpu.concatenate %6, %7 in 0 : vector<15x4xf32>, vector<1x4xf32> -> vector<16x4xf32>
    %9 = tpu.concatenate %5, %1, %8 in 1 : vector<16x4xf32>, vector<16x4xf32>, vector<16x4xf32> -> vector<16x12xf32>
    %10 = arith.truncf %9 : vector<16x12xf32> to vector<16x12xbf16>
    %cst = arith.constant dense<0.000000e+00> : vector<16x32xf32>
    %11 = tpu.matmul %10, %2, %cst {dimension_numbers = #tpu.dot_dimension_numbers<[1], [0], [0], [1], [0, 0, 1, 1], [], []>} : vector<16x12xbf16>, vector<12x32xbf16>, vector<16x32xf32> -> vector<16x32xf32>
    %c0_4 = arith.constant 0 : index
    %c0_5 = arith.constant 0 : index
    %c0_6 = arith.constant 0 : index
    %12 = vector.load %arg2[%c0_4, %c0_5, %c0_6] : memref<1x16x32xf32, #tpu.memory_space<vmem>>, vector<1x16x32xf32>
    %13 = vector.shape_cast %12 : vector<1x16x32xf32> to vector<16x32xf32>
    %14 = arith.addf %11, %13 : vector<16x32xf32>
    %c0_7 = arith.constant 0 : index
    %c0_8 = arith.constant 0 : index
    %c0_9 = arith.constant 0 : index
    %15 = vector.load %arg4[%c0_7, %c0_8, %c0_9] : memref<1x16x32xf32, #tpu.memory_space<vmem>>, vector<1x16x32xf32>
    %16 = vector.shape_cast %15 : vector<1x16x32xf32> to vector<16x32xf32>
    %17 = vector.shape_cast %14 : vector<16x32xf32> to vector<1x16x32xf32>
    tpu.vector_store %arg4[%c0_7, %c0_8, %c0_9], %17 {strides = array<i32>} : memref<1x16x32xf32, #tpu.memory_space<vmem>>, vector<1x16x32xf32>,
    return
  }
  func.func @transform_0(%arg0: i32) -> (i32, i32, i32) {
    %c0_i32 = arith.constant 0 : i32
    %c0_i32_0 = arith.constant 0 : i32
    %c0_i32_1 = arith.constant 0 : i32
    return %arg0, %c0_i32, %c0_i32_0 : i32, i32, i32
  }
  func.func @transform_1(%arg0: i32) -> (i32, i32, i32) {
    %c0_i32 = arith.constant 0 : i32
    %c0_i32_0 = arith.constant 0 : i32
    %c0_i32_1 = arith.constant 0 : i32
    return %arg0, %c0_i32, %c0_i32_0 : i32, i32, i32
  }
  func.func @transform_2(%arg0: i32) -> (i32, i32) {
    %c0_i32 = arith.constant 0 : i32
    %c0_i32_0 = arith.constant 0 : i32
    %c0_i32_1 = arith.constant 0 : i32
    return %c0_i32, %c0_i32_0 : i32, i32
  }
  func.func @transform_3(%arg0: i32) -> (i32, i32, i32) {
    %c0_i32 = arith.constant 0 : i32
    %c0_i32_0 = arith.constant 0 : i32
    %c0_i32_1 = arith.constant 0 : i32
    return %arg0, %c0_i32, %c0_i32_0 : i32, i32, i32
  }
}

module attributes {stable_mosaic.version = 11 : i64} {
  func.func @kernel(%arg0: i32, %arg1: memref<1x16x32xf32, #tpu.memory_space<vmem>>, %arg2: memref<32x96xbf16, #tpu.memory_space<vmem>>, %arg3: memref<1x96xf32, #tpu.memory_space<vmem>>, %arg4: memref<32x32xbf16, #tpu.memory_space<vmem>>, %arg5: memref<1x32xf32, #tpu.memory_space<vmem>>, %arg6: memref<32x32xbf16, #tpu.memory_space<vmem>>, %arg7: memref<32x32xbf16, #tpu.memory_space<vmem>>, %arg8: memref<16x16xf32, #tpu.memory_space<vmem>>, %arg9: memref<16x16xf32, #tpu.memory_space<vmem>>, %arg10: memref<1x16x32xf32, #tpu.memory_space<vmem>>) attributes {dimension_semantics = [#tpu.dimension_semantics<parallel>], iteration_bounds = array<i64: 2>, scalar_prefetch = 0 : i64, scratch_operands = 0 : i64, tpu.core_type = #tpu.core_type<tc>, window_params = [{transform_indices = @transform_0, window_bounds = array<i64: 1, 16, 32>}, {pipeline_mode = #tpu.pipeline_mode<synchronous>, transform_indices = @transform_1, window_bounds = array<i64: 32, 96>}, {pipeline_mode = #tpu.pipeline_mode<synchronous>, transform_indices = @transform_2, window_bounds = array<i64: 1, 96>}, {pipeline_mode = #tpu.pipeline_mode<synchronous>, transform_indices = @transform_3, window_bounds = array<i64: 32, 32>}, {pipeline_mode = #tpu.pipeline_mode<synchronous>, transform_indices = @transform_4, window_bounds = array<i64: 1, 32>}, {pipeline_mode = #tpu.pipeline_mode<synchronous>, transform_indices = @transform_5, window_bounds = array<i64: 32, 32>}, {pipeline_mode = #tpu.pipeline_mode<synchronous>, transform_indices = @transform_6, window_bounds = array<i64: 32, 32>}, {pipeline_mode = #tpu.pipeline_mode<synchronous>, transform_indices = @transform_7, window_bounds = array<i64: 16, 16>}, {pipeline_mode = #tpu.pipeline_mode<synchronous>, transform_indices = @transform_8, window_bounds = array<i64: 16, 16>}, {transform_indices = @transform_9, window_bounds = array<i64: 1, 16, 32>}]} {
    %c0 = arith.constant 0 : index
    %c0_0 = arith.constant 0 : index
    %c0_1 = arith.constant 0 : index
    %0 = vector.load %arg1[%c0, %c0_0, %c0_1] : memref<1x16x32xf32, #tpu.memory_space<vmem>>, vector<1x16x32xf32>
    %1 = vector.shape_cast %0 : vector<1x16x32xf32> to vector<16x32xf32>
    %c0_2 = arith.constant 0 : index
    %c0_3 = arith.constant 0 : index
    %2 = vector.load %arg2[%c0_2, %c0_3] : memref<32x96xbf16, #tpu.memory_space<vmem>>, vector<32x96xbf16>
    %3 = arith.truncf %1 : vector<16x32xf32> to vector<16x32xbf16>
    %cst = arith.constant dense<0.000000e+00> : vector<16x96xf32>
    %4 = tpu.matmul %3, %2, %cst {dimension_numbers = #tpu.dot_dimension_numbers<[1], [0], [0], [1], [0, 0, 1, 1], [], []>} : vector<16x32xbf16>, vector<32x96xbf16>, vector<16x96xf32> -> vector<16x96xf32>
    %c0_4 = arith.constant 0 : index
    %c0_5 = arith.constant 0 : index
    %5 = vector.load %arg3[%c0_4, %c0_5] : memref<1x96xf32, #tpu.memory_space<vmem>>, vector<1x96xf32>
    %6 = vector.broadcast %5 : vector<1x96xf32> to vector<16x96xf32>
    %7 = arith.addf %4, %6 : vector<16x96xf32>
    %8 = vector.extract_strided_slice %7 {offsets = [0, 0], sizes = [16, 32], strides = [1, 1]} : vector<16x96xf32> to vector<16x32xf32>
    %9 = vector.extract_strided_slice %7 {offsets = [0, 32], sizes = [16, 32], strides = [1, 1]} : vector<16x96xf32> to vector<16x32xf32>
    %10 = vector.extract_strided_slice %7 {offsets = [0, 64], sizes = [16, 32], strides = [1, 1]} : vector<16x96xf32> to vector<16x32xf32>
    %c0_6 = arith.constant 0 : index
    %c0_7 = arith.constant 0 : index
    %11 = vector.load %arg8[%c0_6, %c0_7] : memref<16x16xf32, #tpu.memory_space<vmem>>, vector<16x16xf32>
    %c0_8 = arith.constant 0 : index
    %c0_9 = arith.constant 0 : index
    %12 = vector.load %arg9[%c0_8, %c0_9] : memref<16x16xf32, #tpu.memory_space<vmem>>, vector<16x16xf32>
    %c0_10 = arith.constant 0 : index
    %c0_11 = arith.constant 0 : index
    %13 = vector.load %arg4[%c0_10, %c0_11] : memref<32x32xbf16, #tpu.memory_space<vmem>>, vector<32x32xbf16>
    %c0_12 = arith.constant 0 : index
    %c0_13 = arith.constant 0 : index
    %14 = vector.load %arg5[%c0_12, %c0_13] : memref<1x32xf32, #tpu.memory_space<vmem>>, vector<1x32xf32>
    %cst_14 = arith.constant dense<0.000000e+00> : vector<16x32xf32>
    %15 = tpu.matmul %11, %8, %cst_14 {dimension_numbers = #tpu.dot_dimension_numbers<[1], [0], [0], [1], [0, 0, 1, 1], [], []>} : vector<16x16xf32>, vector<16x32xf32>, vector<16x32xf32> -> vector<16x32xf32>
    %cst_15 = arith.constant dense<0.000000e+00> : vector<16x32xf32>
    %16 = tpu.matmul %12, %8, %cst_15 {dimension_numbers = #tpu.dot_dimension_numbers<[1], [0], [0], [1], [0, 0, 1, 1], [], []>} : vector<16x16xf32>, vector<16x32xf32>, vector<16x32xf32> -> vector<16x32xf32>
    %cst_16 = arith.constant dense<0.000000e+00> : vector<16x32xf32>
    %17 = tpu.matmul %11, %9, %cst_16 {dimension_numbers = #tpu.dot_dimension_numbers<[1], [0], [0], [1], [0, 0, 1, 1], [], []>} : vector<16x16xf32>, vector<16x32xf32>, vector<16x32xf32> -> vector<16x32xf32>
    %cst_17 = arith.constant dense<0.000000e+00> : vector<16x32xf32>
    %18 = tpu.matmul %12, %9, %cst_17 {dimension_numbers = #tpu.dot_dimension_numbers<[1], [0], [0], [1], [0, 0, 1, 1], [], []>} : vector<16x16xf32>, vector<16x32xf32>, vector<16x32xf32> -> vector<16x32xf32>
    %19 = arith.mulf %15, %17 : vector<16x32xf32>
    %20 = arith.mulf %16, %18 : vector<16x32xf32>
    %21 = arith.addf %19, %20 : vector<16x32xf32>
    %cst_18 = arith.constant dense<0.000000e+00> : vector<16xf32>
    %22 = vector.multi_reduction <add>, %21, %cst_18 [1] : vector<16x32xf32> to vector<16xf32>
    %23 = vector.shape_cast %22 : vector<16xf32> to vector<16x1xf32>
    %24 = arith.mulf %15, %18 : vector<16x32xf32>
    %25 = arith.mulf %16, %17 : vector<16x32xf32>
    %26 = arith.subf %24, %25 : vector<16x32xf32>
    %cst_19 = arith.constant dense<0.000000e+00> : vector<16xf32>
    %27 = vector.multi_reduction <add>, %26, %cst_19 [1] : vector<16x32xf32> to vector<16xf32>
    %28 = vector.shape_cast %27 : vector<16xf32> to vector<16x1xf32>
    %29 = vector.broadcast %23 : vector<16x1xf32> to vector<16x16xf32>
    %30 = arith.mulf %29, %11 : vector<16x16xf32>
    %31 = vector.broadcast %28 : vector<16x1xf32> to vector<16x16xf32>
    %32 = arith.mulf %31, %12 : vector<16x16xf32>
    %33 = arith.subf %30, %32 : vector<16x16xf32>
    %cst_20 = arith.constant dense<0.000000e+00> : vector<16xf32>
    %34 = vector.multi_reduction <add>, %33, %cst_20 [0] : vector<16x16xf32> to vector<16xf32>
    %35 = vector.shape_cast %34 : vector<16xf32> to vector<1x16xf32>
    %cst_21 = arith.constant 6.250000e-02 : f32
    %36 = vector.broadcast %cst_21 : f32 to vector<1x16xf32>
    %37 = arith.mulf %35, %36 : vector<1x16xf32>
    %cst_22 = arith.constant 3.125000e-02 : f32
    %38 = vector.broadcast %cst_22 : f32 to vector<1x16xf32>
    %39 = arith.mulf %37, %38 : vector<1x16xf32>
    %40 = tpu.iota {dimensions = array<i32: 1>} : vector<1x16xi32>
    %41 = tpu.iota {dimensions = array<i32: 0>} : vector<16x16xi32>
    %42 = tpu.iota {dimensions = array<i32: 1>} : vector<16x16xi32>
    %43 = arith.subi %42, %41 : vector<16x16xi32>
    %c0_i32 = arith.constant 0 : i32
    %44 = vector.broadcast %c0_i32 : i32 to vector<16x16xi32>
    %45 = arith.cmpi sge, %43, %44 : vector<16x16xi32>
    %c16_i32 = arith.constant 16 : i32
    %46 = vector.broadcast %c16_i32 : i32 to vector<16x16xi32>
    %47 = arith.addi %43, %46 : vector<16x16xi32>
    %48 = arith.select %45, %43, %47 : vector<16x16xi1>, vector<16x16xi32>
    %cst_23 = arith.constant 0.000000e+00 : f32
    %49 = vector.broadcast %cst_23 : f32 to vector<1x16xf32>
    %cst_24 = arith.constant dense<0xFF800000> : vector<1xf32>
    %50 = vector.multi_reduction <maximumf>, %39, %cst_24 [1] : vector<1x16xf32> to vector<1xf32>
    %51 = vector.shape_cast %50 : vector<1xf32> to vector<1x1xf32>
    %52 = vector.broadcast %51 : vector<1x1xf32> to vector<1x16xf32>
    %53 = arith.cmpf oeq, %39, %52 : vector<1x16xf32>
    %c16_i32_25 = arith.constant 16 : i32
    %54 = vector.broadcast %c16_i32_25 : i32 to vector<1x16xi32>
    %55 = arith.select %53, %40, %54 : vector<1x16xi1>, vector<1x16xi32>
    %cst_26 = arith.constant dense<2147483647> : vector<1xi32>
    %56 = vector.multi_reduction <minsi>, %55, %cst_26 [1] : vector<1x16xi32> to vector<1xi32>
    %57 = vector.shape_cast %56 : vector<1xi32> to vector<1x1xi32>
    %58 = vector.broadcast %57 : vector<1x1xi32> to vector<1x16xi32>
    %59 = arith.cmpi eq, %40, %58 : vector<1x16xi32>
    %cst_27 = arith.constant 1.000000e+00 : f32
    %60 = vector.broadcast %cst_27 : f32 to vector<1x16xf32>
    %61 = arith.select %59, %60, %49 : vector<1x16xi1>, vector<1x16xf32>
    %cst_28 = arith.constant 0xFF800000 : f32
    %62 = vector.broadcast %cst_28 : f32 to vector<1x16xf32>
    %63 = arith.select %59, %62, %39 : vector<1x16xi1>, vector<1x16xf32>
    %cst_29 = arith.constant dense<0xFF800000> : vector<1xf32>
    %64 = vector.multi_reduction <maximumf>, %63, %cst_29 [1] : vector<1x16xf32> to vector<1xf32>
    %65 = vector.shape_cast %64 : vector<1xf32> to vector<1x1xf32>
    %66 = vector.broadcast %65 : vector<1x1xf32> to vector<1x16xf32>
    %67 = arith.cmpf oeq, %63, %66 : vector<1x16xf32>
    %c16_i32_30 = arith.constant 16 : i32
    %68 = vector.broadcast %c16_i32_30 : i32 to vector<1x16xi32>
    %69 = arith.select %67, %40, %68 : vector<1x16xi1>, vector<1x16xi32>
    %cst_31 = arith.constant dense<2147483647> : vector<1xi32>
    %70 = vector.multi_reduction <minsi>, %69, %cst_31 [1] : vector<1x16xi32> to vector<1xi32>
    %71 = vector.shape_cast %70 : vector<1xi32> to vector<1x1xi32>
    %72 = vector.broadcast %71 : vector<1x1xi32> to vector<1x16xi32>
    %73 = arith.cmpi eq, %40, %72 : vector<1x16xi32>
    %cst_32 = arith.constant 1.000000e+00 : f32
    %74 = vector.broadcast %cst_32 : f32 to vector<1x16xf32>
    %75 = arith.select %73, %74, %61 : vector<1x16xi1>, vector<1x16xf32>
    %cst_33 = arith.constant 0xFF800000 : f32
    %76 = vector.broadcast %cst_33 : f32 to vector<1x16xf32>
    %77 = arith.select %73, %76, %63 : vector<1x16xi1>, vector<1x16xf32>
    %cst_34 = arith.constant dense<0xFF800000> : vector<1xf32>
    %78 = vector.multi_reduction <maximumf>, %77, %cst_34 [1] : vector<1x16xf32> to vector<1xf32>
    %79 = vector.shape_cast %78 : vector<1xf32> to vector<1x1xf32>
    %80 = vector.broadcast %79 : vector<1x1xf32> to vector<1x16xf32>
    %81 = arith.cmpf oeq, %77, %80 : vector<1x16xf32>
    %c16_i32_35 = arith.constant 16 : i32
    %82 = vector.broadcast %c16_i32_35 : i32 to vector<1x16xi32>
    %83 = arith.select %81, %40, %82 : vector<1x16xi1>, vector<1x16xi32>
    %cst_36 = arith.constant dense<2147483647> : vector<1xi32>
    %84 = vector.multi_reduction <minsi>, %83, %cst_36 [1] : vector<1x16xi32> to vector<1xi32>
    %85 = vector.shape_cast %84 : vector<1xi32> to vector<1x1xi32>
    %86 = vector.broadcast %85 : vector<1x1xi32> to vector<1x16xi32>
    %87 = arith.cmpi eq, %40, %86 : vector<1x16xi32>
    %cst_37 = arith.constant 1.000000e+00 : f32
    %88 = vector.broadcast %cst_37 : f32 to vector<1x16xf32>
    %89 = arith.select %87, %88, %75 : vector<1x16xi1>, vector<1x16xf32>
    %cst_38 = arith.constant 0xFF800000 : f32
    %90 = vector.broadcast %cst_38 : f32 to vector<1x16xf32>
    %91 = arith.select %87, %90, %77 : vector<1x16xi1>, vector<1x16xf32>
    %cst_39 = arith.constant dense<0xFF800000> : vector<1xf32>
    %92 = vector.multi_reduction <maximumf>, %91, %cst_39 [1] : vector<1x16xf32> to vector<1xf32>
    %93 = vector.shape_cast %92 : vector<1xf32> to vector<1x1xf32>
    %94 = vector.broadcast %93 : vector<1x1xf32> to vector<1x16xf32>
    %95 = arith.cmpf oeq, %91, %94 : vector<1x16xf32>
    %c16_i32_40 = arith.constant 16 : i32
    %96 = vector.broadcast %c16_i32_40 : i32 to vector<1x16xi32>
    %97 = arith.select %95, %40, %96 : vector<1x16xi1>, vector<1x16xi32>
    %cst_41 = arith.constant dense<2147483647> : vector<1xi32>
    %98 = vector.multi_reduction <minsi>, %97, %cst_41 [1] : vector<1x16xi32> to vector<1xi32>
    %99 = vector.shape_cast %98 : vector<1xi32> to vector<1x1xi32>
    %100 = vector.broadcast %99 : vector<1x1xi32> to vector<1x16xi32>
    %101 = arith.cmpi eq, %40, %100 : vector<1x16xi32>
    %cst_42 = arith.constant 1.000000e+00 : f32
    %102 = vector.broadcast %cst_42 : f32 to vector<1x16xf32>
    %103 = arith.select %101, %102, %89 : vector<1x16xi1>, vector<1x16xf32>
    %cst_43 = arith.constant 0xFF800000 : f32
    %104 = vector.broadcast %cst_43 : f32 to vector<1x16xf32>
    %105 = arith.select %101, %104, %91 : vector<1x16xi1>, vector<1x16xf32>
    %cst_44 = arith.constant dense<0xFF800000> : vector<1xf32>
    %106 = vector.multi_reduction <maximumf>, %105, %cst_44 [1] : vector<1x16xf32> to vector<1xf32>
    %107 = vector.shape_cast %106 : vector<1xf32> to vector<1x1xf32>
    %108 = vector.broadcast %107 : vector<1x1xf32> to vector<1x16xf32>
    %109 = arith.cmpf oeq, %105, %108 : vector<1x16xf32>
    %c16_i32_45 = arith.constant 16 : i32
    %110 = vector.broadcast %c16_i32_45 : i32 to vector<1x16xi32>
    %111 = arith.select %109, %40, %110 : vector<1x16xi1>, vector<1x16xi32>
    %cst_46 = arith.constant dense<2147483647> : vector<1xi32>
    %112 = vector.multi_reduction <minsi>, %111, %cst_46 [1] : vector<1x16xi32> to vector<1xi32>
    %113 = vector.shape_cast %112 : vector<1xi32> to vector<1x1xi32>
    %114 = vector.broadcast %113 : vector<1x1xi32> to vector<1x16xi32>
    %115 = arith.cmpi eq, %40, %114 : vector<1x16xi32>
    %cst_47 = arith.constant 1.000000e+00 : f32
    %116 = vector.broadcast %cst_47 : f32 to vector<1x16xf32>
    %117 = arith.select %115, %116, %103 : vector<1x16xi1>, vector<1x16xf32>
    %cst_48 = arith.constant 0xFF800000 : f32
    %118 = vector.broadcast %cst_48 : f32 to vector<1x16xf32>
    %119 = arith.select %115, %118, %105 : vector<1x16xi1>, vector<1x16xf32>
    %cst_49 = arith.constant dense<0xFF800000> : vector<1xf32>
    %120 = vector.multi_reduction <maximumf>, %119, %cst_49 [1] : vector<1x16xf32> to vector<1xf32>
    %121 = vector.shape_cast %120 : vector<1xf32> to vector<1x1xf32>
    %122 = vector.broadcast %121 : vector<1x1xf32> to vector<1x16xf32>
    %123 = arith.cmpf oeq, %119, %122 : vector<1x16xf32>
    %c16_i32_50 = arith.constant 16 : i32
    %124 = vector.broadcast %c16_i32_50 : i32 to vector<1x16xi32>
    %125 = arith.select %123, %40, %124 : vector<1x16xi1>, vector<1x16xi32>
    %cst_51 = arith.constant dense<2147483647> : vector<1xi32>
    %126 = vector.multi_reduction <minsi>, %125, %cst_51 [1] : vector<1x16xi32> to vector<1xi32>
    %127 = vector.shape_cast %126 : vector<1xi32> to vector<1x1xi32>
    %128 = vector.broadcast %127 : vector<1x1xi32> to vector<1x16xi32>
    %129 = arith.cmpi eq, %40, %128 : vector<1x16xi32>
    %cst_52 = arith.constant 1.000000e+00 : f32
    %130 = vector.broadcast %cst_52 : f32 to vector<1x16xf32>
    %131 = arith.select %129, %130, %117 : vector<1x16xi1>, vector<1x16xf32>
    %cst_53 = arith.constant 0xFF800000 : f32
    %132 = vector.broadcast %cst_53 : f32 to vector<1x16xf32>
    %133 = arith.select %129, %132, %119 : vector<1x16xi1>, vector<1x16xf32>
    %cst_54 = arith.constant dense<0xFF800000> : vector<1xf32>
    %134 = vector.multi_reduction <maximumf>, %133, %cst_54 [1] : vector<1x16xf32> to vector<1xf32>
    %135 = vector.shape_cast %134 : vector<1xf32> to vector<1x1xf32>
    %136 = vector.broadcast %135 : vector<1x1xf32> to vector<1x16xf32>
    %137 = arith.cmpf oeq, %133, %136 : vector<1x16xf32>
    %c16_i32_55 = arith.constant 16 : i32
    %138 = vector.broadcast %c16_i32_55 : i32 to vector<1x16xi32>
    %139 = arith.select %137, %40, %138 : vector<1x16xi1>, vector<1x16xi32>
    %cst_56 = arith.constant dense<2147483647> : vector<1xi32>
    %140 = vector.multi_reduction <minsi>, %139, %cst_56 [1] : vector<1x16xi32> to vector<1xi32>
    %141 = vector.shape_cast %140 : vector<1xi32> to vector<1x1xi32>
    %142 = vector.broadcast %141 : vector<1x1xi32> to vector<1x16xi32>
    %143 = arith.cmpi eq, %40, %142 : vector<1x16xi32>
    %cst_57 = arith.constant 1.000000e+00 : f32
    %144 = vector.broadcast %cst_57 : f32 to vector<1x16xf32>
    %145 = arith.select %143, %144, %131 : vector<1x16xi1>, vector<1x16xf32>
    %cst_58 = arith.constant 0xFF800000 : f32
    %146 = vector.broadcast %cst_58 : f32 to vector<1x16xf32>
    %147 = arith.select %143, %146, %133 : vector<1x16xi1>, vector<1x16xf32>
    %cst_59 = arith.constant dense<0xFF800000> : vector<1xf32>
    %148 = vector.multi_reduction <maximumf>, %147, %cst_59 [1] : vector<1x16xf32> to vector<1xf32>
    %149 = vector.shape_cast %148 : vector<1xf32> to vector<1x1xf32>
    %150 = vector.broadcast %149 : vector<1x1xf32> to vector<1x16xf32>
    %151 = arith.cmpf oeq, %147, %150 : vector<1x16xf32>
    %c16_i32_60 = arith.constant 16 : i32
    %152 = vector.broadcast %c16_i32_60 : i32 to vector<1x16xi32>
    %153 = arith.select %151, %40, %152 : vector<1x16xi1>, vector<1x16xi32>
    %cst_61 = arith.constant dense<2147483647> : vector<1xi32>
    %154 = vector.multi_reduction <minsi>, %153, %cst_61 [1] : vector<1x16xi32> to vector<1xi32>
    %155 = vector.shape_cast %154 : vector<1xi32> to vector<1x1xi32>
    %156 = vector.broadcast %155 : vector<1x1xi32> to vector<1x16xi32>
    %157 = arith.cmpi eq, %40, %156 : vector<1x16xi32>
    %cst_62 = arith.constant 1.000000e+00 : f32
    %158 = vector.broadcast %cst_62 : f32 to vector<1x16xf32>
    %159 = arith.select %157, %158, %145 : vector<1x16xi1>, vector<1x16xf32>
    %cst_63 = arith.constant 0xFF800000 : f32
    %160 = vector.broadcast %cst_63 : f32 to vector<1x16xf32>
    %161 = arith.select %157, %160, %147 : vector<1x16xi1>, vector<1x16xf32>
    %cst_64 = arith.constant dense<0xFF800000> : vector<1xf32>
    %162 = vector.multi_reduction <maximumf>, %161, %cst_64 [1] : vector<1x16xf32> to vector<1xf32>
    %163 = vector.shape_cast %162 : vector<1xf32> to vector<1x1xf32>
    %164 = vector.broadcast %163 : vector<1x1xf32> to vector<1x16xf32>
    %165 = arith.cmpf oeq, %161, %164 : vector<1x16xf32>
    %c16_i32_65 = arith.constant 16 : i32
    %166 = vector.broadcast %c16_i32_65 : i32 to vector<1x16xi32>
    %167 = arith.select %165, %40, %166 : vector<1x16xi1>, vector<1x16xi32>
    %cst_66 = arith.constant dense<2147483647> : vector<1xi32>
    %168 = vector.multi_reduction <minsi>, %167, %cst_66 [1] : vector<1x16xi32> to vector<1xi32>
    %169 = vector.shape_cast %168 : vector<1xi32> to vector<1x1xi32>
    %170 = vector.broadcast %169 : vector<1x1xi32> to vector<1x16xi32>
    %171 = arith.cmpi eq, %40, %170 : vector<1x16xi32>
    %cst_67 = arith.constant 1.000000e+00 : f32
    %172 = vector.broadcast %cst_67 : f32 to vector<1x16xf32>
    %173 = arith.select %171, %172, %159 : vector<1x16xi1>, vector<1x16xf32>
    %cst_68 = arith.constant 0xFF800000 : f32
    %174 = vector.broadcast %cst_68 : f32 to vector<1x16xf32>
    %175 = arith.select %171, %174, %161 : vector<1x16xi1>, vector<1x16xf32>
    %cst_69 = arith.constant dense<0xFF800000> : vector<1xf32>
    %176 = vector.multi_reduction <maximumf>, %175, %cst_69 [1] : vector<1x16xf32> to vector<1xf32>
    %177 = vector.shape_cast %176 : vector<1xf32> to vector<1x1xf32>
    %178 = vector.broadcast %177 : vector<1x1xf32> to vector<1x16xf32>
    %179 = arith.cmpf oeq, %175, %178 : vector<1x16xf32>
    %c16_i32_70 = arith.constant 16 : i32
    %180 = vector.broadcast %c16_i32_70 : i32 to vector<1x16xi32>
    %181 = arith.select %179, %40, %180 : vector<1x16xi1>, vector<1x16xi32>
    %cst_71 = arith.constant dense<2147483647> : vector<1xi32>
    %182 = vector.multi_reduction <minsi>, %181, %cst_71 [1] : vector<1x16xi32> to vector<1xi32>
    %183 = vector.shape_cast %182 : vector<1xi32> to vector<1x1xi32>
    %184 = vector.broadcast %183 : vector<1x1xi32> to vector<1x16xi32>
    %185 = arith.cmpi eq, %40, %184 : vector<1x16xi32>
    %cst_72 = arith.constant 1.000000e+00 : f32
    %186 = vector.broadcast %cst_72 : f32 to vector<1x16xf32>
    %187 = arith.select %185, %186, %173 : vector<1x16xi1>, vector<1x16xf32>
    %cst_73 = arith.constant 0xFF800000 : f32
    %188 = vector.broadcast %cst_73 : f32 to vector<1x16xf32>
    %189 = arith.select %185, %188, %175 : vector<1x16xi1>, vector<1x16xf32>
    %cst_74 = arith.constant dense<0xFF800000> : vector<1xf32>
    %190 = vector.multi_reduction <maximumf>, %189, %cst_74 [1] : vector<1x16xf32> to vector<1xf32>
    %191 = vector.shape_cast %190 : vector<1xf32> to vector<1x1xf32>
    %192 = vector.broadcast %191 : vector<1x1xf32> to vector<1x16xf32>
    %193 = arith.cmpf oeq, %189, %192 : vector<1x16xf32>
    %c16_i32_75 = arith.constant 16 : i32
    %194 = vector.broadcast %c16_i32_75 : i32 to vector<1x16xi32>
    %195 = arith.select %193, %40, %194 : vector<1x16xi1>, vector<1x16xi32>
    %cst_76 = arith.constant dense<2147483647> : vector<1xi32>
    %196 = vector.multi_reduction <minsi>, %195, %cst_76 [1] : vector<1x16xi32> to vector<1xi32>
    %197 = vector.shape_cast %196 : vector<1xi32> to vector<1x1xi32>
    %198 = vector.broadcast %197 : vector<1x1xi32> to vector<1x16xi32>
    %199 = arith.cmpi eq, %40, %198 : vector<1x16xi32>
    %cst_77 = arith.constant 1.000000e+00 : f32
    %200 = vector.broadcast %cst_77 : f32 to vector<1x16xf32>
    %201 = arith.select %199, %200, %187 : vector<1x16xi1>, vector<1x16xf32>
    %cst_78 = arith.constant 0xFF800000 : f32
    %202 = vector.broadcast %cst_78 : f32 to vector<1x16xf32>
    %203 = arith.select %199, %202, %189 : vector<1x16xi1>, vector<1x16xf32>
    %cst_79 = arith.constant dense<0xFF800000> : vector<1xf32>
    %204 = vector.multi_reduction <maximumf>, %203, %cst_79 [1] : vector<1x16xf32> to vector<1xf32>
    %205 = vector.shape_cast %204 : vector<1xf32> to vector<1x1xf32>
    %206 = vector.broadcast %205 : vector<1x1xf32> to vector<1x16xf32>
    %207 = arith.cmpf oeq, %203, %206 : vector<1x16xf32>
    %c16_i32_80 = arith.constant 16 : i32
    %208 = vector.broadcast %c16_i32_80 : i32 to vector<1x16xi32>
    %209 = arith.select %207, %40, %208 : vector<1x16xi1>, vector<1x16xi32>
    %cst_81 = arith.constant dense<2147483647> : vector<1xi32>
    %210 = vector.multi_reduction <minsi>, %209, %cst_81 [1] : vector<1x16xi32> to vector<1xi32>
    %211 = vector.shape_cast %210 : vector<1xi32> to vector<1x1xi32>
    %212 = vector.broadcast %211 : vector<1x1xi32> to vector<1x16xi32>
    %213 = arith.cmpi eq, %40, %212 : vector<1x16xi32>
    %cst_82 = arith.constant 1.000000e+00 : f32
    %214 = vector.broadcast %cst_82 : f32 to vector<1x16xf32>
    %215 = arith.select %213, %214, %201 : vector<1x16xi1>, vector<1x16xf32>
    %cst_83 = arith.constant 0xFF800000 : f32
    %216 = vector.broadcast %cst_83 : f32 to vector<1x16xf32>
    %217 = arith.select %213, %216, %203 : vector<1x16xi1>, vector<1x16xf32>
    %cst_84 = arith.constant dense<0xFF800000> : vector<1xf32>
    %218 = vector.multi_reduction <maximumf>, %217, %cst_84 [1] : vector<1x16xf32> to vector<1xf32>
    %219 = vector.shape_cast %218 : vector<1xf32> to vector<1x1xf32>
    %220 = vector.broadcast %219 : vector<1x1xf32> to vector<1x16xf32>
    %221 = arith.cmpf oeq, %217, %220 : vector<1x16xf32>
    %c16_i32_85 = arith.constant 16 : i32
    %222 = vector.broadcast %c16_i32_85 : i32 to vector<1x16xi32>
    %223 = arith.select %221, %40, %222 : vector<1x16xi1>, vector<1x16xi32>
    %cst_86 = arith.constant dense<2147483647> : vector<1xi32>
    %224 = vector.multi_reduction <minsi>, %223, %cst_86 [1] : vector<1x16xi32> to vector<1xi32>
    %225 = vector.shape_cast %224 : vector<1xi32> to vector<1x1xi32>
    %226 = vector.broadcast %225 : vector<1x1xi32> to vector<1x16xi32>
    %227 = arith.cmpi eq, %40, %226 : vector<1x16xi32>
    %cst_87 = arith.constant 1.000000e+00 : f32
    %228 = vector.broadcast %cst_87 : f32 to vector<1x16xf32>
    %229 = arith.select %227, %228, %215 : vector<1x16xi1>, vector<1x16xf32>
    %230 = vector.broadcast %51 : vector<1x1xf32> to vector<1x16xf32>
    %231 = arith.subf %39, %230 : vector<1x16xf32>
    %232 = math.exp %231 : vector<1x16xf32>
    %233 = arith.mulf %232, %229 : vector<1x16xf32>
    %cst_88 = arith.constant dense<0.000000e+00> : vector<1xf32>
    %234 = vector.multi_reduction <add>, %233, %cst_88 [1] : vector<1x16xf32> to vector<1xf32>
    %235 = vector.shape_cast %234 : vector<1xf32> to vector<1x1xf32>
    %cst_89 = arith.constant 1.000000e+00 : f32
    %236 = vector.broadcast %cst_89 : f32 to vector<1x1xf32>
    %237 = arith.divf %236, %235 : vector<1x1xf32>
    %238 = vector.broadcast %237 : vector<1x1xf32> to vector<1x16xf32>
    %239 = arith.mulf %233, %238 : vector<1x16xf32>
    %cst_90 = arith.constant 0.000000e+00 : f32
    %240 = vector.broadcast %cst_90 : f32 to vector<16x16xf32>
    %241 = vector.broadcast %57 : vector<1x1xi32> to vector<1x16xi32>
    %242 = arith.cmpi eq, %40, %241 : vector<1x16xi32>
    %cst_91 = arith.constant 0.000000e+00 : f32
    %243 = vector.broadcast %cst_91 : f32 to vector<1x16xf32>
    %244 = arith.select %242, %239, %243 : vector<1x16xi1>, vector<1x16xf32>
    %cst_92 = arith.constant dense<0.000000e+00> : vector<1xf32>
    %245 = vector.multi_reduction <add>, %244, %cst_92 [1] : vector<1x16xf32> to vector<1xf32>
    %246 = vector.shape_cast %245 : vector<1xf32> to vector<1x1xf32>
    %247 = vector.broadcast %57 : vector<1x1xi32> to vector<16x16xi32>
    %248 = arith.cmpi eq, %48, %247 : vector<16x16xi32>
    %249 = arith.extui %248 : vector<16x16xi1> to vector<16x16xi32>
    %250 = arith.sitofp %249 : vector<16x16xi32> to vector<16x16xf32>
    %251 = vector.broadcast %246 : vector<1x1xf32> to vector<16x16xf32>
    %252 = arith.mulf %251, %250 : vector<16x16xf32>
    %253 = arith.addf %240, %252 : vector<16x16xf32>
    %254 = vector.broadcast %71 : vector<1x1xi32> to vector<1x16xi32>
    %255 = arith.cmpi eq, %40, %254 : vector<1x16xi32>
    %cst_93 = arith.constant 0.000000e+00 : f32
    %256 = vector.broadcast %cst_93 : f32 to vector<1x16xf32>
    %257 = arith.select %255, %239, %256 : vector<1x16xi1>, vector<1x16xf32>
    %cst_94 = arith.constant dense<0.000000e+00> : vector<1xf32>
    %258 = vector.multi_reduction <add>, %257, %cst_94 [1] : vector<1x16xf32> to vector<1xf32>
    %259 = vector.shape_cast %258 : vector<1xf32> to vector<1x1xf32>
    %260 = vector.broadcast %71 : vector<1x1xi32> to vector<16x16xi32>
    %261 = arith.cmpi eq, %48, %260 : vector<16x16xi32>
    %262 = arith.extui %261 : vector<16x16xi1> to vector<16x16xi32>
    %263 = arith.sitofp %262 : vector<16x16xi32> to vector<16x16xf32>
    %264 = vector.broadcast %259 : vector<1x1xf32> to vector<16x16xf32>
    %265 = arith.mulf %264, %263 : vector<16x16xf32>
    %266 = arith.addf %253, %265 : vector<16x16xf32>
    %267 = vector.broadcast %85 : vector<1x1xi32> to vector<1x16xi32>
    %268 = arith.cmpi eq, %40, %267 : vector<1x16xi32>
    %cst_95 = arith.constant 0.000000e+00 : f32
    %269 = vector.broadcast %cst_95 : f32 to vector<1x16xf32>
    %270 = arith.select %268, %239, %269 : vector<1x16xi1>, vector<1x16xf32>
    %cst_96 = arith.constant dense<0.000000e+00> : vector<1xf32>
    %271 = vector.multi_reduction <add>, %270, %cst_96 [1] : vector<1x16xf32> to vector<1xf32>
    %272 = vector.shape_cast %271 : vector<1xf32> to vector<1x1xf32>
    %273 = vector.broadcast %85 : vector<1x1xi32> to vector<16x16xi32>
    %274 = arith.cmpi eq, %48, %273 : vector<16x16xi32>
    %275 = arith.extui %274 : vector<16x16xi1> to vector<16x16xi32>
    %276 = arith.sitofp %275 : vector<16x16xi32> to vector<16x16xf32>
    %277 = vector.broadcast %272 : vector<1x1xf32> to vector<16x16xf32>
    %278 = arith.mulf %277, %276 : vector<16x16xf32>
    %279 = arith.addf %266, %278 : vector<16x16xf32>
    %280 = vector.broadcast %99 : vector<1x1xi32> to vector<1x16xi32>
    %281 = arith.cmpi eq, %40, %280 : vector<1x16xi32>
    %cst_97 = arith.constant 0.000000e+00 : f32
    %282 = vector.broadcast %cst_97 : f32 to vector<1x16xf32>
    %283 = arith.select %281, %239, %282 : vector<1x16xi1>, vector<1x16xf32>
    %cst_98 = arith.constant dense<0.000000e+00> : vector<1xf32>
    %284 = vector.multi_reduction <add>, %283, %cst_98 [1] : vector<1x16xf32> to vector<1xf32>
    %285 = vector.shape_cast %284 : vector<1xf32> to vector<1x1xf32>
    %286 = vector.broadcast %99 : vector<1x1xi32> to vector<16x16xi32>
    %287 = arith.cmpi eq, %48, %286 : vector<16x16xi32>
    %288 = arith.extui %287 : vector<16x16xi1> to vector<16x16xi32>
    %289 = arith.sitofp %288 : vector<16x16xi32> to vector<16x16xf32>
    %290 = vector.broadcast %285 : vector<1x1xf32> to vector<16x16xf32>
    %291 = arith.mulf %290, %289 : vector<16x16xf32>
    %292 = arith.addf %279, %291 : vector<16x16xf32>
    %293 = vector.broadcast %113 : vector<1x1xi32> to vector<1x16xi32>
    %294 = arith.cmpi eq, %40, %293 : vector<1x16xi32>
    %cst_99 = arith.constant 0.000000e+00 : f32
    %295 = vector.broadcast %cst_99 : f32 to vector<1x16xf32>
    %296 = arith.select %294, %239, %295 : vector<1x16xi1>, vector<1x16xf32>
    %cst_100 = arith.constant dense<0.000000e+00> : vector<1xf32>
    %297 = vector.multi_reduction <add>, %296, %cst_100 [1] : vector<1x16xf32> to vector<1xf32>
    %298 = vector.shape_cast %297 : vector<1xf32> to vector<1x1xf32>
    %299 = vector.broadcast %113 : vector<1x1xi32> to vector<16x16xi32>
    %300 = arith.cmpi eq, %48, %299 : vector<16x16xi32>
    %301 = arith.extui %300 : vector<16x16xi1> to vector<16x16xi32>
    %302 = arith.sitofp %301 : vector<16x16xi32> to vector<16x16xf32>
    %303 = vector.broadcast %298 : vector<1x1xf32> to vector<16x16xf32>
    %304 = arith.mulf %303, %302 : vector<16x16xf32>
    %305 = arith.addf %292, %304 : vector<16x16xf32>
    %306 = vector.broadcast %127 : vector<1x1xi32> to vector<1x16xi32>
    %307 = arith.cmpi eq, %40, %306 : vector<1x16xi32>
    %cst_101 = arith.constant 0.000000e+00 : f32
    %308 = vector.broadcast %cst_101 : f32 to vector<1x16xf32>
    %309 = arith.select %307, %239, %308 : vector<1x16xi1>, vector<1x16xf32>
    %cst_102 = arith.constant dense<0.000000e+00> : vector<1xf32>
    %310 = vector.multi_reduction <add>, %309, %cst_102 [1] : vector<1x16xf32> to vector<1xf32>
    %311 = vector.shape_cast %310 : vector<1xf32> to vector<1x1xf32>
    %312 = vector.broadcast %127 : vector<1x1xi32> to vector<16x16xi32>
    %313 = arith.cmpi eq, %48, %312 : vector<16x16xi32>
    %314 = arith.extui %313 : vector<16x16xi1> to vector<16x16xi32>
    %315 = arith.sitofp %314 : vector<16x16xi32> to vector<16x16xf32>
    %316 = vector.broadcast %311 : vector<1x1xf32> to vector<16x16xf32>
    %317 = arith.mulf %316, %315 : vector<16x16xf32>
    %318 = arith.addf %305, %317 : vector<16x16xf32>
    %319 = vector.broadcast %141 : vector<1x1xi32> to vector<1x16xi32>
    %320 = arith.cmpi eq, %40, %319 : vector<1x16xi32>
    %cst_103 = arith.constant 0.000000e+00 : f32
    %321 = vector.broadcast %cst_103 : f32 to vector<1x16xf32>
    %322 = arith.select %320, %239, %321 : vector<1x16xi1>, vector<1x16xf32>
    %cst_104 = arith.constant dense<0.000000e+00> : vector<1xf32>
    %323 = vector.multi_reduction <add>, %322, %cst_104 [1] : vector<1x16xf32> to vector<1xf32>
    %324 = vector.shape_cast %323 : vector<1xf32> to vector<1x1xf32>
    %325 = vector.broadcast %141 : vector<1x1xi32> to vector<16x16xi32>
    %326 = arith.cmpi eq, %48, %325 : vector<16x16xi32>
    %327 = arith.extui %326 : vector<16x16xi1> to vector<16x16xi32>
    %328 = arith.sitofp %327 : vector<16x16xi32> to vector<16x16xf32>
    %329 = vector.broadcast %324 : vector<1x1xf32> to vector<16x16xf32>
    %330 = arith.mulf %329, %328 : vector<16x16xf32>
    %331 = arith.addf %318, %330 : vector<16x16xf32>
    %332 = vector.broadcast %155 : vector<1x1xi32> to vector<1x16xi32>
    %333 = arith.cmpi eq, %40, %332 : vector<1x16xi32>
    %cst_105 = arith.constant 0.000000e+00 : f32
    %334 = vector.broadcast %cst_105 : f32 to vector<1x16xf32>
    %335 = arith.select %333, %239, %334 : vector<1x16xi1>, vector<1x16xf32>
    %cst_106 = arith.constant dense<0.000000e+00> : vector<1xf32>
    %336 = vector.multi_reduction <add>, %335, %cst_106 [1] : vector<1x16xf32> to vector<1xf32>
    %337 = vector.shape_cast %336 : vector<1xf32> to vector<1x1xf32>
    %338 = vector.broadcast %155 : vector<1x1xi32> to vector<16x16xi32>
    %339 = arith.cmpi eq, %48, %338 : vector<16x16xi32>
    %340 = arith.extui %339 : vector<16x16xi1> to vector<16x16xi32>
    %341 = arith.sitofp %340 : vector<16x16xi32> to vector<16x16xf32>
    %342 = vector.broadcast %337 : vector<1x1xf32> to vector<16x16xf32>
    %343 = arith.mulf %342, %341 : vector<16x16xf32>
    %344 = arith.addf %331, %343 : vector<16x16xf32>
    %345 = vector.broadcast %169 : vector<1x1xi32> to vector<1x16xi32>
    %346 = arith.cmpi eq, %40, %345 : vector<1x16xi32>
    %cst_107 = arith.constant 0.000000e+00 : f32
    %347 = vector.broadcast %cst_107 : f32 to vector<1x16xf32>
    %348 = arith.select %346, %239, %347 : vector<1x16xi1>, vector<1x16xf32>
    %cst_108 = arith.constant dense<0.000000e+00> : vector<1xf32>
    %349 = vector.multi_reduction <add>, %348, %cst_108 [1] : vector<1x16xf32> to vector<1xf32>
    %350 = vector.shape_cast %349 : vector<1xf32> to vector<1x1xf32>
    %351 = vector.broadcast %169 : vector<1x1xi32> to vector<16x16xi32>
    %352 = arith.cmpi eq, %48, %351 : vector<16x16xi32>
    %353 = arith.extui %352 : vector<16x16xi1> to vector<16x16xi32>
    %354 = arith.sitofp %353 : vector<16x16xi32> to vector<16x16xf32>
    %355 = vector.broadcast %350 : vector<1x1xf32> to vector<16x16xf32>
    %356 = arith.mulf %355, %354 : vector<16x16xf32>
    %357 = arith.addf %344, %356 : vector<16x16xf32>
    %358 = vector.broadcast %183 : vector<1x1xi32> to vector<1x16xi32>
    %359 = arith.cmpi eq, %40, %358 : vector<1x16xi32>
    %cst_109 = arith.constant 0.000000e+00 : f32
    %360 = vector.broadcast %cst_109 : f32 to vector<1x16xf32>
    %361 = arith.select %359, %239, %360 : vector<1x16xi1>, vector<1x16xf32>
    %cst_110 = arith.constant dense<0.000000e+00> : vector<1xf32>
    %362 = vector.multi_reduction <add>, %361, %cst_110 [1] : vector<1x16xf32> to vector<1xf32>
    %363 = vector.shape_cast %362 : vector<1xf32> to vector<1x1xf32>
    %364 = vector.broadcast %183 : vector<1x1xi32> to vector<16x16xi32>
    %365 = arith.cmpi eq, %48, %364 : vector<16x16xi32>
    %366 = arith.extui %365 : vector<16x16xi1> to vector<16x16xi32>
    %367 = arith.sitofp %366 : vector<16x16xi32> to vector<16x16xf32>
    %368 = vector.broadcast %363 : vector<1x1xf32> to vector<16x16xf32>
    %369 = arith.mulf %368, %367 : vector<16x16xf32>
    %370 = arith.addf %357, %369 : vector<16x16xf32>
    %371 = vector.broadcast %197 : vector<1x1xi32> to vector<1x16xi32>
    %372 = arith.cmpi eq, %40, %371 : vector<1x16xi32>
    %cst_111 = arith.constant 0.000000e+00 : f32
    %373 = vector.broadcast %cst_111 : f32 to vector<1x16xf32>
    %374 = arith.select %372, %239, %373 : vector<1x16xi1>, vector<1x16xf32>
    %cst_112 = arith.constant dense<0.000000e+00> : vector<1xf32>
    %375 = vector.multi_reduction <add>, %374, %cst_112 [1] : vector<1x16xf32> to vector<1xf32>
    %376 = vector.shape_cast %375 : vector<1xf32> to vector<1x1xf32>
    %377 = vector.broadcast %197 : vector<1x1xi32> to vector<16x16xi32>
    %378 = arith.cmpi eq, %48, %377 : vector<16x16xi32>
    %379 = arith.extui %378 : vector<16x16xi1> to vector<16x16xi32>
    %380 = arith.sitofp %379 : vector<16x16xi32> to vector<16x16xf32>
    %381 = vector.broadcast %376 : vector<1x1xf32> to vector<16x16xf32>
    %382 = arith.mulf %381, %380 : vector<16x16xf32>
    %383 = arith.addf %370, %382 : vector<16x16xf32>
    %384 = vector.broadcast %211 : vector<1x1xi32> to vector<1x16xi32>
    %385 = arith.cmpi eq, %40, %384 : vector<1x16xi32>
    %cst_113 = arith.constant 0.000000e+00 : f32
    %386 = vector.broadcast %cst_113 : f32 to vector<1x16xf32>
    %387 = arith.select %385, %239, %386 : vector<1x16xi1>, vector<1x16xf32>
    %cst_114 = arith.constant dense<0.000000e+00> : vector<1xf32>
    %388 = vector.multi_reduction <add>, %387, %cst_114 [1] : vector<1x16xf32> to vector<1xf32>
    %389 = vector.shape_cast %388 : vector<1xf32> to vector<1x1xf32>
    %390 = vector.broadcast %211 : vector<1x1xi32> to vector<16x16xi32>
    %391 = arith.cmpi eq, %48, %390 : vector<16x16xi32>
    %392 = arith.extui %391 : vector<16x16xi1> to vector<16x16xi32>
    %393 = arith.sitofp %392 : vector<16x16xi32> to vector<16x16xf32>
    %394 = vector.broadcast %389 : vector<1x1xf32> to vector<16x16xf32>
    %395 = arith.mulf %394, %393 : vector<16x16xf32>
    %396 = arith.addf %383, %395 : vector<16x16xf32>
    %397 = vector.broadcast %225 : vector<1x1xi32> to vector<1x16xi32>
    %398 = arith.cmpi eq, %40, %397 : vector<1x16xi32>
    %cst_115 = arith.constant 0.000000e+00 : f32
    %399 = vector.broadcast %cst_115 : f32 to vector<1x16xf32>
    %400 = arith.select %398, %239, %399 : vector<1x16xi1>, vector<1x16xf32>
    %cst_116 = arith.constant dense<0.000000e+00> : vector<1xf32>
    %401 = vector.multi_reduction <add>, %400, %cst_116 [1] : vector<1x16xf32> to vector<1xf32>
    %402 = vector.shape_cast %401 : vector<1xf32> to vector<1x1xf32>
    %403 = vector.broadcast %225 : vector<1x1xi32> to vector<16x16xi32>
    %404 = arith.cmpi eq, %48, %403 : vector<16x16xi32>
    %405 = arith.extui %404 : vector<16x16xi1> to vector<16x16xi32>
    %406 = arith.sitofp %405 : vector<16x16xi32> to vector<16x16xf32>
    %407 = vector.broadcast %402 : vector<1x1xf32> to vector<16x16xf32>
    %408 = arith.mulf %407, %406 : vector<16x16xf32>
    %409 = arith.addf %396, %408 : vector<16x16xf32>
    %cst_117 = arith.constant dense<0.000000e+00> : vector<16x32xf32>
    %410 = tpu.matmul %409, %10, %cst_117 {dimension_numbers = #tpu.dot_dimension_numbers<[1], [0], [0], [1], [0, 0, 1, 1], [], []>} : vector<16x16xf32>, vector<16x32xf32>, vector<16x32xf32> -> vector<16x32xf32>
    %411 = arith.truncf %410 : vector<16x32xf32> to vector<16x32xbf16>
    %cst_118 = arith.constant dense<0.000000e+00> : vector<16x32xf32>
    %412 = tpu.matmul %411, %13, %cst_118 {dimension_numbers = #tpu.dot_dimension_numbers<[1], [0], [0], [1], [0, 0, 1, 1], [], []>} : vector<16x32xbf16>, vector<32x32xbf16>, vector<16x32xf32> -> vector<16x32xf32>
    %413 = vector.broadcast %14 : vector<1x32xf32> to vector<16x32xf32>
    %414 = arith.addf %412, %413 : vector<16x32xf32>
    %415 = arith.addf %1, %414 : vector<16x32xf32>
    %416 = vector.extract_strided_slice %415 {offsets = [0, 0], sizes = [1, 32], strides = [1, 1]} : vector<16x32xf32> to vector<1x32xf32>
    %417 = vector.shape_cast %416 : vector<1x32xf32> to vector<1x32xf32>
    %418 = vector.broadcast %417 : vector<1x32xf32> to vector<2x32xf32>
    %419 = vector.extract_strided_slice %415 {offsets = [15, 0], sizes = [1, 32], strides = [1, 1]} : vector<16x32xf32> to vector<1x32xf32>
    %420 = vector.shape_cast %419 : vector<1x32xf32> to vector<1x32xf32>
    %421 = vector.broadcast %420 : vector<1x32xf32> to vector<2x32xf32>
    %422 = tpu.concatenate %418, %415, %421 in 0 : vector<2x32xf32>, vector<16x32xf32>, vector<2x32xf32> -> vector<20x32xf32>
    %423 = vector.extract_strided_slice %422 {offsets = [0, 0], sizes = [16, 32], strides = [1, 1]} : vector<20x32xf32> to vector<16x32xf32>
    %424 = vector.extract_strided_slice %422 {offsets = [1, 0], sizes = [16, 32], strides = [1, 1]} : vector<20x32xf32> to vector<16x32xf32>
    %425 = arith.addf %423, %424 : vector<16x32xf32>
    %426 = vector.extract_strided_slice %422 {offsets = [2, 0], sizes = [16, 32], strides = [1, 1]} : vector<20x32xf32> to vector<16x32xf32>
    %427 = arith.addf %425, %426 : vector<16x32xf32>
    %428 = vector.extract_strided_slice %422 {offsets = [3, 0], sizes = [16, 32], strides = [1, 1]} : vector<20x32xf32> to vector<16x32xf32>
    %429 = arith.addf %427, %428 : vector<16x32xf32>
    %430 = vector.extract_strided_slice %422 {offsets = [4, 0], sizes = [16, 32], strides = [1, 1]} : vector<20x32xf32> to vector<16x32xf32>
    %431 = arith.addf %429, %430 : vector<16x32xf32>
    %cst_119 = arith.constant 2.000000e-01 : f32
    %432 = vector.broadcast %cst_119 : f32 to vector<16x32xf32>
    %433 = arith.mulf %431, %432 : vector<16x32xf32>
    %434 = arith.subf %415, %433 : vector<16x32xf32>
    %c0_120 = arith.constant 0 : index
    %c0_121 = arith.constant 0 : index
    %435 = vector.load %arg6[%c0_120, %c0_121] : memref<32x32xbf16, #tpu.memory_space<vmem>>, vector<32x32xbf16>
    %436 = arith.truncf %434 : vector<16x32xf32> to vector<16x32xbf16>
    %cst_122 = arith.constant dense<0.000000e+00> : vector<16x32xf32>
    %437 = tpu.matmul %436, %435, %cst_122 {dimension_numbers = #tpu.dot_dimension_numbers<[1], [0], [0], [1], [0, 0, 1, 1], [], []>} : vector<16x32xbf16>, vector<32x32xbf16>, vector<16x32xf32> -> vector<16x32xf32>
    %cst_123 = arith.constant 5.000000e-01 : f32
    %438 = vector.broadcast %cst_123 : f32 to vector<16x32xf32>
    %439 = arith.mulf %438, %437 : vector<16x32xf32>
    %cst_124 = arith.constant 0.707106769 : f32
    %440 = vector.broadcast %cst_124 : f32 to vector<16x32xf32>
    %441 = arith.mulf %437, %440 : vector<16x32xf32>
    %cst_125 = arith.constant 0.000000e+00 : f32
    %442 = vector.broadcast %cst_125 : f32 to vector<16x32xf32>
    %443 = arith.cmpf oge, %441, %442 : vector<16x32xf32>
    %cst_126 = arith.constant 1.000000e+00 : f32
    %cst_127 = arith.constant -1.000000e+00 : f32
    %444 = vector.broadcast %cst_126 : f32 to vector<16x32xf32>
    %445 = vector.broadcast %cst_127 : f32 to vector<16x32xf32>
    %446 = arith.select %443, %444, %445 : vector<16x32xi1>, vector<16x32xf32>
    %447 = math.absf %441 : vector<16x32xf32>
    %cst_128 = arith.constant 0.327591091 : f32
    %448 = vector.broadcast %cst_128 : f32 to vector<16x32xf32>
    %449 = arith.mulf %448, %447 : vector<16x32xf32>
    %cst_129 = arith.constant 1.000000e+00 : f32
    %450 = vector.broadcast %cst_129 : f32 to vector<16x32xf32>
    %451 = arith.addf %450, %449 : vector<16x32xf32>
    %cst_130 = arith.constant 1.000000e+00 : f32
    %452 = vector.broadcast %cst_130 : f32 to vector<16x32xf32>
    %453 = arith.divf %452, %451 : vector<16x32xf32>
    %cst_131 = arith.constant 1.06140542 : f32
    %454 = vector.broadcast %cst_131 : f32 to vector<16x32xf32>
    %455 = arith.mulf %454, %453 : vector<16x32xf32>
    %cst_132 = arith.constant -1.45315206 : f32
    %456 = vector.broadcast %cst_132 : f32 to vector<16x32xf32>
    %457 = arith.addf %455, %456 : vector<16x32xf32>
    %458 = arith.mulf %457, %453 : vector<16x32xf32>
    %cst_133 = arith.constant 1.42141378 : f32
    %459 = vector.broadcast %cst_133 : f32 to vector<16x32xf32>
    %460 = arith.addf %458, %459 : vector<16x32xf32>
    %461 = arith.mulf %460, %453 : vector<16x32xf32>
    %cst_134 = arith.constant -0.284496725 : f32
    %462 = vector.broadcast %cst_134 : f32 to vector<16x32xf32>
    %463 = arith.addf %461, %462 : vector<16x32xf32>
    %464 = arith.mulf %463, %453 : vector<16x32xf32>
    %cst_135 = arith.constant 0.254829586 : f32
    %465 = vector.broadcast %cst_135 : f32 to vector<16x32xf32>
    %466 = arith.addf %464, %465 : vector<16x32xf32>
    %467 = arith.mulf %466, %453 : vector<16x32xf32>
    %cst_136 = arith.constant 0.000000e+00 : f32
    %468 = vector.broadcast %cst_136 : f32 to vector<16x32xf32>
    %469 = arith.subf %468, %447 : vector<16x32xf32>
    %470 = arith.mulf %469, %447 : vector<16x32xf32>
    %471 = math.exp %470 : vector<16x32xf32>
    %472 = arith.mulf %467, %471 : vector<16x32xf32>
    %cst_137 = arith.constant 1.000000e+00 : f32
    %473 = vector.broadcast %cst_137 : f32 to vector<16x32xf32>
    %474 = arith.subf %473, %472 : vector<16x32xf32>
    %475 = arith.mulf %446, %474 : vector<16x32xf32>
    %cst_138 = arith.constant 1.000000e+00 : f32
    %476 = vector.broadcast %cst_138 : f32 to vector<16x32xf32>
    %477 = arith.addf %476, %475 : vector<16x32xf32>
    %478 = arith.mulf %439, %477 : vector<16x32xf32>
    %c0_139 = arith.constant 0 : index
    %c0_140 = arith.constant 0 : index
    %479 = vector.load %arg7[%c0_139, %c0_140] : memref<32x32xbf16, #tpu.memory_space<vmem>>, vector<32x32xbf16>
    %480 = arith.truncf %478 : vector<16x32xf32> to vector<16x32xbf16>
    %cst_141 = arith.constant dense<0.000000e+00> : vector<16x32xf32>
    %481 = tpu.matmul %480, %479, %cst_141 {dimension_numbers = #tpu.dot_dimension_numbers<[1], [0], [0], [1], [0, 0, 1, 1], [], []>} : vector<16x32xbf16>, vector<32x32xbf16>, vector<16x32xf32> -> vector<16x32xf32>
    %482 = arith.addf %434, %481 : vector<16x32xf32>
    %483 = vector.extract_strided_slice %482 {offsets = [0, 0], sizes = [1, 32], strides = [1, 1]} : vector<16x32xf32> to vector<1x32xf32>
    %484 = vector.shape_cast %483 : vector<1x32xf32> to vector<1x32xf32>
    %485 = vector.broadcast %484 : vector<1x32xf32> to vector<2x32xf32>
    %486 = vector.extract_strided_slice %482 {offsets = [15, 0], sizes = [1, 32], strides = [1, 1]} : vector<16x32xf32> to vector<1x32xf32>
    %487 = vector.shape_cast %486 : vector<1x32xf32> to vector<1x32xf32>
    %488 = vector.broadcast %487 : vector<1x32xf32> to vector<2x32xf32>
    %489 = tpu.concatenate %485, %482, %488 in 0 : vector<2x32xf32>, vector<16x32xf32>, vector<2x32xf32> -> vector<20x32xf32>
    %490 = vector.extract_strided_slice %489 {offsets = [0, 0], sizes = [16, 32], strides = [1, 1]} : vector<20x32xf32> to vector<16x32xf32>
    %491 = vector.extract_strided_slice %489 {offsets = [1, 0], sizes = [16, 32], strides = [1, 1]} : vector<20x32xf32> to vector<16x32xf32>
    %492 = arith.addf %490, %491 : vector<16x32xf32>
    %493 = vector.extract_strided_slice %489 {offsets = [2, 0], sizes = [16, 32], strides = [1, 1]} : vector<20x32xf32> to vector<16x32xf32>
    %494 = arith.addf %492, %493 : vector<16x32xf32>
    %495 = vector.extract_strided_slice %489 {offsets = [3, 0], sizes = [16, 32], strides = [1, 1]} : vector<20x32xf32> to vector<16x32xf32>
    %496 = arith.addf %494, %495 : vector<16x32xf32>
    %497 = vector.extract_strided_slice %489 {offsets = [4, 0], sizes = [16, 32], strides = [1, 1]} : vector<20x32xf32> to vector<16x32xf32>
    %498 = arith.addf %496, %497 : vector<16x32xf32>
    %cst_142 = arith.constant 2.000000e-01 : f32
    %499 = vector.broadcast %cst_142 : f32 to vector<16x32xf32>
    %500 = arith.mulf %498, %499 : vector<16x32xf32>
    %501 = arith.subf %482, %500 : vector<16x32xf32>
    %c0_143 = arith.constant 0 : index
    %c0_144 = arith.constant 0 : index
    %c0_145 = arith.constant 0 : index
    %502 = vector.load %arg10[%c0_143, %c0_144, %c0_145] : memref<1x16x32xf32, #tpu.memory_space<vmem>>, vector<1x16x32xf32>
    %503 = vector.shape_cast %502 : vector<1x16x32xf32> to vector<16x32xf32>
    %504 = vector.shape_cast %501 : vector<16x32xf32> to vector<1x16x32xf32>
    tpu.vector_store %arg10[%c0_143, %c0_144, %c0_145], %504 {strides = array<i32>} : memref<1x16x32xf32, #tpu.memory_space<vmem>>, vector<1x16x32xf32>,
    return
  }
  func.func @transform_0(%arg0: i32) -> (i32, i32, i32) {
    %c0_i32 = arith.constant 0 : i32
    %c0_i32_0 = arith.constant 0 : i32
    %c0_i32_1 = arith.constant 0 : i32
    return %arg0, %c0_i32, %c0_i32_0 : i32, i32, i32
  }
  func.func @transform_1(%arg0: i32) -> (i32, i32) {
    %c0_i32 = arith.constant 0 : i32
    %c0_i32_0 = arith.constant 0 : i32
    %c0_i32_1 = arith.constant 0 : i32
    return %c0_i32, %c0_i32_0 : i32, i32
  }
  func.func @transform_2(%arg0: i32) -> (i32, i32) {
    %c0_i32 = arith.constant 0 : i32
    %c0_i32_0 = arith.constant 0 : i32
    %c0_i32_1 = arith.constant 0 : i32
    return %c0_i32, %c0_i32_0 : i32, i32
  }
  func.func @transform_3(%arg0: i32) -> (i32, i32) {
    %c0_i32 = arith.constant 0 : i32
    %c0_i32_0 = arith.constant 0 : i32
    %c0_i32_1 = arith.constant 0 : i32
    return %c0_i32, %c0_i32_0 : i32, i32
  }
  func.func @transform_4(%arg0: i32) -> (i32, i32) {
    %c0_i32 = arith.constant 0 : i32
    %c0_i32_0 = arith.constant 0 : i32
    %c0_i32_1 = arith.constant 0 : i32
    return %c0_i32, %c0_i32_0 : i32, i32
  }
  func.func @transform_5(%arg0: i32) -> (i32, i32) {
    %c0_i32 = arith.constant 0 : i32
    %c0_i32_0 = arith.constant 0 : i32
    %c0_i32_1 = arith.constant 0 : i32
    return %c0_i32, %c0_i32_0 : i32, i32
  }
  func.func @transform_6(%arg0: i32) -> (i32, i32) {
    %c0_i32 = arith.constant 0 : i32
    %c0_i32_0 = arith.constant 0 : i32
    %c0_i32_1 = arith.constant 0 : i32
    return %c0_i32, %c0_i32_0 : i32, i32
  }
  func.func @transform_7(%arg0: i32) -> (i32, i32) {
    %c0_i32 = arith.constant 0 : i32
    %c0_i32_0 = arith.constant 0 : i32
    %c0_i32_1 = arith.constant 0 : i32
    return %c0_i32, %c0_i32_0 : i32, i32
  }
  func.func @transform_8(%arg0: i32) -> (i32, i32) {
    %c0_i32 = arith.constant 0 : i32
    %c0_i32_0 = arith.constant 0 : i32
    %c0_i32_1 = arith.constant 0 : i32
    return %c0_i32, %c0_i32_0 : i32, i32
  }
  func.func @transform_9(%arg0: i32) -> (i32, i32, i32) {
    %c0_i32 = arith.constant 0 : i32
    %c0_i32_0 = arith.constant 0 : i32
    %c0_i32_1 = arith.constant 0 : i32
    return %arg0, %c0_i32, %c0_i32_0 : i32, i32, i32
  }
}

module attributes {stable_mosaic.version = 11 : i64} {
  func.func @kernel(%arg0: i32, %arg1: memref<1x16x32xf32, #tpu.memory_space<vmem>>, %arg2: memref<32x96xbf16, #tpu.memory_space<vmem>>, %arg3: memref<1x96xf32, #tpu.memory_space<vmem>>, %arg4: memref<32x32xbf16, #tpu.memory_space<vmem>>, %arg5: memref<1x32xf32, #tpu.memory_space<vmem>>, %arg6: memref<32x32xbf16, #tpu.memory_space<vmem>>, %arg7: memref<32x32xbf16, #tpu.memory_space<vmem>>, %arg8: memref<16x16xf32, #tpu.memory_space<vmem>>, %arg9: memref<16x16xf32, #tpu.memory_space<vmem>>, %arg10: memref<1x32xf32, #tpu.memory_space<vmem>>, %arg11: memref<1x32xf32, #tpu.memory_space<vmem>>, %arg12: memref<1x16x32xf32, #tpu.memory_space<vmem>>) attributes {dimension_semantics = [#tpu.dimension_semantics<parallel>], iteration_bounds = array<i64: 2>, scalar_prefetch = 0 : i64, scratch_operands = 0 : i64, tpu.core_type = #tpu.core_type<tc>, window_params = [{transform_indices = @transform_0, window_bounds = array<i64: 1, 16, 32>}, {pipeline_mode = #tpu.pipeline_mode<synchronous>, transform_indices = @transform_1, window_bounds = array<i64: 32, 96>}, {pipeline_mode = #tpu.pipeline_mode<synchronous>, transform_indices = @transform_2, window_bounds = array<i64: 1, 96>}, {pipeline_mode = #tpu.pipeline_mode<synchronous>, transform_indices = @transform_3, window_bounds = array<i64: 32, 32>}, {pipeline_mode = #tpu.pipeline_mode<synchronous>, transform_indices = @transform_4, window_bounds = array<i64: 1, 32>}, {pipeline_mode = #tpu.pipeline_mode<synchronous>, transform_indices = @transform_5, window_bounds = array<i64: 32, 32>}, {pipeline_mode = #tpu.pipeline_mode<synchronous>, transform_indices = @transform_6, window_bounds = array<i64: 32, 32>}, {pipeline_mode = #tpu.pipeline_mode<synchronous>, transform_indices = @transform_7, window_bounds = array<i64: 16, 16>}, {pipeline_mode = #tpu.pipeline_mode<synchronous>, transform_indices = @transform_8, window_bounds = array<i64: 16, 16>}, {pipeline_mode = #tpu.pipeline_mode<synchronous>, transform_indices = @transform_9, window_bounds = array<i64: 1, 32>}, {pipeline_mode = #tpu.pipeline_mode<synchronous>, transform_indices = @transform_10, window_bounds = array<i64: 1, 32>}, {transform_indices = @transform_11, window_bounds = array<i64: 1, 16, 32>}]} {
    %c0 = arith.constant 0 : index
    %c0_0 = arith.constant 0 : index
    %c0_1 = arith.constant 0 : index
    %0 = vector.load %arg1[%c0, %c0_0, %c0_1] : memref<1x16x32xf32, #tpu.memory_space<vmem>>, vector<1x16x32xf32>
    %1 = vector.shape_cast %0 : vector<1x16x32xf32> to vector<16x32xf32>
    %c0_2 = arith.constant 0 : index
    %c0_3 = arith.constant 0 : index
    %2 = vector.load %arg2[%c0_2, %c0_3] : memref<32x96xbf16, #tpu.memory_space<vmem>>, vector<32x96xbf16>
    %3 = arith.truncf %1 : vector<16x32xf32> to vector<16x32xbf16>
    %cst = arith.constant dense<0.000000e+00> : vector<16x96xf32>
    %4 = tpu.matmul %3, %2, %cst {dimension_numbers = #tpu.dot_dimension_numbers<[1], [0], [0], [1], [0, 0, 1, 1], [], []>} : vector<16x32xbf16>, vector<32x96xbf16>, vector<16x96xf32> -> vector<16x96xf32>
    %c0_4 = arith.constant 0 : index
    %c0_5 = arith.constant 0 : index
    %5 = vector.load %arg3[%c0_4, %c0_5] : memref<1x96xf32, #tpu.memory_space<vmem>>, vector<1x96xf32>
    %6 = vector.broadcast %5 : vector<1x96xf32> to vector<16x96xf32>
    %7 = arith.addf %4, %6 : vector<16x96xf32>
    %8 = vector.extract_strided_slice %7 {offsets = [0, 0], sizes = [16, 32], strides = [1, 1]} : vector<16x96xf32> to vector<16x32xf32>
    %9 = vector.extract_strided_slice %7 {offsets = [0, 32], sizes = [16, 32], strides = [1, 1]} : vector<16x96xf32> to vector<16x32xf32>
    %10 = vector.extract_strided_slice %7 {offsets = [0, 64], sizes = [16, 32], strides = [1, 1]} : vector<16x96xf32> to vector<16x32xf32>
    %c0_6 = arith.constant 0 : index
    %c0_7 = arith.constant 0 : index
    %11 = vector.load %arg8[%c0_6, %c0_7] : memref<16x16xf32, #tpu.memory_space<vmem>>, vector<16x16xf32>
    %c0_8 = arith.constant 0 : index
    %c0_9 = arith.constant 0 : index
    %12 = vector.load %arg9[%c0_8, %c0_9] : memref<16x16xf32, #tpu.memory_space<vmem>>, vector<16x16xf32>
    %c0_10 = arith.constant 0 : index
    %c0_11 = arith.constant 0 : index
    %13 = vector.load %arg4[%c0_10, %c0_11] : memref<32x32xbf16, #tpu.memory_space<vmem>>, vector<32x32xbf16>
    %c0_12 = arith.constant 0 : index
    %c0_13 = arith.constant 0 : index
    %14 = vector.load %arg5[%c0_12, %c0_13] : memref<1x32xf32, #tpu.memory_space<vmem>>, vector<1x32xf32>
    %cst_14 = arith.constant dense<0.000000e+00> : vector<16x32xf32>
    %15 = tpu.matmul %11, %8, %cst_14 {dimension_numbers = #tpu.dot_dimension_numbers<[1], [0], [0], [1], [0, 0, 1, 1], [], []>} : vector<16x16xf32>, vector<16x32xf32>, vector<16x32xf32> -> vector<16x32xf32>
    %cst_15 = arith.constant dense<0.000000e+00> : vector<16x32xf32>
    %16 = tpu.matmul %12, %8, %cst_15 {dimension_numbers = #tpu.dot_dimension_numbers<[1], [0], [0], [1], [0, 0, 1, 1], [], []>} : vector<16x16xf32>, vector<16x32xf32>, vector<16x32xf32> -> vector<16x32xf32>
    %cst_16 = arith.constant dense<0.000000e+00> : vector<16x32xf32>
    %17 = tpu.matmul %11, %9, %cst_16 {dimension_numbers = #tpu.dot_dimension_numbers<[1], [0], [0], [1], [0, 0, 1, 1], [], []>} : vector<16x16xf32>, vector<16x32xf32>, vector<16x32xf32> -> vector<16x32xf32>
    %cst_17 = arith.constant dense<0.000000e+00> : vector<16x32xf32>
    %18 = tpu.matmul %12, %9, %cst_17 {dimension_numbers = #tpu.dot_dimension_numbers<[1], [0], [0], [1], [0, 0, 1, 1], [], []>} : vector<16x16xf32>, vector<16x32xf32>, vector<16x32xf32> -> vector<16x32xf32>
    %19 = arith.mulf %15, %17 : vector<16x32xf32>
    %20 = arith.mulf %16, %18 : vector<16x32xf32>
    %21 = arith.addf %19, %20 : vector<16x32xf32>
    %cst_18 = arith.constant dense<0.000000e+00> : vector<16xf32>
    %22 = vector.multi_reduction <add>, %21, %cst_18 [1] : vector<16x32xf32> to vector<16xf32>
    %23 = vector.shape_cast %22 : vector<16xf32> to vector<16x1xf32>
    %24 = arith.mulf %15, %18 : vector<16x32xf32>
    %25 = arith.mulf %16, %17 : vector<16x32xf32>
    %26 = arith.subf %24, %25 : vector<16x32xf32>
    %cst_19 = arith.constant dense<0.000000e+00> : vector<16xf32>
    %27 = vector.multi_reduction <add>, %26, %cst_19 [1] : vector<16x32xf32> to vector<16xf32>
    %28 = vector.shape_cast %27 : vector<16xf32> to vector<16x1xf32>
    %29 = vector.broadcast %23 : vector<16x1xf32> to vector<16x16xf32>
    %30 = arith.mulf %29, %11 : vector<16x16xf32>
    %31 = vector.broadcast %28 : vector<16x1xf32> to vector<16x16xf32>
    %32 = arith.mulf %31, %12 : vector<16x16xf32>
    %33 = arith.subf %30, %32 : vector<16x16xf32>
    %cst_20 = arith.constant dense<0.000000e+00> : vector<16xf32>
    %34 = vector.multi_reduction <add>, %33, %cst_20 [0] : vector<16x16xf32> to vector<16xf32>
    %35 = vector.shape_cast %34 : vector<16xf32> to vector<1x16xf32>
    %cst_21 = arith.constant 6.250000e-02 : f32
    %36 = vector.broadcast %cst_21 : f32 to vector<1x16xf32>
    %37 = arith.mulf %35, %36 : vector<1x16xf32>
    %cst_22 = arith.constant 3.125000e-02 : f32
    %38 = vector.broadcast %cst_22 : f32 to vector<1x16xf32>
    %39 = arith.mulf %37, %38 : vector<1x16xf32>
    %40 = tpu.iota {dimensions = array<i32: 1>} : vector<1x16xi32>
    %41 = tpu.iota {dimensions = array<i32: 0>} : vector<16x16xi32>
    %42 = tpu.iota {dimensions = array<i32: 1>} : vector<16x16xi32>
    %43 = arith.subi %42, %41 : vector<16x16xi32>
    %c0_i32 = arith.constant 0 : i32
    %44 = vector.broadcast %c0_i32 : i32 to vector<16x16xi32>
    %45 = arith.cmpi sge, %43, %44 : vector<16x16xi32>
    %c16_i32 = arith.constant 16 : i32
    %46 = vector.broadcast %c16_i32 : i32 to vector<16x16xi32>
    %47 = arith.addi %43, %46 : vector<16x16xi32>
    %48 = arith.select %45, %43, %47 : vector<16x16xi1>, vector<16x16xi32>
    %cst_23 = arith.constant 0.000000e+00 : f32
    %49 = vector.broadcast %cst_23 : f32 to vector<1x16xf32>
    %cst_24 = arith.constant dense<0xFF800000> : vector<1xf32>
    %50 = vector.multi_reduction <maximumf>, %39, %cst_24 [1] : vector<1x16xf32> to vector<1xf32>
    %51 = vector.shape_cast %50 : vector<1xf32> to vector<1x1xf32>
    %52 = vector.broadcast %51 : vector<1x1xf32> to vector<1x16xf32>
    %53 = arith.cmpf oeq, %39, %52 : vector<1x16xf32>
    %c16_i32_25 = arith.constant 16 : i32
    %54 = vector.broadcast %c16_i32_25 : i32 to vector<1x16xi32>
    %55 = arith.select %53, %40, %54 : vector<1x16xi1>, vector<1x16xi32>
    %cst_26 = arith.constant dense<2147483647> : vector<1xi32>
    %56 = vector.multi_reduction <minsi>, %55, %cst_26 [1] : vector<1x16xi32> to vector<1xi32>
    %57 = vector.shape_cast %56 : vector<1xi32> to vector<1x1xi32>
    %58 = vector.broadcast %57 : vector<1x1xi32> to vector<1x16xi32>
    %59 = arith.cmpi eq, %40, %58 : vector<1x16xi32>
    %cst_27 = arith.constant 1.000000e+00 : f32
    %60 = vector.broadcast %cst_27 : f32 to vector<1x16xf32>
    %61 = arith.select %59, %60, %49 : vector<1x16xi1>, vector<1x16xf32>
    %cst_28 = arith.constant 0xFF800000 : f32
    %62 = vector.broadcast %cst_28 : f32 to vector<1x16xf32>
    %63 = arith.select %59, %62, %39 : vector<1x16xi1>, vector<1x16xf32>
    %cst_29 = arith.constant dense<0xFF800000> : vector<1xf32>
    %64 = vector.multi_reduction <maximumf>, %63, %cst_29 [1] : vector<1x16xf32> to vector<1xf32>
    %65 = vector.shape_cast %64 : vector<1xf32> to vector<1x1xf32>
    %66 = vector.broadcast %65 : vector<1x1xf32> to vector<1x16xf32>
    %67 = arith.cmpf oeq, %63, %66 : vector<1x16xf32>
    %c16_i32_30 = arith.constant 16 : i32
    %68 = vector.broadcast %c16_i32_30 : i32 to vector<1x16xi32>
    %69 = arith.select %67, %40, %68 : vector<1x16xi1>, vector<1x16xi32>
    %cst_31 = arith.constant dense<2147483647> : vector<1xi32>
    %70 = vector.multi_reduction <minsi>, %69, %cst_31 [1] : vector<1x16xi32> to vector<1xi32>
    %71 = vector.shape_cast %70 : vector<1xi32> to vector<1x1xi32>
    %72 = vector.broadcast %71 : vector<1x1xi32> to vector<1x16xi32>
    %73 = arith.cmpi eq, %40, %72 : vector<1x16xi32>
    %cst_32 = arith.constant 1.000000e+00 : f32
    %74 = vector.broadcast %cst_32 : f32 to vector<1x16xf32>
    %75 = arith.select %73, %74, %61 : vector<1x16xi1>, vector<1x16xf32>
    %cst_33 = arith.constant 0xFF800000 : f32
    %76 = vector.broadcast %cst_33 : f32 to vector<1x16xf32>
    %77 = arith.select %73, %76, %63 : vector<1x16xi1>, vector<1x16xf32>
    %cst_34 = arith.constant dense<0xFF800000> : vector<1xf32>
    %78 = vector.multi_reduction <maximumf>, %77, %cst_34 [1] : vector<1x16xf32> to vector<1xf32>
    %79 = vector.shape_cast %78 : vector<1xf32> to vector<1x1xf32>
    %80 = vector.broadcast %79 : vector<1x1xf32> to vector<1x16xf32>
    %81 = arith.cmpf oeq, %77, %80 : vector<1x16xf32>
    %c16_i32_35 = arith.constant 16 : i32
    %82 = vector.broadcast %c16_i32_35 : i32 to vector<1x16xi32>
    %83 = arith.select %81, %40, %82 : vector<1x16xi1>, vector<1x16xi32>
    %cst_36 = arith.constant dense<2147483647> : vector<1xi32>
    %84 = vector.multi_reduction <minsi>, %83, %cst_36 [1] : vector<1x16xi32> to vector<1xi32>
    %85 = vector.shape_cast %84 : vector<1xi32> to vector<1x1xi32>
    %86 = vector.broadcast %85 : vector<1x1xi32> to vector<1x16xi32>
    %87 = arith.cmpi eq, %40, %86 : vector<1x16xi32>
    %cst_37 = arith.constant 1.000000e+00 : f32
    %88 = vector.broadcast %cst_37 : f32 to vector<1x16xf32>
    %89 = arith.select %87, %88, %75 : vector<1x16xi1>, vector<1x16xf32>
    %cst_38 = arith.constant 0xFF800000 : f32
    %90 = vector.broadcast %cst_38 : f32 to vector<1x16xf32>
    %91 = arith.select %87, %90, %77 : vector<1x16xi1>, vector<1x16xf32>
    %cst_39 = arith.constant dense<0xFF800000> : vector<1xf32>
    %92 = vector.multi_reduction <maximumf>, %91, %cst_39 [1] : vector<1x16xf32> to vector<1xf32>
    %93 = vector.shape_cast %92 : vector<1xf32> to vector<1x1xf32>
    %94 = vector.broadcast %93 : vector<1x1xf32> to vector<1x16xf32>
    %95 = arith.cmpf oeq, %91, %94 : vector<1x16xf32>
    %c16_i32_40 = arith.constant 16 : i32
    %96 = vector.broadcast %c16_i32_40 : i32 to vector<1x16xi32>
    %97 = arith.select %95, %40, %96 : vector<1x16xi1>, vector<1x16xi32>
    %cst_41 = arith.constant dense<2147483647> : vector<1xi32>
    %98 = vector.multi_reduction <minsi>, %97, %cst_41 [1] : vector<1x16xi32> to vector<1xi32>
    %99 = vector.shape_cast %98 : vector<1xi32> to vector<1x1xi32>
    %100 = vector.broadcast %99 : vector<1x1xi32> to vector<1x16xi32>
    %101 = arith.cmpi eq, %40, %100 : vector<1x16xi32>
    %cst_42 = arith.constant 1.000000e+00 : f32
    %102 = vector.broadcast %cst_42 : f32 to vector<1x16xf32>
    %103 = arith.select %101, %102, %89 : vector<1x16xi1>, vector<1x16xf32>
    %cst_43 = arith.constant 0xFF800000 : f32
    %104 = vector.broadcast %cst_43 : f32 to vector<1x16xf32>
    %105 = arith.select %101, %104, %91 : vector<1x16xi1>, vector<1x16xf32>
    %cst_44 = arith.constant dense<0xFF800000> : vector<1xf32>
    %106 = vector.multi_reduction <maximumf>, %105, %cst_44 [1] : vector<1x16xf32> to vector<1xf32>
    %107 = vector.shape_cast %106 : vector<1xf32> to vector<1x1xf32>
    %108 = vector.broadcast %107 : vector<1x1xf32> to vector<1x16xf32>
    %109 = arith.cmpf oeq, %105, %108 : vector<1x16xf32>
    %c16_i32_45 = arith.constant 16 : i32
    %110 = vector.broadcast %c16_i32_45 : i32 to vector<1x16xi32>
    %111 = arith.select %109, %40, %110 : vector<1x16xi1>, vector<1x16xi32>
    %cst_46 = arith.constant dense<2147483647> : vector<1xi32>
    %112 = vector.multi_reduction <minsi>, %111, %cst_46 [1] : vector<1x16xi32> to vector<1xi32>
    %113 = vector.shape_cast %112 : vector<1xi32> to vector<1x1xi32>
    %114 = vector.broadcast %113 : vector<1x1xi32> to vector<1x16xi32>
    %115 = arith.cmpi eq, %40, %114 : vector<1x16xi32>
    %cst_47 = arith.constant 1.000000e+00 : f32
    %116 = vector.broadcast %cst_47 : f32 to vector<1x16xf32>
    %117 = arith.select %115, %116, %103 : vector<1x16xi1>, vector<1x16xf32>
    %cst_48 = arith.constant 0xFF800000 : f32
    %118 = vector.broadcast %cst_48 : f32 to vector<1x16xf32>
    %119 = arith.select %115, %118, %105 : vector<1x16xi1>, vector<1x16xf32>
    %cst_49 = arith.constant dense<0xFF800000> : vector<1xf32>
    %120 = vector.multi_reduction <maximumf>, %119, %cst_49 [1] : vector<1x16xf32> to vector<1xf32>
    %121 = vector.shape_cast %120 : vector<1xf32> to vector<1x1xf32>
    %122 = vector.broadcast %121 : vector<1x1xf32> to vector<1x16xf32>
    %123 = arith.cmpf oeq, %119, %122 : vector<1x16xf32>
    %c16_i32_50 = arith.constant 16 : i32
    %124 = vector.broadcast %c16_i32_50 : i32 to vector<1x16xi32>
    %125 = arith.select %123, %40, %124 : vector<1x16xi1>, vector<1x16xi32>
    %cst_51 = arith.constant dense<2147483647> : vector<1xi32>
    %126 = vector.multi_reduction <minsi>, %125, %cst_51 [1] : vector<1x16xi32> to vector<1xi32>
    %127 = vector.shape_cast %126 : vector<1xi32> to vector<1x1xi32>
    %128 = vector.broadcast %127 : vector<1x1xi32> to vector<1x16xi32>
    %129 = arith.cmpi eq, %40, %128 : vector<1x16xi32>
    %cst_52 = arith.constant 1.000000e+00 : f32
    %130 = vector.broadcast %cst_52 : f32 to vector<1x16xf32>
    %131 = arith.select %129, %130, %117 : vector<1x16xi1>, vector<1x16xf32>
    %cst_53 = arith.constant 0xFF800000 : f32
    %132 = vector.broadcast %cst_53 : f32 to vector<1x16xf32>
    %133 = arith.select %129, %132, %119 : vector<1x16xi1>, vector<1x16xf32>
    %cst_54 = arith.constant dense<0xFF800000> : vector<1xf32>
    %134 = vector.multi_reduction <maximumf>, %133, %cst_54 [1] : vector<1x16xf32> to vector<1xf32>
    %135 = vector.shape_cast %134 : vector<1xf32> to vector<1x1xf32>
    %136 = vector.broadcast %135 : vector<1x1xf32> to vector<1x16xf32>
    %137 = arith.cmpf oeq, %133, %136 : vector<1x16xf32>
    %c16_i32_55 = arith.constant 16 : i32
    %138 = vector.broadcast %c16_i32_55 : i32 to vector<1x16xi32>
    %139 = arith.select %137, %40, %138 : vector<1x16xi1>, vector<1x16xi32>
    %cst_56 = arith.constant dense<2147483647> : vector<1xi32>
    %140 = vector.multi_reduction <minsi>, %139, %cst_56 [1] : vector<1x16xi32> to vector<1xi32>
    %141 = vector.shape_cast %140 : vector<1xi32> to vector<1x1xi32>
    %142 = vector.broadcast %141 : vector<1x1xi32> to vector<1x16xi32>
    %143 = arith.cmpi eq, %40, %142 : vector<1x16xi32>
    %cst_57 = arith.constant 1.000000e+00 : f32
    %144 = vector.broadcast %cst_57 : f32 to vector<1x16xf32>
    %145 = arith.select %143, %144, %131 : vector<1x16xi1>, vector<1x16xf32>
    %cst_58 = arith.constant 0xFF800000 : f32
    %146 = vector.broadcast %cst_58 : f32 to vector<1x16xf32>
    %147 = arith.select %143, %146, %133 : vector<1x16xi1>, vector<1x16xf32>
    %cst_59 = arith.constant dense<0xFF800000> : vector<1xf32>
    %148 = vector.multi_reduction <maximumf>, %147, %cst_59 [1] : vector<1x16xf32> to vector<1xf32>
    %149 = vector.shape_cast %148 : vector<1xf32> to vector<1x1xf32>
    %150 = vector.broadcast %149 : vector<1x1xf32> to vector<1x16xf32>
    %151 = arith.cmpf oeq, %147, %150 : vector<1x16xf32>
    %c16_i32_60 = arith.constant 16 : i32
    %152 = vector.broadcast %c16_i32_60 : i32 to vector<1x16xi32>
    %153 = arith.select %151, %40, %152 : vector<1x16xi1>, vector<1x16xi32>
    %cst_61 = arith.constant dense<2147483647> : vector<1xi32>
    %154 = vector.multi_reduction <minsi>, %153, %cst_61 [1] : vector<1x16xi32> to vector<1xi32>
    %155 = vector.shape_cast %154 : vector<1xi32> to vector<1x1xi32>
    %156 = vector.broadcast %155 : vector<1x1xi32> to vector<1x16xi32>
    %157 = arith.cmpi eq, %40, %156 : vector<1x16xi32>
    %cst_62 = arith.constant 1.000000e+00 : f32
    %158 = vector.broadcast %cst_62 : f32 to vector<1x16xf32>
    %159 = arith.select %157, %158, %145 : vector<1x16xi1>, vector<1x16xf32>
    %cst_63 = arith.constant 0xFF800000 : f32
    %160 = vector.broadcast %cst_63 : f32 to vector<1x16xf32>
    %161 = arith.select %157, %160, %147 : vector<1x16xi1>, vector<1x16xf32>
    %cst_64 = arith.constant dense<0xFF800000> : vector<1xf32>
    %162 = vector.multi_reduction <maximumf>, %161, %cst_64 [1] : vector<1x16xf32> to vector<1xf32>
    %163 = vector.shape_cast %162 : vector<1xf32> to vector<1x1xf32>
    %164 = vector.broadcast %163 : vector<1x1xf32> to vector<1x16xf32>
    %165 = arith.cmpf oeq, %161, %164 : vector<1x16xf32>
    %c16_i32_65 = arith.constant 16 : i32
    %166 = vector.broadcast %c16_i32_65 : i32 to vector<1x16xi32>
    %167 = arith.select %165, %40, %166 : vector<1x16xi1>, vector<1x16xi32>
    %cst_66 = arith.constant dense<2147483647> : vector<1xi32>
    %168 = vector.multi_reduction <minsi>, %167, %cst_66 [1] : vector<1x16xi32> to vector<1xi32>
    %169 = vector.shape_cast %168 : vector<1xi32> to vector<1x1xi32>
    %170 = vector.broadcast %169 : vector<1x1xi32> to vector<1x16xi32>
    %171 = arith.cmpi eq, %40, %170 : vector<1x16xi32>
    %cst_67 = arith.constant 1.000000e+00 : f32
    %172 = vector.broadcast %cst_67 : f32 to vector<1x16xf32>
    %173 = arith.select %171, %172, %159 : vector<1x16xi1>, vector<1x16xf32>
    %cst_68 = arith.constant 0xFF800000 : f32
    %174 = vector.broadcast %cst_68 : f32 to vector<1x16xf32>
    %175 = arith.select %171, %174, %161 : vector<1x16xi1>, vector<1x16xf32>
    %cst_69 = arith.constant dense<0xFF800000> : vector<1xf32>
    %176 = vector.multi_reduction <maximumf>, %175, %cst_69 [1] : vector<1x16xf32> to vector<1xf32>
    %177 = vector.shape_cast %176 : vector<1xf32> to vector<1x1xf32>
    %178 = vector.broadcast %177 : vector<1x1xf32> to vector<1x16xf32>
    %179 = arith.cmpf oeq, %175, %178 : vector<1x16xf32>
    %c16_i32_70 = arith.constant 16 : i32
    %180 = vector.broadcast %c16_i32_70 : i32 to vector<1x16xi32>
    %181 = arith.select %179, %40, %180 : vector<1x16xi1>, vector<1x16xi32>
    %cst_71 = arith.constant dense<2147483647> : vector<1xi32>
    %182 = vector.multi_reduction <minsi>, %181, %cst_71 [1] : vector<1x16xi32> to vector<1xi32>
    %183 = vector.shape_cast %182 : vector<1xi32> to vector<1x1xi32>
    %184 = vector.broadcast %183 : vector<1x1xi32> to vector<1x16xi32>
    %185 = arith.cmpi eq, %40, %184 : vector<1x16xi32>
    %cst_72 = arith.constant 1.000000e+00 : f32
    %186 = vector.broadcast %cst_72 : f32 to vector<1x16xf32>
    %187 = arith.select %185, %186, %173 : vector<1x16xi1>, vector<1x16xf32>
    %cst_73 = arith.constant 0xFF800000 : f32
    %188 = vector.broadcast %cst_73 : f32 to vector<1x16xf32>
    %189 = arith.select %185, %188, %175 : vector<1x16xi1>, vector<1x16xf32>
    %cst_74 = arith.constant dense<0xFF800000> : vector<1xf32>
    %190 = vector.multi_reduction <maximumf>, %189, %cst_74 [1] : vector<1x16xf32> to vector<1xf32>
    %191 = vector.shape_cast %190 : vector<1xf32> to vector<1x1xf32>
    %192 = vector.broadcast %191 : vector<1x1xf32> to vector<1x16xf32>
    %193 = arith.cmpf oeq, %189, %192 : vector<1x16xf32>
    %c16_i32_75 = arith.constant 16 : i32
    %194 = vector.broadcast %c16_i32_75 : i32 to vector<1x16xi32>
    %195 = arith.select %193, %40, %194 : vector<1x16xi1>, vector<1x16xi32>
    %cst_76 = arith.constant dense<2147483647> : vector<1xi32>
    %196 = vector.multi_reduction <minsi>, %195, %cst_76 [1] : vector<1x16xi32> to vector<1xi32>
    %197 = vector.shape_cast %196 : vector<1xi32> to vector<1x1xi32>
    %198 = vector.broadcast %197 : vector<1x1xi32> to vector<1x16xi32>
    %199 = arith.cmpi eq, %40, %198 : vector<1x16xi32>
    %cst_77 = arith.constant 1.000000e+00 : f32
    %200 = vector.broadcast %cst_77 : f32 to vector<1x16xf32>
    %201 = arith.select %199, %200, %187 : vector<1x16xi1>, vector<1x16xf32>
    %cst_78 = arith.constant 0xFF800000 : f32
    %202 = vector.broadcast %cst_78 : f32 to vector<1x16xf32>
    %203 = arith.select %199, %202, %189 : vector<1x16xi1>, vector<1x16xf32>
    %cst_79 = arith.constant dense<0xFF800000> : vector<1xf32>
    %204 = vector.multi_reduction <maximumf>, %203, %cst_79 [1] : vector<1x16xf32> to vector<1xf32>
    %205 = vector.shape_cast %204 : vector<1xf32> to vector<1x1xf32>
    %206 = vector.broadcast %205 : vector<1x1xf32> to vector<1x16xf32>
    %207 = arith.cmpf oeq, %203, %206 : vector<1x16xf32>
    %c16_i32_80 = arith.constant 16 : i32
    %208 = vector.broadcast %c16_i32_80 : i32 to vector<1x16xi32>
    %209 = arith.select %207, %40, %208 : vector<1x16xi1>, vector<1x16xi32>
    %cst_81 = arith.constant dense<2147483647> : vector<1xi32>
    %210 = vector.multi_reduction <minsi>, %209, %cst_81 [1] : vector<1x16xi32> to vector<1xi32>
    %211 = vector.shape_cast %210 : vector<1xi32> to vector<1x1xi32>
    %212 = vector.broadcast %211 : vector<1x1xi32> to vector<1x16xi32>
    %213 = arith.cmpi eq, %40, %212 : vector<1x16xi32>
    %cst_82 = arith.constant 1.000000e+00 : f32
    %214 = vector.broadcast %cst_82 : f32 to vector<1x16xf32>
    %215 = arith.select %213, %214, %201 : vector<1x16xi1>, vector<1x16xf32>
    %cst_83 = arith.constant 0xFF800000 : f32
    %216 = vector.broadcast %cst_83 : f32 to vector<1x16xf32>
    %217 = arith.select %213, %216, %203 : vector<1x16xi1>, vector<1x16xf32>
    %cst_84 = arith.constant dense<0xFF800000> : vector<1xf32>
    %218 = vector.multi_reduction <maximumf>, %217, %cst_84 [1] : vector<1x16xf32> to vector<1xf32>
    %219 = vector.shape_cast %218 : vector<1xf32> to vector<1x1xf32>
    %220 = vector.broadcast %219 : vector<1x1xf32> to vector<1x16xf32>
    %221 = arith.cmpf oeq, %217, %220 : vector<1x16xf32>
    %c16_i32_85 = arith.constant 16 : i32
    %222 = vector.broadcast %c16_i32_85 : i32 to vector<1x16xi32>
    %223 = arith.select %221, %40, %222 : vector<1x16xi1>, vector<1x16xi32>
    %cst_86 = arith.constant dense<2147483647> : vector<1xi32>
    %224 = vector.multi_reduction <minsi>, %223, %cst_86 [1] : vector<1x16xi32> to vector<1xi32>
    %225 = vector.shape_cast %224 : vector<1xi32> to vector<1x1xi32>
    %226 = vector.broadcast %225 : vector<1x1xi32> to vector<1x16xi32>
    %227 = arith.cmpi eq, %40, %226 : vector<1x16xi32>
    %cst_87 = arith.constant 1.000000e+00 : f32
    %228 = vector.broadcast %cst_87 : f32 to vector<1x16xf32>
    %229 = arith.select %227, %228, %215 : vector<1x16xi1>, vector<1x16xf32>
    %230 = vector.broadcast %51 : vector<1x1xf32> to vector<1x16xf32>
    %231 = arith.subf %39, %230 : vector<1x16xf32>
    %232 = math.exp %231 : vector<1x16xf32>
    %233 = arith.mulf %232, %229 : vector<1x16xf32>
    %cst_88 = arith.constant dense<0.000000e+00> : vector<1xf32>
    %234 = vector.multi_reduction <add>, %233, %cst_88 [1] : vector<1x16xf32> to vector<1xf32>
    %235 = vector.shape_cast %234 : vector<1xf32> to vector<1x1xf32>
    %cst_89 = arith.constant 1.000000e+00 : f32
    %236 = vector.broadcast %cst_89 : f32 to vector<1x1xf32>
    %237 = arith.divf %236, %235 : vector<1x1xf32>
    %238 = vector.broadcast %237 : vector<1x1xf32> to vector<1x16xf32>
    %239 = arith.mulf %233, %238 : vector<1x16xf32>
    %cst_90 = arith.constant 0.000000e+00 : f32
    %240 = vector.broadcast %cst_90 : f32 to vector<16x16xf32>
    %241 = vector.broadcast %57 : vector<1x1xi32> to vector<1x16xi32>
    %242 = arith.cmpi eq, %40, %241 : vector<1x16xi32>
    %cst_91 = arith.constant 0.000000e+00 : f32
    %243 = vector.broadcast %cst_91 : f32 to vector<1x16xf32>
    %244 = arith.select %242, %239, %243 : vector<1x16xi1>, vector<1x16xf32>
    %cst_92 = arith.constant dense<0.000000e+00> : vector<1xf32>
    %245 = vector.multi_reduction <add>, %244, %cst_92 [1] : vector<1x16xf32> to vector<1xf32>
    %246 = vector.shape_cast %245 : vector<1xf32> to vector<1x1xf32>
    %247 = vector.broadcast %57 : vector<1x1xi32> to vector<16x16xi32>
    %248 = arith.cmpi eq, %48, %247 : vector<16x16xi32>
    %249 = arith.extui %248 : vector<16x16xi1> to vector<16x16xi32>
    %250 = arith.sitofp %249 : vector<16x16xi32> to vector<16x16xf32>
    %251 = vector.broadcast %246 : vector<1x1xf32> to vector<16x16xf32>
    %252 = arith.mulf %251, %250 : vector<16x16xf32>
    %253 = arith.addf %240, %252 : vector<16x16xf32>
    %254 = vector.broadcast %71 : vector<1x1xi32> to vector<1x16xi32>
    %255 = arith.cmpi eq, %40, %254 : vector<1x16xi32>
    %cst_93 = arith.constant 0.000000e+00 : f32
    %256 = vector.broadcast %cst_93 : f32 to vector<1x16xf32>
    %257 = arith.select %255, %239, %256 : vector<1x16xi1>, vector<1x16xf32>
    %cst_94 = arith.constant dense<0.000000e+00> : vector<1xf32>
    %258 = vector.multi_reduction <add>, %257, %cst_94 [1] : vector<1x16xf32> to vector<1xf32>
    %259 = vector.shape_cast %258 : vector<1xf32> to vector<1x1xf32>
    %260 = vector.broadcast %71 : vector<1x1xi32> to vector<16x16xi32>
    %261 = arith.cmpi eq, %48, %260 : vector<16x16xi32>
    %262 = arith.extui %261 : vector<16x16xi1> to vector<16x16xi32>
    %263 = arith.sitofp %262 : vector<16x16xi32> to vector<16x16xf32>
    %264 = vector.broadcast %259 : vector<1x1xf32> to vector<16x16xf32>
    %265 = arith.mulf %264, %263 : vector<16x16xf32>
    %266 = arith.addf %253, %265 : vector<16x16xf32>
    %267 = vector.broadcast %85 : vector<1x1xi32> to vector<1x16xi32>
    %268 = arith.cmpi eq, %40, %267 : vector<1x16xi32>
    %cst_95 = arith.constant 0.000000e+00 : f32
    %269 = vector.broadcast %cst_95 : f32 to vector<1x16xf32>
    %270 = arith.select %268, %239, %269 : vector<1x16xi1>, vector<1x16xf32>
    %cst_96 = arith.constant dense<0.000000e+00> : vector<1xf32>
    %271 = vector.multi_reduction <add>, %270, %cst_96 [1] : vector<1x16xf32> to vector<1xf32>
    %272 = vector.shape_cast %271 : vector<1xf32> to vector<1x1xf32>
    %273 = vector.broadcast %85 : vector<1x1xi32> to vector<16x16xi32>
    %274 = arith.cmpi eq, %48, %273 : vector<16x16xi32>
    %275 = arith.extui %274 : vector<16x16xi1> to vector<16x16xi32>
    %276 = arith.sitofp %275 : vector<16x16xi32> to vector<16x16xf32>
    %277 = vector.broadcast %272 : vector<1x1xf32> to vector<16x16xf32>
    %278 = arith.mulf %277, %276 : vector<16x16xf32>
    %279 = arith.addf %266, %278 : vector<16x16xf32>
    %280 = vector.broadcast %99 : vector<1x1xi32> to vector<1x16xi32>
    %281 = arith.cmpi eq, %40, %280 : vector<1x16xi32>
    %cst_97 = arith.constant 0.000000e+00 : f32
    %282 = vector.broadcast %cst_97 : f32 to vector<1x16xf32>
    %283 = arith.select %281, %239, %282 : vector<1x16xi1>, vector<1x16xf32>
    %cst_98 = arith.constant dense<0.000000e+00> : vector<1xf32>
    %284 = vector.multi_reduction <add>, %283, %cst_98 [1] : vector<1x16xf32> to vector<1xf32>
    %285 = vector.shape_cast %284 : vector<1xf32> to vector<1x1xf32>
    %286 = vector.broadcast %99 : vector<1x1xi32> to vector<16x16xi32>
    %287 = arith.cmpi eq, %48, %286 : vector<16x16xi32>
    %288 = arith.extui %287 : vector<16x16xi1> to vector<16x16xi32>
    %289 = arith.sitofp %288 : vector<16x16xi32> to vector<16x16xf32>
    %290 = vector.broadcast %285 : vector<1x1xf32> to vector<16x16xf32>
    %291 = arith.mulf %290, %289 : vector<16x16xf32>
    %292 = arith.addf %279, %291 : vector<16x16xf32>
    %293 = vector.broadcast %113 : vector<1x1xi32> to vector<1x16xi32>
    %294 = arith.cmpi eq, %40, %293 : vector<1x16xi32>
    %cst_99 = arith.constant 0.000000e+00 : f32
    %295 = vector.broadcast %cst_99 : f32 to vector<1x16xf32>
    %296 = arith.select %294, %239, %295 : vector<1x16xi1>, vector<1x16xf32>
    %cst_100 = arith.constant dense<0.000000e+00> : vector<1xf32>
    %297 = vector.multi_reduction <add>, %296, %cst_100 [1] : vector<1x16xf32> to vector<1xf32>
    %298 = vector.shape_cast %297 : vector<1xf32> to vector<1x1xf32>
    %299 = vector.broadcast %113 : vector<1x1xi32> to vector<16x16xi32>
    %300 = arith.cmpi eq, %48, %299 : vector<16x16xi32>
    %301 = arith.extui %300 : vector<16x16xi1> to vector<16x16xi32>
    %302 = arith.sitofp %301 : vector<16x16xi32> to vector<16x16xf32>
    %303 = vector.broadcast %298 : vector<1x1xf32> to vector<16x16xf32>
    %304 = arith.mulf %303, %302 : vector<16x16xf32>
    %305 = arith.addf %292, %304 : vector<16x16xf32>
    %306 = vector.broadcast %127 : vector<1x1xi32> to vector<1x16xi32>
    %307 = arith.cmpi eq, %40, %306 : vector<1x16xi32>
    %cst_101 = arith.constant 0.000000e+00 : f32
    %308 = vector.broadcast %cst_101 : f32 to vector<1x16xf32>
    %309 = arith.select %307, %239, %308 : vector<1x16xi1>, vector<1x16xf32>
    %cst_102 = arith.constant dense<0.000000e+00> : vector<1xf32>
    %310 = vector.multi_reduction <add>, %309, %cst_102 [1] : vector<1x16xf32> to vector<1xf32>
    %311 = vector.shape_cast %310 : vector<1xf32> to vector<1x1xf32>
    %312 = vector.broadcast %127 : vector<1x1xi32> to vector<16x16xi32>
    %313 = arith.cmpi eq, %48, %312 : vector<16x16xi32>
    %314 = arith.extui %313 : vector<16x16xi1> to vector<16x16xi32>
    %315 = arith.sitofp %314 : vector<16x16xi32> to vector<16x16xf32>
    %316 = vector.broadcast %311 : vector<1x1xf32> to vector<16x16xf32>
    %317 = arith.mulf %316, %315 : vector<16x16xf32>
    %318 = arith.addf %305, %317 : vector<16x16xf32>
    %319 = vector.broadcast %141 : vector<1x1xi32> to vector<1x16xi32>
    %320 = arith.cmpi eq, %40, %319 : vector<1x16xi32>
    %cst_103 = arith.constant 0.000000e+00 : f32
    %321 = vector.broadcast %cst_103 : f32 to vector<1x16xf32>
    %322 = arith.select %320, %239, %321 : vector<1x16xi1>, vector<1x16xf32>
    %cst_104 = arith.constant dense<0.000000e+00> : vector<1xf32>
    %323 = vector.multi_reduction <add>, %322, %cst_104 [1] : vector<1x16xf32> to vector<1xf32>
    %324 = vector.shape_cast %323 : vector<1xf32> to vector<1x1xf32>
    %325 = vector.broadcast %141 : vector<1x1xi32> to vector<16x16xi32>
    %326 = arith.cmpi eq, %48, %325 : vector<16x16xi32>
    %327 = arith.extui %326 : vector<16x16xi1> to vector<16x16xi32>
    %328 = arith.sitofp %327 : vector<16x16xi32> to vector<16x16xf32>
    %329 = vector.broadcast %324 : vector<1x1xf32> to vector<16x16xf32>
    %330 = arith.mulf %329, %328 : vector<16x16xf32>
    %331 = arith.addf %318, %330 : vector<16x16xf32>
    %332 = vector.broadcast %155 : vector<1x1xi32> to vector<1x16xi32>
    %333 = arith.cmpi eq, %40, %332 : vector<1x16xi32>
    %cst_105 = arith.constant 0.000000e+00 : f32
    %334 = vector.broadcast %cst_105 : f32 to vector<1x16xf32>
    %335 = arith.select %333, %239, %334 : vector<1x16xi1>, vector<1x16xf32>
    %cst_106 = arith.constant dense<0.000000e+00> : vector<1xf32>
    %336 = vector.multi_reduction <add>, %335, %cst_106 [1] : vector<1x16xf32> to vector<1xf32>
    %337 = vector.shape_cast %336 : vector<1xf32> to vector<1x1xf32>
    %338 = vector.broadcast %155 : vector<1x1xi32> to vector<16x16xi32>
    %339 = arith.cmpi eq, %48, %338 : vector<16x16xi32>
    %340 = arith.extui %339 : vector<16x16xi1> to vector<16x16xi32>
    %341 = arith.sitofp %340 : vector<16x16xi32> to vector<16x16xf32>
    %342 = vector.broadcast %337 : vector<1x1xf32> to vector<16x16xf32>
    %343 = arith.mulf %342, %341 : vector<16x16xf32>
    %344 = arith.addf %331, %343 : vector<16x16xf32>
    %345 = vector.broadcast %169 : vector<1x1xi32> to vector<1x16xi32>
    %346 = arith.cmpi eq, %40, %345 : vector<1x16xi32>
    %cst_107 = arith.constant 0.000000e+00 : f32
    %347 = vector.broadcast %cst_107 : f32 to vector<1x16xf32>
    %348 = arith.select %346, %239, %347 : vector<1x16xi1>, vector<1x16xf32>
    %cst_108 = arith.constant dense<0.000000e+00> : vector<1xf32>
    %349 = vector.multi_reduction <add>, %348, %cst_108 [1] : vector<1x16xf32> to vector<1xf32>
    %350 = vector.shape_cast %349 : vector<1xf32> to vector<1x1xf32>
    %351 = vector.broadcast %169 : vector<1x1xi32> to vector<16x16xi32>
    %352 = arith.cmpi eq, %48, %351 : vector<16x16xi32>
    %353 = arith.extui %352 : vector<16x16xi1> to vector<16x16xi32>
    %354 = arith.sitofp %353 : vector<16x16xi32> to vector<16x16xf32>
    %355 = vector.broadcast %350 : vector<1x1xf32> to vector<16x16xf32>
    %356 = arith.mulf %355, %354 : vector<16x16xf32>
    %357 = arith.addf %344, %356 : vector<16x16xf32>
    %358 = vector.broadcast %183 : vector<1x1xi32> to vector<1x16xi32>
    %359 = arith.cmpi eq, %40, %358 : vector<1x16xi32>
    %cst_109 = arith.constant 0.000000e+00 : f32
    %360 = vector.broadcast %cst_109 : f32 to vector<1x16xf32>
    %361 = arith.select %359, %239, %360 : vector<1x16xi1>, vector<1x16xf32>
    %cst_110 = arith.constant dense<0.000000e+00> : vector<1xf32>
    %362 = vector.multi_reduction <add>, %361, %cst_110 [1] : vector<1x16xf32> to vector<1xf32>
    %363 = vector.shape_cast %362 : vector<1xf32> to vector<1x1xf32>
    %364 = vector.broadcast %183 : vector<1x1xi32> to vector<16x16xi32>
    %365 = arith.cmpi eq, %48, %364 : vector<16x16xi32>
    %366 = arith.extui %365 : vector<16x16xi1> to vector<16x16xi32>
    %367 = arith.sitofp %366 : vector<16x16xi32> to vector<16x16xf32>
    %368 = vector.broadcast %363 : vector<1x1xf32> to vector<16x16xf32>
    %369 = arith.mulf %368, %367 : vector<16x16xf32>
    %370 = arith.addf %357, %369 : vector<16x16xf32>
    %371 = vector.broadcast %197 : vector<1x1xi32> to vector<1x16xi32>
    %372 = arith.cmpi eq, %40, %371 : vector<1x16xi32>
    %cst_111 = arith.constant 0.000000e+00 : f32
    %373 = vector.broadcast %cst_111 : f32 to vector<1x16xf32>
    %374 = arith.select %372, %239, %373 : vector<1x16xi1>, vector<1x16xf32>
    %cst_112 = arith.constant dense<0.000000e+00> : vector<1xf32>
    %375 = vector.multi_reduction <add>, %374, %cst_112 [1] : vector<1x16xf32> to vector<1xf32>
    %376 = vector.shape_cast %375 : vector<1xf32> to vector<1x1xf32>
    %377 = vector.broadcast %197 : vector<1x1xi32> to vector<16x16xi32>
    %378 = arith.cmpi eq, %48, %377 : vector<16x16xi32>
    %379 = arith.extui %378 : vector<16x16xi1> to vector<16x16xi32>
    %380 = arith.sitofp %379 : vector<16x16xi32> to vector<16x16xf32>
    %381 = vector.broadcast %376 : vector<1x1xf32> to vector<16x16xf32>
    %382 = arith.mulf %381, %380 : vector<16x16xf32>
    %383 = arith.addf %370, %382 : vector<16x16xf32>
    %384 = vector.broadcast %211 : vector<1x1xi32> to vector<1x16xi32>
    %385 = arith.cmpi eq, %40, %384 : vector<1x16xi32>
    %cst_113 = arith.constant 0.000000e+00 : f32
    %386 = vector.broadcast %cst_113 : f32 to vector<1x16xf32>
    %387 = arith.select %385, %239, %386 : vector<1x16xi1>, vector<1x16xf32>
    %cst_114 = arith.constant dense<0.000000e+00> : vector<1xf32>
    %388 = vector.multi_reduction <add>, %387, %cst_114 [1] : vector<1x16xf32> to vector<1xf32>
    %389 = vector.shape_cast %388 : vector<1xf32> to vector<1x1xf32>
    %390 = vector.broadcast %211 : vector<1x1xi32> to vector<16x16xi32>
    %391 = arith.cmpi eq, %48, %390 : vector<16x16xi32>
    %392 = arith.extui %391 : vector<16x16xi1> to vector<16x16xi32>
    %393 = arith.sitofp %392 : vector<16x16xi32> to vector<16x16xf32>
    %394 = vector.broadcast %389 : vector<1x1xf32> to vector<16x16xf32>
    %395 = arith.mulf %394, %393 : vector<16x16xf32>
    %396 = arith.addf %383, %395 : vector<16x16xf32>
    %397 = vector.broadcast %225 : vector<1x1xi32> to vector<1x16xi32>
    %398 = arith.cmpi eq, %40, %397 : vector<1x16xi32>
    %cst_115 = arith.constant 0.000000e+00 : f32
    %399 = vector.broadcast %cst_115 : f32 to vector<1x16xf32>
    %400 = arith.select %398, %239, %399 : vector<1x16xi1>, vector<1x16xf32>
    %cst_116 = arith.constant dense<0.000000e+00> : vector<1xf32>
    %401 = vector.multi_reduction <add>, %400, %cst_116 [1] : vector<1x16xf32> to vector<1xf32>
    %402 = vector.shape_cast %401 : vector<1xf32> to vector<1x1xf32>
    %403 = vector.broadcast %225 : vector<1x1xi32> to vector<16x16xi32>
    %404 = arith.cmpi eq, %48, %403 : vector<16x16xi32>
    %405 = arith.extui %404 : vector<16x16xi1> to vector<16x16xi32>
    %406 = arith.sitofp %405 : vector<16x16xi32> to vector<16x16xf32>
    %407 = vector.broadcast %402 : vector<1x1xf32> to vector<16x16xf32>
    %408 = arith.mulf %407, %406 : vector<16x16xf32>
    %409 = arith.addf %396, %408 : vector<16x16xf32>
    %cst_117 = arith.constant dense<0.000000e+00> : vector<16x32xf32>
    %410 = tpu.matmul %409, %10, %cst_117 {dimension_numbers = #tpu.dot_dimension_numbers<[1], [0], [0], [1], [0, 0, 1, 1], [], []>} : vector<16x16xf32>, vector<16x32xf32>, vector<16x32xf32> -> vector<16x32xf32>
    %411 = arith.truncf %410 : vector<16x32xf32> to vector<16x32xbf16>
    %cst_118 = arith.constant dense<0.000000e+00> : vector<16x32xf32>
    %412 = tpu.matmul %411, %13, %cst_118 {dimension_numbers = #tpu.dot_dimension_numbers<[1], [0], [0], [1], [0, 0, 1, 1], [], []>} : vector<16x32xbf16>, vector<32x32xbf16>, vector<16x32xf32> -> vector<16x32xf32>
    %413 = vector.broadcast %14 : vector<1x32xf32> to vector<16x32xf32>
    %414 = arith.addf %412, %413 : vector<16x32xf32>
    %415 = arith.addf %1, %414 : vector<16x32xf32>
    %416 = vector.extract_strided_slice %415 {offsets = [0, 0], sizes = [1, 32], strides = [1, 1]} : vector<16x32xf32> to vector<1x32xf32>
    %417 = vector.shape_cast %416 : vector<1x32xf32> to vector<1x32xf32>
    %418 = vector.broadcast %417 : vector<1x32xf32> to vector<2x32xf32>
    %419 = vector.extract_strided_slice %415 {offsets = [15, 0], sizes = [1, 32], strides = [1, 1]} : vector<16x32xf32> to vector<1x32xf32>
    %420 = vector.shape_cast %419 : vector<1x32xf32> to vector<1x32xf32>
    %421 = vector.broadcast %420 : vector<1x32xf32> to vector<2x32xf32>
    %422 = tpu.concatenate %418, %415, %421 in 0 : vector<2x32xf32>, vector<16x32xf32>, vector<2x32xf32> -> vector<20x32xf32>
    %423 = vector.extract_strided_slice %422 {offsets = [0, 0], sizes = [16, 32], strides = [1, 1]} : vector<20x32xf32> to vector<16x32xf32>
    %424 = vector.extract_strided_slice %422 {offsets = [1, 0], sizes = [16, 32], strides = [1, 1]} : vector<20x32xf32> to vector<16x32xf32>
    %425 = arith.addf %423, %424 : vector<16x32xf32>
    %426 = vector.extract_strided_slice %422 {offsets = [2, 0], sizes = [16, 32], strides = [1, 1]} : vector<20x32xf32> to vector<16x32xf32>
    %427 = arith.addf %425, %426 : vector<16x32xf32>
    %428 = vector.extract_strided_slice %422 {offsets = [3, 0], sizes = [16, 32], strides = [1, 1]} : vector<20x32xf32> to vector<16x32xf32>
    %429 = arith.addf %427, %428 : vector<16x32xf32>
    %430 = vector.extract_strided_slice %422 {offsets = [4, 0], sizes = [16, 32], strides = [1, 1]} : vector<20x32xf32> to vector<16x32xf32>
    %431 = arith.addf %429, %430 : vector<16x32xf32>
    %cst_119 = arith.constant 2.000000e-01 : f32
    %432 = vector.broadcast %cst_119 : f32 to vector<16x32xf32>
    %433 = arith.mulf %431, %432 : vector<16x32xf32>
    %434 = arith.subf %415, %433 : vector<16x32xf32>
    %c0_120 = arith.constant 0 : index
    %c0_121 = arith.constant 0 : index
    %435 = vector.load %arg6[%c0_120, %c0_121] : memref<32x32xbf16, #tpu.memory_space<vmem>>, vector<32x32xbf16>
    %436 = arith.truncf %434 : vector<16x32xf32> to vector<16x32xbf16>
    %cst_122 = arith.constant dense<0.000000e+00> : vector<16x32xf32>
    %437 = tpu.matmul %436, %435, %cst_122 {dimension_numbers = #tpu.dot_dimension_numbers<[1], [0], [0], [1], [0, 0, 1, 1], [], []>} : vector<16x32xbf16>, vector<32x32xbf16>, vector<16x32xf32> -> vector<16x32xf32>
    %cst_123 = arith.constant 5.000000e-01 : f32
    %438 = vector.broadcast %cst_123 : f32 to vector<16x32xf32>
    %439 = arith.mulf %438, %437 : vector<16x32xf32>
    %cst_124 = arith.constant 0.707106769 : f32
    %440 = vector.broadcast %cst_124 : f32 to vector<16x32xf32>
    %441 = arith.mulf %437, %440 : vector<16x32xf32>
    %cst_125 = arith.constant 0.000000e+00 : f32
    %442 = vector.broadcast %cst_125 : f32 to vector<16x32xf32>
    %443 = arith.cmpf oge, %441, %442 : vector<16x32xf32>
    %cst_126 = arith.constant 1.000000e+00 : f32
    %cst_127 = arith.constant -1.000000e+00 : f32
    %444 = vector.broadcast %cst_126 : f32 to vector<16x32xf32>
    %445 = vector.broadcast %cst_127 : f32 to vector<16x32xf32>
    %446 = arith.select %443, %444, %445 : vector<16x32xi1>, vector<16x32xf32>
    %447 = math.absf %441 : vector<16x32xf32>
    %cst_128 = arith.constant 0.327591091 : f32
    %448 = vector.broadcast %cst_128 : f32 to vector<16x32xf32>
    %449 = arith.mulf %448, %447 : vector<16x32xf32>
    %cst_129 = arith.constant 1.000000e+00 : f32
    %450 = vector.broadcast %cst_129 : f32 to vector<16x32xf32>
    %451 = arith.addf %450, %449 : vector<16x32xf32>
    %cst_130 = arith.constant 1.000000e+00 : f32
    %452 = vector.broadcast %cst_130 : f32 to vector<16x32xf32>
    %453 = arith.divf %452, %451 : vector<16x32xf32>
    %cst_131 = arith.constant 1.06140542 : f32
    %454 = vector.broadcast %cst_131 : f32 to vector<16x32xf32>
    %455 = arith.mulf %454, %453 : vector<16x32xf32>
    %cst_132 = arith.constant -1.45315206 : f32
    %456 = vector.broadcast %cst_132 : f32 to vector<16x32xf32>
    %457 = arith.addf %455, %456 : vector<16x32xf32>
    %458 = arith.mulf %457, %453 : vector<16x32xf32>
    %cst_133 = arith.constant 1.42141378 : f32
    %459 = vector.broadcast %cst_133 : f32 to vector<16x32xf32>
    %460 = arith.addf %458, %459 : vector<16x32xf32>
    %461 = arith.mulf %460, %453 : vector<16x32xf32>
    %cst_134 = arith.constant -0.284496725 : f32
    %462 = vector.broadcast %cst_134 : f32 to vector<16x32xf32>
    %463 = arith.addf %461, %462 : vector<16x32xf32>
    %464 = arith.mulf %463, %453 : vector<16x32xf32>
    %cst_135 = arith.constant 0.254829586 : f32
    %465 = vector.broadcast %cst_135 : f32 to vector<16x32xf32>
    %466 = arith.addf %464, %465 : vector<16x32xf32>
    %467 = arith.mulf %466, %453 : vector<16x32xf32>
    %cst_136 = arith.constant 0.000000e+00 : f32
    %468 = vector.broadcast %cst_136 : f32 to vector<16x32xf32>
    %469 = arith.subf %468, %447 : vector<16x32xf32>
    %470 = arith.mulf %469, %447 : vector<16x32xf32>
    %471 = math.exp %470 : vector<16x32xf32>
    %472 = arith.mulf %467, %471 : vector<16x32xf32>
    %cst_137 = arith.constant 1.000000e+00 : f32
    %473 = vector.broadcast %cst_137 : f32 to vector<16x32xf32>
    %474 = arith.subf %473, %472 : vector<16x32xf32>
    %475 = arith.mulf %446, %474 : vector<16x32xf32>
    %cst_138 = arith.constant 1.000000e+00 : f32
    %476 = vector.broadcast %cst_138 : f32 to vector<16x32xf32>
    %477 = arith.addf %476, %475 : vector<16x32xf32>
    %478 = arith.mulf %439, %477 : vector<16x32xf32>
    %c0_139 = arith.constant 0 : index
    %c0_140 = arith.constant 0 : index
    %479 = vector.load %arg7[%c0_139, %c0_140] : memref<32x32xbf16, #tpu.memory_space<vmem>>, vector<32x32xbf16>
    %480 = arith.truncf %478 : vector<16x32xf32> to vector<16x32xbf16>
    %cst_141 = arith.constant dense<0.000000e+00> : vector<16x32xf32>
    %481 = tpu.matmul %480, %479, %cst_141 {dimension_numbers = #tpu.dot_dimension_numbers<[1], [0], [0], [1], [0, 0, 1, 1], [], []>} : vector<16x32xbf16>, vector<32x32xbf16>, vector<16x32xf32> -> vector<16x32xf32>
    %482 = arith.addf %434, %481 : vector<16x32xf32>
    %483 = vector.extract_strided_slice %482 {offsets = [0, 0], sizes = [1, 32], strides = [1, 1]} : vector<16x32xf32> to vector<1x32xf32>
    %484 = vector.shape_cast %483 : vector<1x32xf32> to vector<1x32xf32>
    %485 = vector.broadcast %484 : vector<1x32xf32> to vector<2x32xf32>
    %486 = vector.extract_strided_slice %482 {offsets = [15, 0], sizes = [1, 32], strides = [1, 1]} : vector<16x32xf32> to vector<1x32xf32>
    %487 = vector.shape_cast %486 : vector<1x32xf32> to vector<1x32xf32>
    %488 = vector.broadcast %487 : vector<1x32xf32> to vector<2x32xf32>
    %489 = tpu.concatenate %485, %482, %488 in 0 : vector<2x32xf32>, vector<16x32xf32>, vector<2x32xf32> -> vector<20x32xf32>
    %490 = vector.extract_strided_slice %489 {offsets = [0, 0], sizes = [16, 32], strides = [1, 1]} : vector<20x32xf32> to vector<16x32xf32>
    %491 = vector.extract_strided_slice %489 {offsets = [1, 0], sizes = [16, 32], strides = [1, 1]} : vector<20x32xf32> to vector<16x32xf32>
    %492 = arith.addf %490, %491 : vector<16x32xf32>
    %493 = vector.extract_strided_slice %489 {offsets = [2, 0], sizes = [16, 32], strides = [1, 1]} : vector<20x32xf32> to vector<16x32xf32>
    %494 = arith.addf %492, %493 : vector<16x32xf32>
    %495 = vector.extract_strided_slice %489 {offsets = [3, 0], sizes = [16, 32], strides = [1, 1]} : vector<20x32xf32> to vector<16x32xf32>
    %496 = arith.addf %494, %495 : vector<16x32xf32>
    %497 = vector.extract_strided_slice %489 {offsets = [4, 0], sizes = [16, 32], strides = [1, 1]} : vector<20x32xf32> to vector<16x32xf32>
    %498 = arith.addf %496, %497 : vector<16x32xf32>
    %cst_142 = arith.constant 2.000000e-01 : f32
    %499 = vector.broadcast %cst_142 : f32 to vector<16x32xf32>
    %500 = arith.mulf %498, %499 : vector<16x32xf32>
    %501 = arith.subf %482, %500 : vector<16x32xf32>
    %c0_143 = arith.constant 0 : index
    %c0_144 = arith.constant 0 : index
    %502 = vector.load %arg10[%c0_143, %c0_144] : memref<1x32xf32, #tpu.memory_space<vmem>>, vector<1x32xf32>
    %c0_145 = arith.constant 0 : index
    %c0_146 = arith.constant 0 : index
    %503 = vector.load %arg11[%c0_145, %c0_146] : memref<1x32xf32, #tpu.memory_space<vmem>>, vector<1x32xf32>
    %cst_147 = arith.constant dense<0.000000e+00> : vector<16xf32>
    %504 = vector.multi_reduction <add>, %501, %cst_147 [1] : vector<16x32xf32> to vector<16xf32>
    %505 = vector.shape_cast %504 : vector<16xf32> to vector<16x1xf32>
    %cst_148 = arith.constant 3.200000e+01 : f32
    %506 = vector.broadcast %cst_148 : f32 to vector<16x1xf32>
    %507 = arith.divf %505, %506 : vector<16x1xf32>
    %508 = vector.broadcast %507 : vector<16x1xf32> to vector<16x32xf32>
    %509 = arith.subf %501, %508 : vector<16x32xf32>
    %510 = vector.broadcast %507 : vector<16x1xf32> to vector<16x32xf32>
    %511 = arith.subf %501, %510 : vector<16x32xf32>
    %512 = arith.mulf %509, %511 : vector<16x32xf32>
    %cst_149 = arith.constant dense<0.000000e+00> : vector<16xf32>
    %513 = vector.multi_reduction <add>, %512, %cst_149 [1] : vector<16x32xf32> to vector<16xf32>
    %514 = vector.shape_cast %513 : vector<16xf32> to vector<16x1xf32>
    %cst_150 = arith.constant 3.200000e+01 : f32
    %515 = vector.broadcast %cst_150 : f32 to vector<16x1xf32>
    %516 = arith.divf %514, %515 : vector<16x1xf32>
    %517 = vector.broadcast %507 : vector<16x1xf32> to vector<16x32xf32>
    %518 = arith.subf %501, %517 : vector<16x32xf32>
    %cst_151 = arith.constant 9.99999974E-6 : f32
    %519 = vector.broadcast %cst_151 : f32 to vector<16x1xf32>
    %520 = arith.addf %516, %519 : vector<16x1xf32>
    %521 = math.rsqrt %520 : vector<16x1xf32>
    %522 = vector.broadcast %521 : vector<16x1xf32> to vector<16x32xf32>
    %523 = arith.mulf %518, %522 : vector<16x32xf32>
    %524 = vector.broadcast %502 : vector<1x32xf32> to vector<16x32xf32>
    %525 = arith.mulf %523, %524 : vector<16x32xf32>
    %526 = vector.broadcast %503 : vector<1x32xf32> to vector<16x32xf32>
    %527 = arith.addf %525, %526 : vector<16x32xf32>
    %cst_152 = arith.constant dense<0.000000e+00> : vector<32xf32>
    %528 = vector.multi_reduction <add>, %527, %cst_152 [0] : vector<16x32xf32> to vector<32xf32>
    %529 = vector.shape_cast %528 : vector<32xf32> to vector<1x32xf32>
    %cst_153 = arith.constant 1.600000e+01 : f32
    %530 = vector.broadcast %cst_153 : f32 to vector<1x32xf32>
    %531 = arith.divf %529, %530 : vector<1x32xf32>
    %532 = vector.broadcast %531 : vector<1x32xf32> to vector<16x32xf32>
    %533 = arith.subf %527, %532 : vector<16x32xf32>
    %c0_154 = arith.constant 0 : index
    %c0_155 = arith.constant 0 : index
    %c0_156 = arith.constant 0 : index
    %534 = vector.load %arg12[%c0_154, %c0_155, %c0_156] : memref<1x16x32xf32, #tpu.memory_space<vmem>>, vector<1x16x32xf32>
    %535 = vector.shape_cast %534 : vector<1x16x32xf32> to vector<16x32xf32>
    %536 = vector.shape_cast %533 : vector<16x32xf32> to vector<1x16x32xf32>
    tpu.vector_store %arg12[%c0_154, %c0_155, %c0_156], %536 {strides = array<i32>} : memref<1x16x32xf32, #tpu.memory_space<vmem>>, vector<1x16x32xf32>,
    return
  }
  func.func @transform_0(%arg0: i32) -> (i32, i32, i32) {
    %c0_i32 = arith.constant 0 : i32
    %c0_i32_0 = arith.constant 0 : i32
    %c0_i32_1 = arith.constant 0 : i32
    return %arg0, %c0_i32, %c0_i32_0 : i32, i32, i32
  }
  func.func @transform_1(%arg0: i32) -> (i32, i32) {
    %c0_i32 = arith.constant 0 : i32
    %c0_i32_0 = arith.constant 0 : i32
    %c0_i32_1 = arith.constant 0 : i32
    return %c0_i32, %c0_i32_0 : i32, i32
  }
  func.func @transform_2(%arg0: i32) -> (i32, i32) {
    %c0_i32 = arith.constant 0 : i32
    %c0_i32_0 = arith.constant 0 : i32
    %c0_i32_1 = arith.constant 0 : i32
    return %c0_i32, %c0_i32_0 : i32, i32
  }
  func.func @transform_3(%arg0: i32) -> (i32, i32) {
    %c0_i32 = arith.constant 0 : i32
    %c0_i32_0 = arith.constant 0 : i32
    %c0_i32_1 = arith.constant 0 : i32
    return %c0_i32, %c0_i32_0 : i32, i32
  }
  func.func @transform_4(%arg0: i32) -> (i32, i32) {
    %c0_i32 = arith.constant 0 : i32
    %c0_i32_0 = arith.constant 0 : i32
    %c0_i32_1 = arith.constant 0 : i32
    return %c0_i32, %c0_i32_0 : i32, i32
  }
  func.func @transform_5(%arg0: i32) -> (i32, i32) {
    %c0_i32 = arith.constant 0 : i32
    %c0_i32_0 = arith.constant 0 : i32
    %c0_i32_1 = arith.constant 0 : i32
    return %c0_i32, %c0_i32_0 : i32, i32
  }
  func.func @transform_6(%arg0: i32) -> (i32, i32) {
    %c0_i32 = arith.constant 0 : i32
    %c0_i32_0 = arith.constant 0 : i32
    %c0_i32_1 = arith.constant 0 : i32
    return %c0_i32, %c0_i32_0 : i32, i32
  }
  func.func @transform_7(%arg0: i32) -> (i32, i32) {
    %c0_i32 = arith.constant 0 : i32
    %c0_i32_0 = arith.constant 0 : i32
    %c0_i32_1 = arith.constant 0 : i32
    return %c0_i32, %c0_i32_0 : i32, i32
  }
  func.func @transform_8(%arg0: i32) -> (i32, i32) {
    %c0_i32 = arith.constant 0 : i32
    %c0_i32_0 = arith.constant 0 : i32
    %c0_i32_1 = arith.constant 0 : i32
    return %c0_i32, %c0_i32_0 : i32, i32
  }
  func.func @transform_9(%arg0: i32) -> (i32, i32) {
    %c0_i32 = arith.constant 0 : i32
    %c0_i32_0 = arith.constant 0 : i32
    %c0_i32_1 = arith.constant 0 : i32
    return %c0_i32, %c0_i32_0 : i32, i32
  }
  func.func @transform_10(%arg0: i32) -> (i32, i32) {
    %c0_i32 = arith.constant 0 : i32
    %c0_i32_0 = arith.constant 0 : i32
    %c0_i32_1 = arith.constant 0 : i32
    return %c0_i32, %c0_i32_0 : i32, i32
  }
  func.func @transform_11(%arg0: i32) -> (i32, i32, i32) {
    %c0_i32 = arith.constant 0 : i32
    %c0_i32_0 = arith.constant 0 : i32
    %c0_i32_1 = arith.constant 0 : i32
    return %arg0, %c0_i32, %c0_i32_0 : i32, i32, i32
  }
}

module attributes {stable_mosaic.version = 11 : i64} {
  func.func @kernel(%arg0: i32, %arg1: memref<1x16x32xf32, #tpu.memory_space<vmem>>, %arg2: memref<1x16x32xf32, #tpu.memory_space<vmem>>, %arg3: memref<32x96xbf16, #tpu.memory_space<vmem>>, %arg4: memref<1x96xf32, #tpu.memory_space<vmem>>, %arg5: memref<32x32xbf16, #tpu.memory_space<vmem>>, %arg6: memref<1x32xf32, #tpu.memory_space<vmem>>, %arg7: memref<32x32xbf16, #tpu.memory_space<vmem>>, %arg8: memref<1x32xf32, #tpu.memory_space<vmem>>, %arg9: memref<32x64xbf16, #tpu.memory_space<vmem>>, %arg10: memref<1x64xf32, #tpu.memory_space<vmem>>, %arg11: memref<32x32xbf16, #tpu.memory_space<vmem>>, %arg12: memref<1x32xf32, #tpu.memory_space<vmem>>, %arg13: memref<32x32xbf16, #tpu.memory_space<vmem>>, %arg14: memref<32x32xbf16, #tpu.memory_space<vmem>>, %arg15: memref<96x4xbf16, #tpu.memory_space<vmem>>, %arg16: memref<16x16xf32, #tpu.memory_space<vmem>>, %arg17: memref<16x16xf32, #tpu.memory_space<vmem>>, %arg18: memref<1x16x4xf32, #tpu.memory_space<vmem>>, %arg19: memref<1x32xf32, #tpu.memory_space<vmem>>, %arg20: memref<1x32xf32, #tpu.memory_space<vmem>>, %arg21: memref<32x4xbf16, #tpu.memory_space<vmem>>, %arg22: memref<1x4xf32, #tpu.memory_space<vmem>>, %arg23: memref<1x16x4xf32, #tpu.memory_space<vmem>>) attributes {dimension_semantics = [#tpu.dimension_semantics<parallel>], iteration_bounds = array<i64: 2>, scalar_prefetch = 0 : i64, scratch_operands = 0 : i64, tpu.core_type = #tpu.core_type<tc>, window_params = [{transform_indices = @transform_0, window_bounds = array<i64: 1, 16, 32>}, {transform_indices = @transform_1, window_bounds = array<i64: 1, 16, 32>}, {pipeline_mode = #tpu.pipeline_mode<synchronous>, transform_indices = @transform_2, window_bounds = array<i64: 32, 96>}, {pipeline_mode = #tpu.pipeline_mode<synchronous>, transform_indices = @transform_3, window_bounds = array<i64: 1, 96>}, {pipeline_mode = #tpu.pipeline_mode<synchronous>, transform_indices = @transform_4, window_bounds = array<i64: 32, 32>}, {pipeline_mode = #tpu.pipeline_mode<synchronous>, transform_indices = @transform_5, window_bounds = array<i64: 1, 32>}, {pipeline_mode = #tpu.pipeline_mode<synchronous>, transform_indices = @transform_6, window_bounds = array<i64: 32, 32>}, {pipeline_mode = #tpu.pipeline_mode<synchronous>, transform_indices = @transform_7, window_bounds = array<i64: 1, 32>}, {pipeline_mode = #tpu.pipeline_mode<synchronous>, transform_indices = @transform_8, window_bounds = array<i64: 32, 64>}, {pipeline_mode = #tpu.pipeline_mode<synchronous>, transform_indices = @transform_9, window_bounds = array<i64: 1, 64>}, {pipeline_mode = #tpu.pipeline_mode<synchronous>, transform_indices = @transform_10, window_bounds = array<i64: 32, 32>}, {pipeline_mode = #tpu.pipeline_mode<synchronous>, transform_indices = @transform_11, window_bounds = array<i64: 1, 32>}, {pipeline_mode = #tpu.pipeline_mode<synchronous>, transform_indices = @transform_12, window_bounds = array<i64: 32, 32>}, {pipeline_mode = #tpu.pipeline_mode<synchronous>, transform_indices = @transform_13, window_bounds = array<i64: 32, 32>}, {pipeline_mode = #tpu.pipeline_mode<synchronous>, transform_indices = @transform_14, window_bounds = array<i64: 96, 4>}, {pipeline_mode = #tpu.pipeline_mode<synchronous>, transform_indices = @transform_15, window_bounds = array<i64: 16, 16>}, {pipeline_mode = #tpu.pipeline_mode<synchronous>, transform_indices = @transform_16, window_bounds = array<i64: 16, 16>}, {transform_indices = @transform_17, window_bounds = array<i64: 1, 16, 4>}, {pipeline_mode = #tpu.pipeline_mode<synchronous>, transform_indices = @transform_18, window_bounds = array<i64: 1, 32>}, {pipeline_mode = #tpu.pipeline_mode<synchronous>, transform_indices = @transform_19, window_bounds = array<i64: 1, 32>}, {pipeline_mode = #tpu.pipeline_mode<synchronous>, transform_indices = @transform_20, window_bounds = array<i64: 32, 4>}, {pipeline_mode = #tpu.pipeline_mode<synchronous>, transform_indices = @transform_21, window_bounds = array<i64: 1, 4>}, {transform_indices = @transform_22, window_bounds = array<i64: 1, 16, 4>}]} {
    %c0 = arith.constant 0 : index
    %c0_0 = arith.constant 0 : index
    %c0_1 = arith.constant 0 : index
    %0 = vector.load %arg1[%c0, %c0_0, %c0_1] : memref<1x16x32xf32, #tpu.memory_space<vmem>>, vector<1x16x32xf32>
    %1 = vector.shape_cast %0 : vector<1x16x32xf32> to vector<16x32xf32>
    %c0_2 = arith.constant 0 : index
    %c0_3 = arith.constant 0 : index
    %2 = vector.load %arg3[%c0_2, %c0_3] : memref<32x96xbf16, #tpu.memory_space<vmem>>, vector<32x96xbf16>
    %3 = arith.truncf %1 : vector<16x32xf32> to vector<16x32xbf16>
    %cst = arith.constant dense<0.000000e+00> : vector<16x96xf32>
    %4 = tpu.matmul %3, %2, %cst {dimension_numbers = #tpu.dot_dimension_numbers<[1], [0], [0], [1], [0, 0, 1, 1], [], []>} : vector<16x32xbf16>, vector<32x96xbf16>, vector<16x96xf32> -> vector<16x96xf32>
    %c0_4 = arith.constant 0 : index
    %c0_5 = arith.constant 0 : index
    %5 = vector.load %arg4[%c0_4, %c0_5] : memref<1x96xf32, #tpu.memory_space<vmem>>, vector<1x96xf32>
    %6 = vector.broadcast %5 : vector<1x96xf32> to vector<16x96xf32>
    %7 = arith.addf %4, %6 : vector<16x96xf32>
    %8 = vector.extract_strided_slice %7 {offsets = [0, 0], sizes = [16, 32], strides = [1, 1]} : vector<16x96xf32> to vector<16x32xf32>
    %9 = vector.extract_strided_slice %7 {offsets = [0, 32], sizes = [16, 32], strides = [1, 1]} : vector<16x96xf32> to vector<16x32xf32>
    %10 = vector.extract_strided_slice %7 {offsets = [0, 64], sizes = [16, 32], strides = [1, 1]} : vector<16x96xf32> to vector<16x32xf32>
    %c0_6 = arith.constant 0 : index
    %c0_7 = arith.constant 0 : index
    %11 = vector.load %arg16[%c0_6, %c0_7] : memref<16x16xf32, #tpu.memory_space<vmem>>, vector<16x16xf32>
    %c0_8 = arith.constant 0 : index
    %c0_9 = arith.constant 0 : index
    %12 = vector.load %arg17[%c0_8, %c0_9] : memref<16x16xf32, #tpu.memory_space<vmem>>, vector<16x16xf32>
    %c0_10 = arith.constant 0 : index
    %c0_11 = arith.constant 0 : index
    %13 = vector.load %arg5[%c0_10, %c0_11] : memref<32x32xbf16, #tpu.memory_space<vmem>>, vector<32x32xbf16>
    %c0_12 = arith.constant 0 : index
    %c0_13 = arith.constant 0 : index
    %14 = vector.load %arg6[%c0_12, %c0_13] : memref<1x32xf32, #tpu.memory_space<vmem>>, vector<1x32xf32>
    %cst_14 = arith.constant dense<0.000000e+00> : vector<16x32xf32>
    %15 = tpu.matmul %11, %8, %cst_14 {dimension_numbers = #tpu.dot_dimension_numbers<[1], [0], [0], [1], [0, 0, 1, 1], [], []>} : vector<16x16xf32>, vector<16x32xf32>, vector<16x32xf32> -> vector<16x32xf32>
    %cst_15 = arith.constant dense<0.000000e+00> : vector<16x32xf32>
    %16 = tpu.matmul %12, %8, %cst_15 {dimension_numbers = #tpu.dot_dimension_numbers<[1], [0], [0], [1], [0, 0, 1, 1], [], []>} : vector<16x16xf32>, vector<16x32xf32>, vector<16x32xf32> -> vector<16x32xf32>
    %cst_16 = arith.constant dense<0.000000e+00> : vector<16x32xf32>
    %17 = tpu.matmul %11, %9, %cst_16 {dimension_numbers = #tpu.dot_dimension_numbers<[1], [0], [0], [1], [0, 0, 1, 1], [], []>} : vector<16x16xf32>, vector<16x32xf32>, vector<16x32xf32> -> vector<16x32xf32>
    %cst_17 = arith.constant dense<0.000000e+00> : vector<16x32xf32>
    %18 = tpu.matmul %12, %9, %cst_17 {dimension_numbers = #tpu.dot_dimension_numbers<[1], [0], [0], [1], [0, 0, 1, 1], [], []>} : vector<16x16xf32>, vector<16x32xf32>, vector<16x32xf32> -> vector<16x32xf32>
    %19 = arith.mulf %15, %17 : vector<16x32xf32>
    %20 = arith.mulf %16, %18 : vector<16x32xf32>
    %21 = arith.addf %19, %20 : vector<16x32xf32>
    %cst_18 = arith.constant dense<0.000000e+00> : vector<16xf32>
    %22 = vector.multi_reduction <add>, %21, %cst_18 [1] : vector<16x32xf32> to vector<16xf32>
    %23 = vector.shape_cast %22 : vector<16xf32> to vector<16x1xf32>
    %24 = arith.mulf %15, %18 : vector<16x32xf32>
    %25 = arith.mulf %16, %17 : vector<16x32xf32>
    %26 = arith.subf %24, %25 : vector<16x32xf32>
    %cst_19 = arith.constant dense<0.000000e+00> : vector<16xf32>
    %27 = vector.multi_reduction <add>, %26, %cst_19 [1] : vector<16x32xf32> to vector<16xf32>
    %28 = vector.shape_cast %27 : vector<16xf32> to vector<16x1xf32>
    %29 = vector.broadcast %23 : vector<16x1xf32> to vector<16x16xf32>
    %30 = arith.mulf %29, %11 : vector<16x16xf32>
    %31 = vector.broadcast %28 : vector<16x1xf32> to vector<16x16xf32>
    %32 = arith.mulf %31, %12 : vector<16x16xf32>
    %33 = arith.subf %30, %32 : vector<16x16xf32>
    %cst_20 = arith.constant dense<0.000000e+00> : vector<16xf32>
    %34 = vector.multi_reduction <add>, %33, %cst_20 [0] : vector<16x16xf32> to vector<16xf32>
    %35 = vector.shape_cast %34 : vector<16xf32> to vector<1x16xf32>
    %cst_21 = arith.constant 6.250000e-02 : f32
    %36 = vector.broadcast %cst_21 : f32 to vector<1x16xf32>
    %37 = arith.mulf %35, %36 : vector<1x16xf32>
    %cst_22 = arith.constant 3.125000e-02 : f32
    %38 = vector.broadcast %cst_22 : f32 to vector<1x16xf32>
    %39 = arith.mulf %37, %38 : vector<1x16xf32>
    %40 = tpu.iota {dimensions = array<i32: 1>} : vector<1x16xi32>
    %41 = tpu.iota {dimensions = array<i32: 0>} : vector<16x16xi32>
    %42 = tpu.iota {dimensions = array<i32: 1>} : vector<16x16xi32>
    %43 = arith.subi %42, %41 : vector<16x16xi32>
    %c0_i32 = arith.constant 0 : i32
    %44 = vector.broadcast %c0_i32 : i32 to vector<16x16xi32>
    %45 = arith.cmpi sge, %43, %44 : vector<16x16xi32>
    %c16_i32 = arith.constant 16 : i32
    %46 = vector.broadcast %c16_i32 : i32 to vector<16x16xi32>
    %47 = arith.addi %43, %46 : vector<16x16xi32>
    %48 = arith.select %45, %43, %47 : vector<16x16xi1>, vector<16x16xi32>
    %cst_23 = arith.constant 0.000000e+00 : f32
    %49 = vector.broadcast %cst_23 : f32 to vector<1x16xf32>
    %cst_24 = arith.constant dense<0xFF800000> : vector<1xf32>
    %50 = vector.multi_reduction <maximumf>, %39, %cst_24 [1] : vector<1x16xf32> to vector<1xf32>
    %51 = vector.shape_cast %50 : vector<1xf32> to vector<1x1xf32>
    %52 = vector.broadcast %51 : vector<1x1xf32> to vector<1x16xf32>
    %53 = arith.cmpf oeq, %39, %52 : vector<1x16xf32>
    %c16_i32_25 = arith.constant 16 : i32
    %54 = vector.broadcast %c16_i32_25 : i32 to vector<1x16xi32>
    %55 = arith.select %53, %40, %54 : vector<1x16xi1>, vector<1x16xi32>
    %cst_26 = arith.constant dense<2147483647> : vector<1xi32>
    %56 = vector.multi_reduction <minsi>, %55, %cst_26 [1] : vector<1x16xi32> to vector<1xi32>
    %57 = vector.shape_cast %56 : vector<1xi32> to vector<1x1xi32>
    %58 = vector.broadcast %57 : vector<1x1xi32> to vector<1x16xi32>
    %59 = arith.cmpi eq, %40, %58 : vector<1x16xi32>
    %cst_27 = arith.constant 1.000000e+00 : f32
    %60 = vector.broadcast %cst_27 : f32 to vector<1x16xf32>
    %61 = arith.select %59, %60, %49 : vector<1x16xi1>, vector<1x16xf32>
    %cst_28 = arith.constant 0xFF800000 : f32
    %62 = vector.broadcast %cst_28 : f32 to vector<1x16xf32>
    %63 = arith.select %59, %62, %39 : vector<1x16xi1>, vector<1x16xf32>
    %cst_29 = arith.constant dense<0xFF800000> : vector<1xf32>
    %64 = vector.multi_reduction <maximumf>, %63, %cst_29 [1] : vector<1x16xf32> to vector<1xf32>
    %65 = vector.shape_cast %64 : vector<1xf32> to vector<1x1xf32>
    %66 = vector.broadcast %65 : vector<1x1xf32> to vector<1x16xf32>
    %67 = arith.cmpf oeq, %63, %66 : vector<1x16xf32>
    %c16_i32_30 = arith.constant 16 : i32
    %68 = vector.broadcast %c16_i32_30 : i32 to vector<1x16xi32>
    %69 = arith.select %67, %40, %68 : vector<1x16xi1>, vector<1x16xi32>
    %cst_31 = arith.constant dense<2147483647> : vector<1xi32>
    %70 = vector.multi_reduction <minsi>, %69, %cst_31 [1] : vector<1x16xi32> to vector<1xi32>
    %71 = vector.shape_cast %70 : vector<1xi32> to vector<1x1xi32>
    %72 = vector.broadcast %71 : vector<1x1xi32> to vector<1x16xi32>
    %73 = arith.cmpi eq, %40, %72 : vector<1x16xi32>
    %cst_32 = arith.constant 1.000000e+00 : f32
    %74 = vector.broadcast %cst_32 : f32 to vector<1x16xf32>
    %75 = arith.select %73, %74, %61 : vector<1x16xi1>, vector<1x16xf32>
    %cst_33 = arith.constant 0xFF800000 : f32
    %76 = vector.broadcast %cst_33 : f32 to vector<1x16xf32>
    %77 = arith.select %73, %76, %63 : vector<1x16xi1>, vector<1x16xf32>
    %cst_34 = arith.constant dense<0xFF800000> : vector<1xf32>
    %78 = vector.multi_reduction <maximumf>, %77, %cst_34 [1] : vector<1x16xf32> to vector<1xf32>
    %79 = vector.shape_cast %78 : vector<1xf32> to vector<1x1xf32>
    %80 = vector.broadcast %79 : vector<1x1xf32> to vector<1x16xf32>
    %81 = arith.cmpf oeq, %77, %80 : vector<1x16xf32>
    %c16_i32_35 = arith.constant 16 : i32
    %82 = vector.broadcast %c16_i32_35 : i32 to vector<1x16xi32>
    %83 = arith.select %81, %40, %82 : vector<1x16xi1>, vector<1x16xi32>
    %cst_36 = arith.constant dense<2147483647> : vector<1xi32>
    %84 = vector.multi_reduction <minsi>, %83, %cst_36 [1] : vector<1x16xi32> to vector<1xi32>
    %85 = vector.shape_cast %84 : vector<1xi32> to vector<1x1xi32>
    %86 = vector.broadcast %85 : vector<1x1xi32> to vector<1x16xi32>
    %87 = arith.cmpi eq, %40, %86 : vector<1x16xi32>
    %cst_37 = arith.constant 1.000000e+00 : f32
    %88 = vector.broadcast %cst_37 : f32 to vector<1x16xf32>
    %89 = arith.select %87, %88, %75 : vector<1x16xi1>, vector<1x16xf32>
    %cst_38 = arith.constant 0xFF800000 : f32
    %90 = vector.broadcast %cst_38 : f32 to vector<1x16xf32>
    %91 = arith.select %87, %90, %77 : vector<1x16xi1>, vector<1x16xf32>
    %cst_39 = arith.constant dense<0xFF800000> : vector<1xf32>
    %92 = vector.multi_reduction <maximumf>, %91, %cst_39 [1] : vector<1x16xf32> to vector<1xf32>
    %93 = vector.shape_cast %92 : vector<1xf32> to vector<1x1xf32>
    %94 = vector.broadcast %93 : vector<1x1xf32> to vector<1x16xf32>
    %95 = arith.cmpf oeq, %91, %94 : vector<1x16xf32>
    %c16_i32_40 = arith.constant 16 : i32
    %96 = vector.broadcast %c16_i32_40 : i32 to vector<1x16xi32>
    %97 = arith.select %95, %40, %96 : vector<1x16xi1>, vector<1x16xi32>
    %cst_41 = arith.constant dense<2147483647> : vector<1xi32>
    %98 = vector.multi_reduction <minsi>, %97, %cst_41 [1] : vector<1x16xi32> to vector<1xi32>
    %99 = vector.shape_cast %98 : vector<1xi32> to vector<1x1xi32>
    %100 = vector.broadcast %99 : vector<1x1xi32> to vector<1x16xi32>
    %101 = arith.cmpi eq, %40, %100 : vector<1x16xi32>
    %cst_42 = arith.constant 1.000000e+00 : f32
    %102 = vector.broadcast %cst_42 : f32 to vector<1x16xf32>
    %103 = arith.select %101, %102, %89 : vector<1x16xi1>, vector<1x16xf32>
    %cst_43 = arith.constant 0xFF800000 : f32
    %104 = vector.broadcast %cst_43 : f32 to vector<1x16xf32>
    %105 = arith.select %101, %104, %91 : vector<1x16xi1>, vector<1x16xf32>
    %cst_44 = arith.constant dense<0xFF800000> : vector<1xf32>
    %106 = vector.multi_reduction <maximumf>, %105, %cst_44 [1] : vector<1x16xf32> to vector<1xf32>
    %107 = vector.shape_cast %106 : vector<1xf32> to vector<1x1xf32>
    %108 = vector.broadcast %107 : vector<1x1xf32> to vector<1x16xf32>
    %109 = arith.cmpf oeq, %105, %108 : vector<1x16xf32>
    %c16_i32_45 = arith.constant 16 : i32
    %110 = vector.broadcast %c16_i32_45 : i32 to vector<1x16xi32>
    %111 = arith.select %109, %40, %110 : vector<1x16xi1>, vector<1x16xi32>
    %cst_46 = arith.constant dense<2147483647> : vector<1xi32>
    %112 = vector.multi_reduction <minsi>, %111, %cst_46 [1] : vector<1x16xi32> to vector<1xi32>
    %113 = vector.shape_cast %112 : vector<1xi32> to vector<1x1xi32>
    %114 = vector.broadcast %113 : vector<1x1xi32> to vector<1x16xi32>
    %115 = arith.cmpi eq, %40, %114 : vector<1x16xi32>
    %cst_47 = arith.constant 1.000000e+00 : f32
    %116 = vector.broadcast %cst_47 : f32 to vector<1x16xf32>
    %117 = arith.select %115, %116, %103 : vector<1x16xi1>, vector<1x16xf32>
    %cst_48 = arith.constant 0xFF800000 : f32
    %118 = vector.broadcast %cst_48 : f32 to vector<1x16xf32>
    %119 = arith.select %115, %118, %105 : vector<1x16xi1>, vector<1x16xf32>
    %cst_49 = arith.constant dense<0xFF800000> : vector<1xf32>
    %120 = vector.multi_reduction <maximumf>, %119, %cst_49 [1] : vector<1x16xf32> to vector<1xf32>
    %121 = vector.shape_cast %120 : vector<1xf32> to vector<1x1xf32>
    %122 = vector.broadcast %121 : vector<1x1xf32> to vector<1x16xf32>
    %123 = arith.cmpf oeq, %119, %122 : vector<1x16xf32>
    %c16_i32_50 = arith.constant 16 : i32
    %124 = vector.broadcast %c16_i32_50 : i32 to vector<1x16xi32>
    %125 = arith.select %123, %40, %124 : vector<1x16xi1>, vector<1x16xi32>
    %cst_51 = arith.constant dense<2147483647> : vector<1xi32>
    %126 = vector.multi_reduction <minsi>, %125, %cst_51 [1] : vector<1x16xi32> to vector<1xi32>
    %127 = vector.shape_cast %126 : vector<1xi32> to vector<1x1xi32>
    %128 = vector.broadcast %127 : vector<1x1xi32> to vector<1x16xi32>
    %129 = arith.cmpi eq, %40, %128 : vector<1x16xi32>
    %cst_52 = arith.constant 1.000000e+00 : f32
    %130 = vector.broadcast %cst_52 : f32 to vector<1x16xf32>
    %131 = arith.select %129, %130, %117 : vector<1x16xi1>, vector<1x16xf32>
    %cst_53 = arith.constant 0xFF800000 : f32
    %132 = vector.broadcast %cst_53 : f32 to vector<1x16xf32>
    %133 = arith.select %129, %132, %119 : vector<1x16xi1>, vector<1x16xf32>
    %cst_54 = arith.constant dense<0xFF800000> : vector<1xf32>
    %134 = vector.multi_reduction <maximumf>, %133, %cst_54 [1] : vector<1x16xf32> to vector<1xf32>
    %135 = vector.shape_cast %134 : vector<1xf32> to vector<1x1xf32>
    %136 = vector.broadcast %135 : vector<1x1xf32> to vector<1x16xf32>
    %137 = arith.cmpf oeq, %133, %136 : vector<1x16xf32>
    %c16_i32_55 = arith.constant 16 : i32
    %138 = vector.broadcast %c16_i32_55 : i32 to vector<1x16xi32>
    %139 = arith.select %137, %40, %138 : vector<1x16xi1>, vector<1x16xi32>
    %cst_56 = arith.constant dense<2147483647> : vector<1xi32>
    %140 = vector.multi_reduction <minsi>, %139, %cst_56 [1] : vector<1x16xi32> to vector<1xi32>
    %141 = vector.shape_cast %140 : vector<1xi32> to vector<1x1xi32>
    %142 = vector.broadcast %141 : vector<1x1xi32> to vector<1x16xi32>
    %143 = arith.cmpi eq, %40, %142 : vector<1x16xi32>
    %cst_57 = arith.constant 1.000000e+00 : f32
    %144 = vector.broadcast %cst_57 : f32 to vector<1x16xf32>
    %145 = arith.select %143, %144, %131 : vector<1x16xi1>, vector<1x16xf32>
    %cst_58 = arith.constant 0xFF800000 : f32
    %146 = vector.broadcast %cst_58 : f32 to vector<1x16xf32>
    %147 = arith.select %143, %146, %133 : vector<1x16xi1>, vector<1x16xf32>
    %cst_59 = arith.constant dense<0xFF800000> : vector<1xf32>
    %148 = vector.multi_reduction <maximumf>, %147, %cst_59 [1] : vector<1x16xf32> to vector<1xf32>
    %149 = vector.shape_cast %148 : vector<1xf32> to vector<1x1xf32>
    %150 = vector.broadcast %149 : vector<1x1xf32> to vector<1x16xf32>
    %151 = arith.cmpf oeq, %147, %150 : vector<1x16xf32>
    %c16_i32_60 = arith.constant 16 : i32
    %152 = vector.broadcast %c16_i32_60 : i32 to vector<1x16xi32>
    %153 = arith.select %151, %40, %152 : vector<1x16xi1>, vector<1x16xi32>
    %cst_61 = arith.constant dense<2147483647> : vector<1xi32>
    %154 = vector.multi_reduction <minsi>, %153, %cst_61 [1] : vector<1x16xi32> to vector<1xi32>
    %155 = vector.shape_cast %154 : vector<1xi32> to vector<1x1xi32>
    %156 = vector.broadcast %155 : vector<1x1xi32> to vector<1x16xi32>
    %157 = arith.cmpi eq, %40, %156 : vector<1x16xi32>
    %cst_62 = arith.constant 1.000000e+00 : f32
    %158 = vector.broadcast %cst_62 : f32 to vector<1x16xf32>
    %159 = arith.select %157, %158, %145 : vector<1x16xi1>, vector<1x16xf32>
    %cst_63 = arith.constant 0xFF800000 : f32
    %160 = vector.broadcast %cst_63 : f32 to vector<1x16xf32>
    %161 = arith.select %157, %160, %147 : vector<1x16xi1>, vector<1x16xf32>
    %cst_64 = arith.constant dense<0xFF800000> : vector<1xf32>
    %162 = vector.multi_reduction <maximumf>, %161, %cst_64 [1] : vector<1x16xf32> to vector<1xf32>
    %163 = vector.shape_cast %162 : vector<1xf32> to vector<1x1xf32>
    %164 = vector.broadcast %163 : vector<1x1xf32> to vector<1x16xf32>
    %165 = arith.cmpf oeq, %161, %164 : vector<1x16xf32>
    %c16_i32_65 = arith.constant 16 : i32
    %166 = vector.broadcast %c16_i32_65 : i32 to vector<1x16xi32>
    %167 = arith.select %165, %40, %166 : vector<1x16xi1>, vector<1x16xi32>
    %cst_66 = arith.constant dense<2147483647> : vector<1xi32>
    %168 = vector.multi_reduction <minsi>, %167, %cst_66 [1] : vector<1x16xi32> to vector<1xi32>
    %169 = vector.shape_cast %168 : vector<1xi32> to vector<1x1xi32>
    %170 = vector.broadcast %169 : vector<1x1xi32> to vector<1x16xi32>
    %171 = arith.cmpi eq, %40, %170 : vector<1x16xi32>
    %cst_67 = arith.constant 1.000000e+00 : f32
    %172 = vector.broadcast %cst_67 : f32 to vector<1x16xf32>
    %173 = arith.select %171, %172, %159 : vector<1x16xi1>, vector<1x16xf32>
    %cst_68 = arith.constant 0xFF800000 : f32
    %174 = vector.broadcast %cst_68 : f32 to vector<1x16xf32>
    %175 = arith.select %171, %174, %161 : vector<1x16xi1>, vector<1x16xf32>
    %cst_69 = arith.constant dense<0xFF800000> : vector<1xf32>
    %176 = vector.multi_reduction <maximumf>, %175, %cst_69 [1] : vector<1x16xf32> to vector<1xf32>
    %177 = vector.shape_cast %176 : vector<1xf32> to vector<1x1xf32>
    %178 = vector.broadcast %177 : vector<1x1xf32> to vector<1x16xf32>
    %179 = arith.cmpf oeq, %175, %178 : vector<1x16xf32>
    %c16_i32_70 = arith.constant 16 : i32
    %180 = vector.broadcast %c16_i32_70 : i32 to vector<1x16xi32>
    %181 = arith.select %179, %40, %180 : vector<1x16xi1>, vector<1x16xi32>
    %cst_71 = arith.constant dense<2147483647> : vector<1xi32>
    %182 = vector.multi_reduction <minsi>, %181, %cst_71 [1] : vector<1x16xi32> to vector<1xi32>
    %183 = vector.shape_cast %182 : vector<1xi32> to vector<1x1xi32>
    %184 = vector.broadcast %183 : vector<1x1xi32> to vector<1x16xi32>
    %185 = arith.cmpi eq, %40, %184 : vector<1x16xi32>
    %cst_72 = arith.constant 1.000000e+00 : f32
    %186 = vector.broadcast %cst_72 : f32 to vector<1x16xf32>
    %187 = arith.select %185, %186, %173 : vector<1x16xi1>, vector<1x16xf32>
    %cst_73 = arith.constant 0xFF800000 : f32
    %188 = vector.broadcast %cst_73 : f32 to vector<1x16xf32>
    %189 = arith.select %185, %188, %175 : vector<1x16xi1>, vector<1x16xf32>
    %cst_74 = arith.constant dense<0xFF800000> : vector<1xf32>
    %190 = vector.multi_reduction <maximumf>, %189, %cst_74 [1] : vector<1x16xf32> to vector<1xf32>
    %191 = vector.shape_cast %190 : vector<1xf32> to vector<1x1xf32>
    %192 = vector.broadcast %191 : vector<1x1xf32> to vector<1x16xf32>
    %193 = arith.cmpf oeq, %189, %192 : vector<1x16xf32>
    %c16_i32_75 = arith.constant 16 : i32
    %194 = vector.broadcast %c16_i32_75 : i32 to vector<1x16xi32>
    %195 = arith.select %193, %40, %194 : vector<1x16xi1>, vector<1x16xi32>
    %cst_76 = arith.constant dense<2147483647> : vector<1xi32>
    %196 = vector.multi_reduction <minsi>, %195, %cst_76 [1] : vector<1x16xi32> to vector<1xi32>
    %197 = vector.shape_cast %196 : vector<1xi32> to vector<1x1xi32>
    %198 = vector.broadcast %197 : vector<1x1xi32> to vector<1x16xi32>
    %199 = arith.cmpi eq, %40, %198 : vector<1x16xi32>
    %cst_77 = arith.constant 1.000000e+00 : f32
    %200 = vector.broadcast %cst_77 : f32 to vector<1x16xf32>
    %201 = arith.select %199, %200, %187 : vector<1x16xi1>, vector<1x16xf32>
    %cst_78 = arith.constant 0xFF800000 : f32
    %202 = vector.broadcast %cst_78 : f32 to vector<1x16xf32>
    %203 = arith.select %199, %202, %189 : vector<1x16xi1>, vector<1x16xf32>
    %cst_79 = arith.constant dense<0xFF800000> : vector<1xf32>
    %204 = vector.multi_reduction <maximumf>, %203, %cst_79 [1] : vector<1x16xf32> to vector<1xf32>
    %205 = vector.shape_cast %204 : vector<1xf32> to vector<1x1xf32>
    %206 = vector.broadcast %205 : vector<1x1xf32> to vector<1x16xf32>
    %207 = arith.cmpf oeq, %203, %206 : vector<1x16xf32>
    %c16_i32_80 = arith.constant 16 : i32
    %208 = vector.broadcast %c16_i32_80 : i32 to vector<1x16xi32>
    %209 = arith.select %207, %40, %208 : vector<1x16xi1>, vector<1x16xi32>
    %cst_81 = arith.constant dense<2147483647> : vector<1xi32>
    %210 = vector.multi_reduction <minsi>, %209, %cst_81 [1] : vector<1x16xi32> to vector<1xi32>
    %211 = vector.shape_cast %210 : vector<1xi32> to vector<1x1xi32>
    %212 = vector.broadcast %211 : vector<1x1xi32> to vector<1x16xi32>
    %213 = arith.cmpi eq, %40, %212 : vector<1x16xi32>
    %cst_82 = arith.constant 1.000000e+00 : f32
    %214 = vector.broadcast %cst_82 : f32 to vector<1x16xf32>
    %215 = arith.select %213, %214, %201 : vector<1x16xi1>, vector<1x16xf32>
    %cst_83 = arith.constant 0xFF800000 : f32
    %216 = vector.broadcast %cst_83 : f32 to vector<1x16xf32>
    %217 = arith.select %213, %216, %203 : vector<1x16xi1>, vector<1x16xf32>
    %cst_84 = arith.constant dense<0xFF800000> : vector<1xf32>
    %218 = vector.multi_reduction <maximumf>, %217, %cst_84 [1] : vector<1x16xf32> to vector<1xf32>
    %219 = vector.shape_cast %218 : vector<1xf32> to vector<1x1xf32>
    %220 = vector.broadcast %219 : vector<1x1xf32> to vector<1x16xf32>
    %221 = arith.cmpf oeq, %217, %220 : vector<1x16xf32>
    %c16_i32_85 = arith.constant 16 : i32
    %222 = vector.broadcast %c16_i32_85 : i32 to vector<1x16xi32>
    %223 = arith.select %221, %40, %222 : vector<1x16xi1>, vector<1x16xi32>
    %cst_86 = arith.constant dense<2147483647> : vector<1xi32>
    %224 = vector.multi_reduction <minsi>, %223, %cst_86 [1] : vector<1x16xi32> to vector<1xi32>
    %225 = vector.shape_cast %224 : vector<1xi32> to vector<1x1xi32>
    %226 = vector.broadcast %225 : vector<1x1xi32> to vector<1x16xi32>
    %227 = arith.cmpi eq, %40, %226 : vector<1x16xi32>
    %cst_87 = arith.constant 1.000000e+00 : f32
    %228 = vector.broadcast %cst_87 : f32 to vector<1x16xf32>
    %229 = arith.select %227, %228, %215 : vector<1x16xi1>, vector<1x16xf32>
    %230 = vector.broadcast %51 : vector<1x1xf32> to vector<1x16xf32>
    %231 = arith.subf %39, %230 : vector<1x16xf32>
    %232 = math.exp %231 : vector<1x16xf32>
    %233 = arith.mulf %232, %229 : vector<1x16xf32>
    %cst_88 = arith.constant dense<0.000000e+00> : vector<1xf32>
    %234 = vector.multi_reduction <add>, %233, %cst_88 [1] : vector<1x16xf32> to vector<1xf32>
    %235 = vector.shape_cast %234 : vector<1xf32> to vector<1x1xf32>
    %cst_89 = arith.constant 1.000000e+00 : f32
    %236 = vector.broadcast %cst_89 : f32 to vector<1x1xf32>
    %237 = arith.divf %236, %235 : vector<1x1xf32>
    %238 = vector.broadcast %237 : vector<1x1xf32> to vector<1x16xf32>
    %239 = arith.mulf %233, %238 : vector<1x16xf32>
    %cst_90 = arith.constant 0.000000e+00 : f32
    %240 = vector.broadcast %cst_90 : f32 to vector<16x16xf32>
    %241 = vector.broadcast %57 : vector<1x1xi32> to vector<1x16xi32>
    %242 = arith.cmpi eq, %40, %241 : vector<1x16xi32>
    %cst_91 = arith.constant 0.000000e+00 : f32
    %243 = vector.broadcast %cst_91 : f32 to vector<1x16xf32>
    %244 = arith.select %242, %239, %243 : vector<1x16xi1>, vector<1x16xf32>
    %cst_92 = arith.constant dense<0.000000e+00> : vector<1xf32>
    %245 = vector.multi_reduction <add>, %244, %cst_92 [1] : vector<1x16xf32> to vector<1xf32>
    %246 = vector.shape_cast %245 : vector<1xf32> to vector<1x1xf32>
    %247 = vector.broadcast %57 : vector<1x1xi32> to vector<16x16xi32>
    %248 = arith.cmpi eq, %48, %247 : vector<16x16xi32>
    %249 = arith.extui %248 : vector<16x16xi1> to vector<16x16xi32>
    %250 = arith.sitofp %249 : vector<16x16xi32> to vector<16x16xf32>
    %251 = vector.broadcast %246 : vector<1x1xf32> to vector<16x16xf32>
    %252 = arith.mulf %251, %250 : vector<16x16xf32>
    %253 = arith.addf %240, %252 : vector<16x16xf32>
    %254 = vector.broadcast %71 : vector<1x1xi32> to vector<1x16xi32>
    %255 = arith.cmpi eq, %40, %254 : vector<1x16xi32>
    %cst_93 = arith.constant 0.000000e+00 : f32
    %256 = vector.broadcast %cst_93 : f32 to vector<1x16xf32>
    %257 = arith.select %255, %239, %256 : vector<1x16xi1>, vector<1x16xf32>
    %cst_94 = arith.constant dense<0.000000e+00> : vector<1xf32>
    %258 = vector.multi_reduction <add>, %257, %cst_94 [1] : vector<1x16xf32> to vector<1xf32>
    %259 = vector.shape_cast %258 : vector<1xf32> to vector<1x1xf32>
    %260 = vector.broadcast %71 : vector<1x1xi32> to vector<16x16xi32>
    %261 = arith.cmpi eq, %48, %260 : vector<16x16xi32>
    %262 = arith.extui %261 : vector<16x16xi1> to vector<16x16xi32>
    %263 = arith.sitofp %262 : vector<16x16xi32> to vector<16x16xf32>
    %264 = vector.broadcast %259 : vector<1x1xf32> to vector<16x16xf32>
    %265 = arith.mulf %264, %263 : vector<16x16xf32>
    %266 = arith.addf %253, %265 : vector<16x16xf32>
    %267 = vector.broadcast %85 : vector<1x1xi32> to vector<1x16xi32>
    %268 = arith.cmpi eq, %40, %267 : vector<1x16xi32>
    %cst_95 = arith.constant 0.000000e+00 : f32
    %269 = vector.broadcast %cst_95 : f32 to vector<1x16xf32>
    %270 = arith.select %268, %239, %269 : vector<1x16xi1>, vector<1x16xf32>
    %cst_96 = arith.constant dense<0.000000e+00> : vector<1xf32>
    %271 = vector.multi_reduction <add>, %270, %cst_96 [1] : vector<1x16xf32> to vector<1xf32>
    %272 = vector.shape_cast %271 : vector<1xf32> to vector<1x1xf32>
    %273 = vector.broadcast %85 : vector<1x1xi32> to vector<16x16xi32>
    %274 = arith.cmpi eq, %48, %273 : vector<16x16xi32>
    %275 = arith.extui %274 : vector<16x16xi1> to vector<16x16xi32>
    %276 = arith.sitofp %275 : vector<16x16xi32> to vector<16x16xf32>
    %277 = vector.broadcast %272 : vector<1x1xf32> to vector<16x16xf32>
    %278 = arith.mulf %277, %276 : vector<16x16xf32>
    %279 = arith.addf %266, %278 : vector<16x16xf32>
    %280 = vector.broadcast %99 : vector<1x1xi32> to vector<1x16xi32>
    %281 = arith.cmpi eq, %40, %280 : vector<1x16xi32>
    %cst_97 = arith.constant 0.000000e+00 : f32
    %282 = vector.broadcast %cst_97 : f32 to vector<1x16xf32>
    %283 = arith.select %281, %239, %282 : vector<1x16xi1>, vector<1x16xf32>
    %cst_98 = arith.constant dense<0.000000e+00> : vector<1xf32>
    %284 = vector.multi_reduction <add>, %283, %cst_98 [1] : vector<1x16xf32> to vector<1xf32>
    %285 = vector.shape_cast %284 : vector<1xf32> to vector<1x1xf32>
    %286 = vector.broadcast %99 : vector<1x1xi32> to vector<16x16xi32>
    %287 = arith.cmpi eq, %48, %286 : vector<16x16xi32>
    %288 = arith.extui %287 : vector<16x16xi1> to vector<16x16xi32>
    %289 = arith.sitofp %288 : vector<16x16xi32> to vector<16x16xf32>
    %290 = vector.broadcast %285 : vector<1x1xf32> to vector<16x16xf32>
    %291 = arith.mulf %290, %289 : vector<16x16xf32>
    %292 = arith.addf %279, %291 : vector<16x16xf32>
    %293 = vector.broadcast %113 : vector<1x1xi32> to vector<1x16xi32>
    %294 = arith.cmpi eq, %40, %293 : vector<1x16xi32>
    %cst_99 = arith.constant 0.000000e+00 : f32
    %295 = vector.broadcast %cst_99 : f32 to vector<1x16xf32>
    %296 = arith.select %294, %239, %295 : vector<1x16xi1>, vector<1x16xf32>
    %cst_100 = arith.constant dense<0.000000e+00> : vector<1xf32>
    %297 = vector.multi_reduction <add>, %296, %cst_100 [1] : vector<1x16xf32> to vector<1xf32>
    %298 = vector.shape_cast %297 : vector<1xf32> to vector<1x1xf32>
    %299 = vector.broadcast %113 : vector<1x1xi32> to vector<16x16xi32>
    %300 = arith.cmpi eq, %48, %299 : vector<16x16xi32>
    %301 = arith.extui %300 : vector<16x16xi1> to vector<16x16xi32>
    %302 = arith.sitofp %301 : vector<16x16xi32> to vector<16x16xf32>
    %303 = vector.broadcast %298 : vector<1x1xf32> to vector<16x16xf32>
    %304 = arith.mulf %303, %302 : vector<16x16xf32>
    %305 = arith.addf %292, %304 : vector<16x16xf32>
    %306 = vector.broadcast %127 : vector<1x1xi32> to vector<1x16xi32>
    %307 = arith.cmpi eq, %40, %306 : vector<1x16xi32>
    %cst_101 = arith.constant 0.000000e+00 : f32
    %308 = vector.broadcast %cst_101 : f32 to vector<1x16xf32>
    %309 = arith.select %307, %239, %308 : vector<1x16xi1>, vector<1x16xf32>
    %cst_102 = arith.constant dense<0.000000e+00> : vector<1xf32>
    %310 = vector.multi_reduction <add>, %309, %cst_102 [1] : vector<1x16xf32> to vector<1xf32>
    %311 = vector.shape_cast %310 : vector<1xf32> to vector<1x1xf32>
    %312 = vector.broadcast %127 : vector<1x1xi32> to vector<16x16xi32>
    %313 = arith.cmpi eq, %48, %312 : vector<16x16xi32>
    %314 = arith.extui %313 : vector<16x16xi1> to vector<16x16xi32>
    %315 = arith.sitofp %314 : vector<16x16xi32> to vector<16x16xf32>
    %316 = vector.broadcast %311 : vector<1x1xf32> to vector<16x16xf32>
    %317 = arith.mulf %316, %315 : vector<16x16xf32>
    %318 = arith.addf %305, %317 : vector<16x16xf32>
    %319 = vector.broadcast %141 : vector<1x1xi32> to vector<1x16xi32>
    %320 = arith.cmpi eq, %40, %319 : vector<1x16xi32>
    %cst_103 = arith.constant 0.000000e+00 : f32
    %321 = vector.broadcast %cst_103 : f32 to vector<1x16xf32>
    %322 = arith.select %320, %239, %321 : vector<1x16xi1>, vector<1x16xf32>
    %cst_104 = arith.constant dense<0.000000e+00> : vector<1xf32>
    %323 = vector.multi_reduction <add>, %322, %cst_104 [1] : vector<1x16xf32> to vector<1xf32>
    %324 = vector.shape_cast %323 : vector<1xf32> to vector<1x1xf32>
    %325 = vector.broadcast %141 : vector<1x1xi32> to vector<16x16xi32>
    %326 = arith.cmpi eq, %48, %325 : vector<16x16xi32>
    %327 = arith.extui %326 : vector<16x16xi1> to vector<16x16xi32>
    %328 = arith.sitofp %327 : vector<16x16xi32> to vector<16x16xf32>
    %329 = vector.broadcast %324 : vector<1x1xf32> to vector<16x16xf32>
    %330 = arith.mulf %329, %328 : vector<16x16xf32>
    %331 = arith.addf %318, %330 : vector<16x16xf32>
    %332 = vector.broadcast %155 : vector<1x1xi32> to vector<1x16xi32>
    %333 = arith.cmpi eq, %40, %332 : vector<1x16xi32>
    %cst_105 = arith.constant 0.000000e+00 : f32
    %334 = vector.broadcast %cst_105 : f32 to vector<1x16xf32>
    %335 = arith.select %333, %239, %334 : vector<1x16xi1>, vector<1x16xf32>
    %cst_106 = arith.constant dense<0.000000e+00> : vector<1xf32>
    %336 = vector.multi_reduction <add>, %335, %cst_106 [1] : vector<1x16xf32> to vector<1xf32>
    %337 = vector.shape_cast %336 : vector<1xf32> to vector<1x1xf32>
    %338 = vector.broadcast %155 : vector<1x1xi32> to vector<16x16xi32>
    %339 = arith.cmpi eq, %48, %338 : vector<16x16xi32>
    %340 = arith.extui %339 : vector<16x16xi1> to vector<16x16xi32>
    %341 = arith.sitofp %340 : vector<16x16xi32> to vector<16x16xf32>
    %342 = vector.broadcast %337 : vector<1x1xf32> to vector<16x16xf32>
    %343 = arith.mulf %342, %341 : vector<16x16xf32>
    %344 = arith.addf %331, %343 : vector<16x16xf32>
    %345 = vector.broadcast %169 : vector<1x1xi32> to vector<1x16xi32>
    %346 = arith.cmpi eq, %40, %345 : vector<1x16xi32>
    %cst_107 = arith.constant 0.000000e+00 : f32
    %347 = vector.broadcast %cst_107 : f32 to vector<1x16xf32>
    %348 = arith.select %346, %239, %347 : vector<1x16xi1>, vector<1x16xf32>
    %cst_108 = arith.constant dense<0.000000e+00> : vector<1xf32>
    %349 = vector.multi_reduction <add>, %348, %cst_108 [1] : vector<1x16xf32> to vector<1xf32>
    %350 = vector.shape_cast %349 : vector<1xf32> to vector<1x1xf32>
    %351 = vector.broadcast %169 : vector<1x1xi32> to vector<16x16xi32>
    %352 = arith.cmpi eq, %48, %351 : vector<16x16xi32>
    %353 = arith.extui %352 : vector<16x16xi1> to vector<16x16xi32>
    %354 = arith.sitofp %353 : vector<16x16xi32> to vector<16x16xf32>
    %355 = vector.broadcast %350 : vector<1x1xf32> to vector<16x16xf32>
    %356 = arith.mulf %355, %354 : vector<16x16xf32>
    %357 = arith.addf %344, %356 : vector<16x16xf32>
    %358 = vector.broadcast %183 : vector<1x1xi32> to vector<1x16xi32>
    %359 = arith.cmpi eq, %40, %358 : vector<1x16xi32>
    %cst_109 = arith.constant 0.000000e+00 : f32
    %360 = vector.broadcast %cst_109 : f32 to vector<1x16xf32>
    %361 = arith.select %359, %239, %360 : vector<1x16xi1>, vector<1x16xf32>
    %cst_110 = arith.constant dense<0.000000e+00> : vector<1xf32>
    %362 = vector.multi_reduction <add>, %361, %cst_110 [1] : vector<1x16xf32> to vector<1xf32>
    %363 = vector.shape_cast %362 : vector<1xf32> to vector<1x1xf32>
    %364 = vector.broadcast %183 : vector<1x1xi32> to vector<16x16xi32>
    %365 = arith.cmpi eq, %48, %364 : vector<16x16xi32>
    %366 = arith.extui %365 : vector<16x16xi1> to vector<16x16xi32>
    %367 = arith.sitofp %366 : vector<16x16xi32> to vector<16x16xf32>
    %368 = vector.broadcast %363 : vector<1x1xf32> to vector<16x16xf32>
    %369 = arith.mulf %368, %367 : vector<16x16xf32>
    %370 = arith.addf %357, %369 : vector<16x16xf32>
    %371 = vector.broadcast %197 : vector<1x1xi32> to vector<1x16xi32>
    %372 = arith.cmpi eq, %40, %371 : vector<1x16xi32>
    %cst_111 = arith.constant 0.000000e+00 : f32
    %373 = vector.broadcast %cst_111 : f32 to vector<1x16xf32>
    %374 = arith.select %372, %239, %373 : vector<1x16xi1>, vector<1x16xf32>
    %cst_112 = arith.constant dense<0.000000e+00> : vector<1xf32>
    %375 = vector.multi_reduction <add>, %374, %cst_112 [1] : vector<1x16xf32> to vector<1xf32>
    %376 = vector.shape_cast %375 : vector<1xf32> to vector<1x1xf32>
    %377 = vector.broadcast %197 : vector<1x1xi32> to vector<16x16xi32>
    %378 = arith.cmpi eq, %48, %377 : vector<16x16xi32>
    %379 = arith.extui %378 : vector<16x16xi1> to vector<16x16xi32>
    %380 = arith.sitofp %379 : vector<16x16xi32> to vector<16x16xf32>
    %381 = vector.broadcast %376 : vector<1x1xf32> to vector<16x16xf32>
    %382 = arith.mulf %381, %380 : vector<16x16xf32>
    %383 = arith.addf %370, %382 : vector<16x16xf32>
    %384 = vector.broadcast %211 : vector<1x1xi32> to vector<1x16xi32>
    %385 = arith.cmpi eq, %40, %384 : vector<1x16xi32>
    %cst_113 = arith.constant 0.000000e+00 : f32
    %386 = vector.broadcast %cst_113 : f32 to vector<1x16xf32>
    %387 = arith.select %385, %239, %386 : vector<1x16xi1>, vector<1x16xf32>
    %cst_114 = arith.constant dense<0.000000e+00> : vector<1xf32>
    %388 = vector.multi_reduction <add>, %387, %cst_114 [1] : vector<1x16xf32> to vector<1xf32>
    %389 = vector.shape_cast %388 : vector<1xf32> to vector<1x1xf32>
    %390 = vector.broadcast %211 : vector<1x1xi32> to vector<16x16xi32>
    %391 = arith.cmpi eq, %48, %390 : vector<16x16xi32>
    %392 = arith.extui %391 : vector<16x16xi1> to vector<16x16xi32>
    %393 = arith.sitofp %392 : vector<16x16xi32> to vector<16x16xf32>
    %394 = vector.broadcast %389 : vector<1x1xf32> to vector<16x16xf32>
    %395 = arith.mulf %394, %393 : vector<16x16xf32>
    %396 = arith.addf %383, %395 : vector<16x16xf32>
    %397 = vector.broadcast %225 : vector<1x1xi32> to vector<1x16xi32>
    %398 = arith.cmpi eq, %40, %397 : vector<1x16xi32>
    %cst_115 = arith.constant 0.000000e+00 : f32
    %399 = vector.broadcast %cst_115 : f32 to vector<1x16xf32>
    %400 = arith.select %398, %239, %399 : vector<1x16xi1>, vector<1x16xf32>
    %cst_116 = arith.constant dense<0.000000e+00> : vector<1xf32>
    %401 = vector.multi_reduction <add>, %400, %cst_116 [1] : vector<1x16xf32> to vector<1xf32>
    %402 = vector.shape_cast %401 : vector<1xf32> to vector<1x1xf32>
    %403 = vector.broadcast %225 : vector<1x1xi32> to vector<16x16xi32>
    %404 = arith.cmpi eq, %48, %403 : vector<16x16xi32>
    %405 = arith.extui %404 : vector<16x16xi1> to vector<16x16xi32>
    %406 = arith.sitofp %405 : vector<16x16xi32> to vector<16x16xf32>
    %407 = vector.broadcast %402 : vector<1x1xf32> to vector<16x16xf32>
    %408 = arith.mulf %407, %406 : vector<16x16xf32>
    %409 = arith.addf %396, %408 : vector<16x16xf32>
    %cst_117 = arith.constant dense<0.000000e+00> : vector<16x32xf32>
    %410 = tpu.matmul %409, %10, %cst_117 {dimension_numbers = #tpu.dot_dimension_numbers<[1], [0], [0], [1], [0, 0, 1, 1], [], []>} : vector<16x16xf32>, vector<16x32xf32>, vector<16x32xf32> -> vector<16x32xf32>
    %411 = arith.truncf %410 : vector<16x32xf32> to vector<16x32xbf16>
    %cst_118 = arith.constant dense<0.000000e+00> : vector<16x32xf32>
    %412 = tpu.matmul %411, %13, %cst_118 {dimension_numbers = #tpu.dot_dimension_numbers<[1], [0], [0], [1], [0, 0, 1, 1], [], []>} : vector<16x32xbf16>, vector<32x32xbf16>, vector<16x32xf32> -> vector<16x32xf32>
    %413 = vector.broadcast %14 : vector<1x32xf32> to vector<16x32xf32>
    %414 = arith.addf %412, %413 : vector<16x32xf32>
    %415 = arith.addf %1, %414 : vector<16x32xf32>
    %416 = vector.extract_strided_slice %415 {offsets = [0, 0], sizes = [1, 32], strides = [1, 1]} : vector<16x32xf32> to vector<1x32xf32>
    %417 = vector.shape_cast %416 : vector<1x32xf32> to vector<1x32xf32>
    %418 = vector.broadcast %417 : vector<1x32xf32> to vector<2x32xf32>
    %419 = vector.extract_strided_slice %415 {offsets = [15, 0], sizes = [1, 32], strides = [1, 1]} : vector<16x32xf32> to vector<1x32xf32>
    %420 = vector.shape_cast %419 : vector<1x32xf32> to vector<1x32xf32>
    %421 = vector.broadcast %420 : vector<1x32xf32> to vector<2x32xf32>
    %422 = tpu.concatenate %418, %415, %421 in 0 : vector<2x32xf32>, vector<16x32xf32>, vector<2x32xf32> -> vector<20x32xf32>
    %423 = vector.extract_strided_slice %422 {offsets = [0, 0], sizes = [16, 32], strides = [1, 1]} : vector<20x32xf32> to vector<16x32xf32>
    %424 = vector.extract_strided_slice %422 {offsets = [1, 0], sizes = [16, 32], strides = [1, 1]} : vector<20x32xf32> to vector<16x32xf32>
    %425 = arith.addf %423, %424 : vector<16x32xf32>
    %426 = vector.extract_strided_slice %422 {offsets = [2, 0], sizes = [16, 32], strides = [1, 1]} : vector<20x32xf32> to vector<16x32xf32>
    %427 = arith.addf %425, %426 : vector<16x32xf32>
    %428 = vector.extract_strided_slice %422 {offsets = [3, 0], sizes = [16, 32], strides = [1, 1]} : vector<20x32xf32> to vector<16x32xf32>
    %429 = arith.addf %427, %428 : vector<16x32xf32>
    %430 = vector.extract_strided_slice %422 {offsets = [4, 0], sizes = [16, 32], strides = [1, 1]} : vector<20x32xf32> to vector<16x32xf32>
    %431 = arith.addf %429, %430 : vector<16x32xf32>
    %cst_119 = arith.constant 2.000000e-01 : f32
    %432 = vector.broadcast %cst_119 : f32 to vector<16x32xf32>
    %433 = arith.mulf %431, %432 : vector<16x32xf32>
    %434 = arith.subf %415, %433 : vector<16x32xf32>
    %c0_120 = arith.constant 0 : index
    %c0_121 = arith.constant 0 : index
    %435 = vector.load %arg7[%c0_120, %c0_121] : memref<32x32xbf16, #tpu.memory_space<vmem>>, vector<32x32xbf16>
    %436 = arith.truncf %434 : vector<16x32xf32> to vector<16x32xbf16>
    %cst_122 = arith.constant dense<0.000000e+00> : vector<16x32xf32>
    %437 = tpu.matmul %436, %435, %cst_122 {dimension_numbers = #tpu.dot_dimension_numbers<[1], [0], [0], [1], [0, 0, 1, 1], [], []>} : vector<16x32xbf16>, vector<32x32xbf16>, vector<16x32xf32> -> vector<16x32xf32>
    %c0_123 = arith.constant 0 : index
    %c0_124 = arith.constant 0 : index
    %438 = vector.load %arg8[%c0_123, %c0_124] : memref<1x32xf32, #tpu.memory_space<vmem>>, vector<1x32xf32>
    %439 = vector.broadcast %438 : vector<1x32xf32> to vector<16x32xf32>
    %440 = arith.addf %437, %439 : vector<16x32xf32>
    %c0_125 = arith.constant 0 : index
    %c0_126 = arith.constant 0 : index
    %c0_127 = arith.constant 0 : index
    %441 = vector.load %arg2[%c0_125, %c0_126, %c0_127] : memref<1x16x32xf32, #tpu.memory_space<vmem>>, vector<1x16x32xf32>
    %442 = vector.shape_cast %441 : vector<1x16x32xf32> to vector<16x32xf32>
    %c0_128 = arith.constant 0 : index
    %c0_129 = arith.constant 0 : index
    %443 = vector.load %arg9[%c0_128, %c0_129] : memref<32x64xbf16, #tpu.memory_space<vmem>>, vector<32x64xbf16>
    %444 = arith.truncf %442 : vector<16x32xf32> to vector<16x32xbf16>
    %cst_130 = arith.constant dense<0.000000e+00> : vector<16x64xf32>
    %445 = tpu.matmul %444, %443, %cst_130 {dimension_numbers = #tpu.dot_dimension_numbers<[1], [0], [0], [1], [0, 0, 1, 1], [], []>} : vector<16x32xbf16>, vector<32x64xbf16>, vector<16x64xf32> -> vector<16x64xf32>
    %c0_131 = arith.constant 0 : index
    %c0_132 = arith.constant 0 : index
    %446 = vector.load %arg10[%c0_131, %c0_132] : memref<1x64xf32, #tpu.memory_space<vmem>>, vector<1x64xf32>
    %447 = vector.broadcast %446 : vector<1x64xf32> to vector<16x64xf32>
    %448 = arith.addf %445, %447 : vector<16x64xf32>
    %449 = vector.extract_strided_slice %448 {offsets = [0, 0], sizes = [16, 32], strides = [1, 1]} : vector<16x64xf32> to vector<16x32xf32>
    %450 = vector.extract_strided_slice %448 {offsets = [0, 32], sizes = [16, 32], strides = [1, 1]} : vector<16x64xf32> to vector<16x32xf32>
    %c0_133 = arith.constant 0 : index
    %c0_134 = arith.constant 0 : index
    %451 = vector.load %arg16[%c0_133, %c0_134] : memref<16x16xf32, #tpu.memory_space<vmem>>, vector<16x16xf32>
    %c0_135 = arith.constant 0 : index
    %c0_136 = arith.constant 0 : index
    %452 = vector.load %arg17[%c0_135, %c0_136] : memref<16x16xf32, #tpu.memory_space<vmem>>, vector<16x16xf32>
    %c0_137 = arith.constant 0 : index
    %c0_138 = arith.constant 0 : index
    %453 = vector.load %arg11[%c0_137, %c0_138] : memref<32x32xbf16, #tpu.memory_space<vmem>>, vector<32x32xbf16>
    %c0_139 = arith.constant 0 : index
    %c0_140 = arith.constant 0 : index
    %454 = vector.load %arg12[%c0_139, %c0_140] : memref<1x32xf32, #tpu.memory_space<vmem>>, vector<1x32xf32>
    %cst_141 = arith.constant dense<0.000000e+00> : vector<16x32xf32>
    %455 = tpu.matmul %451, %440, %cst_141 {dimension_numbers = #tpu.dot_dimension_numbers<[1], [0], [0], [1], [0, 0, 1, 1], [], []>} : vector<16x16xf32>, vector<16x32xf32>, vector<16x32xf32> -> vector<16x32xf32>
    %cst_142 = arith.constant dense<0.000000e+00> : vector<16x32xf32>
    %456 = tpu.matmul %452, %440, %cst_142 {dimension_numbers = #tpu.dot_dimension_numbers<[1], [0], [0], [1], [0, 0, 1, 1], [], []>} : vector<16x16xf32>, vector<16x32xf32>, vector<16x32xf32> -> vector<16x32xf32>
    %cst_143 = arith.constant dense<0.000000e+00> : vector<16x32xf32>
    %457 = tpu.matmul %451, %449, %cst_143 {dimension_numbers = #tpu.dot_dimension_numbers<[1], [0], [0], [1], [0, 0, 1, 1], [], []>} : vector<16x16xf32>, vector<16x32xf32>, vector<16x32xf32> -> vector<16x32xf32>
    %cst_144 = arith.constant dense<0.000000e+00> : vector<16x32xf32>
    %458 = tpu.matmul %452, %449, %cst_144 {dimension_numbers = #tpu.dot_dimension_numbers<[1], [0], [0], [1], [0, 0, 1, 1], [], []>} : vector<16x16xf32>, vector<16x32xf32>, vector<16x32xf32> -> vector<16x32xf32>
    %459 = arith.mulf %455, %457 : vector<16x32xf32>
    %460 = arith.mulf %456, %458 : vector<16x32xf32>
    %461 = arith.addf %459, %460 : vector<16x32xf32>
    %cst_145 = arith.constant dense<0.000000e+00> : vector<16xf32>
    %462 = vector.multi_reduction <add>, %461, %cst_145 [1] : vector<16x32xf32> to vector<16xf32>
    %463 = vector.shape_cast %462 : vector<16xf32> to vector<16x1xf32>
    %464 = arith.mulf %455, %458 : vector<16x32xf32>
    %465 = arith.mulf %456, %457 : vector<16x32xf32>
    %466 = arith.subf %464, %465 : vector<16x32xf32>
    %cst_146 = arith.constant dense<0.000000e+00> : vector<16xf32>
    %467 = vector.multi_reduction <add>, %466, %cst_146 [1] : vector<16x32xf32> to vector<16xf32>
    %468 = vector.shape_cast %467 : vector<16xf32> to vector<16x1xf32>
    %469 = vector.broadcast %463 : vector<16x1xf32> to vector<16x16xf32>
    %470 = arith.mulf %469, %451 : vector<16x16xf32>
    %471 = vector.broadcast %468 : vector<16x1xf32> to vector<16x16xf32>
    %472 = arith.mulf %471, %452 : vector<16x16xf32>
    %473 = arith.subf %470, %472 : vector<16x16xf32>
    %cst_147 = arith.constant dense<0.000000e+00> : vector<16xf32>
    %474 = vector.multi_reduction <add>, %473, %cst_147 [0] : vector<16x16xf32> to vector<16xf32>
    %475 = vector.shape_cast %474 : vector<16xf32> to vector<1x16xf32>
    %cst_148 = arith.constant 6.250000e-02 : f32
    %476 = vector.broadcast %cst_148 : f32 to vector<1x16xf32>
    %477 = arith.mulf %475, %476 : vector<1x16xf32>
    %cst_149 = arith.constant 3.125000e-02 : f32
    %478 = vector.broadcast %cst_149 : f32 to vector<1x16xf32>
    %479 = arith.mulf %477, %478 : vector<1x16xf32>
    %480 = tpu.iota {dimensions = array<i32: 1>} : vector<1x16xi32>
    %481 = tpu.iota {dimensions = array<i32: 0>} : vector<16x16xi32>
    %482 = tpu.iota {dimensions = array<i32: 1>} : vector<16x16xi32>
    %483 = arith.subi %482, %481 : vector<16x16xi32>
    %c0_i32_150 = arith.constant 0 : i32
    %484 = vector.broadcast %c0_i32_150 : i32 to vector<16x16xi32>
    %485 = arith.cmpi sge, %483, %484 : vector<16x16xi32>
    %c16_i32_151 = arith.constant 16 : i32
    %486 = vector.broadcast %c16_i32_151 : i32 to vector<16x16xi32>
    %487 = arith.addi %483, %486 : vector<16x16xi32>
    %488 = arith.select %485, %483, %487 : vector<16x16xi1>, vector<16x16xi32>
    %cst_152 = arith.constant 0.000000e+00 : f32
    %489 = vector.broadcast %cst_152 : f32 to vector<1x16xf32>
    %cst_153 = arith.constant dense<0xFF800000> : vector<1xf32>
    %490 = vector.multi_reduction <maximumf>, %479, %cst_153 [1] : vector<1x16xf32> to vector<1xf32>
    %491 = vector.shape_cast %490 : vector<1xf32> to vector<1x1xf32>
    %492 = vector.broadcast %491 : vector<1x1xf32> to vector<1x16xf32>
    %493 = arith.cmpf oeq, %479, %492 : vector<1x16xf32>
    %c16_i32_154 = arith.constant 16 : i32
    %494 = vector.broadcast %c16_i32_154 : i32 to vector<1x16xi32>
    %495 = arith.select %493, %480, %494 : vector<1x16xi1>, vector<1x16xi32>
    %cst_155 = arith.constant dense<2147483647> : vector<1xi32>
    %496 = vector.multi_reduction <minsi>, %495, %cst_155 [1] : vector<1x16xi32> to vector<1xi32>
    %497 = vector.shape_cast %496 : vector<1xi32> to vector<1x1xi32>
    %498 = vector.broadcast %497 : vector<1x1xi32> to vector<1x16xi32>
    %499 = arith.cmpi eq, %480, %498 : vector<1x16xi32>
    %cst_156 = arith.constant 1.000000e+00 : f32
    %500 = vector.broadcast %cst_156 : f32 to vector<1x16xf32>
    %501 = arith.select %499, %500, %489 : vector<1x16xi1>, vector<1x16xf32>
    %cst_157 = arith.constant 0xFF800000 : f32
    %502 = vector.broadcast %cst_157 : f32 to vector<1x16xf32>
    %503 = arith.select %499, %502, %479 : vector<1x16xi1>, vector<1x16xf32>
    %cst_158 = arith.constant dense<0xFF800000> : vector<1xf32>
    %504 = vector.multi_reduction <maximumf>, %503, %cst_158 [1] : vector<1x16xf32> to vector<1xf32>
    %505 = vector.shape_cast %504 : vector<1xf32> to vector<1x1xf32>
    %506 = vector.broadcast %505 : vector<1x1xf32> to vector<1x16xf32>
    %507 = arith.cmpf oeq, %503, %506 : vector<1x16xf32>
    %c16_i32_159 = arith.constant 16 : i32
    %508 = vector.broadcast %c16_i32_159 : i32 to vector<1x16xi32>
    %509 = arith.select %507, %480, %508 : vector<1x16xi1>, vector<1x16xi32>
    %cst_160 = arith.constant dense<2147483647> : vector<1xi32>
    %510 = vector.multi_reduction <minsi>, %509, %cst_160 [1] : vector<1x16xi32> to vector<1xi32>
    %511 = vector.shape_cast %510 : vector<1xi32> to vector<1x1xi32>
    %512 = vector.broadcast %511 : vector<1x1xi32> to vector<1x16xi32>
    %513 = arith.cmpi eq, %480, %512 : vector<1x16xi32>
    %cst_161 = arith.constant 1.000000e+00 : f32
    %514 = vector.broadcast %cst_161 : f32 to vector<1x16xf32>
    %515 = arith.select %513, %514, %501 : vector<1x16xi1>, vector<1x16xf32>
    %cst_162 = arith.constant 0xFF800000 : f32
    %516 = vector.broadcast %cst_162 : f32 to vector<1x16xf32>
    %517 = arith.select %513, %516, %503 : vector<1x16xi1>, vector<1x16xf32>
    %cst_163 = arith.constant dense<0xFF800000> : vector<1xf32>
    %518 = vector.multi_reduction <maximumf>, %517, %cst_163 [1] : vector<1x16xf32> to vector<1xf32>
    %519 = vector.shape_cast %518 : vector<1xf32> to vector<1x1xf32>
    %520 = vector.broadcast %519 : vector<1x1xf32> to vector<1x16xf32>
    %521 = arith.cmpf oeq, %517, %520 : vector<1x16xf32>
    %c16_i32_164 = arith.constant 16 : i32
    %522 = vector.broadcast %c16_i32_164 : i32 to vector<1x16xi32>
    %523 = arith.select %521, %480, %522 : vector<1x16xi1>, vector<1x16xi32>
    %cst_165 = arith.constant dense<2147483647> : vector<1xi32>
    %524 = vector.multi_reduction <minsi>, %523, %cst_165 [1] : vector<1x16xi32> to vector<1xi32>
    %525 = vector.shape_cast %524 : vector<1xi32> to vector<1x1xi32>
    %526 = vector.broadcast %525 : vector<1x1xi32> to vector<1x16xi32>
    %527 = arith.cmpi eq, %480, %526 : vector<1x16xi32>
    %cst_166 = arith.constant 1.000000e+00 : f32
    %528 = vector.broadcast %cst_166 : f32 to vector<1x16xf32>
    %529 = arith.select %527, %528, %515 : vector<1x16xi1>, vector<1x16xf32>
    %cst_167 = arith.constant 0xFF800000 : f32
    %530 = vector.broadcast %cst_167 : f32 to vector<1x16xf32>
    %531 = arith.select %527, %530, %517 : vector<1x16xi1>, vector<1x16xf32>
    %cst_168 = arith.constant dense<0xFF800000> : vector<1xf32>
    %532 = vector.multi_reduction <maximumf>, %531, %cst_168 [1] : vector<1x16xf32> to vector<1xf32>
    %533 = vector.shape_cast %532 : vector<1xf32> to vector<1x1xf32>
    %534 = vector.broadcast %533 : vector<1x1xf32> to vector<1x16xf32>
    %535 = arith.cmpf oeq, %531, %534 : vector<1x16xf32>
    %c16_i32_169 = arith.constant 16 : i32
    %536 = vector.broadcast %c16_i32_169 : i32 to vector<1x16xi32>
    %537 = arith.select %535, %480, %536 : vector<1x16xi1>, vector<1x16xi32>
    %cst_170 = arith.constant dense<2147483647> : vector<1xi32>
    %538 = vector.multi_reduction <minsi>, %537, %cst_170 [1] : vector<1x16xi32> to vector<1xi32>
    %539 = vector.shape_cast %538 : vector<1xi32> to vector<1x1xi32>
    %540 = vector.broadcast %539 : vector<1x1xi32> to vector<1x16xi32>
    %541 = arith.cmpi eq, %480, %540 : vector<1x16xi32>
    %cst_171 = arith.constant 1.000000e+00 : f32
    %542 = vector.broadcast %cst_171 : f32 to vector<1x16xf32>
    %543 = arith.select %541, %542, %529 : vector<1x16xi1>, vector<1x16xf32>
    %cst_172 = arith.constant 0xFF800000 : f32
    %544 = vector.broadcast %cst_172 : f32 to vector<1x16xf32>
    %545 = arith.select %541, %544, %531 : vector<1x16xi1>, vector<1x16xf32>
    %cst_173 = arith.constant dense<0xFF800000> : vector<1xf32>
    %546 = vector.multi_reduction <maximumf>, %545, %cst_173 [1] : vector<1x16xf32> to vector<1xf32>
    %547 = vector.shape_cast %546 : vector<1xf32> to vector<1x1xf32>
    %548 = vector.broadcast %547 : vector<1x1xf32> to vector<1x16xf32>
    %549 = arith.cmpf oeq, %545, %548 : vector<1x16xf32>
    %c16_i32_174 = arith.constant 16 : i32
    %550 = vector.broadcast %c16_i32_174 : i32 to vector<1x16xi32>
    %551 = arith.select %549, %480, %550 : vector<1x16xi1>, vector<1x16xi32>
    %cst_175 = arith.constant dense<2147483647> : vector<1xi32>
    %552 = vector.multi_reduction <minsi>, %551, %cst_175 [1] : vector<1x16xi32> to vector<1xi32>
    %553 = vector.shape_cast %552 : vector<1xi32> to vector<1x1xi32>
    %554 = vector.broadcast %553 : vector<1x1xi32> to vector<1x16xi32>
    %555 = arith.cmpi eq, %480, %554 : vector<1x16xi32>
    %cst_176 = arith.constant 1.000000e+00 : f32
    %556 = vector.broadcast %cst_176 : f32 to vector<1x16xf32>
    %557 = arith.select %555, %556, %543 : vector<1x16xi1>, vector<1x16xf32>
    %cst_177 = arith.constant 0xFF800000 : f32
    %558 = vector.broadcast %cst_177 : f32 to vector<1x16xf32>
    %559 = arith.select %555, %558, %545 : vector<1x16xi1>, vector<1x16xf32>
    %cst_178 = arith.constant dense<0xFF800000> : vector<1xf32>
    %560 = vector.multi_reduction <maximumf>, %559, %cst_178 [1] : vector<1x16xf32> to vector<1xf32>
    %561 = vector.shape_cast %560 : vector<1xf32> to vector<1x1xf32>
    %562 = vector.broadcast %561 : vector<1x1xf32> to vector<1x16xf32>
    %563 = arith.cmpf oeq, %559, %562 : vector<1x16xf32>
    %c16_i32_179 = arith.constant 16 : i32
    %564 = vector.broadcast %c16_i32_179 : i32 to vector<1x16xi32>
    %565 = arith.select %563, %480, %564 : vector<1x16xi1>, vector<1x16xi32>
    %cst_180 = arith.constant dense<2147483647> : vector<1xi32>
    %566 = vector.multi_reduction <minsi>, %565, %cst_180 [1] : vector<1x16xi32> to vector<1xi32>
    %567 = vector.shape_cast %566 : vector<1xi32> to vector<1x1xi32>
    %568 = vector.broadcast %567 : vector<1x1xi32> to vector<1x16xi32>
    %569 = arith.cmpi eq, %480, %568 : vector<1x16xi32>
    %cst_181 = arith.constant 1.000000e+00 : f32
    %570 = vector.broadcast %cst_181 : f32 to vector<1x16xf32>
    %571 = arith.select %569, %570, %557 : vector<1x16xi1>, vector<1x16xf32>
    %cst_182 = arith.constant 0xFF800000 : f32
    %572 = vector.broadcast %cst_182 : f32 to vector<1x16xf32>
    %573 = arith.select %569, %572, %559 : vector<1x16xi1>, vector<1x16xf32>
    %cst_183 = arith.constant dense<0xFF800000> : vector<1xf32>
    %574 = vector.multi_reduction <maximumf>, %573, %cst_183 [1] : vector<1x16xf32> to vector<1xf32>
    %575 = vector.shape_cast %574 : vector<1xf32> to vector<1x1xf32>
    %576 = vector.broadcast %575 : vector<1x1xf32> to vector<1x16xf32>
    %577 = arith.cmpf oeq, %573, %576 : vector<1x16xf32>
    %c16_i32_184 = arith.constant 16 : i32
    %578 = vector.broadcast %c16_i32_184 : i32 to vector<1x16xi32>
    %579 = arith.select %577, %480, %578 : vector<1x16xi1>, vector<1x16xi32>
    %cst_185 = arith.constant dense<2147483647> : vector<1xi32>
    %580 = vector.multi_reduction <minsi>, %579, %cst_185 [1] : vector<1x16xi32> to vector<1xi32>
    %581 = vector.shape_cast %580 : vector<1xi32> to vector<1x1xi32>
    %582 = vector.broadcast %581 : vector<1x1xi32> to vector<1x16xi32>
    %583 = arith.cmpi eq, %480, %582 : vector<1x16xi32>
    %cst_186 = arith.constant 1.000000e+00 : f32
    %584 = vector.broadcast %cst_186 : f32 to vector<1x16xf32>
    %585 = arith.select %583, %584, %571 : vector<1x16xi1>, vector<1x16xf32>
    %cst_187 = arith.constant 0xFF800000 : f32
    %586 = vector.broadcast %cst_187 : f32 to vector<1x16xf32>
    %587 = arith.select %583, %586, %573 : vector<1x16xi1>, vector<1x16xf32>
    %cst_188 = arith.constant dense<0xFF800000> : vector<1xf32>
    %588 = vector.multi_reduction <maximumf>, %587, %cst_188 [1] : vector<1x16xf32> to vector<1xf32>
    %589 = vector.shape_cast %588 : vector<1xf32> to vector<1x1xf32>
    %590 = vector.broadcast %589 : vector<1x1xf32> to vector<1x16xf32>
    %591 = arith.cmpf oeq, %587, %590 : vector<1x16xf32>
    %c16_i32_189 = arith.constant 16 : i32
    %592 = vector.broadcast %c16_i32_189 : i32 to vector<1x16xi32>
    %593 = arith.select %591, %480, %592 : vector<1x16xi1>, vector<1x16xi32>
    %cst_190 = arith.constant dense<2147483647> : vector<1xi32>
    %594 = vector.multi_reduction <minsi>, %593, %cst_190 [1] : vector<1x16xi32> to vector<1xi32>
    %595 = vector.shape_cast %594 : vector<1xi32> to vector<1x1xi32>
    %596 = vector.broadcast %595 : vector<1x1xi32> to vector<1x16xi32>
    %597 = arith.cmpi eq, %480, %596 : vector<1x16xi32>
    %cst_191 = arith.constant 1.000000e+00 : f32
    %598 = vector.broadcast %cst_191 : f32 to vector<1x16xf32>
    %599 = arith.select %597, %598, %585 : vector<1x16xi1>, vector<1x16xf32>
    %cst_192 = arith.constant 0xFF800000 : f32
    %600 = vector.broadcast %cst_192 : f32 to vector<1x16xf32>
    %601 = arith.select %597, %600, %587 : vector<1x16xi1>, vector<1x16xf32>
    %cst_193 = arith.constant dense<0xFF800000> : vector<1xf32>
    %602 = vector.multi_reduction <maximumf>, %601, %cst_193 [1] : vector<1x16xf32> to vector<1xf32>
    %603 = vector.shape_cast %602 : vector<1xf32> to vector<1x1xf32>
    %604 = vector.broadcast %603 : vector<1x1xf32> to vector<1x16xf32>
    %605 = arith.cmpf oeq, %601, %604 : vector<1x16xf32>
    %c16_i32_194 = arith.constant 16 : i32
    %606 = vector.broadcast %c16_i32_194 : i32 to vector<1x16xi32>
    %607 = arith.select %605, %480, %606 : vector<1x16xi1>, vector<1x16xi32>
    %cst_195 = arith.constant dense<2147483647> : vector<1xi32>
    %608 = vector.multi_reduction <minsi>, %607, %cst_195 [1] : vector<1x16xi32> to vector<1xi32>
    %609 = vector.shape_cast %608 : vector<1xi32> to vector<1x1xi32>
    %610 = vector.broadcast %609 : vector<1x1xi32> to vector<1x16xi32>
    %611 = arith.cmpi eq, %480, %610 : vector<1x16xi32>
    %cst_196 = arith.constant 1.000000e+00 : f32
    %612 = vector.broadcast %cst_196 : f32 to vector<1x16xf32>
    %613 = arith.select %611, %612, %599 : vector<1x16xi1>, vector<1x16xf32>
    %cst_197 = arith.constant 0xFF800000 : f32
    %614 = vector.broadcast %cst_197 : f32 to vector<1x16xf32>
    %615 = arith.select %611, %614, %601 : vector<1x16xi1>, vector<1x16xf32>
    %cst_198 = arith.constant dense<0xFF800000> : vector<1xf32>
    %616 = vector.multi_reduction <maximumf>, %615, %cst_198 [1] : vector<1x16xf32> to vector<1xf32>
    %617 = vector.shape_cast %616 : vector<1xf32> to vector<1x1xf32>
    %618 = vector.broadcast %617 : vector<1x1xf32> to vector<1x16xf32>
    %619 = arith.cmpf oeq, %615, %618 : vector<1x16xf32>
    %c16_i32_199 = arith.constant 16 : i32
    %620 = vector.broadcast %c16_i32_199 : i32 to vector<1x16xi32>
    %621 = arith.select %619, %480, %620 : vector<1x16xi1>, vector<1x16xi32>
    %cst_200 = arith.constant dense<2147483647> : vector<1xi32>
    %622 = vector.multi_reduction <minsi>, %621, %cst_200 [1] : vector<1x16xi32> to vector<1xi32>
    %623 = vector.shape_cast %622 : vector<1xi32> to vector<1x1xi32>
    %624 = vector.broadcast %623 : vector<1x1xi32> to vector<1x16xi32>
    %625 = arith.cmpi eq, %480, %624 : vector<1x16xi32>
    %cst_201 = arith.constant 1.000000e+00 : f32
    %626 = vector.broadcast %cst_201 : f32 to vector<1x16xf32>
    %627 = arith.select %625, %626, %613 : vector<1x16xi1>, vector<1x16xf32>
    %cst_202 = arith.constant 0xFF800000 : f32
    %628 = vector.broadcast %cst_202 : f32 to vector<1x16xf32>
    %629 = arith.select %625, %628, %615 : vector<1x16xi1>, vector<1x16xf32>
    %cst_203 = arith.constant dense<0xFF800000> : vector<1xf32>
    %630 = vector.multi_reduction <maximumf>, %629, %cst_203 [1] : vector<1x16xf32> to vector<1xf32>
    %631 = vector.shape_cast %630 : vector<1xf32> to vector<1x1xf32>
    %632 = vector.broadcast %631 : vector<1x1xf32> to vector<1x16xf32>
    %633 = arith.cmpf oeq, %629, %632 : vector<1x16xf32>
    %c16_i32_204 = arith.constant 16 : i32
    %634 = vector.broadcast %c16_i32_204 : i32 to vector<1x16xi32>
    %635 = arith.select %633, %480, %634 : vector<1x16xi1>, vector<1x16xi32>
    %cst_205 = arith.constant dense<2147483647> : vector<1xi32>
    %636 = vector.multi_reduction <minsi>, %635, %cst_205 [1] : vector<1x16xi32> to vector<1xi32>
    %637 = vector.shape_cast %636 : vector<1xi32> to vector<1x1xi32>
    %638 = vector.broadcast %637 : vector<1x1xi32> to vector<1x16xi32>
    %639 = arith.cmpi eq, %480, %638 : vector<1x16xi32>
    %cst_206 = arith.constant 1.000000e+00 : f32
    %640 = vector.broadcast %cst_206 : f32 to vector<1x16xf32>
    %641 = arith.select %639, %640, %627 : vector<1x16xi1>, vector<1x16xf32>
    %cst_207 = arith.constant 0xFF800000 : f32
    %642 = vector.broadcast %cst_207 : f32 to vector<1x16xf32>
    %643 = arith.select %639, %642, %629 : vector<1x16xi1>, vector<1x16xf32>
    %cst_208 = arith.constant dense<0xFF800000> : vector<1xf32>
    %644 = vector.multi_reduction <maximumf>, %643, %cst_208 [1] : vector<1x16xf32> to vector<1xf32>
    %645 = vector.shape_cast %644 : vector<1xf32> to vector<1x1xf32>
    %646 = vector.broadcast %645 : vector<1x1xf32> to vector<1x16xf32>
    %647 = arith.cmpf oeq, %643, %646 : vector<1x16xf32>
    %c16_i32_209 = arith.constant 16 : i32
    %648 = vector.broadcast %c16_i32_209 : i32 to vector<1x16xi32>
    %649 = arith.select %647, %480, %648 : vector<1x16xi1>, vector<1x16xi32>
    %cst_210 = arith.constant dense<2147483647> : vector<1xi32>
    %650 = vector.multi_reduction <minsi>, %649, %cst_210 [1] : vector<1x16xi32> to vector<1xi32>
    %651 = vector.shape_cast %650 : vector<1xi32> to vector<1x1xi32>
    %652 = vector.broadcast %651 : vector<1x1xi32> to vector<1x16xi32>
    %653 = arith.cmpi eq, %480, %652 : vector<1x16xi32>
    %cst_211 = arith.constant 1.000000e+00 : f32
    %654 = vector.broadcast %cst_211 : f32 to vector<1x16xf32>
    %655 = arith.select %653, %654, %641 : vector<1x16xi1>, vector<1x16xf32>
    %cst_212 = arith.constant 0xFF800000 : f32
    %656 = vector.broadcast %cst_212 : f32 to vector<1x16xf32>
    %657 = arith.select %653, %656, %643 : vector<1x16xi1>, vector<1x16xf32>
    %cst_213 = arith.constant dense<0xFF800000> : vector<1xf32>
    %658 = vector.multi_reduction <maximumf>, %657, %cst_213 [1] : vector<1x16xf32> to vector<1xf32>
    %659 = vector.shape_cast %658 : vector<1xf32> to vector<1x1xf32>
    %660 = vector.broadcast %659 : vector<1x1xf32> to vector<1x16xf32>
    %661 = arith.cmpf oeq, %657, %660 : vector<1x16xf32>
    %c16_i32_214 = arith.constant 16 : i32
    %662 = vector.broadcast %c16_i32_214 : i32 to vector<1x16xi32>
    %663 = arith.select %661, %480, %662 : vector<1x16xi1>, vector<1x16xi32>
    %cst_215 = arith.constant dense<2147483647> : vector<1xi32>
    %664 = vector.multi_reduction <minsi>, %663, %cst_215 [1] : vector<1x16xi32> to vector<1xi32>
    %665 = vector.shape_cast %664 : vector<1xi32> to vector<1x1xi32>
    %666 = vector.broadcast %665 : vector<1x1xi32> to vector<1x16xi32>
    %667 = arith.cmpi eq, %480, %666 : vector<1x16xi32>
    %cst_216 = arith.constant 1.000000e+00 : f32
    %668 = vector.broadcast %cst_216 : f32 to vector<1x16xf32>
    %669 = arith.select %667, %668, %655 : vector<1x16xi1>, vector<1x16xf32>
    %670 = vector.broadcast %491 : vector<1x1xf32> to vector<1x16xf32>
    %671 = arith.subf %479, %670 : vector<1x16xf32>
    %672 = math.exp %671 : vector<1x16xf32>
    %673 = arith.mulf %672, %669 : vector<1x16xf32>
    %cst_217 = arith.constant dense<0.000000e+00> : vector<1xf32>
    %674 = vector.multi_reduction <add>, %673, %cst_217 [1] : vector<1x16xf32> to vector<1xf32>
    %675 = vector.shape_cast %674 : vector<1xf32> to vector<1x1xf32>
    %cst_218 = arith.constant 1.000000e+00 : f32
    %676 = vector.broadcast %cst_218 : f32 to vector<1x1xf32>
    %677 = arith.divf %676, %675 : vector<1x1xf32>
    %678 = vector.broadcast %677 : vector<1x1xf32> to vector<1x16xf32>
    %679 = arith.mulf %673, %678 : vector<1x16xf32>
    %cst_219 = arith.constant 0.000000e+00 : f32
    %680 = vector.broadcast %cst_219 : f32 to vector<16x16xf32>
    %681 = vector.broadcast %497 : vector<1x1xi32> to vector<1x16xi32>
    %682 = arith.cmpi eq, %480, %681 : vector<1x16xi32>
    %cst_220 = arith.constant 0.000000e+00 : f32
    %683 = vector.broadcast %cst_220 : f32 to vector<1x16xf32>
    %684 = arith.select %682, %679, %683 : vector<1x16xi1>, vector<1x16xf32>
    %cst_221 = arith.constant dense<0.000000e+00> : vector<1xf32>
    %685 = vector.multi_reduction <add>, %684, %cst_221 [1] : vector<1x16xf32> to vector<1xf32>
    %686 = vector.shape_cast %685 : vector<1xf32> to vector<1x1xf32>
    %687 = vector.broadcast %497 : vector<1x1xi32> to vector<16x16xi32>
    %688 = arith.cmpi eq, %488, %687 : vector<16x16xi32>
    %689 = arith.extui %688 : vector<16x16xi1> to vector<16x16xi32>
    %690 = arith.sitofp %689 : vector<16x16xi32> to vector<16x16xf32>
    %691 = vector.broadcast %686 : vector<1x1xf32> to vector<16x16xf32>
    %692 = arith.mulf %691, %690 : vector<16x16xf32>
    %693 = arith.addf %680, %692 : vector<16x16xf32>
    %694 = vector.broadcast %511 : vector<1x1xi32> to vector<1x16xi32>
    %695 = arith.cmpi eq, %480, %694 : vector<1x16xi32>
    %cst_222 = arith.constant 0.000000e+00 : f32
    %696 = vector.broadcast %cst_222 : f32 to vector<1x16xf32>
    %697 = arith.select %695, %679, %696 : vector<1x16xi1>, vector<1x16xf32>
    %cst_223 = arith.constant dense<0.000000e+00> : vector<1xf32>
    %698 = vector.multi_reduction <add>, %697, %cst_223 [1] : vector<1x16xf32> to vector<1xf32>
    %699 = vector.shape_cast %698 : vector<1xf32> to vector<1x1xf32>
    %700 = vector.broadcast %511 : vector<1x1xi32> to vector<16x16xi32>
    %701 = arith.cmpi eq, %488, %700 : vector<16x16xi32>
    %702 = arith.extui %701 : vector<16x16xi1> to vector<16x16xi32>
    %703 = arith.sitofp %702 : vector<16x16xi32> to vector<16x16xf32>
    %704 = vector.broadcast %699 : vector<1x1xf32> to vector<16x16xf32>
    %705 = arith.mulf %704, %703 : vector<16x16xf32>
    %706 = arith.addf %693, %705 : vector<16x16xf32>
    %707 = vector.broadcast %525 : vector<1x1xi32> to vector<1x16xi32>
    %708 = arith.cmpi eq, %480, %707 : vector<1x16xi32>
    %cst_224 = arith.constant 0.000000e+00 : f32
    %709 = vector.broadcast %cst_224 : f32 to vector<1x16xf32>
    %710 = arith.select %708, %679, %709 : vector<1x16xi1>, vector<1x16xf32>
    %cst_225 = arith.constant dense<0.000000e+00> : vector<1xf32>
    %711 = vector.multi_reduction <add>, %710, %cst_225 [1] : vector<1x16xf32> to vector<1xf32>
    %712 = vector.shape_cast %711 : vector<1xf32> to vector<1x1xf32>
    %713 = vector.broadcast %525 : vector<1x1xi32> to vector<16x16xi32>
    %714 = arith.cmpi eq, %488, %713 : vector<16x16xi32>
    %715 = arith.extui %714 : vector<16x16xi1> to vector<16x16xi32>
    %716 = arith.sitofp %715 : vector<16x16xi32> to vector<16x16xf32>
    %717 = vector.broadcast %712 : vector<1x1xf32> to vector<16x16xf32>
    %718 = arith.mulf %717, %716 : vector<16x16xf32>
    %719 = arith.addf %706, %718 : vector<16x16xf32>
    %720 = vector.broadcast %539 : vector<1x1xi32> to vector<1x16xi32>
    %721 = arith.cmpi eq, %480, %720 : vector<1x16xi32>
    %cst_226 = arith.constant 0.000000e+00 : f32
    %722 = vector.broadcast %cst_226 : f32 to vector<1x16xf32>
    %723 = arith.select %721, %679, %722 : vector<1x16xi1>, vector<1x16xf32>
    %cst_227 = arith.constant dense<0.000000e+00> : vector<1xf32>
    %724 = vector.multi_reduction <add>, %723, %cst_227 [1] : vector<1x16xf32> to vector<1xf32>
    %725 = vector.shape_cast %724 : vector<1xf32> to vector<1x1xf32>
    %726 = vector.broadcast %539 : vector<1x1xi32> to vector<16x16xi32>
    %727 = arith.cmpi eq, %488, %726 : vector<16x16xi32>
    %728 = arith.extui %727 : vector<16x16xi1> to vector<16x16xi32>
    %729 = arith.sitofp %728 : vector<16x16xi32> to vector<16x16xf32>
    %730 = vector.broadcast %725 : vector<1x1xf32> to vector<16x16xf32>
    %731 = arith.mulf %730, %729 : vector<16x16xf32>
    %732 = arith.addf %719, %731 : vector<16x16xf32>
    %733 = vector.broadcast %553 : vector<1x1xi32> to vector<1x16xi32>
    %734 = arith.cmpi eq, %480, %733 : vector<1x16xi32>
    %cst_228 = arith.constant 0.000000e+00 : f32
    %735 = vector.broadcast %cst_228 : f32 to vector<1x16xf32>
    %736 = arith.select %734, %679, %735 : vector<1x16xi1>, vector<1x16xf32>
    %cst_229 = arith.constant dense<0.000000e+00> : vector<1xf32>
    %737 = vector.multi_reduction <add>, %736, %cst_229 [1] : vector<1x16xf32> to vector<1xf32>
    %738 = vector.shape_cast %737 : vector<1xf32> to vector<1x1xf32>
    %739 = vector.broadcast %553 : vector<1x1xi32> to vector<16x16xi32>
    %740 = arith.cmpi eq, %488, %739 : vector<16x16xi32>
    %741 = arith.extui %740 : vector<16x16xi1> to vector<16x16xi32>
    %742 = arith.sitofp %741 : vector<16x16xi32> to vector<16x16xf32>
    %743 = vector.broadcast %738 : vector<1x1xf32> to vector<16x16xf32>
    %744 = arith.mulf %743, %742 : vector<16x16xf32>
    %745 = arith.addf %732, %744 : vector<16x16xf32>
    %746 = vector.broadcast %567 : vector<1x1xi32> to vector<1x16xi32>
    %747 = arith.cmpi eq, %480, %746 : vector<1x16xi32>
    %cst_230 = arith.constant 0.000000e+00 : f32
    %748 = vector.broadcast %cst_230 : f32 to vector<1x16xf32>
    %749 = arith.select %747, %679, %748 : vector<1x16xi1>, vector<1x16xf32>
    %cst_231 = arith.constant dense<0.000000e+00> : vector<1xf32>
    %750 = vector.multi_reduction <add>, %749, %cst_231 [1] : vector<1x16xf32> to vector<1xf32>
    %751 = vector.shape_cast %750 : vector<1xf32> to vector<1x1xf32>
    %752 = vector.broadcast %567 : vector<1x1xi32> to vector<16x16xi32>
    %753 = arith.cmpi eq, %488, %752 : vector<16x16xi32>
    %754 = arith.extui %753 : vector<16x16xi1> to vector<16x16xi32>
    %755 = arith.sitofp %754 : vector<16x16xi32> to vector<16x16xf32>
    %756 = vector.broadcast %751 : vector<1x1xf32> to vector<16x16xf32>
    %757 = arith.mulf %756, %755 : vector<16x16xf32>
    %758 = arith.addf %745, %757 : vector<16x16xf32>
    %759 = vector.broadcast %581 : vector<1x1xi32> to vector<1x16xi32>
    %760 = arith.cmpi eq, %480, %759 : vector<1x16xi32>
    %cst_232 = arith.constant 0.000000e+00 : f32
    %761 = vector.broadcast %cst_232 : f32 to vector<1x16xf32>
    %762 = arith.select %760, %679, %761 : vector<1x16xi1>, vector<1x16xf32>
    %cst_233 = arith.constant dense<0.000000e+00> : vector<1xf32>
    %763 = vector.multi_reduction <add>, %762, %cst_233 [1] : vector<1x16xf32> to vector<1xf32>
    %764 = vector.shape_cast %763 : vector<1xf32> to vector<1x1xf32>
    %765 = vector.broadcast %581 : vector<1x1xi32> to vector<16x16xi32>
    %766 = arith.cmpi eq, %488, %765 : vector<16x16xi32>
    %767 = arith.extui %766 : vector<16x16xi1> to vector<16x16xi32>
    %768 = arith.sitofp %767 : vector<16x16xi32> to vector<16x16xf32>
    %769 = vector.broadcast %764 : vector<1x1xf32> to vector<16x16xf32>
    %770 = arith.mulf %769, %768 : vector<16x16xf32>
    %771 = arith.addf %758, %770 : vector<16x16xf32>
    %772 = vector.broadcast %595 : vector<1x1xi32> to vector<1x16xi32>
    %773 = arith.cmpi eq, %480, %772 : vector<1x16xi32>
    %cst_234 = arith.constant 0.000000e+00 : f32
    %774 = vector.broadcast %cst_234 : f32 to vector<1x16xf32>
    %775 = arith.select %773, %679, %774 : vector<1x16xi1>, vector<1x16xf32>
    %cst_235 = arith.constant dense<0.000000e+00> : vector<1xf32>
    %776 = vector.multi_reduction <add>, %775, %cst_235 [1] : vector<1x16xf32> to vector<1xf32>
    %777 = vector.shape_cast %776 : vector<1xf32> to vector<1x1xf32>
    %778 = vector.broadcast %595 : vector<1x1xi32> to vector<16x16xi32>
    %779 = arith.cmpi eq, %488, %778 : vector<16x16xi32>
    %780 = arith.extui %779 : vector<16x16xi1> to vector<16x16xi32>
    %781 = arith.sitofp %780 : vector<16x16xi32> to vector<16x16xf32>
    %782 = vector.broadcast %777 : vector<1x1xf32> to vector<16x16xf32>
    %783 = arith.mulf %782, %781 : vector<16x16xf32>
    %784 = arith.addf %771, %783 : vector<16x16xf32>
    %785 = vector.broadcast %609 : vector<1x1xi32> to vector<1x16xi32>
    %786 = arith.cmpi eq, %480, %785 : vector<1x16xi32>
    %cst_236 = arith.constant 0.000000e+00 : f32
    %787 = vector.broadcast %cst_236 : f32 to vector<1x16xf32>
    %788 = arith.select %786, %679, %787 : vector<1x16xi1>, vector<1x16xf32>
    %cst_237 = arith.constant dense<0.000000e+00> : vector<1xf32>
    %789 = vector.multi_reduction <add>, %788, %cst_237 [1] : vector<1x16xf32> to vector<1xf32>
    %790 = vector.shape_cast %789 : vector<1xf32> to vector<1x1xf32>
    %791 = vector.broadcast %609 : vector<1x1xi32> to vector<16x16xi32>
    %792 = arith.cmpi eq, %488, %791 : vector<16x16xi32>
    %793 = arith.extui %792 : vector<16x16xi1> to vector<16x16xi32>
    %794 = arith.sitofp %793 : vector<16x16xi32> to vector<16x16xf32>
    %795 = vector.broadcast %790 : vector<1x1xf32> to vector<16x16xf32>
    %796 = arith.mulf %795, %794 : vector<16x16xf32>
    %797 = arith.addf %784, %796 : vector<16x16xf32>
    %798 = vector.broadcast %623 : vector<1x1xi32> to vector<1x16xi32>
    %799 = arith.cmpi eq, %480, %798 : vector<1x16xi32>
    %cst_238 = arith.constant 0.000000e+00 : f32
    %800 = vector.broadcast %cst_238 : f32 to vector<1x16xf32>
    %801 = arith.select %799, %679, %800 : vector<1x16xi1>, vector<1x16xf32>
    %cst_239 = arith.constant dense<0.000000e+00> : vector<1xf32>
    %802 = vector.multi_reduction <add>, %801, %cst_239 [1] : vector<1x16xf32> to vector<1xf32>
    %803 = vector.shape_cast %802 : vector<1xf32> to vector<1x1xf32>
    %804 = vector.broadcast %623 : vector<1x1xi32> to vector<16x16xi32>
    %805 = arith.cmpi eq, %488, %804 : vector<16x16xi32>
    %806 = arith.extui %805 : vector<16x16xi1> to vector<16x16xi32>
    %807 = arith.sitofp %806 : vector<16x16xi32> to vector<16x16xf32>
    %808 = vector.broadcast %803 : vector<1x1xf32> to vector<16x16xf32>
    %809 = arith.mulf %808, %807 : vector<16x16xf32>
    %810 = arith.addf %797, %809 : vector<16x16xf32>
    %811 = vector.broadcast %637 : vector<1x1xi32> to vector<1x16xi32>
    %812 = arith.cmpi eq, %480, %811 : vector<1x16xi32>
    %cst_240 = arith.constant 0.000000e+00 : f32
    %813 = vector.broadcast %cst_240 : f32 to vector<1x16xf32>
    %814 = arith.select %812, %679, %813 : vector<1x16xi1>, vector<1x16xf32>
    %cst_241 = arith.constant dense<0.000000e+00> : vector<1xf32>
    %815 = vector.multi_reduction <add>, %814, %cst_241 [1] : vector<1x16xf32> to vector<1xf32>
    %816 = vector.shape_cast %815 : vector<1xf32> to vector<1x1xf32>
    %817 = vector.broadcast %637 : vector<1x1xi32> to vector<16x16xi32>
    %818 = arith.cmpi eq, %488, %817 : vector<16x16xi32>
    %819 = arith.extui %818 : vector<16x16xi1> to vector<16x16xi32>
    %820 = arith.sitofp %819 : vector<16x16xi32> to vector<16x16xf32>
    %821 = vector.broadcast %816 : vector<1x1xf32> to vector<16x16xf32>
    %822 = arith.mulf %821, %820 : vector<16x16xf32>
    %823 = arith.addf %810, %822 : vector<16x16xf32>
    %824 = vector.broadcast %651 : vector<1x1xi32> to vector<1x16xi32>
    %825 = arith.cmpi eq, %480, %824 : vector<1x16xi32>
    %cst_242 = arith.constant 0.000000e+00 : f32
    %826 = vector.broadcast %cst_242 : f32 to vector<1x16xf32>
    %827 = arith.select %825, %679, %826 : vector<1x16xi1>, vector<1x16xf32>
    %cst_243 = arith.constant dense<0.000000e+00> : vector<1xf32>
    %828 = vector.multi_reduction <add>, %827, %cst_243 [1] : vector<1x16xf32> to vector<1xf32>
    %829 = vector.shape_cast %828 : vector<1xf32> to vector<1x1xf32>
    %830 = vector.broadcast %651 : vector<1x1xi32> to vector<16x16xi32>
    %831 = arith.cmpi eq, %488, %830 : vector<16x16xi32>
    %832 = arith.extui %831 : vector<16x16xi1> to vector<16x16xi32>
    %833 = arith.sitofp %832 : vector<16x16xi32> to vector<16x16xf32>
    %834 = vector.broadcast %829 : vector<1x1xf32> to vector<16x16xf32>
    %835 = arith.mulf %834, %833 : vector<16x16xf32>
    %836 = arith.addf %823, %835 : vector<16x16xf32>
    %837 = vector.broadcast %665 : vector<1x1xi32> to vector<1x16xi32>
    %838 = arith.cmpi eq, %480, %837 : vector<1x16xi32>
    %cst_244 = arith.constant 0.000000e+00 : f32
    %839 = vector.broadcast %cst_244 : f32 to vector<1x16xf32>
    %840 = arith.select %838, %679, %839 : vector<1x16xi1>, vector<1x16xf32>
    %cst_245 = arith.constant dense<0.000000e+00> : vector<1xf32>
    %841 = vector.multi_reduction <add>, %840, %cst_245 [1] : vector<1x16xf32> to vector<1xf32>
    %842 = vector.shape_cast %841 : vector<1xf32> to vector<1x1xf32>
    %843 = vector.broadcast %665 : vector<1x1xi32> to vector<16x16xi32>
    %844 = arith.cmpi eq, %488, %843 : vector<16x16xi32>
    %845 = arith.extui %844 : vector<16x16xi1> to vector<16x16xi32>
    %846 = arith.sitofp %845 : vector<16x16xi32> to vector<16x16xf32>
    %847 = vector.broadcast %842 : vector<1x1xf32> to vector<16x16xf32>
    %848 = arith.mulf %847, %846 : vector<16x16xf32>
    %849 = arith.addf %836, %848 : vector<16x16xf32>
    %cst_246 = arith.constant dense<0.000000e+00> : vector<16x32xf32>
    %850 = tpu.matmul %849, %450, %cst_246 {dimension_numbers = #tpu.dot_dimension_numbers<[1], [0], [0], [1], [0, 0, 1, 1], [], []>} : vector<16x16xf32>, vector<16x32xf32>, vector<16x32xf32> -> vector<16x32xf32>
    %851 = arith.truncf %850 : vector<16x32xf32> to vector<16x32xbf16>
    %cst_247 = arith.constant dense<0.000000e+00> : vector<16x32xf32>
    %852 = tpu.matmul %851, %453, %cst_247 {dimension_numbers = #tpu.dot_dimension_numbers<[1], [0], [0], [1], [0, 0, 1, 1], [], []>} : vector<16x32xbf16>, vector<32x32xbf16>, vector<16x32xf32> -> vector<16x32xf32>
    %853 = vector.broadcast %454 : vector<1x32xf32> to vector<16x32xf32>
    %854 = arith.addf %852, %853 : vector<16x32xf32>
    %855 = arith.addf %434, %854 : vector<16x32xf32>
    %856 = vector.extract_strided_slice %855 {offsets = [0, 0], sizes = [1, 32], strides = [1, 1]} : vector<16x32xf32> to vector<1x32xf32>
    %857 = vector.shape_cast %856 : vector<1x32xf32> to vector<1x32xf32>
    %858 = vector.broadcast %857 : vector<1x32xf32> to vector<2x32xf32>
    %859 = vector.extract_strided_slice %855 {offsets = [15, 0], sizes = [1, 32], strides = [1, 1]} : vector<16x32xf32> to vector<1x32xf32>
    %860 = vector.shape_cast %859 : vector<1x32xf32> to vector<1x32xf32>
    %861 = vector.broadcast %860 : vector<1x32xf32> to vector<2x32xf32>
    %862 = tpu.concatenate %858, %855, %861 in 0 : vector<2x32xf32>, vector<16x32xf32>, vector<2x32xf32> -> vector<20x32xf32>
    %863 = vector.extract_strided_slice %862 {offsets = [0, 0], sizes = [16, 32], strides = [1, 1]} : vector<20x32xf32> to vector<16x32xf32>
    %864 = vector.extract_strided_slice %862 {offsets = [1, 0], sizes = [16, 32], strides = [1, 1]} : vector<20x32xf32> to vector<16x32xf32>
    %865 = arith.addf %863, %864 : vector<16x32xf32>
    %866 = vector.extract_strided_slice %862 {offsets = [2, 0], sizes = [16, 32], strides = [1, 1]} : vector<20x32xf32> to vector<16x32xf32>
    %867 = arith.addf %865, %866 : vector<16x32xf32>
    %868 = vector.extract_strided_slice %862 {offsets = [3, 0], sizes = [16, 32], strides = [1, 1]} : vector<20x32xf32> to vector<16x32xf32>
    %869 = arith.addf %867, %868 : vector<16x32xf32>
    %870 = vector.extract_strided_slice %862 {offsets = [4, 0], sizes = [16, 32], strides = [1, 1]} : vector<20x32xf32> to vector<16x32xf32>
    %871 = arith.addf %869, %870 : vector<16x32xf32>
    %cst_248 = arith.constant 2.000000e-01 : f32
    %872 = vector.broadcast %cst_248 : f32 to vector<16x32xf32>
    %873 = arith.mulf %871, %872 : vector<16x32xf32>
    %874 = arith.subf %855, %873 : vector<16x32xf32>
    %c0_249 = arith.constant 0 : index
    %c0_250 = arith.constant 0 : index
    %875 = vector.load %arg13[%c0_249, %c0_250] : memref<32x32xbf16, #tpu.memory_space<vmem>>, vector<32x32xbf16>
    %876 = arith.truncf %874 : vector<16x32xf32> to vector<16x32xbf16>
    %cst_251 = arith.constant dense<0.000000e+00> : vector<16x32xf32>
    %877 = tpu.matmul %876, %875, %cst_251 {dimension_numbers = #tpu.dot_dimension_numbers<[1], [0], [0], [1], [0, 0, 1, 1], [], []>} : vector<16x32xbf16>, vector<32x32xbf16>, vector<16x32xf32> -> vector<16x32xf32>
    %cst_252 = arith.constant 5.000000e-01 : f32
    %878 = vector.broadcast %cst_252 : f32 to vector<16x32xf32>
    %879 = arith.mulf %878, %877 : vector<16x32xf32>
    %cst_253 = arith.constant 0.707106769 : f32
    %880 = vector.broadcast %cst_253 : f32 to vector<16x32xf32>
    %881 = arith.mulf %877, %880 : vector<16x32xf32>
    %cst_254 = arith.constant 0.000000e+00 : f32
    %882 = vector.broadcast %cst_254 : f32 to vector<16x32xf32>
    %883 = arith.cmpf oge, %881, %882 : vector<16x32xf32>
    %cst_255 = arith.constant 1.000000e+00 : f32
    %cst_256 = arith.constant -1.000000e+00 : f32
    %884 = vector.broadcast %cst_255 : f32 to vector<16x32xf32>
    %885 = vector.broadcast %cst_256 : f32 to vector<16x32xf32>
    %886 = arith.select %883, %884, %885 : vector<16x32xi1>, vector<16x32xf32>
    %887 = math.absf %881 : vector<16x32xf32>
    %cst_257 = arith.constant 0.327591091 : f32
    %888 = vector.broadcast %cst_257 : f32 to vector<16x32xf32>
    %889 = arith.mulf %888, %887 : vector<16x32xf32>
    %cst_258 = arith.constant 1.000000e+00 : f32
    %890 = vector.broadcast %cst_258 : f32 to vector<16x32xf32>
    %891 = arith.addf %890, %889 : vector<16x32xf32>
    %cst_259 = arith.constant 1.000000e+00 : f32
    %892 = vector.broadcast %cst_259 : f32 to vector<16x32xf32>
    %893 = arith.divf %892, %891 : vector<16x32xf32>
    %cst_260 = arith.constant 1.06140542 : f32
    %894 = vector.broadcast %cst_260 : f32 to vector<16x32xf32>
    %895 = arith.mulf %894, %893 : vector<16x32xf32>
    %cst_261 = arith.constant -1.45315206 : f32
    %896 = vector.broadcast %cst_261 : f32 to vector<16x32xf32>
    %897 = arith.addf %895, %896 : vector<16x32xf32>
    %898 = arith.mulf %897, %893 : vector<16x32xf32>
    %cst_262 = arith.constant 1.42141378 : f32
    %899 = vector.broadcast %cst_262 : f32 to vector<16x32xf32>
    %900 = arith.addf %898, %899 : vector<16x32xf32>
    %901 = arith.mulf %900, %893 : vector<16x32xf32>
    %cst_263 = arith.constant -0.284496725 : f32
    %902 = vector.broadcast %cst_263 : f32 to vector<16x32xf32>
    %903 = arith.addf %901, %902 : vector<16x32xf32>
    %904 = arith.mulf %903, %893 : vector<16x32xf32>
    %cst_264 = arith.constant 0.254829586 : f32
    %905 = vector.broadcast %cst_264 : f32 to vector<16x32xf32>
    %906 = arith.addf %904, %905 : vector<16x32xf32>
    %907 = arith.mulf %906, %893 : vector<16x32xf32>
    %cst_265 = arith.constant 0.000000e+00 : f32
    %908 = vector.broadcast %cst_265 : f32 to vector<16x32xf32>
    %909 = arith.subf %908, %887 : vector<16x32xf32>
    %910 = arith.mulf %909, %887 : vector<16x32xf32>
    %911 = math.exp %910 : vector<16x32xf32>
    %912 = arith.mulf %907, %911 : vector<16x32xf32>
    %cst_266 = arith.constant 1.000000e+00 : f32
    %913 = vector.broadcast %cst_266 : f32 to vector<16x32xf32>
    %914 = arith.subf %913, %912 : vector<16x32xf32>
    %915 = arith.mulf %886, %914 : vector<16x32xf32>
    %cst_267 = arith.constant 1.000000e+00 : f32
    %916 = vector.broadcast %cst_267 : f32 to vector<16x32xf32>
    %917 = arith.addf %916, %915 : vector<16x32xf32>
    %918 = arith.mulf %879, %917 : vector<16x32xf32>
    %c0_268 = arith.constant 0 : index
    %c0_269 = arith.constant 0 : index
    %919 = vector.load %arg14[%c0_268, %c0_269] : memref<32x32xbf16, #tpu.memory_space<vmem>>, vector<32x32xbf16>
    %920 = arith.truncf %918 : vector<16x32xf32> to vector<16x32xbf16>
    %cst_270 = arith.constant dense<0.000000e+00> : vector<16x32xf32>
    %921 = tpu.matmul %920, %919, %cst_270 {dimension_numbers = #tpu.dot_dimension_numbers<[1], [0], [0], [1], [0, 0, 1, 1], [], []>} : vector<16x32xbf16>, vector<32x32xbf16>, vector<16x32xf32> -> vector<16x32xf32>
    %922 = arith.addf %874, %921 : vector<16x32xf32>
    %923 = vector.extract_strided_slice %922 {offsets = [0, 0], sizes = [1, 32], strides = [1, 1]} : vector<16x32xf32> to vector<1x32xf32>
    %924 = vector.shape_cast %923 : vector<1x32xf32> to vector<1x32xf32>
    %925 = vector.broadcast %924 : vector<1x32xf32> to vector<2x32xf32>
    %926 = vector.extract_strided_slice %922 {offsets = [15, 0], sizes = [1, 32], strides = [1, 1]} : vector<16x32xf32> to vector<1x32xf32>
    %927 = vector.shape_cast %926 : vector<1x32xf32> to vector<1x32xf32>
    %928 = vector.broadcast %927 : vector<1x32xf32> to vector<2x32xf32>
    %929 = tpu.concatenate %925, %922, %928 in 0 : vector<2x32xf32>, vector<16x32xf32>, vector<2x32xf32> -> vector<20x32xf32>
    %930 = vector.extract_strided_slice %929 {offsets = [0, 0], sizes = [16, 32], strides = [1, 1]} : vector<20x32xf32> to vector<16x32xf32>
    %931 = vector.extract_strided_slice %929 {offsets = [1, 0], sizes = [16, 32], strides = [1, 1]} : vector<20x32xf32> to vector<16x32xf32>
    %932 = arith.addf %930, %931 : vector<16x32xf32>
    %933 = vector.extract_strided_slice %929 {offsets = [2, 0], sizes = [16, 32], strides = [1, 1]} : vector<20x32xf32> to vector<16x32xf32>
    %934 = arith.addf %932, %933 : vector<16x32xf32>
    %935 = vector.extract_strided_slice %929 {offsets = [3, 0], sizes = [16, 32], strides = [1, 1]} : vector<20x32xf32> to vector<16x32xf32>
    %936 = arith.addf %934, %935 : vector<16x32xf32>
    %937 = vector.extract_strided_slice %929 {offsets = [4, 0], sizes = [16, 32], strides = [1, 1]} : vector<20x32xf32> to vector<16x32xf32>
    %938 = arith.addf %936, %937 : vector<16x32xf32>
    %cst_271 = arith.constant 2.000000e-01 : f32
    %939 = vector.broadcast %cst_271 : f32 to vector<16x32xf32>
    %940 = arith.mulf %938, %939 : vector<16x32xf32>
    %941 = arith.subf %922, %940 : vector<16x32xf32>
    %942 = arith.addf %433, %873 : vector<16x32xf32>
    %943 = arith.addf %942, %940 : vector<16x32xf32>
    %c0_272 = arith.constant 0 : index
    %c0_273 = arith.constant 0 : index
    %944 = vector.load %arg15[%c0_272, %c0_273] : memref<96x4xbf16, #tpu.memory_space<vmem>>, vector<96x4xbf16>
    %945 = vector.extract_strided_slice %943 {offsets = [15, 0], sizes = [1, 32], strides = [1, 1]} : vector<16x32xf32> to vector<1x32xf32>
    %946 = vector.extract_strided_slice %943 {offsets = [0, 0], sizes = [15, 32], strides = [1, 1]} : vector<16x32xf32> to vector<15x32xf32>
    %947 = tpu.concatenate %945, %946 in 0 : vector<1x32xf32>, vector<15x32xf32> -> vector<16x32xf32>
    %948 = vector.extract_strided_slice %943 {offsets = [1, 0], sizes = [15, 32], strides = [1, 1]} : vector<16x32xf32> to vector<15x32xf32>
    %949 = vector.extract_strided_slice %943 {offsets = [0, 0], sizes = [1, 32], strides = [1, 1]} : vector<16x32xf32> to vector<1x32xf32>
    %950 = tpu.concatenate %948, %949 in 0 : vector<15x32xf32>, vector<1x32xf32> -> vector<16x32xf32>
    %951 = tpu.concatenate %947, %943, %950 in 1 : vector<16x32xf32>, vector<16x32xf32>, vector<16x32xf32> -> vector<16x96xf32>
    %952 = arith.truncf %951 : vector<16x96xf32> to vector<16x96xbf16>
    %cst_274 = arith.constant dense<0.000000e+00> : vector<16x4xf32>
    %953 = tpu.matmul %952, %944, %cst_274 {dimension_numbers = #tpu.dot_dimension_numbers<[1], [0], [0], [1], [0, 0, 1, 1], [], []>} : vector<16x96xbf16>, vector<96x4xbf16>, vector<16x4xf32> -> vector<16x4xf32>
    %c0_275 = arith.constant 0 : index
    %c0_276 = arith.constant 0 : index
    %954 = vector.load %arg19[%c0_275, %c0_276] : memref<1x32xf32, #tpu.memory_space<vmem>>, vector<1x32xf32>
    %c0_277 = arith.constant 0 : index
    %c0_278 = arith.constant 0 : index
    %955 = vector.load %arg20[%c0_277, %c0_278] : memref<1x32xf32, #tpu.memory_space<vmem>>, vector<1x32xf32>
    %cst_279 = arith.constant dense<0.000000e+00> : vector<16xf32>
    %956 = vector.multi_reduction <add>, %941, %cst_279 [1] : vector<16x32xf32> to vector<16xf32>
    %957 = vector.shape_cast %956 : vector<16xf32> to vector<16x1xf32>
    %cst_280 = arith.constant 3.200000e+01 : f32
    %958 = vector.broadcast %cst_280 : f32 to vector<16x1xf32>
    %959 = arith.divf %957, %958 : vector<16x1xf32>
    %960 = vector.broadcast %959 : vector<16x1xf32> to vector<16x32xf32>
    %961 = arith.subf %941, %960 : vector<16x32xf32>
    %962 = vector.broadcast %959 : vector<16x1xf32> to vector<16x32xf32>
    %963 = arith.subf %941, %962 : vector<16x32xf32>
    %964 = arith.mulf %961, %963 : vector<16x32xf32>
    %cst_281 = arith.constant dense<0.000000e+00> : vector<16xf32>
    %965 = vector.multi_reduction <add>, %964, %cst_281 [1] : vector<16x32xf32> to vector<16xf32>
    %966 = vector.shape_cast %965 : vector<16xf32> to vector<16x1xf32>
    %cst_282 = arith.constant 3.200000e+01 : f32
    %967 = vector.broadcast %cst_282 : f32 to vector<16x1xf32>
    %968 = arith.divf %966, %967 : vector<16x1xf32>
    %969 = vector.broadcast %959 : vector<16x1xf32> to vector<16x32xf32>
    %970 = arith.subf %941, %969 : vector<16x32xf32>
    %cst_283 = arith.constant 9.99999974E-6 : f32
    %971 = vector.broadcast %cst_283 : f32 to vector<16x1xf32>
    %972 = arith.addf %968, %971 : vector<16x1xf32>
    %973 = math.rsqrt %972 : vector<16x1xf32>
    %974 = vector.broadcast %973 : vector<16x1xf32> to vector<16x32xf32>
    %975 = arith.mulf %970, %974 : vector<16x32xf32>
    %976 = vector.broadcast %954 : vector<1x32xf32> to vector<16x32xf32>
    %977 = arith.mulf %975, %976 : vector<16x32xf32>
    %978 = vector.broadcast %955 : vector<1x32xf32> to vector<16x32xf32>
    %979 = arith.addf %977, %978 : vector<16x32xf32>
    %cst_284 = arith.constant dense<0.000000e+00> : vector<32xf32>
    %980 = vector.multi_reduction <add>, %979, %cst_284 [0] : vector<16x32xf32> to vector<32xf32>
    %981 = vector.shape_cast %980 : vector<32xf32> to vector<1x32xf32>
    %cst_285 = arith.constant 1.600000e+01 : f32
    %982 = vector.broadcast %cst_285 : f32 to vector<1x32xf32>
    %983 = arith.divf %981, %982 : vector<1x32xf32>
    %984 = vector.broadcast %983 : vector<1x32xf32> to vector<16x32xf32>
    %985 = arith.subf %979, %984 : vector<16x32xf32>
    %c0_286 = arith.constant 0 : index
    %c0_287 = arith.constant 0 : index
    %986 = vector.load %arg21[%c0_286, %c0_287] : memref<32x4xbf16, #tpu.memory_space<vmem>>, vector<32x4xbf16>
    %987 = arith.truncf %985 : vector<16x32xf32> to vector<16x32xbf16>
    %cst_288 = arith.constant dense<0.000000e+00> : vector<16x4xf32>
    %988 = tpu.matmul %987, %986, %cst_288 {dimension_numbers = #tpu.dot_dimension_numbers<[1], [0], [0], [1], [0, 0, 1, 1], [], []>} : vector<16x32xbf16>, vector<32x4xbf16>, vector<16x4xf32> -> vector<16x4xf32>
    %c0_289 = arith.constant 0 : index
    %c0_290 = arith.constant 0 : index
    %989 = vector.load %arg22[%c0_289, %c0_290] : memref<1x4xf32, #tpu.memory_space<vmem>>, vector<1x4xf32>
    %990 = vector.broadcast %989 : vector<1x4xf32> to vector<16x4xf32>
    %991 = arith.addf %988, %990 : vector<16x4xf32>
    %c0_291 = arith.constant 0 : index
    %c0_292 = arith.constant 0 : index
    %c0_293 = arith.constant 0 : index
    %992 = vector.load %arg18[%c0_291, %c0_292, %c0_293] : memref<1x16x4xf32, #tpu.memory_space<vmem>>, vector<1x16x4xf32>
    %993 = vector.shape_cast %992 : vector<1x16x4xf32> to vector<16x4xf32>
    %994 = arith.addf %993, %953 : vector<16x4xf32>
    %995 = arith.addf %994, %991 : vector<16x4xf32>
    %c0_294 = arith.constant 0 : index
    %c0_295 = arith.constant 0 : index
    %c0_296 = arith.constant 0 : index
    %996 = vector.load %arg23[%c0_294, %c0_295, %c0_296] : memref<1x16x4xf32, #tpu.memory_space<vmem>>, vector<1x16x4xf32>
    %997 = vector.shape_cast %996 : vector<1x16x4xf32> to vector<16x4xf32>
    %998 = vector.shape_cast %995 : vector<16x4xf32> to vector<1x16x4xf32>
    tpu.vector_store %arg23[%c0_294, %c0_295, %c0_296], %998 {strides = array<i32>} : memref<1x16x4xf32, #tpu.memory_space<vmem>>, vector<1x16x4xf32>,
    return
  }
  func.func @transform_0(%arg0: i32) -> (i32, i32, i32) {
    %c0_i32 = arith.constant 0 : i32
    %c0_i32_0 = arith.constant 0 : i32
    %c0_i32_1 = arith.constant 0 : i32
    return %arg0, %c0_i32, %c0_i32_0 : i32, i32, i32
  }
  func.func @transform_1(%arg0: i32) -> (i32, i32, i32) {
    %c0_i32 = arith.constant 0 : i32
    %c0_i32_0 = arith.constant 0 : i32
    %c0_i32_1 = arith.constant 0 : i32
    return %arg0, %c0_i32, %c0_i32_0 : i32, i32, i32
  }
  func.func @transform_2(%arg0: i32) -> (i32, i32) {
    %c0_i32 = arith.constant 0 : i32
    %c0_i32_0 = arith.constant 0 : i32
    %c0_i32_1 = arith.constant 0 : i32
    return %c0_i32, %c0_i32_0 : i32, i32
  }
  func.func @transform_3(%arg0: i32) -> (i32, i32) {
    %c0_i32 = arith.constant 0 : i32
    %c0_i32_0 = arith.constant 0 : i32
    %c0_i32_1 = arith.constant 0 : i32
    return %c0_i32, %c0_i32_0 : i32, i32
  }
  func.func @transform_4(%arg0: i32) -> (i32, i32) {
    %c0_i32 = arith.constant 0 : i32
    %c0_i32_0 = arith.constant 0 : i32
    %c0_i32_1 = arith.constant 0 : i32
    return %c0_i32, %c0_i32_0 : i32, i32
  }
  func.func @transform_5(%arg0: i32) -> (i32, i32) {
    %c0_i32 = arith.constant 0 : i32
    %c0_i32_0 = arith.constant 0 : i32
    %c0_i32_1 = arith.constant 0 : i32
    return %c0_i32, %c0_i32_0 : i32, i32
  }
  func.func @transform_6(%arg0: i32) -> (i32, i32) {
    %c0_i32 = arith.constant 0 : i32
    %c0_i32_0 = arith.constant 0 : i32
    %c0_i32_1 = arith.constant 0 : i32
    return %c0_i32, %c0_i32_0 : i32, i32
  }
  func.func @transform_7(%arg0: i32) -> (i32, i32) {
    %c0_i32 = arith.constant 0 : i32
    %c0_i32_0 = arith.constant 0 : i32
    %c0_i32_1 = arith.constant 0 : i32
    return %c0_i32, %c0_i32_0 : i32, i32
  }
  func.func @transform_8(%arg0: i32) -> (i32, i32) {
    %c0_i32 = arith.constant 0 : i32
    %c0_i32_0 = arith.constant 0 : i32
    %c0_i32_1 = arith.constant 0 : i32
    return %c0_i32, %c0_i32_0 : i32, i32
  }
  func.func @transform_9(%arg0: i32) -> (i32, i32) {
    %c0_i32 = arith.constant 0 : i32
    %c0_i32_0 = arith.constant 0 : i32
    %c0_i32_1 = arith.constant 0 : i32
    return %c0_i32, %c0_i32_0 : i32, i32
  }
  func.func @transform_10(%arg0: i32) -> (i32, i32) {
    %c0_i32 = arith.constant 0 : i32
    %c0_i32_0 = arith.constant 0 : i32
    %c0_i32_1 = arith.constant 0 : i32
    return %c0_i32, %c0_i32_0 : i32, i32
  }
  func.func @transform_11(%arg0: i32) -> (i32, i32) {
    %c0_i32 = arith.constant 0 : i32
    %c0_i32_0 = arith.constant 0 : i32
    %c0_i32_1 = arith.constant 0 : i32
    return %c0_i32, %c0_i32_0 : i32, i32
  }
  func.func @transform_12(%arg0: i32) -> (i32, i32) {
    %c0_i32 = arith.constant 0 : i32
    %c0_i32_0 = arith.constant 0 : i32
    %c0_i32_1 = arith.constant 0 : i32
    return %c0_i32, %c0_i32_0 : i32, i32
  }
  func.func @transform_13(%arg0: i32) -> (i32, i32) {
    %c0_i32 = arith.constant 0 : i32
    %c0_i32_0 = arith.constant 0 : i32
    %c0_i32_1 = arith.constant 0 : i32
    return %c0_i32, %c0_i32_0 : i32, i32
  }
  func.func @transform_14(%arg0: i32) -> (i32, i32) {
    %c0_i32 = arith.constant 0 : i32
    %c0_i32_0 = arith.constant 0 : i32
    %c0_i32_1 = arith.constant 0 : i32
    return %c0_i32, %c0_i32_0 : i32, i32
  }
  func.func @transform_15(%arg0: i32) -> (i32, i32) {
    %c0_i32 = arith.constant 0 : i32
    %c0_i32_0 = arith.constant 0 : i32
    %c0_i32_1 = arith.constant 0 : i32
    return %c0_i32, %c0_i32_0 : i32, i32
  }
  func.func @transform_16(%arg0: i32) -> (i32, i32) {
    %c0_i32 = arith.constant 0 : i32
    %c0_i32_0 = arith.constant 0 : i32
    %c0_i32_1 = arith.constant 0 : i32
    return %c0_i32, %c0_i32_0 : i32, i32
  }
  func.func @transform_17(%arg0: i32) -> (i32, i32, i32) {
    %c0_i32 = arith.constant 0 : i32
    %c0_i32_0 = arith.constant 0 : i32
    %c0_i32_1 = arith.constant 0 : i32
    return %arg0, %c0_i32, %c0_i32_0 : i32, i32, i32
  }
  func.func @transform_18(%arg0: i32) -> (i32, i32) {
    %c0_i32 = arith.constant 0 : i32
    %c0_i32_0 = arith.constant 0 : i32
    %c0_i32_1 = arith.constant 0 : i32
    return %c0_i32, %c0_i32_0 : i32, i32
  }
  func.func @transform_19(%arg0: i32) -> (i32, i32) {
    %c0_i32 = arith.constant 0 : i32
    %c0_i32_0 = arith.constant 0 : i32
    %c0_i32_1 = arith.constant 0 : i32
    return %c0_i32, %c0_i32_0 : i32, i32
  }
  func.func @transform_20(%arg0: i32) -> (i32, i32) {
    %c0_i32 = arith.constant 0 : i32
    %c0_i32_0 = arith.constant 0 : i32
    %c0_i32_1 = arith.constant 0 : i32
    return %c0_i32, %c0_i32_0 : i32, i32
  }
  func.func @transform_21(%arg0: i32) -> (i32, i32) {
    %c0_i32 = arith.constant 0 : i32
    %c0_i32_0 = arith.constant 0 : i32
    %c0_i32_1 = arith.constant 0 : i32
    return %c0_i32, %c0_i32_0 : i32, i32
  }
  func.func @transform_22(%arg0: i32) -> (i32, i32, i32) {
    %c0_i32 = arith.constant 0 : i32
    %c0_i32_0 = arith.constant 0 : i32
    %c0_i32_1 = arith.constant 0 : i32
    return %arg0, %c0_i32, %c0_i32_0 : i32, i32, i32
  }
}

</mosaic_0001>

<bundles_post_ra>
// kernel: _lambda_.6
= control target key start
LH: loop header
LB: loop body
LE: loop exit
PB: predicated region body
PF: predicated region fallthrough
CT: control target
= control target key end

     0   :  { %s440_s12 = smov 0   ;;  %s468_s0 = inlined_call_operand.vmem [shape: f32[2,16,4], index: 0, kind: input, shape index: {}]   ;;  %s469_s1 = inlined_call_operand.vmem [shape: f32[2,16,32], index: 1, kind: input, shape index: {}]   ;;  %s470_s2 = inlined_call_operand.vmem [shape: bf16[12,32], index: 2, kind: input, shape index: {}]   ;;  %s471_s3 = inlined_call_operand.vmem [shape: f32[2,16,32], index: 3, kind: output, shape index: {}]  }
   0x1 LB: > { %s359_s13 = sadd.s32 4294967295, %s414_s12   ;;  %p363_p0 = scmp.ge.s32.totalorder %s414_s12, 1  ;;  %s414_s12 = sphi %s440_s12, %s13_s12  }
   0x2   : > { %p147_p1 = scmp.lt.s32.totalorder %s414_s12, 3 }
   0x4   : > { %p148_p2 = pnand %p363_p0, %p147_p1 }
   0x5   : > { %p176_p3 = scmp.lt.s32.totalorder (!%p148_p2), %s359_s13, 1  ;;  %v416_v0 = vmov (!%p148_p2), 0.0   ;;  %v407_v1 = vld [vmem:[%s470_s2] sm:$0x3f] (!%p148_p2)   ;;  %vm244_vm0 = vcmask (!%p148_p2), 1045504   ;;  %vm417_vm1 = vmmov (!%p148_p2), 0  }
   0x6   : > { %151 = sbr.rel (%p148_p2) target bundleno = 360 (0x168), region = 32  ;;  %379 = vmatprep.subr.bf16.mxu0 (!%p148_p2), %v416_v0  ;;  %v246_v2 = vsel (!%p148_p2), %vm244_vm0, %v407_v1, 0  ;;  %381 = vmatprep.mubr.msk.bf16.mxu0 (!%p148_p2), %vm417_vm1, %v416_v0  ;;  %vm206_vm2 = vcmask (!%p148_p2), 1046528   ;;  %vm200_vm3 = vcmask (!%p148_p2), 1040384   ;;  %s418_s20 = smov (!%p148_p2), 4   ;;  %vm226_vm4 = vcmask (!%p148_p2), 31744  }
   0x7   : > { %380 = vmatpush3.bf16.msra.mxu0 (!%p148_p2), %v246_v2  ;;  %s419_s21 = smov (!%p148_p2), 8   ;;  %vm229_vm5 = vcmask (!%p148_p2), 64512   ;;  %vm240_vm6 = vcmask (!%p148_p2), 97280   ;;  %vm289_vm7 = vcmask (!%p148_p2), 261120  }
   0xd   : > { %s473_s13 = smov (!%p176_p3, %s359_s13), 1 }
   0xe   : > { %s451_s16 = sshll.u32 %s473_s13, 4 }
   0xf   : > { %s180_s19 = scalar_lea.vmem %s468_s0, %s451_s16  ;;  %s185_s24 = scalar_lea.vmem %s469_s1, %s451_s16 }
  0x10   : > { %v192_v3 = vld [vmem:[%s180_s19] sm:$0xff]  ;;  %v193_v4 = vld [vmem:[%s180_s19 + $0x8] sm:$0xff]  ;;  %s190_s27 = scalar_lea.vmem %s471_s3, %s451_s16 }
  0x11   : > { %v197_v5 = vrot.slane %v193_v4, 7  ;;  %v208_v6 = vrot.slane %v193_v4, 1  ;;  %v397_v7 = vpack.i.bf16 %v193_v4, %v192_v3  ;;  %v201_v8 = vrot.slane %v192_v3, 7  ;;  %v233_v26 = vld [vmem:[%s185_s24] sm:$0xff]  ;;  %v234_v28 = vld [vmem:[%s185_s24 + $0x8] sm:$0xff] }
  0x12   : > { %v207_v9 = vrot.slane %v192_v3, 1 }
  0x13   : > { %398 = vrot.lane.b32.xlu0 %v397_v7, %s418_s20  ;;  %v202_v10 = vsel %vm200_vm3, %v201_v8, %v197_v5  ;;  %v205_v11 = vsel %vm200_vm3, %v197_v5, %v201_v8 }
  0x14   : > { %v209_v12 = vsel %vm206_vm2, %v207_v9, %v208_v6  ;;  %v212_v13 = vsel %vm206_vm2, %v208_v6, %v207_v9 }
  0x15   : > { %v402_v14 = vpack.i.bf16 %v212_v13, %v209_v12 }
  0x17   : > { %403 = vrot.lane.b32.xlu0 %v402_v14, %s419_s21 }
  0x85   : > { %v399_v15 = vpop.permute.xlu0 %398 }
  0x86   : > { %v401_v16 = vunpack.i.h.bf16 %v399_v15  ;;  %v400_v17 = vunpack.i.l.bf16 %v399_v15 }
  0x88   : > { %v227_v21 = vsel %vm226_vm4, %v205_v11, %v400_v17  ;;  %v228_v22 = vsel %vm226_vm4, %v202_v10, %v401_v16 }
  0x89   : > { %v404_v18 = vpop.permute.xlu0 %403 }
  0x8a   : > { %v406_v19 = vunpack.i.h.bf16 %v404_v18  ;;  %v405_v20 = vunpack.i.l.bf16 %v404_v18 }
  0x8c   : > { %v230_v23 = vsel %vm229_vm5, %v227_v21, %v405_v20  ;;  %v231_v24 = vsel %vm229_vm5, %v228_v22, %v406_v19 }
  0x8d   : > { %v232_v25 = vpack.c.bf16 %v231_v24, %v230_v23 }
  0x8f   : > { %382 = vmatmul.mubr.msk.bf16.vlgmr.msra.gmra.mrb[0].mxu0 %vm240_vm6, %v232_v25 }
 0x162   : > { %v282_v27 = vpop.f32.mrb[0].mxu0 }
 0x163   : > { %v283_v29 = vadd.f32 %v282_v27, %v233_v26  ;;  %v383_v30 = vpop.f32.mrb[1].mxu0 }
 0x164   : > { %v285_v31 = vpop.f32.mrb[2].mxu0 }
 0x165   : > { %290 = vst.msk [vmem:[%s190_s27] sm:$0xff] %vm289_vm7, %v283_v29  ;;  %v286_v32 = vadd.f32 %v285_v31, %v234_v28  ;;  %v384_v33 = vpop.f32.mrb[3].mxu0 }
 0x167   : > { %291 = vst.msk [vmem:[%s190_s27 + $0x8] sm:$0xff] %vm289_vm7, %v286_v32 }
 0x168 PF: > { %s13_s12 = sadd.s32 1, %s414_s12  }
 0x169   : > { %p10_p4 = scmp.ge.s32.totalorder %s13_s12, 4  }
 0x16b   :  { %12 = sbr.rel (!%p10_p4) target bundleno = 1 (0x1), region = 65 }

// kernel: _lambda_.7
= control target key start
LH: loop header
LB: loop body
LE: loop exit
PB: predicated region body
PF: predicated region fallthrough
CT: control target
= control target key end

     0   :  { %s2081_s30 = smov 0   ;;  %s2568_s0 = inlined_call_operand.vmem [shape: f32[2,16,32], index: 0, kind: input, shape index: {}]   ;;  %s2569_s1 = inlined_call_operand.vmem [shape: bf16[32,96], index: 1, kind: input, shape index: {}]   ;;  %s2570_s2 = inlined_call_operand.vmem [shape: f32[1,96], index: 2, kind: input, shape index: {}]   ;;  %s2571_s3 = inlined_call_operand.vmem [shape: bf16[32,32], index: 3, kind: input, shape index: {}]   ;;  %s2572_s4 = inlined_call_operand.vmem [shape: f32[1,32], index: 4, kind: input, shape index: {}]   ;;  %s2573_s5 = inlined_call_operand.vmem [shape: bf16[32,32], index: 5, kind: input, shape index: {}]   ;;  %s2574_s6 = inlined_call_operand.vmem [shape: bf16[32,32], index: 6, kind: input, shape index: {}]   ;;  %s2575_s7 = inlined_call_operand.vmem [shape: f32[16,16], index: 7, kind: input, shape index: {}]   ;;  %s2576_s8 = inlined_call_operand.vmem [shape: f32[16,16], index: 8, kind: input, shape index: {}]   ;;  %s2577_s9 = inlined_call_operand.vmem [shape: f32[2,16,32], index: 9, kind: output, shape index: {}]  }
   0x1 LB: > { %s1791_s10 = sadd.s32 4294967295, %s2024_s30   ;;  %p1795_p0 = scmp.ge.s32.totalorder %s2024_s30, 1  ;;  %s2024_s30 = sphi %s2081_s30, %s19_s30  }
   0x2   : > { %p287_p1 = scmp.lt.s32.totalorder %s2024_s30, 3 }
   0x4   : > { %p288_p2 = pnand %p1795_p0, %p287_p1 }
   0x5   : > { %v1996_v0 = vld [vmem:[%s2569_s1] sm:$0xff] (!%p288_p2)   ;;  %v2026_v1 = vmov (!%p288_p2), 0.0   ;;  %v1997_v2 = vld [vmem:[%s2569_s1 + $0x8] sm:$0xff] (!%p288_p2)   ;;  %vm2027_vm0 = vmmov (!%p288_p2), 0   ;;  %p323_p3 = scmp.lt.s32.totalorder (!%p288_p2), %s1791_s10, 1  ;;  %vm2578_vm1 = vcmask (!%p288_p2), 261120  }
   0x6   : > { %291 = sbr.rel (%p288_p2) target bundleno = 7786 (0x1e6a), region = 56  ;;  %1886 = vmatprep.subr.bf16.mxu0 (!%p288_p2), %v2026_v1  ;;  %1890 = vmatprep.mubr.msk.bf16.mxu0 (!%p288_p2), %vm2027_vm0, %v2026_v1  ;;  %v2118_v6 = vld [vmem:[%s2575_s7] sm:$0xff] (!%p288_p2)  ;;  %vm414_vm2 = vcmask (!%p288_p2), 130048   ;;  %s2028_s23 = smov (!%p288_p2), 96   ;;  %v406_v16 = vld [vmem:[%s2575_s7 + $0x8] sm:$0xff] (!%p288_p2) }
   0x7   : > { %1887 = vmatpush3.bf16.msra.mxu0 (!%p288_p2), %v1996_v0  ;;  %1898 = vmatprep.mubr.msk.f32.mxu1 (!%p288_p2), %vm414_vm2, %v2118_v6  ;;  %v1800_v7 = vld [vmem:[%s2570_s2] ss:$0 sm:$0xff] (!%p288_p2)  ;;  %v408_v18 = vld [vmem:[%s2576_s8 + $0x8] sm:$0xff] (!%p288_p2)  ;;  %s2029_s11 = smov (!%p288_p2), 64  }
   0x8   : > { %1888 = vmatprep.subr.bf16.mxu0 (!%p288_p2), %v2026_v1  ;;  %v407_v17 = vld [vmem:[%s2576_s8] sm:$0xff] (!%p288_p2) }
   0xb   : > { %1889 = vmatpush3.bf16.msra.mxu0 (!%p288_p2), %v1997_v2 }
   0xc   : > { %1929 = vmatprep.subr.bf16.mxu0 (!%p288_p2), %v2026_v1 }
   0xd   : > { %s2585_s10 = smov (!%p323_p3, %s1791_s10), 1 }
   0xe   : > { %s1852_s15 = sshll.u32 %s2585_s10, 4 }
   0xf   : > { %s2107_s18 = scalar_lea.vmem %s2568_s0, %s1852_s15  ;;  %s332_s29 = scalar_lea.vmem %s2577_s9, %s1852_s15 }
  0x10   : > { %v334_v3 = vld [vmem:[%s2107_s18] sm:$0xff]  ;;  %v335_v4 = vld [vmem:[%s2107_s18 + $0x8] sm:$0xff] }
  0x11   : > { %v340_v5 = vpack.c.bf16 %v335_v4, %v334_v3 }
  0x13   : > { %1891 = vmatmul.mubr.msk.bf16.vlgmr.msra.gmra.mrb[0].mxu0 %vm2578_vm1, %v340_v5 }
  0x14   : > { %1933 = vmatprep.mubr.msk.bf16.mxu0 %vm2027_vm0, %v2026_v1 }
  0xe6   : > { %v398_v8 = vpop.f32.mrb[0].mxu0 }
  0xe7   : > { %v1892_v9 = vpop.f32.mrb[1].mxu0  ;;  %v399_v11 = vadd.f32 %v1800_v7, %v398_v8 }
  0xe8   : > { %v401_v10 = vpop.f32.mrb[2].mxu0 }
  0xe9   : > { %v402_v12 = vadd.f32 %v1800_v7, %v401_v10  ;;  %v1893_v13 = vpop.f32.mrb[3].mxu0 }
  0xeb   : > { %v1953_v14 = vpack.c.bf16 %v402_v12, %v399_v11  ;;  %v2125_v15 = vpack.i.bf16 %v402_v12, %v399_v11 }
  0xed   : > { %1987 = vrot.lane.b32.xlu0 %v2125_v15, %s2028_s23  ;;  %1954 = vmatprep.subr.bf16.mxu1 %v1953_v14 }
  0xee   : > { %1956 = vmatpush3.bf16.msra.mxu1 %v1953_v14 }
  0xef   : > { %1958 = vmatprep.subr.bf16.mxu1 %v1953_v14 }
  0xf1   : > { %1899 = vmatmul.mubr.msk.f32.vlgmr.msra.gmra.mrb[0].mxu1 %vm414_vm2, %v406_v16 }
  0xf2   : > { %1960 = vmatpush3.bf16.msra.mxu1 %v1953_v14  ;;  %1905 = vmatprep.mubr.msk.f32.mxu1 %vm414_vm2, %v407_v17 }
  0xf5   : > { %1906 = vmatmul.mubr.msk.f32.vlgmr.msra.gmra.mrb[2].mxu1 %vm414_vm2, %v408_v18 }
  0xf6   : > { %1912 = vmatprep.mubr.msk.f32.mxu1 %vm414_vm2, %v2118_v6 }
 0x15f   : > { %v1988_v19 = vpop.permute.xlu0 %1987 }
 0x160   : > { %v1990_v20 = vunpack.i.h.bf16 %v1988_v19  ;;  %v1989_v21 = vunpack.i.l.bf16 %v1988_v19 }
 0x162   : > { %v1961_v22 = vpack.c.bf16 %v1990_v20, %v1989_v21 }
 0x164   : > { %1962 = vmatprep.subr.bf16.mxu1 %v1961_v22 }
 0x165   : > { %1964 = vmatpush3.bf16.msra.mxu1 %v1961_v22 }
 0x166   : > { %1966 = vmatprep.subr.bf16.mxu1 %v1961_v22 }
 0x168   : > { %1913 = vmatmul.mubr.msk.f32.vlgmr.msra.gmra.mrb[4].mxu1 %vm414_vm2, %v406_v16 }
 0x169   : > { %1968 = vmatpush3.bf16.msra.mxu1 %v1961_v22  ;;  %1919 = vmatprep.mubr.msk.f32.mxu1 %vm414_vm2, %v407_v17 }
 0x16c   : > { %1920 = vmatmul.mubr.msk.f32.vlgmr.msra.gmra.mrb[6].mxu1 %vm414_vm2, %v408_v18 }
 0x1c4   : > { %v1900_v23 = vpop.f32.mrb[0].mxu1 }
 0x1c5   : > { %v487_v24 = vpop.f32.mrb[1].mxu1 }
 0x1c8   : > { %v1907_v25 = vpop.f32.mrb[2].mxu1 }
 0x1c9   : > { %v568_v26 = vpop.f32.mrb[3].mxu1 }
 0x23b   : > { %v1914_v27 = vpop.f32.mrb[4].mxu1 }
 0x23c   : > { %v736_v28 = vmul.f32 %v1914_v27, %v1900_v23  ;;  %v750_v29 = vmul.f32 %v1914_v27, %v1907_v25  ;;  %v651_v30 = vpop.f32.mrb[5].mxu1 }
 0x23d   : > { %v735_v31 = vmul.f32 %v651_v30, %v487_v24  ;;  %v749_v32 = vmul.f32 %v651_v30, %v568_v26 }
 0x23f   : > { %v1921_v33 = vpop.f32.mrb[6].mxu1 }
 0x240   : > { %v738_v34 = vmul.f32 %v1921_v33, %v1907_v25  ;;  %v748_v35 = vmul.f32 %v1921_v33, %v1900_v23  ;;  %v726_v36 = vpop.f32.mrb[7].mxu1 }
 0x241   : > { %v737_v37 = vmul.f32 %v726_v36, %v568_v26  ;;  %v747_v38 = vmul.f32 %v726_v36, %v487_v24 }
 0x242   : > { %v740_v39 = vadd.f32 %v738_v34, %v736_v28  ;;  %v752_v40 = vsub.f32 %v748_v35, %v750_v29 }
 0x243   : > { %v739_v41 = vadd.f32 %v737_v37, %v735_v31  ;;  %v751_v42 = vsub.f32 %v747_v38, %v749_v32 }
 0x244   : > { %v744_v43 = vsel %vm2578_vm1, %v740_v39, 0.0  ;;  %v756_v46 = vsel %vm2578_vm1, %v752_v40, 0.0 }
 0x245   : > { %745 = vadd.xlane.f32.xlu1 %v744_v43  ;;  %v741_v44 = vsel %vm2578_vm1, %v739_v41, 0.0  ;;  %v753_v45 = vsel %vm2578_vm1, %v751_v42, 0.0 }
 0x246   : > { %742 = vadd.xlane.f32.xlu0 %v741_v44 }
 0x249   : > { %754 = vadd.xlane.f32.xlu1 %v753_v45 }
 0x24d   : > { %757 = vadd.xlane.f32.xlu1 %v756_v46 }
 0x2d2   : > { %v746_v47 = vpop.xlane.xlu1 %745 }
 0x2d3   : > { %v743_v48 = vpop.xlane.xlu0 %742  ;;  %v760_v53 = vmul.f32 %v746_v47, %v406_v16 }
 0x2d4   : > { %v759_v51 = vmul.f32 %v743_v48, %v2118_v6  ;;  %v776_v6 = vlaneseq }
 0x2d6   : > { %v755_v49 = vpop.xlane.xlu1 %754  ;;  %v2157_v7 = vand.u32 127, %v776_v6 }
 0x2d7   : > { %v761_v50 = vmul.f32 %v755_v49, %v407_v17 }
 0x2d9   : > { %v763_v54 = vsub.f32 %v759_v51, %v761_v50 }
 0x2da   : > { %v758_v52 = vpop.xlane.xlu1 %757 }
 0x2db   : > { %v762_v55 = vmul.f32 %v758_v52, %v408_v18  ;;  %v765_v57 = vsel %vm414_vm2, %v763_v54, 0.0 }
 0x2dd   : > { %v764_v56 = vsub.f32 %v760_v53, %v762_v55 }
 0x2df   : > { %v766_v58 = vsel %vm414_vm2, %v764_v56, 0.0 }
 0x2e0   : > { %v767_v59 = vadd.f32 %v766_v58, %v765_v57 }
 0x2e2   : > { %v768_v60 = vrot.slane %v767_v59, 4 }
 0x2e4   : > { %v769_v61 = vadd.f32 %v768_v60, %v767_v59 }
 0x2e6   : > { %v770_v62 = vrot.slane %v769_v61, 2 }
 0x2e8   : > { %v771_v63 = vadd.f32 %v770_v62, %v769_v61 }
 0x2ea   : > { %v772_v0 = vrot.slane %v771_v63, 1 }
 0x2ec   : > { %v773_v2 = vadd.f32 %v772_v0, %v771_v63 }
 0x2ee   : > { %v774_v3 = vmul.f32 0.0625, %v773_v2 }
 0x2f0   : > { %v2152_v4 = vmul.f32 0.03125, %v774_v3 }
 0x2f2   : > { %v789_v5 = vsel %vm414_vm2, %v2152_v4, -inf }
 0x2f3   : > { %790 = vmax.xlane.f32.xlu1 %v789_v5 }
 0x380   : > { %v2159_v8 = vpop.xlane.xlu1 %790 }
 0x381   : > { %vm792_vm3 = vcmp.eq.f32.partialorder %v2152_v4, %v2159_v8 }
 0x382   : > { %v793_v9 = vsel %vm792_vm3, %v2157_v7, 16 }
 0x383   : > { %v794_v10 = vsel %vm414_vm2, %v793_v9, 2147483647 }
 0x384   : > { %v796_v11 = vshra.s32 %v794_v10, 16  ;;  %v795_v13 = vand.u32 65535, %v794_v10 }
 0x386   : > { %v798_v12 = vcvt.s32.f32 %v796_v11  ;;  %v797_v16 = vcvt.s32.f32 %v795_v13 }
 0x388   : > { %799 = vmin.xlane.f32.xlu1 %v798_v12 }
 0x415   : > { %v800_v14 = vpop.xlane.xlu1 %799 }
 0x416   : > { %vm801_vm4 = vcmp.eq.f32.partialorder %v798_v12, %v800_v14  ;;  %v806_v18 = vcvt.f32.s32 %v800_v14 }
 0x417   : > { %v802_v17 = vsel %vm801_vm4, %v797_v16, inf }
 0x418   : > { %803 = vmin.xlane.f32.xlu1 %v802_v17  ;;  %v807_v20 = vshll.u32 %v806_v18, 16 }
 0x4a5   : > { %v804_v19 = vpop.xlane.xlu1 %803 }
 0x4a6   : > { %v805_v21 = vcvt.f32.s32 %v804_v19 }
 0x4a8   : > { %v2165_v22 = vadd.s32 %v807_v20, %v805_v21 }
 0x4aa   : > { %vm809_vm5 = vcmp.eq.s32.totalorder %v2157_v7, %v2165_v22 }
 0x4ab   : > { %v811_v23 = vsel %vm809_vm5, -inf, %v2152_v4 }
 0x4ac   : > { %v812_v24 = vsel %vm414_vm2, %v811_v23, -inf }
 0x4ad   : > { %813 = vmax.xlane.f32.xlu1 %v812_v24 }
 0x53a   : > { %v814_v25 = vpop.xlane.xlu1 %813 }
 0x53b   : > { %vm815_vm6 = vcmp.eq.f32.partialorder %v811_v23, %v814_v25 }
 0x53c   : > { %v816_v26 = vsel %vm815_vm6, %v2157_v7, 16 }
 0x53d   : > { %v817_v27 = vsel %vm414_vm2, %v816_v26, 2147483647 }
 0x53e   : > { %v819_v28 = vshra.s32 %v817_v27, 16  ;;  %v818_v30 = vand.u32 65535, %v817_v27 }
 0x540   : > { %v821_v29 = vcvt.s32.f32 %v819_v28  ;;  %v820_v32 = vcvt.s32.f32 %v818_v30 }
 0x542   : > { %822 = vmin.xlane.f32.xlu1 %v821_v29 }
 0x5cf   : > { %v823_v31 = vpop.xlane.xlu1 %822 }
 0x5d0   : > { %vm824_vm7 = vcmp.eq.f32.partialorder %v821_v29, %v823_v31  ;;  %v829_v34 = vcvt.f32.s32 %v823_v31 }
 0x5d1   : > { %v825_v33 = vsel %vm824_vm7, %v820_v32, inf }
 0x5d2   : > { %826 = vmin.xlane.f32.xlu1 %v825_v33  ;;  %v830_v36 = vshll.u32 %v829_v34, 16 }
 0x65f   : > { %v827_v35 = vpop.xlane.xlu1 %826 }
 0x660   : > { %v828_v37 = vcvt.f32.s32 %v827_v35 }
 0x662   : > { %v2176_v38 = vadd.s32 %v830_v36, %v828_v37 }
 0x664   : > { %vm832_vm8 = vcmp.eq.s32.totalorder %v2157_v7, %v2176_v38 }
 0x665   : > { %v834_v39 = vsel %vm832_vm8, -inf, %v811_v23 }
 0x666   : > { %v835_v40 = vsel %vm414_vm2, %v834_v39, -inf }
 0x667   : > { %836 = vmax.xlane.f32.xlu0 %v835_v40 }
 0x6f4   : > { %v837_v41 = vpop.xlane.xlu0 %836 }
 0x6f5   : > { %vm838_vm9 = vcmp.eq.f32.partialorder %v834_v39, %v837_v41 }
 0x6f6   : > { %v839_v42 = vsel %vm838_vm9, %v2157_v7, 16 }
 0x6f7   : > { %v840_v43 = vsel %vm414_vm2, %v839_v42, 2147483647 }
 0x6f8   : > { %v842_v44 = vshra.s32 %v840_v43, 16  ;;  %v841_v46 = vand.u32 65535, %v840_v43 }
 0x6fa   : > { %v844_v45 = vcvt.s32.f32 %v842_v44  ;;  %v843_v48 = vcvt.s32.f32 %v841_v46 }
 0x6fc   : > { %845 = vmin.xlane.f32.xlu1 %v844_v45 }
 0x789   : > { %v846_v47 = vpop.xlane.xlu1 %845 }
 0x78a   : > { %vm847_vm10 = vcmp.eq.f32.partialorder %v844_v45, %v846_v47  ;;  %v852_v50 = vcvt.f32.s32 %v846_v47 }
 0x78b   : > { %v848_v49 = vsel %vm847_vm10, %v843_v48, inf }
 0x78c   : > { %849 = vmin.xlane.f32.xlu0 %v848_v49  ;;  %v853_v52 = vshll.u32 %v852_v50, 16 }
 0x819   : > { %v850_v51 = vpop.xlane.xlu0 %849 }
 0x81a   : > { %v851_v53 = vcvt.f32.s32 %v850_v51 }
 0x81c   : > { %v2186_v54 = vadd.s32 %v853_v52, %v851_v53 }
 0x81e   : > { %vm855_vm11 = vcmp.eq.s32.totalorder %v2157_v7, %v2186_v54 }
 0x81f   : > { %v857_v55 = vsel %vm855_vm11, -inf, %v834_v39 }
 0x820   : > { %v858_v56 = vsel %vm414_vm2, %v857_v55, -inf }
 0x821   : > { %859 = vmax.xlane.f32.xlu1 %v858_v56 }
 0x8ae   : > { %v860_v57 = vpop.xlane.xlu1 %859 }
 0x8af   : > { %vm861_vm12 = vcmp.eq.f32.partialorder %v857_v55, %v860_v57 }
 0x8b0   : > { %v862_v58 = vsel %vm861_vm12, %v2157_v7, 16 }
 0x8b1   : > { %v863_v59 = vsel %vm414_vm2, %v862_v58, 2147483647 }
 0x8b2   : > { %v865_v60 = vshra.s32 %v863_v59, 16  ;;  %v864_v62 = vand.u32 65535, %v863_v59 }
 0x8b4   : > { %v867_v61 = vcvt.s32.f32 %v865_v60  ;;  %v866_v0 = vcvt.s32.f32 %v864_v62 }
 0x8b6   : > { %868 = vmin.xlane.f32.xlu0 %v867_v61 }
 0x943   : > { %v869_v63 = vpop.xlane.xlu0 %868 }
 0x944   : > { %vm870_vm13 = vcmp.eq.f32.partialorder %v867_v61, %v869_v63  ;;  %v875_v3 = vcvt.f32.s32 %v869_v63 }
 0x945   : > { %v871_v2 = vsel %vm870_vm13, %v866_v0, inf }
 0x946   : > { %872 = vmin.xlane.f32.xlu1 %v871_v2  ;;  %v876_v9 = vshll.u32 %v875_v3, 16 }
 0x9d3   : > { %v873_v5 = vpop.xlane.xlu1 %872 }
 0x9d4   : > { %v874_v10 = vcvt.f32.s32 %v873_v5 }
 0x9d6   : > { %v2196_v11 = vadd.s32 %v876_v9, %v874_v10 }
 0x9d8   : > { %vm878_vm14 = vcmp.eq.s32.totalorder %v2157_v7, %v2196_v11 }
 0x9d9   : > { %v880_v12 = vsel %vm878_vm14, -inf, %v857_v55 }
 0x9da   : > { %v881_v13 = vsel %vm414_vm2, %v880_v12, -inf }
 0x9db   : > { %882 = vmax.xlane.f32.xlu0 %v881_v13 }
 0xa68   : > { %v883_v14 = vpop.xlane.xlu0 %882 }
 0xa69   : > { %vm884_vm15 = vcmp.eq.f32.partialorder %v880_v12, %v883_v14 }
 0xa6a   : > { %v885_v16 = vsel %vm884_vm15, %v2157_v7, 16 }
 0xa6b   : > { %v886_v17 = vsel %vm414_vm2, %v885_v16, 2147483647 }
 0xa6c   : > { %v888_v18 = vshra.s32 %v886_v17, 16  ;;  %v887_v20 = vand.u32 65535, %v886_v17 }
 0xa6e   : > { %v890_v19 = vcvt.s32.f32 %v888_v18  ;;  %v889_v23 = vcvt.s32.f32 %v887_v20 }
 0xa70   : > { %891 = vmin.xlane.f32.xlu1 %v890_v19 }
 0xafd   : > { %v892_v21 = vpop.xlane.xlu1 %891 }
 0xafe   : > { %vm893_vm3 = vcmp.eq.f32.partialorder %v890_v19, %v892_v21  ;;  %v898_v25 = vcvt.f32.s32 %v892_v21 }
 0xaff   : > { %v894_v24 = vsel %vm893_vm3, %v889_v23, inf }
 0xb00   : > { %895 = vmin.xlane.f32.xlu0 %v894_v24  ;;  %v899_v27 = vshll.u32 %v898_v25, 16 }
 0xb8d   : > { %v896_v26 = vpop.xlane.xlu0 %895 }
 0xb8e   : > { %v897_v28 = vcvt.f32.s32 %v896_v26 }
 0xb90   : > { %v2206_v29 = vadd.s32 %v899_v27, %v897_v28 }
 0xb92   : > { %vm901_vm4 = vcmp.eq.s32.totalorder %v2157_v7, %v2206_v29 }
 0xb93   : > { %v903_v30 = vsel %vm901_vm4, -inf, %v880_v12 }
 0xb94   : > { %v904_v31 = vsel %vm414_vm2, %v903_v30, -inf }
 0xb95   : > { %905 = vmax.xlane.f32.xlu1 %v904_v31 }
 0xc22   : > { %v906_v32 = vpop.xlane.xlu1 %905 }
 0xc23   : > { %vm907_vm6 = vcmp.eq.f32.partialorder %v903_v30, %v906_v32 }
 0xc24   : > { %v908_v33 = vsel %vm907_vm6, %v2157_v7, 16 }
 0xc25   : > { %v909_v34 = vsel %vm414_vm2, %v908_v33, 2147483647 }
 0xc26   : > { %v911_v35 = vshra.s32 %v909_v34, 16  ;;  %v910_v37 = vand.u32 65535, %v909_v34 }
 0xc28   : > { %v913_v36 = vcvt.s32.f32 %v911_v35  ;;  %v912_v40 = vcvt.s32.f32 %v910_v37 }
 0xc2a   : > { %914 = vmin.xlane.f32.xlu0 %v913_v36 }
 0xcb7   : > { %v915_v39 = vpop.xlane.xlu0 %914 }
 0xcb8   : > { %vm916_vm7 = vcmp.eq.f32.partialorder %v913_v36, %v915_v39  ;;  %v921_v42 = vcvt.f32.s32 %v915_v39 }
 0xcb9   : > { %v917_v41 = vsel %vm916_vm7, %v912_v40, inf }
 0xcba   : > { %918 = vmin.xlane.f32.xlu1 %v917_v41  ;;  %v922_v44 = vshll.u32 %v921_v42, 16 }
 0xd47   : > { %v919_v43 = vpop.xlane.xlu1 %918 }
 0xd48   : > { %v920_v45 = vcvt.f32.s32 %v919_v43 }
 0xd4a   : > { %v2216_v46 = vadd.s32 %v922_v44, %v920_v45 }
 0xd4c   : > { %vm924_vm9 = vcmp.eq.s32.totalorder %v2157_v7, %v2216_v46 }
 0xd4d   : > { %v926_v47 = vsel %vm924_vm9, -inf, %v903_v30 }
 0xd4e   : > { %v927_v48 = vsel %vm414_vm2, %v926_v47, -inf }
 0xd4f   : > { %928 = vmax.xlane.f32.xlu0 %v927_v48 }
 0xddc   : > { %v929_v49 = vpop.xlane.xlu0 %928 }
 0xddd   : > { %vm930_vm10 = vcmp.eq.f32.partialorder %v926_v47, %v929_v49 }
 0xdde   : > { %v931_v50 = vsel %vm930_vm10, %v2157_v7, 16 }
 0xddf   : > { %v932_v51 = vsel %vm414_vm2, %v931_v50, 2147483647 }
 0xde0   : > { %v934_v52 = vshra.s32 %v932_v51, 16  ;;  %v933_v55 = vand.u32 65535, %v932_v51 }
 0xde2   : > { %v936_v53 = vcvt.s32.f32 %v934_v52  ;;  %v935_v57 = vcvt.s32.f32 %v933_v55 }
 0xde4   : > { %937 = vmin.xlane.f32.xlu1 %v936_v53 }
 0xe71   : > { %v938_v56 = vpop.xlane.xlu1 %937 }
 0xe72   : > { %vm939_vm12 = vcmp.eq.f32.partialorder %v936_v53, %v938_v56  ;;  %v944_v59 = vcvt.f32.s32 %v938_v56 }
 0xe73   : > { %v940_v58 = vsel %vm939_vm12, %v935_v57, inf }
 0xe74   : > { %941 = vmin.xlane.f32.xlu0 %v940_v58  ;;  %v945_v61 = vshll.u32 %v944_v59, 16 }
 0xf01   : > { %v942_v60 = vpop.xlane.xlu0 %941 }
 0xf02   : > { %v943_v62 = vcvt.f32.s32 %v942_v60 }
 0xf04   : > { %v2226_v63 = vadd.s32 %v945_v61, %v943_v62 }
 0xf06   : > { %vm947_vm13 = vcmp.eq.s32.totalorder %v2157_v7, %v2226_v63 }
 0xf07   : > { %v949_v0 = vsel %vm947_vm13, -inf, %v926_v47 }
 0xf08   : > { %v950_v2 = vsel %vm414_vm2, %v949_v0, -inf }
 0xf09   : > { %951 = vmax.xlane.f32.xlu1 %v950_v2 }
 0xf96   : > { %v952_v3 = vpop.xlane.xlu1 %951 }
 0xf97   : > { %vm953_vm15 = vcmp.eq.f32.partialorder %v949_v0, %v952_v3 }
 0xf98   : > { %v954_v5 = vsel %vm953_vm15, %v2157_v7, 16 }
 0xf99   : > { %v955_v9 = vsel %vm414_vm2, %v954_v5, 2147483647 }
 0xf9a   : > { %v957_v10 = vshra.s32 %v955_v9, 16  ;;  %v956_v13 = vand.u32 65535, %v955_v9 }
 0xf9c   : > { %v959_v12 = vcvt.s32.f32 %v957_v10  ;;  %v958_v16 = vcvt.s32.f32 %v956_v13 }
 0xf9e   : > { %960 = vmin.xlane.f32.xlu0 %v959_v12 }
0x102b   : > { %v961_v14 = vpop.xlane.xlu0 %960 }
0x102c   : > { %vm962_vm3 = vcmp.eq.f32.partialorder %v959_v12, %v961_v14  ;;  %v967_v18 = vcvt.f32.s32 %v961_v14 }
0x102d   : > { %v963_v17 = vsel %vm962_vm3, %v958_v16, inf }
0x102e   : > { %964 = vmin.xlane.f32.xlu1 %v963_v17  ;;  %v968_v20 = vshll.u32 %v967_v18, 16 }
0x10bb   : > { %v965_v19 = vpop.xlane.xlu1 %964 }
0x10bc   : > { %v966_v21 = vcvt.f32.s32 %v965_v19 }
0x10be   : > { %v2236_v23 = vadd.s32 %v968_v20, %v966_v21 }
0x10c0   : > { %vm970_vm6 = vcmp.eq.s32.totalorder %v2157_v7, %v2236_v23 }
0x10c1   : > { %v972_v24 = vsel %vm970_vm6, -inf, %v949_v0 }
0x10c2   : > { %v973_v25 = vsel %vm414_vm2, %v972_v24, -inf }
0x10c3   : > { %974 = vmax.xlane.f32.xlu0 %v973_v25 }
0x1150   : > { %v975_v26 = vpop.xlane.xlu0 %974 }
0x1151   : > { %vm976_vm7 = vcmp.eq.f32.partialorder %v972_v24, %v975_v26 }
0x1152   : > { %v977_v27 = vsel %vm976_vm7, %v2157_v7, 16 }
0x1153   : > { %v978_v28 = vsel %vm414_vm2, %v977_v27, 2147483647 }
0x1154   : > { %v980_v30 = vshra.s32 %v978_v28, 16  ;;  %v979_v32 = vand.u32 65535, %v978_v28 }
0x1156   : > { %v982_v31 = vcvt.s32.f32 %v980_v30  ;;  %v981_v34 = vcvt.s32.f32 %v979_v32 }
0x1158   : > { %983 = vmin.xlane.f32.xlu1 %v982_v31 }
0x11e5   : > { %v984_v33 = vpop.xlane.xlu1 %983 }
0x11e6   : > { %vm985_vm10 = vcmp.eq.f32.partialorder %v982_v31, %v984_v33  ;;  %v990_v36 = vcvt.f32.s32 %v984_v33 }
0x11e7   : > { %v986_v35 = vsel %vm985_vm10, %v981_v34, inf }
0x11e8   : > { %987 = vmin.xlane.f32.xlu0 %v986_v35  ;;  %v991_v39 = vshll.u32 %v990_v36, 16 }
0x1275   : > { %v988_v37 = vpop.xlane.xlu0 %987 }
0x1276   : > { %v989_v40 = vcvt.f32.s32 %v988_v37 }
0x1278   : > { %v2246_v41 = vadd.s32 %v991_v39, %v989_v40 }
0x127a   : > { %vm993_vm12 = vcmp.eq.s32.totalorder %v2157_v7, %v2246_v41 }
0x127b   : > { %v995_v42 = vsel %vm993_vm12, -inf, %v972_v24 }
0x127c   : > { %v996_v43 = vsel %vm414_vm2, %v995_v42, -inf }
0x127d   : > { %997 = vmax.xlane.f32.xlu1 %v996_v43 }
0x130a   : > { %v998_v44 = vpop.xlane.xlu1 %997 }
0x130b   : > { %vm999_vm15 = vcmp.eq.f32.partialorder %v995_v42, %v998_v44 }
0x130c   : > { %v1000_v45 = vsel %vm999_vm15, %v2157_v7, 16 }
0x130d   : > { %v1001_v47 = vsel %vm414_vm2, %v1000_v45, 2147483647 }
0x130e   : > { %v1003_v48 = vshra.s32 %v1001_v47, 16  ;;  %v1002_v50 = vand.u32 65535, %v1001_v47 }
0x1310   : > { %v1005_v49 = vcvt.s32.f32 %v1003_v48  ;;  %v1004_v52 = vcvt.s32.f32 %v1002_v50 }
0x1312   : > { %1006 = vmin.xlane.f32.xlu0 %v1005_v49 }
0x139f   : > { %v1007_v51 = vpop.xlane.xlu0 %1006 }
0x13a0   : > { %vm1008_vm3 = vcmp.eq.f32.partialorder %v1005_v49, %v1007_v51  ;;  %v1013_v55 = vcvt.f32.s32 %v1007_v51 }
0x13a1   : > { %v1009_v53 = vsel %vm1008_vm3, %v1004_v52, inf }
0x13a2   : > { %1010 = vmin.xlane.f32.xlu1 %v1009_v53  ;;  %v1014_v57 = vshll.u32 %v1013_v55, 16  ;;  %v1087_v53 = vsub.f32 %v2152_v4, %v2159_v8 }
0x13a4   : > { %v1088_v55 = vmul.f32 1.442695, %v1087_v53 }
0x13a6   : > { %2004 = vpow2.f32 %v1088_v55 }
0x142f   : > { %v1011_v56 = vpop.xlane.xlu1 %1010 }
0x1430   : > { %v1012_v58 = vcvt.f32.s32 %v1011_v56  ;;  %v810_v56 = vsel %vm809_vm5, 1.0, %v2026_v1 }
0x1432   : > { %v2256_v59 = vadd.s32 %v1014_v57, %v1012_v58  ;;  %v833_v57 = vsel %vm832_vm8, 1.0, %v810_v56 }
0x1433   : > { %v856_v58 = vsel %vm855_vm11, 1.0, %v833_v57 }
0x1434   : > { %vm1016_vm7 = vcmp.eq.s32.totalorder %v2157_v7, %v2256_v59 }
0x1435   : > { %v1018_v60 = vsel %vm1016_vm7, -inf, %v995_v42 }
0x1436   : > { %v1019_v61 = vsel %vm414_vm2, %v1018_v60, -inf }
0x1437   : > { %1020 = vmax.xlane.f32.xlu0 %v1019_v61 }
0x14c4   : > { %v1021_v62 = vpop.xlane.xlu0 %1020 }
0x14c5   : > { %vm1022_vm10 = vcmp.eq.f32.partialorder %v1018_v60, %v1021_v62 }
0x14c6   : > { %v1023_v0 = vsel %vm1022_vm10, %v2157_v7, 16 }
0x14c7   : > { %v1024_v2 = vsel %vm414_vm2, %v1023_v0, 2147483647 }
0x14c8   : > { %v1026_v3 = vshra.s32 %v1024_v2, 16  ;;  %v1025_v9 = vand.u32 65535, %v1024_v2 }
0x14ca   : > { %v1028_v5 = vcvt.s32.f32 %v1026_v3  ;;  %v1027_v12 = vcvt.s32.f32 %v1025_v9 }
0x14cc   : > { %1029 = vmin.xlane.f32.xlu1 %v1028_v5 }
0x1559   : > { %v1030_v10 = vpop.xlane.xlu1 %1029 }
0x155a   : > { %vm1031_vm15 = vcmp.eq.f32.partialorder %v1028_v5, %v1030_v10  ;;  %v1036_v14 = vcvt.f32.s32 %v1030_v10 }
0x155b   : > { %v1032_v13 = vsel %vm1031_vm15, %v1027_v12, inf }
0x155c   : > { %1033 = vmin.xlane.f32.xlu0 %v1032_v13  ;;  %v1037_v17 = vshll.u32 %v1036_v14, 16 }
0x15e9   : > { %v1034_v16 = vpop.xlane.xlu0 %1033 }
0x15ea   : > { %v1035_v18 = vcvt.f32.s32 %v1034_v16  ;;  %v2005_v16 = vpop.eup %2004 }
0x15ec   : > { %v2266_v19 = vadd.s32 %v1037_v17, %v1035_v18 }
0x15ee   : > { %vm1039_vm3 = vcmp.eq.s32.totalorder %v2157_v7, %v2266_v19 }
0x15ef   : > { %v1041_v20 = vsel %vm1039_vm3, -inf, %v1018_v60  ;;  %v879_v60 = vsel %vm878_vm14, 1.0, %v856_v58  ;;  %v1998_v58 = vld [vmem:[%s2571_s3] sm:$0xff]  }
0x15f0   : > { %v1042_v21 = vsel %vm414_vm2, %v1041_v20, -inf  ;;  %v902_v8 = vsel %vm901_vm4, 1.0, %v879_v60  ;;  %1930 = vmatpush3.bf16.msra.mxu0 %v1998_v58  ;;  %v2391_v60 = vshrl.u32 %v776_v6, 7 }
0x15f1   : > { %1043 = vmax.xlane.f32.xlu1 %v1042_v21  ;;  %v925_v61 = vsel %vm924_vm9, 1.0, %v902_v8  ;;  %1931 = vmatprep.subr.bf16.mxu0 %v2026_v1 }
0x15f2   : > { %v948_v62 = vsel %vm947_vm13, 1.0, %v925_v61  ;;  %v781_v8 = vsub.s32 %v2157_v7, %v2391_v60 }
0x15f3   : > { %v971_v2 = vsel %vm970_vm6, 1.0, %v948_v62 }
0x15f4   : > { %v994_v9 = vsel %vm993_vm12, 1.0, %v971_v2  ;;  %v785_v62 = vadd.s32 16, %v781_v8 }
0x15f5   : > { %v1017_v12 = vsel %vm1016_vm7, 1.0, %v994_v9 }
0x15f6   : > { %v1040_v13 = vsel %vm1039_vm3, 1.0, %v1017_v12 }
0x167e   : > { %v1044_v24 = vpop.xlane.xlu1 %1043 }
0x167f   : > { %vm1045_vm10 = vcmp.eq.f32.partialorder %v1041_v20, %v1044_v24 }
0x1680   : > { %v1046_v25 = vsel %vm1045_vm10, %v2157_v7, 16 }
0x1681   : > { %v1047_v26 = vsel %vm414_vm2, %v1046_v25, 2147483647 }
0x1682   : > { %v1049_v27 = vshra.s32 %v1047_v26, 16  ;;  %v1048_v30 = vand.u32 65535, %v1047_v26 }
0x1684   : > { %v1051_v28 = vcvt.s32.f32 %v1049_v27  ;;  %v1050_v32 = vcvt.s32.f32 %v1048_v30 }
0x1686   : > { %1052 = vmin.xlane.f32.xlu0 %v1051_v28 }
0x1713   : > { %v1053_v31 = vpop.xlane.xlu0 %1052 }
0x1714   : > { %vm1054_vm15 = vcmp.eq.f32.partialorder %v1051_v28, %v1053_v31  ;;  %v1059_v34 = vcvt.f32.s32 %v1053_v31 }
0x1715   : > { %v1055_v33 = vsel %vm1054_vm15, %v1050_v32, inf }
0x1716   : > { %1056 = vmin.xlane.f32.xlu1 %v1055_v33  ;;  %v1060_v36 = vshll.u32 %v1059_v34, 16 }
0x17a3   : > { %v1057_v35 = vpop.xlane.xlu1 %1056 }
0x17a4   : > { %v1058_v37 = vcvt.f32.s32 %v1057_v35 }
0x17a6   : > { %v2276_v39 = vadd.s32 %v1060_v36, %v1058_v37 }
0x17a8   : > { %vm1062_vm10 = vcmp.eq.s32.totalorder %v2157_v7, %v2276_v39 }
0x17a9   : > { %v1064_v40 = vsel %vm1062_vm10, -inf, %v1041_v20  ;;  %v1063_v14 = vsel %vm1062_vm10, 1.0, %v1040_v13 }
0x17aa   : > { %v1065_v42 = vsel %vm414_vm2, %v1064_v40, -inf }
0x17ab   : > { %1066 = vmax.xlane.f32.xlu0 %v1065_v42 }
0x1838   : > { %v1067_v43 = vpop.xlane.xlu0 %1066 }
0x1839   : > { %vm1068_vm1 = vcmp.eq.f32.partialorder %v1064_v40, %v1067_v43 }
0x183a   : > { %v1069_v44 = vsel %vm1068_vm1, %v2157_v7, 16 }
0x183b   : > { %v1070_v45 = vsel %vm414_vm2, %v1069_v44, 2147483647 }
0x183c   : > { %v1072_v47 = vshra.s32 %v1070_v45, 16  ;;  %v1071_v49 = vand.u32 65535, %v1070_v45 }
0x183e   : > { %v1074_v48 = vcvt.s32.f32 %v1072_v47  ;;  %v1073_v51 = vcvt.s32.f32 %v1071_v49 }
0x1840   : > { %1075 = vmin.xlane.f32.xlu1 %v1074_v48 }
0x18cd   : > { %v1076_v50 = vpop.xlane.xlu1 %1075 }
0x18ce   : > { %vm1077_vm15 = vcmp.eq.f32.partialorder %v1074_v48, %v1076_v50  ;;  %v1082_v4 = vcvt.f32.s32 %v1076_v50 }
0x18cf   : > { %v1078_v52 = vsel %vm1077_vm15, %v1073_v51, inf }
0x18d0   : > { %1079 = vmin.xlane.f32.xlu0 %v1078_v52  ;;  %v1083_v3 = vshll.u32 %v1082_v4, 16  ;;  %v780_v4 = vadd.s32 8, %v2391_v60 }
0x18d2   : > { %v782_v61 = vsub.s32 %v2157_v7, %v780_v4 }
0x195d   : > { %v1080_v0 = vpop.xlane.xlu0 %1079 }
0x195e   : > { %v1081_v5 = vcvt.f32.s32 %v1080_v0  ;;  %v786_v0 = vadd.s32 16, %v782_v61 }
0x1960   : > { %v2316_v10 = vadd.s32 %v1083_v3, %v1081_v5 }
0x1962   : > { %vm1085_vm1 = vcmp.eq.s32.totalorder %v2157_v7, %v2316_v10 }
0x1963   : > { %v1086_v17 = vsel %vm1085_vm1, 1.0, %v1063_v14 }
0x1964   : > { %v1090_v18 = vmul.f32 %v2005_v16, %v1086_v17 }
0x1966   : > { %v1091_v20 = vsel %vm414_vm2, %v1090_v18, 0.0 }
0x1967   : > { %1092 = vadd.xlane.f32.xlu1 %v1091_v20 }
0x19f4   : > { %v1093_v21 = vpop.xlane.xlu1 %1092 }
0x19f5   : > { %2006 = vrcp.f32 %v1093_v21 }
0x19ff   : > { %v2007_v24 = vpop.eup %2006 }
0x1a00   : > { %v1096_v25 = vmul.f32 %v2007_v24, %v1090_v18 }
0x1a02   : > { %v1111_v26 = vsel %vm832_vm8, %v1096_v25, 0.0  ;;  %v1097_v27 = vsel %vm809_vm5, %v1096_v25, 0.0  ;;  %v1139_v31 = vsel %vm878_vm14, %v1096_v25, 0.0  ;;  %v1125_v32 = vsel %vm855_vm11, %v1096_v25, 0.0 }
0x1a03   : > { %v1112_v28 = vsel %vm414_vm2, %v1111_v26, 0.0  ;;  %v1098_v30 = vsel %vm414_vm2, %v1097_v27, 0.0  ;;  %v1140_v33 = vsel %vm414_vm2, %v1139_v31, 0.0  ;;  %v1126_v34 = vsel %vm414_vm2, %v1125_v32, 0.0 }
0x1a04   : > { %1113 = vadd.xlane.f32.xlu1 %v1112_v28  ;;  %1099 = vadd.xlane.f32.xlu0 %v1098_v30  ;;  %v1167_v35 = vsel %vm924_vm9, %v1096_v25, 0.0  ;;  %v1153_v36 = vsel %vm901_vm4, %v1096_v25, 0.0  ;;  %v1195_v42 = vsel %vm970_vm6, %v1096_v25, 0.0  ;;  %v1181_v43 = vsel %vm947_vm13, %v1096_v25, 0.0 }
0x1a05   : > { %v1168_v37 = vsel %vm414_vm2, %v1167_v35, 0.0  ;;  %v1154_v40 = vsel %vm414_vm2, %v1153_v36, 0.0  ;;  %v1196_v44 = vsel %vm414_vm2, %v1195_v42, 0.0  ;;  %v1182_v45 = vsel %vm414_vm2, %v1181_v43, 0.0 }
0x1a06   : > { %v1223_v47 = vsel %vm1016_vm7, %v1096_v25, 0.0  ;;  %v1209_v48 = vsel %vm993_vm12, %v1096_v25, 0.0  ;;  %v1251_v51 = vsel %vm1062_vm10, %v1096_v25, 0.0  ;;  %v1237_v52 = vsel %vm1039_vm3, %v1096_v25, 0.0 }
0x1a07   : > { %v1224_v49 = vsel %vm414_vm2, %v1223_v47, 0.0  ;;  %v1210_v50 = vsel %vm414_vm2, %v1209_v48, 0.0  ;;  %v1252_v53 = vsel %vm414_vm2, %v1251_v51, 0.0  ;;  %v1238_v55 = vsel %vm414_vm2, %v1237_v52, 0.0 }
0x1a08   : > { %1141 = vadd.xlane.f32.xlu1 %v1140_v33  ;;  %1127 = vadd.xlane.f32.xlu0 %v1126_v34  ;;  %v1265_v56 = vsel %vm1085_vm1, %v1096_v25, 0.0  ;;  %vm783_vm5 = vcmp.ge.s32.totalorder %v781_v8, 0  ;;  %vm784_vm8 = vcmp.ge.s32.totalorder %v782_v61, 0 }
0x1a09   : > { %v1266_v57 = vsel %vm414_vm2, %v1265_v56, 0.0  ;;  %v2399_v2 = vsel %vm784_vm8, %v782_v61, %v786_v0 }
0x1a0a   : > { %vm1102_vm14 = vcmp.eq.s32.totalorder %v2399_v2, %v2165_v22  ;;  %vm1116_vm9 = vcmp.eq.s32.totalorder %v2399_v2, %v2176_v38  ;;  %vm1130_vm6 = vcmp.eq.s32.totalorder %v2399_v2, %v2186_v54  ;;  %vm1144_vm7 = vcmp.eq.s32.totalorder %v2399_v2, %v2196_v11 }
0x1a0b   : > { %v1813_v7 = vsel %vm1102_vm14, 1.0, %v2026_v1  ;;  %v1815_v5 = vsel %vm1116_vm9, 1.0, %v2026_v1  ;;  %v1817_v21 = vsel %vm1130_vm6, 1.0, %v2026_v1  ;;  %vm1158_vm10 = vcmp.eq.s32.totalorder %v2399_v2, %v2206_v29 }
0x1a0c   : > { %1169 = vadd.xlane.f32.xlu1 %v1168_v37  ;;  %1155 = vadd.xlane.f32.xlu0 %v1154_v40  ;;  %v1819_v27 = vsel %vm1144_vm7, 1.0, %v2026_v1  ;;  %vm1172_vm1 = vcmp.eq.s32.totalorder %v2399_v2, %v2216_v46  ;;  %v1821_v34 = vsel %vm1158_vm10, 1.0, %v2026_v1  ;;  %vm1186_vm8 = vcmp.eq.s32.totalorder %v2399_v2, %v2226_v63 }
0x1a0d   : > { %vm1200_vm14 = vcmp.eq.s32.totalorder %v2399_v2, %v2236_v23  ;;  %vm1214_vm9 = vcmp.eq.s32.totalorder %v2399_v2, %v2246_v41  ;;  %vm1228_vm6 = vcmp.eq.s32.totalorder %v2399_v2, %v2256_v59  ;;  %vm1242_vm7 = vcmp.eq.s32.totalorder %v2399_v2, %v2266_v19 }
0x1a0e   : > { %v1829_v58 = vsel %vm1214_vm9, 1.0, %v2026_v1  ;;  %vm1256_vm10 = vcmp.eq.s32.totalorder %v2399_v2, %v2276_v39 }
0x1a10   : > { %1197 = vadd.xlane.f32.xlu1 %v1196_v44  ;;  %1183 = vadd.xlane.f32.xlu0 %v1182_v45  ;;  %v1825_v44 = vsel %vm1186_vm8, 1.0, %v2026_v1  ;;  %vm1462_vm8 = vcmask 1045504  }
0x1a14   : > { %1225 = vadd.xlane.f32.xlu1 %v1224_v49  ;;  %1211 = vadd.xlane.f32.xlu0 %v1210_v50 }
0x1a18   : > { %1253 = vadd.xlane.f32.xlu1 %v1252_v53  ;;  %1239 = vadd.xlane.f32.xlu0 %v1238_v55 }
0x1a1c   : > { %1267 = vadd.xlane.f32.xlu0 %v1266_v57 }
0x1a29   : > { %1992 = vrot.lane.b32.xlu1 %v2125_v15, %s2029_s11  ;;  %v2397_v15 = vsel %vm783_vm5, %v781_v8, %v785_v62 }
0x1a2a   : > { %vm1101_vm11 = vcmp.eq.s32.totalorder %v2397_v15, %v2165_v22  ;;  %vm1115_vm4 = vcmp.eq.s32.totalorder %v2397_v15, %v2176_v38  ;;  %vm1129_vm13 = vcmp.eq.s32.totalorder %v2397_v15, %v2186_v54  ;;  %vm1143_vm12 = vcmp.eq.s32.totalorder %v2397_v15, %v2196_v11 }
0x1a2b   : > { %v1812_v6 = vsel %vm1101_vm11, 1.0, %v2026_v1  ;;  %v1814_v3 = vsel %vm1115_vm4, 1.0, %v2026_v1  ;;  %v1816_v20 = vsel %vm1129_vm13, 1.0, %v2026_v1  ;;  %vm1157_vm3 = vcmp.eq.s32.totalorder %v2397_v15, %v2206_v29 }
0x1a2c   : > { %v1818_v26 = vsel %vm1143_vm12, 1.0, %v2026_v1  ;;  %vm1171_vm15 = vcmp.eq.s32.totalorder %v2397_v15, %v2216_v46  ;;  %v1820_v33 = vsel %vm1157_vm3, 1.0, %v2026_v1  ;;  %vm1185_vm5 = vcmp.eq.s32.totalorder %v2397_v15, %v2226_v63 }
0x1a2d   : > { %v1822_v35 = vsel %vm1171_vm15, 1.0, %v2026_v1  ;;  %v1823_v46 = vsel %vm1172_vm1, 1.0, %v2026_v1  ;;  %vm1199_vm11 = vcmp.eq.s32.totalorder %v2397_v15, %v2236_v23  ;;  %v1824_v43 = vsel %vm1185_vm5, 1.0, %v2026_v1 }
0x1a2e   : > { %vm1213_vm4 = vcmp.eq.s32.totalorder %v2397_v15, %v2246_v41  ;;  %v1826_v51 = vsel %vm1199_vm11, 1.0, %v2026_v1  ;;  %v1827_v23 = vsel %vm1200_vm14, 1.0, %v2026_v1  ;;  %vm1227_vm13 = vcmp.eq.s32.totalorder %v2397_v15, %v2256_v59 }
0x1a2f   : > { %v1828_v57 = vsel %vm1213_vm4, 1.0, %v2026_v1  ;;  %vm1241_vm12 = vcmp.eq.s32.totalorder %v2397_v15, %v2266_v19  ;;  %vm1255_vm3 = vcmp.eq.s32.totalorder %v2397_v15, %v2276_v39  ;;  %vm1269_vm15 = vcmp.eq.s32.totalorder %v2397_v15, %v2316_v10 }
0x1a30   : > { %vm1270_vm1 = vcmp.eq.s32.totalorder %v2399_v2, %v2316_v10  ;;  %v1835_v39 = vsel %vm1256_vm10, 1.0, %v2026_v1  ;;  %vm2579_vm5 = vcmask 261120   ;;  %vm1472_vm11 = vcmask 1044480  }
0x1a31   : > { %v1837_v15 = vsel %vm1270_vm1, 1.0, %v2026_v1  ;;  %vm1482_vm14 = vcmask 1043456   ;;  %vm2580_vm4 = vmmov %vm2579_vm5 }
0x1a91   : > { %v1114_v9 = vpop.xlane.xlu1 %1113  ;;  %v1100_v12 = vpop.xlane.xlu0 %1099 }
0x1a92   : > { %v1121_v22 = vmul.f32 %v1814_v3, %v1114_v9  ;;  %v1122_v13 = vmul.f32 %v1815_v5, %v1114_v9  ;;  %v1107_v14 = vmul.f32 %v1812_v6, %v1100_v12  ;;  %v1108_v38 = vmul.f32 %v1813_v7, %v1100_v12 }
0x1a93   : > { %v1830_v6 = vsel %vm1227_vm13, 1.0, %v2026_v1  ;;  %v1831_v7 = vsel %vm1228_vm6, 1.0, %v2026_v1  ;;  %v1832_v12 = vsel %vm1241_vm12, 1.0, %v2026_v1  ;;  %vm2581_vm6 = vmmov %vm2580_vm4 }
0x1a94   : > { %v1123_v16 = vadd.f32 %v1121_v22, %v1107_v14  ;;  %v1124_v17 = vadd.f32 %v1122_v13, %v1108_v38  ;;  %v1833_v22 = vsel %vm1242_vm7, 1.0, %v2026_v1  ;;  %vm2582_vm12 = vmmov %vm2580_vm4 }
0x1a95   : > { %v1142_v18 = vpop.xlane.xlu1 %1141  ;;  %v1128_v24 = vpop.xlane.xlu0 %1127  ;;  %vm2583_vm7 = vmmov %vm2580_vm4 }
0x1a96   : > { %v1135_v25 = vmul.f32 %v1816_v20, %v1128_v24  ;;  %v1136_v54 = vmul.f32 %v1817_v21, %v1128_v24  ;;  %v1149_v11 = vmul.f32 %v1818_v26, %v1142_v18  ;;  %v1150_v28 = vmul.f32 %v1819_v27, %v1142_v18 }
0x1a98   : > { %v1137_v30 = vadd.f32 %v1135_v25, %v1123_v16  ;;  %v1138_v31 = vadd.f32 %v1136_v54, %v1124_v17  ;;  %v1834_v25 = vsel %vm1255_vm3, 1.0, %v2026_v1  ;;  %v1836_v54 = vsel %vm1269_vm15, 1.0, %v2026_v1 }
0x1a99   : > { %v1170_v32 = vpop.xlane.xlu1 %1169  ;;  %v1156_v29 = vpop.xlane.xlu0 %1155 }
0x1a9a   : > { %v1151_v36 = vadd.f32 %v1149_v11, %v1137_v30  ;;  %v1152_v37 = vadd.f32 %v1150_v28, %v1138_v31  ;;  %v1163_v40 = vmul.f32 %v1820_v33, %v1156_v29  ;;  %v1164_v42 = vmul.f32 %v1821_v34, %v1156_v29 }
0x1a9b   : > { %v1177_v63 = vmul.f32 %v1822_v35, %v1170_v32  ;;  %v1178_v45 = vmul.f32 %v1823_v46, %v1170_v32 }
0x1a9c   : > { %v1165_v47 = vadd.f32 %v1163_v40, %v1151_v36  ;;  %v1166_v48 = vadd.f32 %v1164_v42, %v1152_v37  ;;  %v1999_v37 = vld [vmem:[%s2571_s3 + $0x8] sm:$0xff]  }
0x1a9d   : > { %v1198_v49 = vpop.xlane.xlu1 %1197  ;;  %v1184_v50 = vpop.xlane.xlu0 %1183  ;;  %1932 = vmatpush3.bf16.msra.mxu0 %v1999_v37 }
0x1a9e   : > { %v1191_v52 = vmul.f32 %v1824_v43, %v1184_v50  ;;  %v1192_v53 = vmul.f32 %v1825_v44, %v1184_v50  ;;  %v1179_v55 = vadd.f32 %v1177_v63, %v1165_v47  ;;  %v1180_v56 = vadd.f32 %v1178_v45, %v1166_v48  ;;  %1945 = vmatprep.subr.bf16.mxu0 %v2026_v1  ;;  %v2000_v44 = vld [vmem:[%s2573_s5] sm:$0xff]   ;;  %v2001_v63 = vld [vmem:[%s2573_s5 + $0x8] sm:$0xff]  }
0x1a9f   : > { %v1205_v4 = vmul.f32 %v1826_v51, %v1198_v49  ;;  %v1206_v8 = vmul.f32 %v1827_v23, %v1198_v49  ;;  %v1840_v45 = vld [vmem:[%s2572_s4] ss:$0 sm:$0xff]  ;;  %v1433_v49 = vsub.s32 0, %v2391_v60 }
0x1aa0   : > { %v1193_v61 = vadd.f32 %v1191_v52, %v1179_v55  ;;  %v1194_v59 = vadd.f32 %v1192_v53, %v1180_v56  ;;  %v2016_v23 = vld [vmem:[%s2107_s18] sm:$0xff]  ;;  %v1437_v55 = vsub.s32 7, %v2391_v60 }
0x1aa1   : > { %v1226_v62 = vpop.xlane.xlu1 %1225  ;;  %v1212_v0 = vpop.xlane.xlu0 %1211 }
0x1aa2   : > { %v1219_v3 = vmul.f32 %v1828_v57, %v1212_v0  ;;  %v1220_v5 = vmul.f32 %v1829_v58, %v1212_v0  ;;  %v1207_v41 = vadd.f32 %v1205_v4, %v1193_v61  ;;  %v1208_v9 = vadd.f32 %v1206_v8, %v1194_v59  ;;  %v2017_v4 = vld [vmem:[%s2107_s18 + $0x8] sm:$0xff] }
0x1aa3   : > { %v1233_v19 = vmul.f32 %v1830_v6, %v1226_v62  ;;  %v1234_v13 = vmul.f32 %v1831_v7, %v1226_v62 }
0x1aa4   : > { %v1221_v14 = vadd.f32 %v1219_v3, %v1207_v41  ;;  %v1222_v38 = vadd.f32 %v1220_v5, %v1208_v9 }
0x1aa5   : > { %v1254_v16 = vpop.xlane.xlu1 %1253  ;;  %v1240_v17 = vpop.xlane.xlu0 %1239 }
0x1aa6   : > { %v1247_v18 = vmul.f32 %v1832_v12, %v1240_v17  ;;  %v1248_v20 = vmul.f32 %v1833_v22, %v1240_v17  ;;  %v1235_v21 = vadd.f32 %v1233_v19, %v1221_v14  ;;  %v1236_v24 = vadd.f32 %v1234_v13, %v1222_v38 }
0x1aa7   : > { %v1261_v26 = vmul.f32 %v1834_v25, %v1254_v16  ;;  %v1262_v10 = vmul.f32 %v1835_v39, %v1254_v16 }
0x1aa8   : > { %v1249_v2 = vadd.f32 %v1247_v18, %v1235_v21  ;;  %v1250_v27 = vadd.f32 %v1248_v20, %v1236_v24 }
0x1aa9   : > { %v1993_v11 = vpop.permute.xlu1 %1992  ;;  %v1268_v28 = vpop.xlane.xlu0 %1267 }
0x1aaa   : > { %v1995_v30 = vunpack.i.h.bf16 %v1993_v11  ;;  %v1994_v31 = vunpack.i.l.bf16 %v1993_v11  ;;  %v1275_v32 = vmul.f32 %v1836_v54, %v1268_v28  ;;  %v1276_v33 = vmul.f32 %v1837_v15, %v1268_v28 }
0x1aab   : > { %v1263_v34 = vadd.f32 %v1261_v26, %v1249_v2  ;;  %v1264_v29 = vadd.f32 %v1262_v10, %v1250_v27 }
0x1aac   : > { %v1969_v35 = vpack.c.bf16 %v1995_v30, %v1994_v31 }
0x1aad   : > { %v1277_v46 = vadd.f32 %v1275_v32, %v1263_v34  ;;  %v1278_v36 = vadd.f32 %v1276_v33, %v1264_v29 }
0x1aae   : > { %1970 = vmatprep.subr.bf16.mxu1 %v1969_v35 }
0x1aaf   : > { %1926 = vmatprep.mubr.msk.f32.mxu1 %vm414_vm2, %v1277_v46  ;;  %1972 = vmatpush3.bf16.msra.mxu1 %v1969_v35  ;;  %v2002_v35 = vld [vmem:[%s2574_s6] sm:$0xff]   ;;  %v2003_v46 = vld [vmem:[%s2574_s6 + $0x8] sm:$0xff]  }
0x1ab0   : > { %1937 = vmatprep.subr.bf16.mxu1 %v2026_v1 }
0x1ab2   : > { %1927 = vmatmul.mubr.msk.f32.vlgmr.msra.gmra.mrb[8].mxu1 %vm414_vm2, %v1278_v36  ;;  %vm1452_vm2 = vcmask 1046528  }
0x1ab3   : > { %1941 = vmatprep.mubr.msk.bf16.mxu1 %vm2027_vm0, %v2026_v1  ;;  %1938 = vmatpush3.bf16.msra.mxu1 %v2000_v44 }
0x1ab4   : > { %1939 = vmatprep.subr.bf16.mxu1 %v2026_v1 }
0x1ab7   : > { %1940 = vmatpush3.bf16.msra.mxu1 %v2001_v63 }
0x1b85   : > { %v1928_v40 = vpop.f32.mrb[8].mxu1 }
0x1b86   : > { %v1357_v42 = vpop.f32.mrb[9].mxu1 }
0x1b87   : > { %v1366_v43 = vpack.c.bf16 %v1928_v40, %v1357_v42 }
0x1b89   : > { %1934 = vmatmul.mubr.msk.bf16.vlgmr.msra.gmra.mrb[4].mxu0 %vm2579_vm5, %v1366_v43 }
0x1b8a   : > { %1949 = vmatprep.mubr.msk.bf16.mxu0 %vm2027_vm0, %v2026_v1  ;;  %vm1441_vm0 = vcmask 1041408   ;;  %1946 = vmatpush3.bf16.msra.mxu0 %v2002_v35 }
0x1b8b   : > { %1947 = vmatprep.subr.bf16.mxu0 %v2026_v1 }
0x1b8e   : > { %1948 = vmatpush3.bf16.msra.mxu0 %v2003_v46 }
0x1c5c   : > { %v1422_v47 = vpop.f32.mrb[4].mxu0 }
0x1c5d   : > { %v1423_v48 = vadd.f32 %v1840_v45, %v1422_v47  ;;  %v1935_v50 = vpop.f32.mrb[5].mxu0 }
0x1c5e   : > { %v1425_v51 = vpop.f32.mrb[6].mxu0 }
0x1c5f   : > { %v1429_v52 = vadd.f32 %v2016_v23, %v1423_v48  ;;  %v1426_v53 = vadd.f32 %v1840_v45, %v1425_v51  ;;  %v1936_v56 = vpop.f32.mrb[7].mxu0 }
0x1c61   : > { %v1434_v57 = vrot.slane %v1429_v52, %v1433_v49  ;;  %v1442_v58 = vrot.slane %v1429_v52, 6  ;;  %v1430_v8 = vadd.f32 %v2017_v4, %v1426_v53 }
0x1c63   : > { %v1448_v61 = vsel %vm1441_vm0, %v1434_v57, %v1442_v58  ;;  %v1438_v59 = vrot.slane %v1430_v8, %v1437_v55  ;;  %v1443_v62 = vrot.slane %v1430_v8, 6 }
0x1c64   : > { %v1453_v0 = vrot.slane %v1448_v61, 1  ;;  %v1463_v6 = vrot.slane %v1448_v61, 2  ;;  %v1473_v7 = vrot.slane %v1448_v61, 3  ;;  %v1483_v3 = vrot.slane %v1448_v61, 4 }
0x1c65   : > { %v1444_v5 = vsel %vm1441_vm0, %v1442_v58, %v1443_v62  ;;  %v1449_v41 = vsel %vm1441_vm0, %v1443_v62, %v1438_v59 }
0x1c66   : > { %v1454_v9 = vrot.slane %v1444_v5, 1  ;;  %v1456_v12 = vrot.slane %v1449_v41, 1  ;;  %v1464_v22 = vrot.slane %v1444_v5, 2  ;;  %v1466_v19 = vrot.slane %v1449_v41, 2 }
0x1c67   : > { %v1474_v13 = vrot.slane %v1444_v5, 3  ;;  %v1476_v14 = vrot.slane %v1449_v41, 3  ;;  %v1484_v38 = vrot.slane %v1444_v5, 4  ;;  %v1486_v16 = vrot.slane %v1449_v41, 4 }
0x1c68   : > { %v1455_v17 = vsel %vm1452_vm2, %v1453_v0, %v1454_v9  ;;  %v1457_v18 = vsel %vm1452_vm2, %v1454_v9, %v1456_v12  ;;  %v1465_v20 = vsel %vm1462_vm8, %v1463_v6, %v1464_v22  ;;  %v1467_v21 = vsel %vm1462_vm8, %v1464_v22, %v1466_v19 }
0x1c69   : > { %v1460_v24 = vadd.f32 %v1455_v17, %v1448_v61  ;;  %v1461_v25 = vadd.f32 %v1457_v18, %v1444_v5  ;;  %v1475_v39 = vsel %vm1472_vm11, %v1473_v7, %v1474_v13  ;;  %v1477_v54 = vsel %vm1472_vm11, %v1474_v13, %v1476_v14 }
0x1c6a   : > { %v1485_v15 = vsel %vm1482_vm14, %v1483_v3, %v1484_v38  ;;  %v1487_v26 = vsel %vm1482_vm14, %v1484_v38, %v1486_v16 }
0x1c6b   : > { %v1470_v10 = vadd.f32 %v1465_v20, %v1460_v24  ;;  %v1471_v2 = vadd.f32 %v1467_v21, %v1461_v25  ;;  %v2030_v24 = vmov -1.0  }
0x1c6d   : > { %v1480_v27 = vadd.f32 %v1475_v39, %v1470_v10  ;;  %v1481_v11 = vadd.f32 %v1477_v54, %v1471_v2 }
0x1c6f   : > { %v1490_v28 = vadd.f32 %v1485_v15, %v1480_v27  ;;  %v1491_v30 = vadd.f32 %v1487_v26, %v1481_v11 }
0x1c71   : > { %v1492_v31 = vmul.f32 0.2, %v1490_v28  ;;  %v1493_v32 = vmul.f32 0.2, %v1491_v30 }
0x1c73   : > { %v2526_v33 = vsub.f32 %v1429_v52, %v1492_v31  ;;  %v2528_v34 = vsub.f32 %v1430_v8, %v1493_v32 }
0x1c75   : > { %v1500_v29 = vpack.c.bf16 %v2528_v34, %v2526_v33 }
0x1c77   : > { %1942 = vmatmul.mubr.msk.bf16.vlgmr.msra.gmra.mrb[12].mxu1 %vm2580_vm4, %v1500_v29 }
0x1d4a   : > { %v1550_v36 = vpop.f32.mrb[12].mxu1 }
0x1d4b   : > { %v1559_v37 = vmul.f32 0.70710677, %v1550_v36  ;;  %v1943_v40 = vpop.f32.mrb[13].mxu1  ;;  %v1557_v27 = vmul.f32 0.5, %v1550_v36 }
0x1d4c   : > { %v1553_v42 = vpop.f32.mrb[14].mxu1 }
0x1d4d   : > { %v1565_v43 = vand.u32 2147483647, %v1559_v37  ;;  %v1560_v44 = vmul.f32 0.70710677, %v1553_v42  ;;  %v1944_v63 = vpop.f32.mrb[15].mxu1  ;;  %vm1561_vm9 = vcmp.ge.f32.partialorder %v1559_v37, 0.0 }
0x1d4e   : > { %v1563_v25 = vsel %vm1561_vm9, 1.0, %v2030_v24  ;;  %v1558_v11 = vmul.f32 0.5, %v1553_v42 }
0x1d4f   : > { %v1567_v45 = vmul.f32 0.3275911, %v1565_v43  ;;  %v1566_v47 = vand.u32 2147483647, %v1560_v44  ;;  %v1593_v23 = vsub.f32 0.0, %v1565_v43  ;;  %vm1562_vm13 = vcmp.ge.f32.partialorder %v1560_v44, 0.0 }
0x1d50   : > { %v1564_v26 = vsel %vm1562_vm13, 1.0, %v2030_v24 }
0x1d51   : > { %v1569_v48 = vadd.f32 1.0, %v1567_v45  ;;  %v1568_v50 = vmul.f32 0.3275911, %v1566_v47  ;;  %v1594_v52 = vsub.f32 0.0, %v1566_v47  ;;  %v1595_v56 = vmul.f32 %v1593_v23, %v1565_v43 }
0x1d53   : > { %2008 = vrcp.f32 %v1569_v48  ;;  %v1570_v51 = vadd.f32 1.0, %v1568_v50  ;;  %v1596_v4 = vmul.f32 %v1594_v52, %v1566_v47  ;;  %v1597_v8 = vmul.f32 1.442695, %v1595_v56 }
0x1d55   : > { %2010 = vrcp.f32 %v1570_v51  ;;  %v1599_v6 = vmul.f32 1.442695, %v1596_v4 }
0x1d56   : > { %2012 = vpow2.f32 %v1597_v8 }
0x1d57   : > { %2014 = vpow2.f32 %v1599_v6 }
0x1d5d   : > { %v2009_v53 = vpop.eup %2008 }
0x1d5e   : > { %v1575_v1 = vmul.f32 1.0614054, %v2009_v53 }
0x1d5f   : > { %v2011_v57 = vpop.eup %2010 }
0x1d60   : > { %v1577_v58 = vadd.f32 -1.4531521, %v1575_v1  ;;  %v1576_v61 = vmul.f32 1.0614054, %v2011_v57  ;;  %v2013_v38 = vpop.eup %2012 }
0x1d61   : > { %v2015_v20 = vpop.eup %2014 }
0x1d62   : > { %v1579_v59 = vmul.f32 %v2009_v53, %v1577_v58  ;;  %v1578_v62 = vadd.f32 -1.4531521, %v1576_v61 }
0x1d64   : > { %v1581_v0 = vadd.f32 1.4214138, %v1579_v59  ;;  %v1580_v7 = vmul.f32 %v2011_v57, %v1578_v62 }
0x1d66   : > { %v1583_v3 = vmul.f32 %v2009_v53, %v1581_v0  ;;  %v1582_v5 = vadd.f32 1.4214138, %v1580_v7 }
0x1d68   : > { %v1585_v41 = vadd.f32 -0.28449672, %v1583_v3  ;;  %v1584_v9 = vmul.f32 %v2011_v57, %v1582_v5 }
0x1d6a   : > { %v1587_v12 = vmul.f32 %v2009_v53, %v1585_v41  ;;  %v1586_v22 = vadd.f32 -0.28449672, %v1584_v9 }
0x1d6c   : > { %v1589_v19 = vadd.f32 0.2548296, %v1587_v12  ;;  %v1588_v13 = vmul.f32 %v2011_v57, %v1586_v22 }
0x1d6e   : > { %v1591_v14 = vmul.f32 %v2009_v53, %v1589_v19  ;;  %v1590_v16 = vadd.f32 0.2548296, %v1588_v13 }
0x1d70   : > { %v1601_v17 = vmul.f32 %v2013_v38, %v1591_v14  ;;  %v1592_v18 = vmul.f32 %v2011_v57, %v1590_v16 }
0x1d72   : > { %v1603_v21 = vsub.f32 1.0, %v1601_v17  ;;  %v1602_v39 = vmul.f32 %v2015_v20, %v1592_v18 }
0x1d74   : > { %v1605_v54 = vmul.f32 %v1603_v21, %v1563_v25  ;;  %v1604_v15 = vsub.f32 1.0, %v1602_v39 }
0x1d76   : > { %v1607_v10 = vadd.f32 1.0, %v1605_v54  ;;  %v1606_v2 = vmul.f32 %v1604_v15, %v1564_v26 }
0x1d78   : > { %v1608_v28 = vadd.f32 1.0, %v1606_v2  ;;  %v1609_v30 = vmul.f32 %v1607_v10, %v1557_v27 }
0x1d7a   : > { %v1610_v31 = vmul.f32 %v1608_v28, %v1558_v11 }
0x1d7c   : > { %v1615_v32 = vpack.c.bf16 %v1610_v31, %v1609_v30 }
0x1d7e   : > { %1950 = vmatmul.mubr.msk.bf16.vlgmr.msra.gmra.mrb[8].mxu0 %vm2581_vm6, %v1615_v32 }
0x1e51   : > { %v1665_v29 = vpop.f32.mrb[8].mxu0 }
0x1e52   : > { %v1672_v35 = vadd.f32 %v1665_v29, %v2526_v33  ;;  %v1951_v46 = vpop.f32.mrb[9].mxu0 }
0x1e53   : > { %v1668_v37 = vpop.f32.mrb[10].mxu0 }
0x1e54   : > { %v1677_v40 = vrot.slane %v1672_v35, %v1433_v49  ;;  %v1684_v43 = vrot.slane %v1672_v35, 6  ;;  %v1673_v44 = vadd.f32 %v1668_v37, %v2528_v34  ;;  %v1952_v63 = vpop.f32.mrb[11].mxu0 }
0x1e56   : > { %v1690_v36 = vsel %vm1441_vm0, %v1677_v40, %v1684_v43  ;;  %v1681_v42 = vrot.slane %v1673_v44, %v1437_v55  ;;  %v1685_v45 = vrot.slane %v1673_v44, 6 }
0x1e57   : > { %v1694_v47 = vrot.slane %v1690_v36, 1  ;;  %v1703_v48 = vrot.slane %v1690_v36, 2  ;;  %v1712_v50 = vrot.slane %v1690_v36, 3  ;;  %v1721_v51 = vrot.slane %v1690_v36, 4 }
0x1e58   : > { %v1686_v33 = vsel %vm1441_vm0, %v1684_v43, %v1685_v45  ;;  %v1691_v23 = vsel %vm1441_vm0, %v1685_v45, %v1681_v42 }
0x1e59   : > { %v1695_v52 = vrot.slane %v1686_v33, 1  ;;  %v1697_v49 = vrot.slane %v1691_v23, 1  ;;  %v1704_v53 = vrot.slane %v1686_v33, 2  ;;  %v1706_v56 = vrot.slane %v1691_v23, 2 }
0x1e5a   : > { %v1713_v34 = vrot.slane %v1686_v33, 3  ;;  %v1715_v1 = vrot.slane %v1691_v23, 3  ;;  %v1722_v57 = vrot.slane %v1686_v33, 4  ;;  %v1724_v58 = vrot.slane %v1691_v23, 4 }
0x1e5b   : > { %v1696_v60 = vsel %vm1452_vm2, %v1694_v47, %v1695_v52  ;;  %v1698_v55 = vsel %vm1452_vm2, %v1695_v52, %v1697_v49  ;;  %v1705_v4 = vsel %vm1462_vm8, %v1703_v48, %v1704_v53  ;;  %v1707_v8 = vsel %vm1462_vm8, %v1704_v53, %v1706_v56 }
0x1e5c   : > { %v1701_v61 = vadd.f32 %v1696_v60, %v1690_v36  ;;  %v1702_v59 = vadd.f32 %v1698_v55, %v1686_v33  ;;  %v1714_v62 = vsel %vm1472_vm11, %v1712_v50, %v1713_v34  ;;  %v1716_v0 = vsel %vm1472_vm11, %v1713_v34, %v1715_v1 }
0x1e5d   : > { %v1723_v6 = vsel %vm1482_vm14, %v1721_v51, %v1722_v57  ;;  %v1725_v7 = vsel %vm1482_vm14, %v1722_v57, %v1724_v58 }
0x1e5e   : > { %v1710_v3 = vadd.f32 %v1705_v4, %v1701_v61  ;;  %v1711_v5 = vadd.f32 %v1707_v8, %v1702_v59 }
0x1e60   : > { %v1719_v41 = vadd.f32 %v1714_v62, %v1710_v3  ;;  %v1720_v9 = vadd.f32 %v1716_v0, %v1711_v5 }
0x1e62   : > { %v1728_v12 = vadd.f32 %v1723_v6, %v1719_v41  ;;  %v1729_v22 = vadd.f32 %v1725_v7, %v1720_v9 }
0x1e64   : > { %v1730_v19 = vmul.f32 0.2, %v1728_v12  ;;  %v1731_v13 = vmul.f32 0.2, %v1729_v22 }
0x1e66   : > { %v1732_v14 = vsub.f32 %v1672_v35, %v1730_v19  ;;  %v1733_v38 = vsub.f32 %v1673_v44, %v1731_v13 }
0x1e68   : > { %1734 = vst.msk [vmem:[%s332_s29] sm:$0xff] %vm2582_vm12, %v1732_v14 }
0x1e69   : > { %1735 = vst.msk [vmem:[%s332_s29 + $0x8] sm:$0xff] %vm2583_vm7, %v1733_v38 }
0x1e6a PF: > { %s19_s30 = sadd.s32 1, %s2024_s30  }
0x1e6b   : > { %p16_p4 = scmp.ge.s32.totalorder %s19_s30, 4  }
0x1e6d   :  { %18 = sbr.rel (!%p16_p4) target bundleno = 1 (0x1), region = 86 }

// kernel: _lambda_.8
= control target key start
LH: loop header
LB: loop body
LE: loop exit
PB: predicated region body
PF: predicated region fallthrough
CT: control target
= control target key end

     0   :  { %s2209_s17 = smov 0   ;;  %s2708_s0 = inlined_call_operand.vmem [shape: f32[2,16,32], index: 0, kind: input, shape index: {}]   ;;  %s2709_s1 = inlined_call_operand.vmem [shape: bf16[32,96], index: 1, kind: input, shape index: {}]   ;;  %s2710_s2 = inlined_call_operand.vmem [shape: f32[1,96], index: 2, kind: input, shape index: {}]   ;;  %s2711_s3 = inlined_call_operand.vmem [shape: bf16[32,32], index: 3, kind: input, shape index: {}]   ;;  %s2712_s4 = inlined_call_operand.vmem [shape: f32[1,32], index: 4, kind: input, shape index: {}]   ;;  %s2713_s5 = inlined_call_operand.vmem [shape: bf16[32,32], index: 5, kind: input, shape index: {}]   ;;  %s2714_s6 = inlined_call_operand.vmem [shape: bf16[32,32], index: 6, kind: input, shape index: {}]   ;;  %s2715_s7 = inlined_call_operand.vmem [shape: f32[16,16], index: 7, kind: input, shape index: {}]   ;;  %s2716_s8 = inlined_call_operand.vmem [shape: f32[16,16], index: 8, kind: input, shape index: {}]   ;;  %s2717_s9 = inlined_call_operand.vmem [shape: f32[1,32], index: 9, kind: input, shape index: {}]   ;;  %s2718_s10 = inlined_call_operand.vmem [shape: f32[1,32], index: 10, kind: input, shape index: {}]   ;;  %s2719_s11 = inlined_call_operand.vmem [shape: f32[2,16,32], index: 11, kind: output, shape index: {}]  }
   0x1 LB: > { %s1903_s18 = sadd.s32 4294967295, %s2142_s17   ;;  %p1907_p0 = scmp.ge.s32.totalorder %s2142_s17, 1  ;;  %s2142_s17 = sphi %s2209_s17, %s21_s17  }
   0x2   : > { %p337_p1 = scmp.lt.s32.totalorder %s2142_s17, 3 }
   0x4   : > { %p338_p2 = pnand %p1907_p0, %p337_p1 }
   0x5   : > { %v2110_v0 = vld [vmem:[%s2709_s1] sm:$0xff] (!%p338_p2)   ;;  %v2144_v1 = vmov (!%p338_p2), 0.0   ;;  %v2111_v2 = vld [vmem:[%s2709_s1 + $0x8] sm:$0xff] (!%p338_p2)   ;;  %vm2145_vm0 = vmmov (!%p338_p2), 0   ;;  %p377_p3 = scmp.lt.s32.totalorder (!%p338_p2), %s1903_s18, 1  ;;  %vm2720_vm1 = vcmask (!%p338_p2), 261120  }
   0x6   : > { %341 = sbr.rel (%p338_p2) target bundleno = 8122 (0x1fba), region = 64  ;;  %2000 = vmatprep.subr.bf16.mxu0 (!%p338_p2), %v2144_v1  ;;  %2004 = vmatprep.mubr.msk.bf16.mxu0 (!%p338_p2), %vm2145_vm0, %v2144_v1  ;;  %v2246_v6 = vld [vmem:[%s2715_s7] sm:$0xff] (!%p338_p2)  ;;  %vm468_vm2 = vcmask (!%p338_p2), 130048   ;;  %s2146_s12 = smov (!%p338_p2), 96   ;;  %v460_v16 = vld [vmem:[%s2715_s7 + $0x8] sm:$0xff] (!%p338_p2) }
   0x7   : > { %2001 = vmatpush3.bf16.msra.mxu0 (!%p338_p2), %v2110_v0  ;;  %2012 = vmatprep.mubr.msk.f32.mxu1 (!%p338_p2), %vm468_vm2, %v2246_v6  ;;  %v1912_v7 = vld [vmem:[%s2710_s2] ss:$0 sm:$0xff] (!%p338_p2)  ;;  %v462_v18 = vld [vmem:[%s2716_s8 + $0x8] sm:$0xff] (!%p338_p2)  ;;  %s2147_s21 = smov (!%p338_p2), 64  }
   0x8   : > { %2002 = vmatprep.subr.bf16.mxu0 (!%p338_p2), %v2144_v1  ;;  %v461_v17 = vld [vmem:[%s2716_s8] sm:$0xff] (!%p338_p2) }
   0xb   : > { %2003 = vmatpush3.bf16.msra.mxu0 (!%p338_p2), %v2111_v2 }
   0xc   : > { %2043 = vmatprep.subr.bf16.mxu0 (!%p338_p2), %v2144_v1 }
   0xd   : > { %s2733_s18 = smov (!%p377_p3, %s1903_s18), 1 }
   0xe   : > { %s1966_s23 = sshll.u32 %s2733_s18, 4 }
   0xf   : > { %s2235_s26 = scalar_lea.vmem %s2708_s0, %s1966_s23  ;;  %s386_s28 = scalar_lea.vmem %s2719_s11, %s1966_s23 }
  0x10   : > { %v388_v3 = vld [vmem:[%s2235_s26] sm:$0xff]  ;;  %v389_v4 = vld [vmem:[%s2235_s26 + $0x8] sm:$0xff] }
  0x11   : > { %v394_v5 = vpack.c.bf16 %v389_v4, %v388_v3 }
  0x13   : > { %2005 = vmatmul.mubr.msk.bf16.vlgmr.msra.gmra.mrb[0].mxu0 %vm2720_vm1, %v394_v5 }
  0x14   : > { %2047 = vmatprep.mubr.msk.bf16.mxu0 %vm2145_vm0, %v2144_v1 }
  0xe6   : > { %v452_v8 = vpop.f32.mrb[0].mxu0 }
  0xe7   : > { %v2006_v9 = vpop.f32.mrb[1].mxu0  ;;  %v453_v11 = vadd.f32 %v1912_v7, %v452_v8 }
  0xe8   : > { %v455_v10 = vpop.f32.mrb[2].mxu0 }
  0xe9   : > { %v456_v12 = vadd.f32 %v1912_v7, %v455_v10  ;;  %v2007_v13 = vpop.f32.mrb[3].mxu0 }
  0xeb   : > { %v2067_v14 = vpack.c.bf16 %v456_v12, %v453_v11  ;;  %v2253_v15 = vpack.i.bf16 %v456_v12, %v453_v11 }
  0xed   : > { %2101 = vrot.lane.b32.xlu0 %v2253_v15, %s2146_s12  ;;  %2068 = vmatprep.subr.bf16.mxu1 %v2067_v14 }
  0xee   : > { %2070 = vmatpush3.bf16.msra.mxu1 %v2067_v14 }
  0xef   : > { %2072 = vmatprep.subr.bf16.mxu1 %v2067_v14 }
  0xf1   : > { %2013 = vmatmul.mubr.msk.f32.vlgmr.msra.gmra.mrb[0].mxu1 %vm468_vm2, %v460_v16 }
  0xf2   : > { %2074 = vmatpush3.bf16.msra.mxu1 %v2067_v14  ;;  %2019 = vmatprep.mubr.msk.f32.mxu1 %vm468_vm2, %v461_v17 }
  0xf5   : > { %2020 = vmatmul.mubr.msk.f32.vlgmr.msra.gmra.mrb[2].mxu1 %vm468_vm2, %v462_v18 }
  0xf6   : > { %2026 = vmatprep.mubr.msk.f32.mxu1 %vm468_vm2, %v2246_v6 }
 0x15f   : > { %v2102_v19 = vpop.permute.xlu0 %2101 }
 0x160   : > { %v2104_v20 = vunpack.i.h.bf16 %v2102_v19  ;;  %v2103_v21 = vunpack.i.l.bf16 %v2102_v19 }
 0x162   : > { %v2075_v22 = vpack.c.bf16 %v2104_v20, %v2103_v21 }
 0x164   : > { %2076 = vmatprep.subr.bf16.mxu1 %v2075_v22 }
 0x165   : > { %2078 = vmatpush3.bf16.msra.mxu1 %v2075_v22 }
 0x166   : > { %2080 = vmatprep.subr.bf16.mxu1 %v2075_v22 }
 0x168   : > { %2027 = vmatmul.mubr.msk.f32.vlgmr.msra.gmra.mrb[4].mxu1 %vm468_vm2, %v460_v16 }
 0x169   : > { %2082 = vmatpush3.bf16.msra.mxu1 %v2075_v22  ;;  %2033 = vmatprep.mubr.msk.f32.mxu1 %vm468_vm2, %v461_v17 }
 0x16c   : > { %2034 = vmatmul.mubr.msk.f32.vlgmr.msra.gmra.mrb[6].mxu1 %vm468_vm2, %v462_v18 }
 0x1c4   : > { %v2014_v23 = vpop.f32.mrb[0].mxu1 }
 0x1c5   : > { %v541_v24 = vpop.f32.mrb[1].mxu1 }
 0x1c8   : > { %v2021_v25 = vpop.f32.mrb[2].mxu1 }
 0x1c9   : > { %v622_v26 = vpop.f32.mrb[3].mxu1 }
 0x23b   : > { %v2028_v27 = vpop.f32.mrb[4].mxu1 }
 0x23c   : > { %v790_v28 = vmul.f32 %v2028_v27, %v2014_v23  ;;  %v804_v29 = vmul.f32 %v2028_v27, %v2021_v25  ;;  %v705_v30 = vpop.f32.mrb[5].mxu1 }
 0x23d   : > { %v789_v31 = vmul.f32 %v705_v30, %v541_v24  ;;  %v803_v32 = vmul.f32 %v705_v30, %v622_v26 }
 0x23f   : > { %v2035_v33 = vpop.f32.mrb[6].mxu1 }
 0x240   : > { %v792_v34 = vmul.f32 %v2035_v33, %v2021_v25  ;;  %v802_v35 = vmul.f32 %v2035_v33, %v2014_v23  ;;  %v780_v36 = vpop.f32.mrb[7].mxu1 }
 0x241   : > { %v791_v37 = vmul.f32 %v780_v36, %v622_v26  ;;  %v801_v38 = vmul.f32 %v780_v36, %v541_v24 }
 0x242   : > { %v794_v39 = vadd.f32 %v792_v34, %v790_v28  ;;  %v806_v40 = vsub.f32 %v802_v35, %v804_v29 }
 0x243   : > { %v793_v41 = vadd.f32 %v791_v37, %v789_v31  ;;  %v805_v42 = vsub.f32 %v801_v38, %v803_v32 }
 0x244   : > { %v798_v43 = vsel %vm2720_vm1, %v794_v39, 0.0  ;;  %v810_v46 = vsel %vm2720_vm1, %v806_v40, 0.0 }
 0x245   : > { %799 = vadd.xlane.f32.xlu1 %v798_v43  ;;  %v795_v44 = vsel %vm2720_vm1, %v793_v41, 0.0  ;;  %v807_v45 = vsel %vm2720_vm1, %v805_v42, 0.0 }
 0x246   : > { %796 = vadd.xlane.f32.xlu0 %v795_v44 }
 0x249   : > { %808 = vadd.xlane.f32.xlu1 %v807_v45 }
 0x24d   : > { %811 = vadd.xlane.f32.xlu1 %v810_v46 }
 0x2d2   : > { %v800_v47 = vpop.xlane.xlu1 %799 }
 0x2d3   : > { %v797_v48 = vpop.xlane.xlu0 %796  ;;  %v814_v53 = vmul.f32 %v800_v47, %v460_v16 }
 0x2d4   : > { %v813_v51 = vmul.f32 %v797_v48, %v2246_v6  ;;  %v830_v6 = vlaneseq }
 0x2d6   : > { %v809_v49 = vpop.xlane.xlu1 %808  ;;  %v2285_v7 = vand.u32 127, %v830_v6 }
 0x2d7   : > { %v815_v50 = vmul.f32 %v809_v49, %v461_v17 }
 0x2d9   : > { %v817_v54 = vsub.f32 %v813_v51, %v815_v50 }
 0x2da   : > { %v812_v52 = vpop.xlane.xlu1 %811 }
 0x2db   : > { %v816_v55 = vmul.f32 %v812_v52, %v462_v18  ;;  %v819_v57 = vsel %vm468_vm2, %v817_v54, 0.0 }
 0x2dd   : > { %v818_v56 = vsub.f32 %v814_v53, %v816_v55 }
 0x2df   : > { %v820_v58 = vsel %vm468_vm2, %v818_v56, 0.0 }
 0x2e0   : > { %v821_v59 = vadd.f32 %v820_v58, %v819_v57 }
 0x2e2   : > { %v822_v60 = vrot.slane %v821_v59, 4 }
 0x2e4   : > { %v823_v61 = vadd.f32 %v822_v60, %v821_v59 }
 0x2e6   : > { %v824_v62 = vrot.slane %v823_v61, 2 }
 0x2e8   : > { %v825_v63 = vadd.f32 %v824_v62, %v823_v61 }
 0x2ea   : > { %v826_v0 = vrot.slane %v825_v63, 1 }
 0x2ec   : > { %v827_v2 = vadd.f32 %v826_v0, %v825_v63 }
 0x2ee   : > { %v828_v3 = vmul.f32 0.0625, %v827_v2 }
 0x2f0   : > { %v2280_v4 = vmul.f32 0.03125, %v828_v3 }
 0x2f2   : > { %v843_v5 = vsel %vm468_vm2, %v2280_v4, -inf }
 0x2f3   : > { %844 = vmax.xlane.f32.xlu1 %v843_v5 }
 0x380   : > { %v2287_v8 = vpop.xlane.xlu1 %844 }
 0x381   : > { %vm846_vm3 = vcmp.eq.f32.partialorder %v2280_v4, %v2287_v8 }
 0x382   : > { %v847_v9 = vsel %vm846_vm3, %v2285_v7, 16 }
 0x383   : > { %v848_v10 = vsel %vm468_vm2, %v847_v9, 2147483647 }
 0x384   : > { %v850_v11 = vshra.s32 %v848_v10, 16  ;;  %v849_v13 = vand.u32 65535, %v848_v10 }
 0x386   : > { %v852_v12 = vcvt.s32.f32 %v850_v11  ;;  %v851_v16 = vcvt.s32.f32 %v849_v13 }
 0x388   : > { %853 = vmin.xlane.f32.xlu1 %v852_v12 }
 0x415   : > { %v854_v14 = vpop.xlane.xlu1 %853 }
 0x416   : > { %vm855_vm4 = vcmp.eq.f32.partialorder %v852_v12, %v854_v14  ;;  %v860_v18 = vcvt.f32.s32 %v854_v14 }
 0x417   : > { %v856_v17 = vsel %vm855_vm4, %v851_v16, inf }
 0x418   : > { %857 = vmin.xlane.f32.xlu1 %v856_v17  ;;  %v861_v20 = vshll.u32 %v860_v18, 16 }
 0x4a5   : > { %v858_v19 = vpop.xlane.xlu1 %857 }
 0x4a6   : > { %v859_v21 = vcvt.f32.s32 %v858_v19 }
 0x4a8   : > { %v2293_v22 = vadd.s32 %v861_v20, %v859_v21 }
 0x4aa   : > { %vm863_vm5 = vcmp.eq.s32.totalorder %v2285_v7, %v2293_v22 }
 0x4ab   : > { %v865_v23 = vsel %vm863_vm5, -inf, %v2280_v4 }
 0x4ac   : > { %v866_v24 = vsel %vm468_vm2, %v865_v23, -inf }
 0x4ad   : > { %867 = vmax.xlane.f32.xlu1 %v866_v24 }
 0x53a   : > { %v868_v25 = vpop.xlane.xlu1 %867 }
 0x53b   : > { %vm869_vm6 = vcmp.eq.f32.partialorder %v865_v23, %v868_v25 }
 0x53c   : > { %v870_v26 = vsel %vm869_vm6, %v2285_v7, 16 }
 0x53d   : > { %v871_v27 = vsel %vm468_vm2, %v870_v26, 2147483647 }
 0x53e   : > { %v873_v28 = vshra.s32 %v871_v27, 16  ;;  %v872_v30 = vand.u32 65535, %v871_v27 }
 0x540   : > { %v875_v29 = vcvt.s32.f32 %v873_v28  ;;  %v874_v32 = vcvt.s32.f32 %v872_v30 }
 0x542   : > { %876 = vmin.xlane.f32.xlu1 %v875_v29 }
 0x5cf   : > { %v877_v31 = vpop.xlane.xlu1 %876 }
 0x5d0   : > { %vm878_vm7 = vcmp.eq.f32.partialorder %v875_v29, %v877_v31  ;;  %v883_v34 = vcvt.f32.s32 %v877_v31 }
 0x5d1   : > { %v879_v33 = vsel %vm878_vm7, %v874_v32, inf }
 0x5d2   : > { %880 = vmin.xlane.f32.xlu1 %v879_v33  ;;  %v884_v36 = vshll.u32 %v883_v34, 16 }
 0x65f   : > { %v881_v35 = vpop.xlane.xlu1 %880 }
 0x660   : > { %v882_v37 = vcvt.f32.s32 %v881_v35 }
 0x662   : > { %v2304_v38 = vadd.s32 %v884_v36, %v882_v37 }
 0x664   : > { %vm886_vm8 = vcmp.eq.s32.totalorder %v2285_v7, %v2304_v38 }
 0x665   : > { %v888_v39 = vsel %vm886_vm8, -inf, %v865_v23 }
 0x666   : > { %v889_v40 = vsel %vm468_vm2, %v888_v39, -inf }
 0x667   : > { %890 = vmax.xlane.f32.xlu0 %v889_v40 }
 0x6f4   : > { %v891_v41 = vpop.xlane.xlu0 %890 }
 0x6f5   : > { %vm892_vm9 = vcmp.eq.f32.partialorder %v888_v39, %v891_v41 }
 0x6f6   : > { %v893_v42 = vsel %vm892_vm9, %v2285_v7, 16 }
 0x6f7   : > { %v894_v43 = vsel %vm468_vm2, %v893_v42, 2147483647 }
 0x6f8   : > { %v896_v44 = vshra.s32 %v894_v43, 16  ;;  %v895_v46 = vand.u32 65535, %v894_v43 }
 0x6fa   : > { %v898_v45 = vcvt.s32.f32 %v896_v44  ;;  %v897_v48 = vcvt.s32.f32 %v895_v46 }
 0x6fc   : > { %899 = vmin.xlane.f32.xlu1 %v898_v45 }
 0x789   : > { %v900_v47 = vpop.xlane.xlu1 %899 }
 0x78a   : > { %vm901_vm10 = vcmp.eq.f32.partialorder %v898_v45, %v900_v47  ;;  %v906_v50 = vcvt.f32.s32 %v900_v47 }
 0x78b   : > { %v902_v49 = vsel %vm901_vm10, %v897_v48, inf }
 0x78c   : > { %903 = vmin.xlane.f32.xlu0 %v902_v49  ;;  %v907_v52 = vshll.u32 %v906_v50, 16 }
 0x819   : > { %v904_v51 = vpop.xlane.xlu0 %903 }
 0x81a   : > { %v905_v53 = vcvt.f32.s32 %v904_v51 }
 0x81c   : > { %v2314_v54 = vadd.s32 %v907_v52, %v905_v53 }
 0x81e   : > { %vm909_vm11 = vcmp.eq.s32.totalorder %v2285_v7, %v2314_v54 }
 0x81f   : > { %v911_v55 = vsel %vm909_vm11, -inf, %v888_v39 }
 0x820   : > { %v912_v56 = vsel %vm468_vm2, %v911_v55, -inf }
 0x821   : > { %913 = vmax.xlane.f32.xlu1 %v912_v56 }
 0x8ae   : > { %v914_v57 = vpop.xlane.xlu1 %913 }
 0x8af   : > { %vm915_vm12 = vcmp.eq.f32.partialorder %v911_v55, %v914_v57 }
 0x8b0   : > { %v916_v58 = vsel %vm915_vm12, %v2285_v7, 16 }
 0x8b1   : > { %v917_v59 = vsel %vm468_vm2, %v916_v58, 2147483647 }
 0x8b2   : > { %v919_v60 = vshra.s32 %v917_v59, 16  ;;  %v918_v62 = vand.u32 65535, %v917_v59 }
 0x8b4   : > { %v921_v61 = vcvt.s32.f32 %v919_v60  ;;  %v920_v0 = vcvt.s32.f32 %v918_v62 }
 0x8b6   : > { %922 = vmin.xlane.f32.xlu0 %v921_v61 }
 0x943   : > { %v923_v63 = vpop.xlane.xlu0 %922 }
 0x944   : > { %vm924_vm13 = vcmp.eq.f32.partialorder %v921_v61, %v923_v63  ;;  %v929_v3 = vcvt.f32.s32 %v923_v63 }
 0x945   : > { %v925_v2 = vsel %vm924_vm13, %v920_v0, inf }
 0x946   : > { %926 = vmin.xlane.f32.xlu1 %v925_v2  ;;  %v930_v9 = vshll.u32 %v929_v3, 16 }
 0x9d3   : > { %v927_v5 = vpop.xlane.xlu1 %926 }
 0x9d4   : > { %v928_v10 = vcvt.f32.s32 %v927_v5 }
 0x9d6   : > { %v2324_v11 = vadd.s32 %v930_v9, %v928_v10 }
 0x9d8   : > { %vm932_vm14 = vcmp.eq.s32.totalorder %v2285_v7, %v2324_v11 }
 0x9d9   : > { %v934_v12 = vsel %vm932_vm14, -inf, %v911_v55 }
 0x9da   : > { %v935_v13 = vsel %vm468_vm2, %v934_v12, -inf }
 0x9db   : > { %936 = vmax.xlane.f32.xlu0 %v935_v13 }
 0xa68   : > { %v937_v14 = vpop.xlane.xlu0 %936 }
 0xa69   : > { %vm938_vm15 = vcmp.eq.f32.partialorder %v934_v12, %v937_v14 }
 0xa6a   : > { %v939_v16 = vsel %vm938_vm15, %v2285_v7, 16 }
 0xa6b   : > { %v940_v17 = vsel %vm468_vm2, %v939_v16, 2147483647 }
 0xa6c   : > { %v942_v18 = vshra.s32 %v940_v17, 16  ;;  %v941_v20 = vand.u32 65535, %v940_v17 }
 0xa6e   : > { %v944_v19 = vcvt.s32.f32 %v942_v18  ;;  %v943_v23 = vcvt.s32.f32 %v941_v20 }
 0xa70   : > { %945 = vmin.xlane.f32.xlu1 %v944_v19 }
 0xafd   : > { %v946_v21 = vpop.xlane.xlu1 %945 }
 0xafe   : > { %vm947_vm3 = vcmp.eq.f32.partialorder %v944_v19, %v946_v21  ;;  %v952_v25 = vcvt.f32.s32 %v946_v21 }
 0xaff   : > { %v948_v24 = vsel %vm947_vm3, %v943_v23, inf }
 0xb00   : > { %949 = vmin.xlane.f32.xlu0 %v948_v24  ;;  %v953_v27 = vshll.u32 %v952_v25, 16 }
 0xb8d   : > { %v950_v26 = vpop.xlane.xlu0 %949 }
 0xb8e   : > { %v951_v28 = vcvt.f32.s32 %v950_v26 }
 0xb90   : > { %v2334_v29 = vadd.s32 %v953_v27, %v951_v28 }
 0xb92   : > { %vm955_vm4 = vcmp.eq.s32.totalorder %v2285_v7, %v2334_v29 }
 0xb93   : > { %v957_v30 = vsel %vm955_vm4, -inf, %v934_v12 }
 0xb94   : > { %v958_v31 = vsel %vm468_vm2, %v957_v30, -inf }
 0xb95   : > { %959 = vmax.xlane.f32.xlu1 %v958_v31 }
 0xc22   : > { %v960_v32 = vpop.xlane.xlu1 %959 }
 0xc23   : > { %vm961_vm6 = vcmp.eq.f32.partialorder %v957_v30, %v960_v32 }
 0xc24   : > { %v962_v33 = vsel %vm961_vm6, %v2285_v7, 16 }
 0xc25   : > { %v963_v34 = vsel %vm468_vm2, %v962_v33, 2147483647 }
 0xc26   : > { %v965_v35 = vshra.s32 %v963_v34, 16  ;;  %v964_v37 = vand.u32 65535, %v963_v34 }
 0xc28   : > { %v967_v36 = vcvt.s32.f32 %v965_v35  ;;  %v966_v40 = vcvt.s32.f32 %v964_v37 }
 0xc2a   : > { %968 = vmin.xlane.f32.xlu0 %v967_v36 }
 0xcb7   : > { %v969_v39 = vpop.xlane.xlu0 %968 }
 0xcb8   : > { %vm970_vm7 = vcmp.eq.f32.partialorder %v967_v36, %v969_v39  ;;  %v975_v42 = vcvt.f32.s32 %v969_v39 }
 0xcb9   : > { %v971_v41 = vsel %vm970_vm7, %v966_v40, inf }
 0xcba   : > { %972 = vmin.xlane.f32.xlu1 %v971_v41  ;;  %v976_v44 = vshll.u32 %v975_v42, 16 }
 0xd47   : > { %v973_v43 = vpop.xlane.xlu1 %972 }
 0xd48   : > { %v974_v45 = vcvt.f32.s32 %v973_v43 }
 0xd4a   : > { %v2344_v46 = vadd.s32 %v976_v44, %v974_v45 }
 0xd4c   : > { %vm978_vm9 = vcmp.eq.s32.totalorder %v2285_v7, %v2344_v46 }
 0xd4d   : > { %v980_v47 = vsel %vm978_vm9, -inf, %v957_v30 }
 0xd4e   : > { %v981_v48 = vsel %vm468_vm2, %v980_v47, -inf }
 0xd4f   : > { %982 = vmax.xlane.f32.xlu0 %v981_v48 }
 0xddc   : > { %v983_v49 = vpop.xlane.xlu0 %982 }
 0xddd   : > { %vm984_vm10 = vcmp.eq.f32.partialorder %v980_v47, %v983_v49 }
 0xdde   : > { %v985_v50 = vsel %vm984_vm10, %v2285_v7, 16 }
 0xddf   : > { %v986_v51 = vsel %vm468_vm2, %v985_v50, 2147483647 }
 0xde0   : > { %v988_v52 = vshra.s32 %v986_v51, 16  ;;  %v987_v55 = vand.u32 65535, %v986_v51 }
 0xde2   : > { %v990_v53 = vcvt.s32.f32 %v988_v52  ;;  %v989_v57 = vcvt.s32.f32 %v987_v55 }
 0xde4   : > { %991 = vmin.xlane.f32.xlu1 %v990_v53 }
 0xe71   : > { %v992_v56 = vpop.xlane.xlu1 %991 }
 0xe72   : > { %vm993_vm12 = vcmp.eq.f32.partialorder %v990_v53, %v992_v56  ;;  %v998_v59 = vcvt.f32.s32 %v992_v56 }
 0xe73   : > { %v994_v58 = vsel %vm993_vm12, %v989_v57, inf }
 0xe74   : > { %995 = vmin.xlane.f32.xlu0 %v994_v58  ;;  %v999_v61 = vshll.u32 %v998_v59, 16 }
 0xf01   : > { %v996_v60 = vpop.xlane.xlu0 %995 }
 0xf02   : > { %v997_v62 = vcvt.f32.s32 %v996_v60 }
 0xf04   : > { %v2354_v63 = vadd.s32 %v999_v61, %v997_v62 }
 0xf06   : > { %vm1001_vm13 = vcmp.eq.s32.totalorder %v2285_v7, %v2354_v63 }
 0xf07   : > { %v1003_v0 = vsel %vm1001_vm13, -inf, %v980_v47 }
 0xf08   : > { %v1004_v2 = vsel %vm468_vm2, %v1003_v0, -inf }
 0xf09   : > { %1005 = vmax.xlane.f32.xlu1 %v1004_v2 }
 0xf96   : > { %v1006_v3 = vpop.xlane.xlu1 %1005 }
 0xf97   : > { %vm1007_vm15 = vcmp.eq.f32.partialorder %v1003_v0, %v1006_v3 }
 0xf98   : > { %v1008_v5 = vsel %vm1007_vm15, %v2285_v7, 16 }
 0xf99   : > { %v1009_v9 = vsel %vm468_vm2, %v1008_v5, 2147483647 }
 0xf9a   : > { %v1011_v10 = vshra.s32 %v1009_v9, 16  ;;  %v1010_v13 = vand.u32 65535, %v1009_v9 }
 0xf9c   : > { %v1013_v12 = vcvt.s32.f32 %v1011_v10  ;;  %v1012_v16 = vcvt.s32.f32 %v1010_v13 }
 0xf9e   : > { %1014 = vmin.xlane.f32.xlu0 %v1013_v12 }
0x102b   : > { %v1015_v14 = vpop.xlane.xlu0 %1014 }
0x102c   : > { %vm1016_vm3 = vcmp.eq.f32.partialorder %v1013_v12, %v1015_v14  ;;  %v1021_v18 = vcvt.f32.s32 %v1015_v14 }
0x102d   : > { %v1017_v17 = vsel %vm1016_vm3, %v1012_v16, inf }
0x102e   : > { %1018 = vmin.xlane.f32.xlu1 %v1017_v17  ;;  %v1022_v20 = vshll.u32 %v1021_v18, 16 }
0x10bb   : > { %v1019_v19 = vpop.xlane.xlu1 %1018 }
0x10bc   : > { %v1020_v21 = vcvt.f32.s32 %v1019_v19 }
0x10be   : > { %v2364_v23 = vadd.s32 %v1022_v20, %v1020_v21 }
0x10c0   : > { %vm1024_vm6 = vcmp.eq.s32.totalorder %v2285_v7, %v2364_v23 }
0x10c1   : > { %v1026_v24 = vsel %vm1024_vm6, -inf, %v1003_v0 }
0x10c2   : > { %v1027_v25 = vsel %vm468_vm2, %v1026_v24, -inf }
0x10c3   : > { %1028 = vmax.xlane.f32.xlu0 %v1027_v25 }
0x1150   : > { %v1029_v26 = vpop.xlane.xlu0 %1028 }
0x1151   : > { %vm1030_vm7 = vcmp.eq.f32.partialorder %v1026_v24, %v1029_v26 }
0x1152   : > { %v1031_v27 = vsel %vm1030_vm7, %v2285_v7, 16 }
0x1153   : > { %v1032_v28 = vsel %vm468_vm2, %v1031_v27, 2147483647 }
0x1154   : > { %v1034_v30 = vshra.s32 %v1032_v28, 16  ;;  %v1033_v32 = vand.u32 65535, %v1032_v28 }
0x1156   : > { %v1036_v31 = vcvt.s32.f32 %v1034_v30  ;;  %v1035_v34 = vcvt.s32.f32 %v1033_v32 }
0x1158   : > { %1037 = vmin.xlane.f32.xlu1 %v1036_v31 }
0x11e5   : > { %v1038_v33 = vpop.xlane.xlu1 %1037 }
0x11e6   : > { %vm1039_vm10 = vcmp.eq.f32.partialorder %v1036_v31, %v1038_v33  ;;  %v1044_v36 = vcvt.f32.s32 %v1038_v33 }
0x11e7   : > { %v1040_v35 = vsel %vm1039_vm10, %v1035_v34, inf }
0x11e8   : > { %1041 = vmin.xlane.f32.xlu0 %v1040_v35  ;;  %v1045_v39 = vshll.u32 %v1044_v36, 16 }
0x1275   : > { %v1042_v37 = vpop.xlane.xlu0 %1041 }
0x1276   : > { %v1043_v40 = vcvt.f32.s32 %v1042_v37 }
0x1278   : > { %v2374_v41 = vadd.s32 %v1045_v39, %v1043_v40 }
0x127a   : > { %vm1047_vm12 = vcmp.eq.s32.totalorder %v2285_v7, %v2374_v41 }
0x127b   : > { %v1049_v42 = vsel %vm1047_vm12, -inf, %v1026_v24 }
0x127c   : > { %v1050_v43 = vsel %vm468_vm2, %v1049_v42, -inf }
0x127d   : > { %1051 = vmax.xlane.f32.xlu1 %v1050_v43 }
0x130a   : > { %v1052_v44 = vpop.xlane.xlu1 %1051 }
0x130b   : > { %vm1053_vm15 = vcmp.eq.f32.partialorder %v1049_v42, %v1052_v44 }
0x130c   : > { %v1054_v45 = vsel %vm1053_vm15, %v2285_v7, 16 }
0x130d   : > { %v1055_v47 = vsel %vm468_vm2, %v1054_v45, 2147483647 }
0x130e   : > { %v1057_v48 = vshra.s32 %v1055_v47, 16  ;;  %v1056_v50 = vand.u32 65535, %v1055_v47 }
0x1310   : > { %v1059_v49 = vcvt.s32.f32 %v1057_v48  ;;  %v1058_v52 = vcvt.s32.f32 %v1056_v50 }
0x1312   : > { %1060 = vmin.xlane.f32.xlu0 %v1059_v49 }
0x139f   : > { %v1061_v51 = vpop.xlane.xlu0 %1060 }
0x13a0   : > { %vm1062_vm3 = vcmp.eq.f32.partialorder %v1059_v49, %v1061_v51  ;;  %v1067_v55 = vcvt.f32.s32 %v1061_v51 }
0x13a1   : > { %v1063_v53 = vsel %vm1062_vm3, %v1058_v52, inf }
0x13a2   : > { %1064 = vmin.xlane.f32.xlu1 %v1063_v53  ;;  %v1068_v57 = vshll.u32 %v1067_v55, 16  ;;  %v1141_v53 = vsub.f32 %v2280_v4, %v2287_v8 }
0x13a4   : > { %v1142_v55 = vmul.f32 1.442695, %v1141_v53 }
0x13a6   : > { %2118 = vpow2.f32 %v1142_v55 }
0x142f   : > { %v1065_v56 = vpop.xlane.xlu1 %1064 }
0x1430   : > { %v1066_v58 = vcvt.f32.s32 %v1065_v56  ;;  %v864_v56 = vsel %vm863_vm5, 1.0, %v2144_v1 }
0x1432   : > { %v2384_v59 = vadd.s32 %v1068_v57, %v1066_v58  ;;  %v887_v57 = vsel %vm886_vm8, 1.0, %v864_v56 }
0x1433   : > { %v910_v58 = vsel %vm909_vm11, 1.0, %v887_v57 }
0x1434   : > { %vm1070_vm7 = vcmp.eq.s32.totalorder %v2285_v7, %v2384_v59 }
0x1435   : > { %v1072_v60 = vsel %vm1070_vm7, -inf, %v1049_v42 }
0x1436   : > { %v1073_v61 = vsel %vm468_vm2, %v1072_v60, -inf }
0x1437   : > { %1074 = vmax.xlane.f32.xlu0 %v1073_v61 }
0x14c4   : > { %v1075_v62 = vpop.xlane.xlu0 %1074 }
0x14c5   : > { %vm1076_vm10 = vcmp.eq.f32.partialorder %v1072_v60, %v1075_v62 }
0x14c6   : > { %v1077_v0 = vsel %vm1076_vm10, %v2285_v7, 16 }
0x14c7   : > { %v1078_v2 = vsel %vm468_vm2, %v1077_v0, 2147483647 }
0x14c8   : > { %v1080_v3 = vshra.s32 %v1078_v2, 16  ;;  %v1079_v9 = vand.u32 65535, %v1078_v2 }
0x14ca   : > { %v1082_v5 = vcvt.s32.f32 %v1080_v3  ;;  %v1081_v12 = vcvt.s32.f32 %v1079_v9 }
0x14cc   : > { %1083 = vmin.xlane.f32.xlu1 %v1082_v5 }
0x1559   : > { %v1084_v10 = vpop.xlane.xlu1 %1083 }
0x155a   : > { %vm1085_vm15 = vcmp.eq.f32.partialorder %v1082_v5, %v1084_v10  ;;  %v1090_v14 = vcvt.f32.s32 %v1084_v10 }
0x155b   : > { %v1086_v13 = vsel %vm1085_vm15, %v1081_v12, inf }
0x155c   : > { %1087 = vmin.xlane.f32.xlu0 %v1086_v13  ;;  %v1091_v17 = vshll.u32 %v1090_v14, 16 }
0x15e9   : > { %v1088_v16 = vpop.xlane.xlu0 %1087 }
0x15ea   : > { %v1089_v18 = vcvt.f32.s32 %v1088_v16  ;;  %v2119_v16 = vpop.eup %2118 }
0x15ec   : > { %v2394_v19 = vadd.s32 %v1091_v17, %v1089_v18 }
0x15ee   : > { %vm1093_vm3 = vcmp.eq.s32.totalorder %v2285_v7, %v2394_v19 }
0x15ef   : > { %v1095_v20 = vsel %vm1093_vm3, -inf, %v1072_v60  ;;  %v933_v60 = vsel %vm932_vm14, 1.0, %v910_v58  ;;  %v2112_v58 = vld [vmem:[%s2711_s3] sm:$0xff]  }
0x15f0   : > { %v1096_v21 = vsel %vm468_vm2, %v1095_v20, -inf  ;;  %v956_v8 = vsel %vm955_vm4, 1.0, %v933_v60  ;;  %2044 = vmatpush3.bf16.msra.mxu0 %v2112_v58  ;;  %v2519_v60 = vshrl.u32 %v830_v6, 7 }
0x15f1   : > { %1097 = vmax.xlane.f32.xlu1 %v1096_v21  ;;  %v979_v61 = vsel %vm978_vm9, 1.0, %v956_v8  ;;  %2045 = vmatprep.subr.bf16.mxu0 %v2144_v1 }
0x15f2   : > { %v1002_v62 = vsel %vm1001_vm13, 1.0, %v979_v61  ;;  %v835_v8 = vsub.s32 %v2285_v7, %v2519_v60 }
0x15f3   : > { %v1025_v2 = vsel %vm1024_vm6, 1.0, %v1002_v62 }
0x15f4   : > { %v1048_v9 = vsel %vm1047_vm12, 1.0, %v1025_v2  ;;  %v839_v62 = vadd.s32 16, %v835_v8 }
0x15f5   : > { %v1071_v12 = vsel %vm1070_vm7, 1.0, %v1048_v9 }
0x15f6   : > { %v1094_v13 = vsel %vm1093_vm3, 1.0, %v1071_v12 }
0x167e   : > { %v1098_v24 = vpop.xlane.xlu1 %1097 }
0x167f   : > { %vm1099_vm10 = vcmp.eq.f32.partialorder %v1095_v20, %v1098_v24 }
0x1680   : > { %v1100_v25 = vsel %vm1099_vm10, %v2285_v7, 16 }
0x1681   : > { %v1101_v26 = vsel %vm468_vm2, %v1100_v25, 2147483647 }
0x1682   : > { %v1103_v27 = vshra.s32 %v1101_v26, 16  ;;  %v1102_v30 = vand.u32 65535, %v1101_v26 }
0x1684   : > { %v1105_v28 = vcvt.s32.f32 %v1103_v27  ;;  %v1104_v32 = vcvt.s32.f32 %v1102_v30 }
0x1686   : > { %1106 = vmin.xlane.f32.xlu0 %v1105_v28 }
0x1713   : > { %v1107_v31 = vpop.xlane.xlu0 %1106 }
0x1714   : > { %vm1108_vm15 = vcmp.eq.f32.partialorder %v1105_v28, %v1107_v31  ;;  %v1113_v34 = vcvt.f32.s32 %v1107_v31 }
0x1715   : > { %v1109_v33 = vsel %vm1108_vm15, %v1104_v32, inf }
0x1716   : > { %1110 = vmin.xlane.f32.xlu1 %v1109_v33  ;;  %v1114_v36 = vshll.u32 %v1113_v34, 16 }
0x17a3   : > { %v1111_v35 = vpop.xlane.xlu1 %1110 }
0x17a4   : > { %v1112_v37 = vcvt.f32.s32 %v1111_v35 }
0x17a6   : > { %v2404_v39 = vadd.s32 %v1114_v36, %v1112_v37 }
0x17a8   : > { %vm1116_vm10 = vcmp.eq.s32.totalorder %v2285_v7, %v2404_v39 }
0x17a9   : > { %v1118_v40 = vsel %vm1116_vm10, -inf, %v1095_v20  ;;  %v1117_v14 = vsel %vm1116_vm10, 1.0, %v1094_v13 }
0x17aa   : > { %v1119_v42 = vsel %vm468_vm2, %v1118_v40, -inf }
0x17ab   : > { %1120 = vmax.xlane.f32.xlu0 %v1119_v42 }
0x1838   : > { %v1121_v43 = vpop.xlane.xlu0 %1120 }
0x1839   : > { %vm1122_vm1 = vcmp.eq.f32.partialorder %v1118_v40, %v1121_v43 }
0x183a   : > { %v1123_v44 = vsel %vm1122_vm1, %v2285_v7, 16 }
0x183b   : > { %v1124_v45 = vsel %vm468_vm2, %v1123_v44, 2147483647 }
0x183c   : > { %v1126_v47 = vshra.s32 %v1124_v45, 16  ;;  %v1125_v49 = vand.u32 65535, %v1124_v45 }
0x183e   : > { %v1128_v48 = vcvt.s32.f32 %v1126_v47  ;;  %v1127_v51 = vcvt.s32.f32 %v1125_v49 }
0x1840   : > { %1129 = vmin.xlane.f32.xlu1 %v1128_v48 }
0x18cd   : > { %v1130_v50 = vpop.xlane.xlu1 %1129 }
0x18ce   : > { %vm1131_vm15 = vcmp.eq.f32.partialorder %v1128_v48, %v1130_v50  ;;  %v1136_v4 = vcvt.f32.s32 %v1130_v50 }
0x18cf   : > { %v1132_v52 = vsel %vm1131_vm15, %v1127_v51, inf }
0x18d0   : > { %1133 = vmin.xlane.f32.xlu0 %v1132_v52  ;;  %v1137_v3 = vshll.u32 %v1136_v4, 16  ;;  %v834_v4 = vadd.s32 8, %v2519_v60 }
0x18d2   : > { %v836_v61 = vsub.s32 %v2285_v7, %v834_v4 }
0x195d   : > { %v1134_v0 = vpop.xlane.xlu0 %1133 }
0x195e   : > { %v1135_v5 = vcvt.f32.s32 %v1134_v0  ;;  %v840_v0 = vadd.s32 16, %v836_v61 }
0x1960   : > { %v2444_v10 = vadd.s32 %v1137_v3, %v1135_v5 }
0x1962   : > { %vm1139_vm1 = vcmp.eq.s32.totalorder %v2285_v7, %v2444_v10 }
0x1963   : > { %v1140_v17 = vsel %vm1139_vm1, 1.0, %v1117_v14 }
0x1964   : > { %v1144_v18 = vmul.f32 %v2119_v16, %v1140_v17 }
0x1966   : > { %v1145_v20 = vsel %vm468_vm2, %v1144_v18, 0.0 }
0x1967   : > { %1146 = vadd.xlane.f32.xlu1 %v1145_v20 }
0x19f4   : > { %v1147_v21 = vpop.xlane.xlu1 %1146 }
0x19f5   : > { %2120 = vrcp.f32 %v1147_v21 }
0x19ff   : > { %v2121_v24 = vpop.eup %2120 }
0x1a00   : > { %v1150_v25 = vmul.f32 %v2121_v24, %v1144_v18 }
0x1a02   : > { %v1165_v26 = vsel %vm886_vm8, %v1150_v25, 0.0  ;;  %v1151_v27 = vsel %vm863_vm5, %v1150_v25, 0.0  ;;  %v1193_v31 = vsel %vm932_vm14, %v1150_v25, 0.0  ;;  %v1179_v32 = vsel %vm909_vm11, %v1150_v25, 0.0 }
0x1a03   : > { %v1166_v28 = vsel %vm468_vm2, %v1165_v26, 0.0  ;;  %v1152_v30 = vsel %vm468_vm2, %v1151_v27, 0.0  ;;  %v1194_v33 = vsel %vm468_vm2, %v1193_v31, 0.0  ;;  %v1180_v34 = vsel %vm468_vm2, %v1179_v32, 0.0 }
0x1a04   : > { %1167 = vadd.xlane.f32.xlu1 %v1166_v28  ;;  %1153 = vadd.xlane.f32.xlu0 %v1152_v30  ;;  %v1221_v35 = vsel %vm978_vm9, %v1150_v25, 0.0  ;;  %v1207_v36 = vsel %vm955_vm4, %v1150_v25, 0.0  ;;  %v1249_v42 = vsel %vm1024_vm6, %v1150_v25, 0.0  ;;  %v1235_v43 = vsel %vm1001_vm13, %v1150_v25, 0.0 }
0x1a05   : > { %v1222_v37 = vsel %vm468_vm2, %v1221_v35, 0.0  ;;  %v1208_v40 = vsel %vm468_vm2, %v1207_v36, 0.0  ;;  %v1250_v44 = vsel %vm468_vm2, %v1249_v42, 0.0  ;;  %v1236_v45 = vsel %vm468_vm2, %v1235_v43, 0.0 }
0x1a06   : > { %v1277_v47 = vsel %vm1070_vm7, %v1150_v25, 0.0  ;;  %v1263_v48 = vsel %vm1047_vm12, %v1150_v25, 0.0  ;;  %v1305_v51 = vsel %vm1116_vm10, %v1150_v25, 0.0  ;;  %v1291_v52 = vsel %vm1093_vm3, %v1150_v25, 0.0 }
0x1a07   : > { %v1278_v49 = vsel %vm468_vm2, %v1277_v47, 0.0  ;;  %v1264_v50 = vsel %vm468_vm2, %v1263_v48, 0.0  ;;  %v1306_v53 = vsel %vm468_vm2, %v1305_v51, 0.0  ;;  %v1292_v55 = vsel %vm468_vm2, %v1291_v52, 0.0 }
0x1a08   : > { %1195 = vadd.xlane.f32.xlu1 %v1194_v33  ;;  %1181 = vadd.xlane.f32.xlu0 %v1180_v34  ;;  %v1319_v56 = vsel %vm1139_vm1, %v1150_v25, 0.0  ;;  %vm837_vm5 = vcmp.ge.s32.totalorder %v835_v8, 0  ;;  %vm838_vm8 = vcmp.ge.s32.totalorder %v836_v61, 0 }
0x1a09   : > { %v1320_v57 = vsel %vm468_vm2, %v1319_v56, 0.0  ;;  %v2527_v2 = vsel %vm838_vm8, %v836_v61, %v840_v0 }
0x1a0a   : > { %vm1156_vm14 = vcmp.eq.s32.totalorder %v2527_v2, %v2293_v22  ;;  %vm1170_vm9 = vcmp.eq.s32.totalorder %v2527_v2, %v2304_v38  ;;  %vm1184_vm6 = vcmp.eq.s32.totalorder %v2527_v2, %v2314_v54  ;;  %vm1198_vm7 = vcmp.eq.s32.totalorder %v2527_v2, %v2324_v11 }
0x1a0b   : > { %v1925_v7 = vsel %vm1156_vm14, 1.0, %v2144_v1  ;;  %v1927_v5 = vsel %vm1170_vm9, 1.0, %v2144_v1  ;;  %v1929_v21 = vsel %vm1184_vm6, 1.0, %v2144_v1  ;;  %vm1212_vm10 = vcmp.eq.s32.totalorder %v2527_v2, %v2334_v29 }
0x1a0c   : > { %1223 = vadd.xlane.f32.xlu1 %v1222_v37  ;;  %1209 = vadd.xlane.f32.xlu0 %v1208_v40  ;;  %v1931_v27 = vsel %vm1198_vm7, 1.0, %v2144_v1  ;;  %vm1226_vm1 = vcmp.eq.s32.totalorder %v2527_v2, %v2344_v46  ;;  %v1933_v34 = vsel %vm1212_vm10, 1.0, %v2144_v1  ;;  %vm1240_vm8 = vcmp.eq.s32.totalorder %v2527_v2, %v2354_v63 }
0x1a0d   : > { %vm1254_vm14 = vcmp.eq.s32.totalorder %v2527_v2, %v2364_v23  ;;  %vm1268_vm9 = vcmp.eq.s32.totalorder %v2527_v2, %v2374_v41  ;;  %vm1282_vm6 = vcmp.eq.s32.totalorder %v2527_v2, %v2384_v59  ;;  %vm1296_vm7 = vcmp.eq.s32.totalorder %v2527_v2, %v2394_v19 }
0x1a0e   : > { %v1941_v58 = vsel %vm1268_vm9, 1.0, %v2144_v1  ;;  %vm1310_vm10 = vcmp.eq.s32.totalorder %v2527_v2, %v2404_v39 }
0x1a10   : > { %1251 = vadd.xlane.f32.xlu1 %v1250_v44  ;;  %1237 = vadd.xlane.f32.xlu0 %v1236_v45  ;;  %v1937_v44 = vsel %vm1240_vm8, 1.0, %v2144_v1  ;;  %vm1516_vm8 = vcmask 1045504  }
0x1a14   : > { %1279 = vadd.xlane.f32.xlu1 %v1278_v49  ;;  %1265 = vadd.xlane.f32.xlu0 %v1264_v50 }
0x1a18   : > { %1307 = vadd.xlane.f32.xlu1 %v1306_v53  ;;  %1293 = vadd.xlane.f32.xlu0 %v1292_v55 }
0x1a1c   : > { %1321 = vadd.xlane.f32.xlu0 %v1320_v57 }
0x1a29   : > { %2106 = vrot.lane.b32.xlu1 %v2253_v15, %s2147_s21  ;;  %v2525_v15 = vsel %vm837_vm5, %v835_v8, %v839_v62 }
0x1a2a   : > { %vm1155_vm11 = vcmp.eq.s32.totalorder %v2525_v15, %v2293_v22  ;;  %vm1169_vm4 = vcmp.eq.s32.totalorder %v2525_v15, %v2304_v38  ;;  %vm1183_vm13 = vcmp.eq.s32.totalorder %v2525_v15, %v2314_v54  ;;  %vm1197_vm12 = vcmp.eq.s32.totalorder %v2525_v15, %v2324_v11 }
0x1a2b   : > { %v1924_v6 = vsel %vm1155_vm11, 1.0, %v2144_v1  ;;  %v1926_v3 = vsel %vm1169_vm4, 1.0, %v2144_v1  ;;  %v1928_v20 = vsel %vm1183_vm13, 1.0, %v2144_v1  ;;  %vm1211_vm3 = vcmp.eq.s32.totalorder %v2525_v15, %v2334_v29 }
0x1a2c   : > { %v1930_v26 = vsel %vm1197_vm12, 1.0, %v2144_v1  ;;  %vm1225_vm15 = vcmp.eq.s32.totalorder %v2525_v15, %v2344_v46  ;;  %v1932_v33 = vsel %vm1211_vm3, 1.0, %v2144_v1  ;;  %vm1239_vm5 = vcmp.eq.s32.totalorder %v2525_v15, %v2354_v63 }
0x1a2d   : > { %v1934_v35 = vsel %vm1225_vm15, 1.0, %v2144_v1  ;;  %v1935_v46 = vsel %vm1226_vm1, 1.0, %v2144_v1  ;;  %vm1253_vm11 = vcmp.eq.s32.totalorder %v2525_v15, %v2364_v23  ;;  %v1936_v43 = vsel %vm1239_vm5, 1.0, %v2144_v1 }
0x1a2e   : > { %vm1267_vm4 = vcmp.eq.s32.totalorder %v2525_v15, %v2374_v41  ;;  %v1938_v51 = vsel %vm1253_vm11, 1.0, %v2144_v1  ;;  %v1939_v23 = vsel %vm1254_vm14, 1.0, %v2144_v1  ;;  %vm1281_vm13 = vcmp.eq.s32.totalorder %v2525_v15, %v2384_v59 }
0x1a2f   : > { %v1940_v57 = vsel %vm1267_vm4, 1.0, %v2144_v1  ;;  %vm1295_vm12 = vcmp.eq.s32.totalorder %v2525_v15, %v2394_v19  ;;  %vm1309_vm3 = vcmp.eq.s32.totalorder %v2525_v15, %v2404_v39  ;;  %vm1323_vm15 = vcmp.eq.s32.totalorder %v2525_v15, %v2444_v10 }
0x1a30   : > { %vm1324_vm1 = vcmp.eq.s32.totalorder %v2527_v2, %v2444_v10  ;;  %v1947_v39 = vsel %vm1310_vm10, 1.0, %v2144_v1  ;;  %vm2721_vm5 = vcmask 261120   ;;  %vm1526_vm11 = vcmask 1044480  }
0x1a31   : > { %v1949_v15 = vsel %vm1324_vm1, 1.0, %v2144_v1  ;;  %vm1536_vm14 = vcmask 1043456   ;;  %vm2722_vm4 = vmmov %vm2721_vm5 }
0x1a91   : > { %v1168_v9 = vpop.xlane.xlu1 %1167  ;;  %v1154_v12 = vpop.xlane.xlu0 %1153 }
0x1a92   : > { %v1175_v22 = vmul.f32 %v1926_v3, %v1168_v9  ;;  %v1176_v13 = vmul.f32 %v1927_v5, %v1168_v9  ;;  %v1161_v14 = vmul.f32 %v1924_v6, %v1154_v12  ;;  %v1162_v38 = vmul.f32 %v1925_v7, %v1154_v12 }
0x1a93   : > { %v1942_v6 = vsel %vm1281_vm13, 1.0, %v2144_v1  ;;  %v1943_v7 = vsel %vm1282_vm6, 1.0, %v2144_v1  ;;  %v1944_v12 = vsel %vm1295_vm12, 1.0, %v2144_v1  ;;  %vm2723_vm6 = vmmov %vm2722_vm4 }
0x1a94   : > { %v1177_v16 = vadd.f32 %v1175_v22, %v1161_v14  ;;  %v1178_v17 = vadd.f32 %v1176_v13, %v1162_v38  ;;  %v1945_v22 = vsel %vm1296_vm7, 1.0, %v2144_v1  ;;  %vm2724_vm12 = vmmov %vm2722_vm4 }
0x1a95   : > { %v1196_v18 = vpop.xlane.xlu1 %1195  ;;  %v1182_v24 = vpop.xlane.xlu0 %1181  ;;  %vm2725_vm7 = vmmov %vm2722_vm4 }
0x1a96   : > { %v1189_v25 = vmul.f32 %v1928_v20, %v1182_v24  ;;  %v1190_v54 = vmul.f32 %v1929_v21, %v1182_v24  ;;  %v1203_v11 = vmul.f32 %v1930_v26, %v1196_v18  ;;  %v1204_v28 = vmul.f32 %v1931_v27, %v1196_v18 }
0x1a98   : > { %v1191_v30 = vadd.f32 %v1189_v25, %v1177_v16  ;;  %v1192_v31 = vadd.f32 %v1190_v54, %v1178_v17  ;;  %v1946_v25 = vsel %vm1309_vm3, 1.0, %v2144_v1  ;;  %v1948_v54 = vsel %vm1323_vm15, 1.0, %v2144_v1  ;;  %vm2726_vm3 = vmmov %vm2722_vm4 }
0x1a99   : > { %v1224_v32 = vpop.xlane.xlu1 %1223  ;;  %v1210_v29 = vpop.xlane.xlu0 %1209  ;;  %vm2727_vm10 = vmmov %vm2726_vm3 }
0x1a9a   : > { %v1205_v36 = vadd.f32 %v1203_v11, %v1191_v30  ;;  %v1206_v37 = vadd.f32 %v1204_v28, %v1192_v31  ;;  %v1217_v40 = vmul.f32 %v1932_v33, %v1210_v29  ;;  %v1218_v42 = vmul.f32 %v1933_v34, %v1210_v29  ;;  %vm2728_vm15 = vmmov %vm2726_vm3 }
0x1a9b   : > { %v1231_v63 = vmul.f32 %v1934_v35, %v1224_v32  ;;  %v1232_v45 = vmul.f32 %v1935_v46, %v1224_v32  ;;  %vm2729_vm1 = vmmov %vm2726_vm3 }
0x1a9c   : > { %v1219_v47 = vadd.f32 %v1217_v40, %v1205_v36  ;;  %v1220_v48 = vadd.f32 %v1218_v42, %v1206_v37  ;;  %v2113_v37 = vld [vmem:[%s2711_s3 + $0x8] sm:$0xff]  }
0x1a9d   : > { %v1252_v49 = vpop.xlane.xlu1 %1251  ;;  %v1238_v50 = vpop.xlane.xlu0 %1237  ;;  %2046 = vmatpush3.bf16.msra.mxu0 %v2113_v37 }
0x1a9e   : > { %v1245_v52 = vmul.f32 %v1936_v43, %v1238_v50  ;;  %v1246_v53 = vmul.f32 %v1937_v44, %v1238_v50  ;;  %v1233_v55 = vadd.f32 %v1231_v63, %v1219_v47  ;;  %v1234_v56 = vadd.f32 %v1232_v45, %v1220_v48  ;;  %2059 = vmatprep.subr.bf16.mxu0 %v2144_v1  ;;  %v2114_v44 = vld [vmem:[%s2713_s5] sm:$0xff]   ;;  %v2115_v63 = vld [vmem:[%s2713_s5 + $0x8] sm:$0xff]  }
0x1a9f   : > { %v1259_v4 = vmul.f32 %v1938_v51, %v1252_v49  ;;  %v1260_v8 = vmul.f32 %v1939_v23, %v1252_v49  ;;  %v1952_v45 = vld [vmem:[%s2712_s4] ss:$0 sm:$0xff]  ;;  %v1487_v49 = vsub.s32 0, %v2519_v60 }
0x1aa0   : > { %v1247_v61 = vadd.f32 %v1245_v52, %v1233_v55  ;;  %v1248_v59 = vadd.f32 %v1246_v53, %v1234_v56  ;;  %v2134_v23 = vld [vmem:[%s2235_s26] sm:$0xff]  ;;  %v1491_v55 = vsub.s32 7, %v2519_v60 }
0x1aa1   : > { %v1280_v62 = vpop.xlane.xlu1 %1279  ;;  %v1266_v0 = vpop.xlane.xlu0 %1265 }
0x1aa2   : > { %v1273_v3 = vmul.f32 %v1940_v57, %v1266_v0  ;;  %v1274_v5 = vmul.f32 %v1941_v58, %v1266_v0  ;;  %v1261_v41 = vadd.f32 %v1259_v4, %v1247_v61  ;;  %v1262_v9 = vadd.f32 %v1260_v8, %v1248_v59  ;;  %v2135_v4 = vld [vmem:[%s2235_s26 + $0x8] sm:$0xff] }
0x1aa3   : > { %v1287_v19 = vmul.f32 %v1942_v6, %v1280_v62  ;;  %v1288_v13 = vmul.f32 %v1943_v7, %v1280_v62 }
0x1aa4   : > { %v1275_v14 = vadd.f32 %v1273_v3, %v1261_v41  ;;  %v1276_v38 = vadd.f32 %v1274_v5, %v1262_v9 }
0x1aa5   : > { %v1308_v16 = vpop.xlane.xlu1 %1307  ;;  %v1294_v17 = vpop.xlane.xlu0 %1293 }
0x1aa6   : > { %v1301_v18 = vmul.f32 %v1944_v12, %v1294_v17  ;;  %v1302_v20 = vmul.f32 %v1945_v22, %v1294_v17  ;;  %v1289_v21 = vadd.f32 %v1287_v19, %v1275_v14  ;;  %v1290_v24 = vadd.f32 %v1288_v13, %v1276_v38 }
0x1aa7   : > { %v1315_v26 = vmul.f32 %v1946_v25, %v1308_v16  ;;  %v1316_v10 = vmul.f32 %v1947_v39, %v1308_v16 }
0x1aa8   : > { %v1303_v2 = vadd.f32 %v1301_v18, %v1289_v21  ;;  %v1304_v27 = vadd.f32 %v1302_v20, %v1290_v24 }
0x1aa9   : > { %v2107_v11 = vpop.permute.xlu1 %2106  ;;  %v1322_v28 = vpop.xlane.xlu0 %1321 }
0x1aaa   : > { %v2109_v30 = vunpack.i.h.bf16 %v2107_v11  ;;  %v2108_v31 = vunpack.i.l.bf16 %v2107_v11  ;;  %v1329_v32 = vmul.f32 %v1948_v54, %v1322_v28  ;;  %v1330_v33 = vmul.f32 %v1949_v15, %v1322_v28 }
0x1aab   : > { %v1317_v34 = vadd.f32 %v1315_v26, %v1303_v2  ;;  %v1318_v29 = vadd.f32 %v1316_v10, %v1304_v27 }
0x1aac   : > { %v2083_v35 = vpack.c.bf16 %v2109_v30, %v2108_v31 }
0x1aad   : > { %v1331_v46 = vadd.f32 %v1329_v32, %v1317_v34  ;;  %v1332_v36 = vadd.f32 %v1330_v33, %v1318_v29 }
0x1aae   : > { %2084 = vmatprep.subr.bf16.mxu1 %v2083_v35 }
0x1aaf   : > { %2040 = vmatprep.mubr.msk.f32.mxu1 %vm468_vm2, %v1331_v46  ;;  %2086 = vmatpush3.bf16.msra.mxu1 %v2083_v35  ;;  %v2116_v35 = vld [vmem:[%s2714_s6] sm:$0xff]   ;;  %v2117_v46 = vld [vmem:[%s2714_s6 + $0x8] sm:$0xff]  }
0x1ab0   : > { %2051 = vmatprep.subr.bf16.mxu1 %v2144_v1 }
0x1ab2   : > { %2041 = vmatmul.mubr.msk.f32.vlgmr.msra.gmra.mrb[8].mxu1 %vm468_vm2, %v1332_v36  ;;  %vm1506_vm2 = vcmask 1046528  }
0x1ab3   : > { %2055 = vmatprep.mubr.msk.bf16.mxu1 %vm2145_vm0, %v2144_v1  ;;  %2052 = vmatpush3.bf16.msra.mxu1 %v2114_v44 }
0x1ab4   : > { %2053 = vmatprep.subr.bf16.mxu1 %v2144_v1 }
0x1ab7   : > { %2054 = vmatpush3.bf16.msra.mxu1 %v2115_v63 }
0x1b85   : > { %v2042_v40 = vpop.f32.mrb[8].mxu1 }
0x1b86   : > { %v1411_v42 = vpop.f32.mrb[9].mxu1 }
0x1b87   : > { %v1420_v43 = vpack.c.bf16 %v2042_v40, %v1411_v42 }
0x1b89   : > { %2048 = vmatmul.mubr.msk.bf16.vlgmr.msra.gmra.mrb[4].mxu0 %vm2721_vm5, %v1420_v43  ;;  %vm2730_vm5 = vmmov %vm2729_vm1 }
0x1b8a   : > { %2063 = vmatprep.mubr.msk.bf16.mxu0 %vm2145_vm0, %v2144_v1  ;;  %vm1495_vm0 = vcmask 1041408   ;;  %2060 = vmatpush3.bf16.msra.mxu0 %v2116_v35 }
0x1b8b   : > { %2061 = vmatprep.subr.bf16.mxu0 %v2144_v1 }
0x1b8e   : > { %2062 = vmatpush3.bf16.msra.mxu0 %v2117_v46 }
0x1c5c   : > { %v1476_v47 = vpop.f32.mrb[4].mxu0 }
0x1c5d   : > { %v1477_v48 = vadd.f32 %v1952_v45, %v1476_v47  ;;  %v2049_v50 = vpop.f32.mrb[5].mxu0 }
0x1c5e   : > { %v1479_v51 = vpop.f32.mrb[6].mxu0 }
0x1c5f   : > { %v1483_v52 = vadd.f32 %v2134_v23, %v1477_v48  ;;  %v1480_v53 = vadd.f32 %v1952_v45, %v1479_v51  ;;  %v2050_v56 = vpop.f32.mrb[7].mxu0 }
0x1c61   : > { %v1488_v57 = vrot.slane %v1483_v52, %v1487_v49  ;;  %v1496_v58 = vrot.slane %v1483_v52, 6  ;;  %v1484_v8 = vadd.f32 %v2135_v4, %v1480_v53 }
0x1c63   : > { %v1502_v61 = vsel %vm1495_vm0, %v1488_v57, %v1496_v58  ;;  %v1492_v59 = vrot.slane %v1484_v8, %v1491_v55  ;;  %v1497_v62 = vrot.slane %v1484_v8, 6 }
0x1c64   : > { %v1507_v0 = vrot.slane %v1502_v61, 1  ;;  %v1517_v6 = vrot.slane %v1502_v61, 2  ;;  %v1527_v7 = vrot.slane %v1502_v61, 3  ;;  %v1537_v3 = vrot.slane %v1502_v61, 4 }
0x1c65   : > { %v1498_v5 = vsel %vm1495_vm0, %v1496_v58, %v1497_v62  ;;  %v1503_v41 = vsel %vm1495_vm0, %v1497_v62, %v1492_v59 }
0x1c66   : > { %v1508_v9 = vrot.slane %v1498_v5, 1  ;;  %v1510_v12 = vrot.slane %v1503_v41, 1  ;;  %v1518_v22 = vrot.slane %v1498_v5, 2  ;;  %v1520_v19 = vrot.slane %v1503_v41, 2 }
0x1c67   : > { %v1528_v13 = vrot.slane %v1498_v5, 3  ;;  %v1530_v14 = vrot.slane %v1503_v41, 3  ;;  %v1538_v38 = vrot.slane %v1498_v5, 4  ;;  %v1540_v16 = vrot.slane %v1503_v41, 4 }
0x1c68   : > { %v1509_v17 = vsel %vm1506_vm2, %v1507_v0, %v1508_v9  ;;  %v1511_v18 = vsel %vm1506_vm2, %v1508_v9, %v1510_v12  ;;  %v1519_v20 = vsel %vm1516_vm8, %v1517_v6, %v1518_v22  ;;  %v1521_v21 = vsel %vm1516_vm8, %v1518_v22, %v1520_v19 }
0x1c69   : > { %v1514_v24 = vadd.f32 %v1509_v17, %v1502_v61  ;;  %v1515_v25 = vadd.f32 %v1511_v18, %v1498_v5  ;;  %v1529_v39 = vsel %vm1526_vm11, %v1527_v7, %v1528_v13  ;;  %v1531_v54 = vsel %vm1526_vm11, %v1528_v13, %v1530_v14 }
0x1c6a   : > { %v1539_v15 = vsel %vm1536_vm14, %v1537_v3, %v1538_v38  ;;  %v1541_v26 = vsel %vm1536_vm14, %v1538_v38, %v1540_v16 }
0x1c6b   : > { %v1524_v10 = vadd.f32 %v1519_v20, %v1514_v24  ;;  %v1525_v2 = vadd.f32 %v1521_v21, %v1515_v25  ;;  %v2148_v24 = vmov -1.0  }
0x1c6d   : > { %v1534_v27 = vadd.f32 %v1529_v39, %v1524_v10  ;;  %v1535_v11 = vadd.f32 %v1531_v54, %v1525_v2 }
0x1c6f   : > { %v1544_v28 = vadd.f32 %v1539_v15, %v1534_v27  ;;  %v1545_v30 = vadd.f32 %v1541_v26, %v1535_v11 }
0x1c71   : > { %v1546_v31 = vmul.f32 0.2, %v1544_v28  ;;  %v1547_v32 = vmul.f32 0.2, %v1545_v30 }
0x1c73   : > { %v2654_v33 = vsub.f32 %v1483_v52, %v1546_v31  ;;  %v2656_v34 = vsub.f32 %v1484_v8, %v1547_v32 }
0x1c75   : > { %v1554_v29 = vpack.c.bf16 %v2656_v34, %v2654_v33 }
0x1c77   : > { %2056 = vmatmul.mubr.msk.bf16.vlgmr.msra.gmra.mrb[12].mxu1 %vm2722_vm4, %v1554_v29 }
0x1d4a   : > { %v1604_v36 = vpop.f32.mrb[12].mxu1 }
0x1d4b   : > { %v1613_v37 = vmul.f32 0.70710677, %v1604_v36  ;;  %v2057_v40 = vpop.f32.mrb[13].mxu1  ;;  %v1611_v27 = vmul.f32 0.5, %v1604_v36 }
0x1d4c   : > { %v1607_v42 = vpop.f32.mrb[14].mxu1 }
0x1d4d   : > { %v1619_v43 = vand.u32 2147483647, %v1613_v37  ;;  %v1614_v44 = vmul.f32 0.70710677, %v1607_v42  ;;  %v2058_v63 = vpop.f32.mrb[15].mxu1  ;;  %vm1615_vm9 = vcmp.ge.f32.partialorder %v1613_v37, 0.0 }
0x1d4e   : > { %v1617_v25 = vsel %vm1615_vm9, 1.0, %v2148_v24  ;;  %v1612_v11 = vmul.f32 0.5, %v1607_v42 }
0x1d4f   : > { %v1621_v45 = vmul.f32 0.3275911, %v1619_v43  ;;  %v1620_v47 = vand.u32 2147483647, %v1614_v44  ;;  %v1647_v23 = vsub.f32 0.0, %v1619_v43  ;;  %vm1616_vm13 = vcmp.ge.f32.partialorder %v1614_v44, 0.0 }
0x1d50   : > { %v1618_v26 = vsel %vm1616_vm13, 1.0, %v2148_v24 }
0x1d51   : > { %v1623_v48 = vadd.f32 1.0, %v1621_v45  ;;  %v1622_v50 = vmul.f32 0.3275911, %v1620_v47  ;;  %v1648_v52 = vsub.f32 0.0, %v1620_v47  ;;  %v1649_v56 = vmul.f32 %v1647_v23, %v1619_v43 }
0x1d53   : > { %2122 = vrcp.f32 %v1623_v48  ;;  %v1624_v51 = vadd.f32 1.0, %v1622_v50  ;;  %v1650_v4 = vmul.f32 %v1648_v52, %v1620_v47  ;;  %v1651_v8 = vmul.f32 1.442695, %v1649_v56 }
0x1d55   : > { %2124 = vrcp.f32 %v1624_v51  ;;  %v1653_v6 = vmul.f32 1.442695, %v1650_v4 }
0x1d56   : > { %2126 = vpow2.f32 %v1651_v8 }
0x1d57   : > { %2128 = vpow2.f32 %v1653_v6 }
0x1d5d   : > { %v2123_v53 = vpop.eup %2122 }
0x1d5e   : > { %v1629_v1 = vmul.f32 1.0614054, %v2123_v53 }
0x1d5f   : > { %v2125_v57 = vpop.eup %2124 }
0x1d60   : > { %v1631_v58 = vadd.f32 -1.4531521, %v1629_v1  ;;  %v1630_v61 = vmul.f32 1.0614054, %v2125_v57  ;;  %v2127_v38 = vpop.eup %2126 }
0x1d61   : > { %v2129_v20 = vpop.eup %2128 }
0x1d62   : > { %v1633_v59 = vmul.f32 %v2123_v53, %v1631_v58  ;;  %v1632_v62 = vadd.f32 -1.4531521, %v1630_v61 }
0x1d64   : > { %v1635_v0 = vadd.f32 1.4214138, %v1633_v59  ;;  %v1634_v7 = vmul.f32 %v2125_v57, %v1632_v62 }
0x1d66   : > { %v1637_v3 = vmul.f32 %v2123_v53, %v1635_v0  ;;  %v1636_v5 = vadd.f32 1.4214138, %v1634_v7 }
0x1d68   : > { %v1639_v41 = vadd.f32 -0.28449672, %v1637_v3  ;;  %v1638_v9 = vmul.f32 %v2125_v57, %v1636_v5 }
0x1d6a   : > { %v1641_v12 = vmul.f32 %v2123_v53, %v1639_v41  ;;  %v1640_v22 = vadd.f32 -0.28449672, %v1638_v9 }
0x1d6c   : > { %v1643_v19 = vadd.f32 0.2548296, %v1641_v12  ;;  %v1642_v13 = vmul.f32 %v2125_v57, %v1640_v22 }
0x1d6e   : > { %v1645_v14 = vmul.f32 %v2123_v53, %v1643_v19  ;;  %v1644_v16 = vadd.f32 0.2548296, %v1642_v13 }
0x1d70   : > { %v1655_v17 = vmul.f32 %v2127_v38, %v1645_v14  ;;  %v1646_v18 = vmul.f32 %v2125_v57, %v1644_v16 }
0x1d72   : > { %v1657_v21 = vsub.f32 1.0, %v1655_v17  ;;  %v1656_v39 = vmul.f32 %v2129_v20, %v1646_v18 }
0x1d74   : > { %v1659_v54 = vmul.f32 %v1657_v21, %v1617_v25  ;;  %v1658_v15 = vsub.f32 1.0, %v1656_v39 }
0x1d76   : > { %v1661_v10 = vadd.f32 1.0, %v1659_v54  ;;  %v1660_v2 = vmul.f32 %v1658_v15, %v1618_v26 }
0x1d78   : > { %v1662_v28 = vadd.f32 1.0, %v1660_v2  ;;  %v1663_v30 = vmul.f32 %v1661_v10, %v1611_v27 }
0x1d7a   : > { %v1664_v31 = vmul.f32 %v1662_v28, %v1612_v11 }
0x1d7c   : > { %v1669_v32 = vpack.c.bf16 %v1664_v31, %v1663_v30 }
0x1d7e   : > { %2064 = vmatmul.mubr.msk.bf16.vlgmr.msra.gmra.mrb[8].mxu0 %vm2723_vm6, %v1669_v32 }
0x1e51   : > { %v1719_v29 = vpop.f32.mrb[8].mxu0 }
0x1e52   : > { %v1726_v35 = vadd.f32 %v1719_v29, %v2654_v33  ;;  %v2065_v46 = vpop.f32.mrb[9].mxu0  ;;  %v1962_v29 = vld [vmem:[%s2717_s9] ss:$0 sm:$0xff] }
0x1e53   : > { %v1722_v37 = vpop.f32.mrb[10].mxu0 }
0x1e54   : > { %v1731_v40 = vrot.slane %v1726_v35, %v1487_v49  ;;  %v1738_v43 = vrot.slane %v1726_v35, 6  ;;  %v1727_v44 = vadd.f32 %v1722_v37, %v2656_v34  ;;  %v2066_v63 = vpop.f32.mrb[11].mxu0 }
0x1e56   : > { %v1744_v36 = vsel %vm1495_vm0, %v1731_v40, %v1738_v43  ;;  %v1735_v42 = vrot.slane %v1727_v44, %v1491_v55  ;;  %v1739_v45 = vrot.slane %v1727_v44, 6  ;;  %v1963_v40 = vld [vmem:[%s2718_s10] ss:$0 sm:$0xff] }
0x1e57   : > { %v1748_v47 = vrot.slane %v1744_v36, 1  ;;  %v1757_v48 = vrot.slane %v1744_v36, 2  ;;  %v1766_v51 = vrot.slane %v1744_v36, 3  ;;  %v1775_v23 = vrot.slane %v1744_v36, 4 }
0x1e58   : > { %v1740_v50 = vsel %vm1495_vm0, %v1738_v43, %v1739_v45  ;;  %v1745_v33 = vsel %vm1495_vm0, %v1739_v45, %v1735_v42  ;;  %vm2731_vm0 = vmmov %vm2729_vm1 }
0x1e59   : > { %v1749_v52 = vrot.slane %v1740_v50, 1  ;;  %v1751_v49 = vrot.slane %v1745_v33, 1  ;;  %v1760_v53 = vrot.slane %v1745_v33, 2  ;;  %v1758_v56 = vrot.slane %v1740_v50, 2 }
0x1e5a   : > { %v1767_v34 = vrot.slane %v1740_v50, 3  ;;  %v1776_v1 = vrot.slane %v1740_v50, 4  ;;  %v1769_v57 = vrot.slane %v1745_v33, 3  ;;  %v1778_v58 = vrot.slane %v1745_v33, 4 }
0x1e5b   : > { %v1750_v60 = vsel %vm1506_vm2, %v1748_v47, %v1749_v52  ;;  %v1759_v55 = vsel %vm1516_vm8, %v1757_v48, %v1758_v56  ;;  %v1752_v4 = vsel %vm1506_vm2, %v1749_v52, %v1751_v49  ;;  %v1761_v8 = vsel %vm1516_vm8, %v1758_v56, %v1760_v53 }
0x1e5c   : > { %v1755_v61 = vadd.f32 %v1750_v60, %v1744_v36  ;;  %v1768_v59 = vsel %vm1526_vm11, %v1766_v51, %v1767_v34  ;;  %v1777_v62 = vsel %vm1536_vm14, %v1775_v23, %v1776_v1  ;;  %v1756_v0 = vadd.f32 %v1752_v4, %v1740_v50 }
0x1e5d   : > { %v1770_v6 = vsel %vm1526_vm11, %v1767_v34, %v1769_v57  ;;  %v1779_v7 = vsel %vm1536_vm14, %v1776_v1, %v1778_v58 }
0x1e5e   : > { %v1764_v3 = vadd.f32 %v1759_v55, %v1755_v61  ;;  %v1765_v5 = vadd.f32 %v1761_v8, %v1756_v0 }
0x1e60   : > { %v1773_v41 = vadd.f32 %v1768_v59, %v1764_v3  ;;  %v1774_v9 = vadd.f32 %v1770_v6, %v1765_v5 }
0x1e62   : > { %v1782_v12 = vadd.f32 %v1777_v62, %v1773_v41  ;;  %v1783_v22 = vadd.f32 %v1779_v7, %v1774_v9 }
0x1e64   : > { %v1784_v19 = vmul.f32 0.2, %v1782_v12  ;;  %v1785_v13 = vmul.f32 0.2, %v1783_v22 }
0x1e66   : > { %v1786_v14 = vsub.f32 %v1726_v35, %v1784_v19  ;;  %v1787_v38 = vsub.f32 %v1727_v44, %v1785_v13 }
0x1e68   : > { %v1790_v16 = vsel %vm2724_vm12, %v1786_v14, 0.0  ;;  %v1793_v17 = vsel %vm2725_vm7, %v1787_v38, 0.0 }
0x1e69   : > { %1791 = vadd.xlane.f32.xlu0 %v1790_v16 }
0x1e6d   : > { %1794 = vadd.xlane.f32.xlu0 %v1793_v17 }
0x1ef6   : > { %v1792_v18 = vpop.xlane.xlu0 %1791 }
0x1ef7   : > { %v1797_v20 = vmul.f32 0.03125, %v1792_v18 }
0x1ef9   : > { %v1799_v21 = vsub.f32 %v1786_v14, %v1797_v20 }
0x1efa   : > { %v1795_v24 = vpop.xlane.xlu0 %1794 }
0x1efb   : > { %v1798_v25 = vmul.f32 0.03125, %v1795_v24  ;;  %v1801_v39 = vmul.f32 %v1799_v21, %v1799_v21 }
0x1efd   : > { %v1800_v54 = vsub.f32 %v1787_v38, %v1798_v25  ;;  %v1803_v15 = vsel %vm2726_vm3, %v1801_v39, 0.0 }
0x1efe   : > { %1804 = vadd.xlane.f32.xlu0 %v1803_v15 }
0x1eff   : > { %v1802_v26 = vmul.f32 %v1800_v54, %v1800_v54 }
0x1f01   : > { %v1806_v10 = vsel %vm2727_vm10, %v1802_v26, 0.0 }
0x1f02   : > { %1807 = vadd.xlane.f32.xlu0 %v1806_v10 }
0x1f8b   : > { %v1805_v2 = vpop.xlane.xlu0 %1804 }
0x1f8c   : > { %v1809_v27 = vmul.f32 0.03125, %v1805_v2 }
0x1f8e   : > { %v1811_v11 = vadd.f32 1e-05, %v1809_v27 }
0x1f8f   : > { %v1808_v28 = vpop.xlane.xlu0 %1807 }
0x1f90   : > { %2130 = vrsqrt.f32 %v1811_v11  ;;  %v1810_v30 = vmul.f32 0.03125, %v1808_v28 }
0x1f92   : > { %v1812_v31 = vadd.f32 1e-05, %v1810_v30 }
0x1f94   : > { %2132 = vrsqrt.f32 %v1812_v31 }
0x1f9a   : > { %v2131_v32 = vpop.eup %2130 }
0x1f9b   : > { %v1815_v35 = vmul.f32 %v2131_v32, %v1799_v21 }
0x1f9d   : > { %v1823_v46 = vmul.f32 %v1962_v29, %v1815_v35 }
0x1f9e   : > { %v2133_v37 = vpop.eup %2132 }
0x1f9f   : > { %v1816_v43 = vmul.f32 %v2133_v37, %v1800_v54  ;;  %v1831_v44 = vadd.f32 %v1963_v40, %v1823_v46 }
0x1fa1   : > { %v1824_v63 = vmul.f32 %v1962_v29, %v1816_v43  ;;  %v1833_v42 = vsel %vm2728_vm15, %v1831_v44, 0.0 }
0x1fa3   : > { %v1832_v36 = vadd.f32 %v1963_v40, %v1824_v63 }
0x1fa5   : > { %v1834_v45 = vsel %vm2729_vm1, %v1832_v36, 0.0 }
0x1fa6   : > { %v1835_v47 = vadd.f32 %v1834_v45, %v1833_v42 }
0x1fa8   : > { %v1836_v48 = vrot.slane %v1835_v47, 4 }
0x1faa   : > { %v1837_v50 = vadd.f32 %v1836_v48, %v1835_v47 }
0x1fac   : > { %v1838_v33 = vrot.slane %v1837_v50, 2 }
0x1fae   : > { %v1839_v51 = vadd.f32 %v1838_v33, %v1837_v50 }
0x1fb0   : > { %v1840_v23 = vrot.slane %v1839_v51, 1 }
0x1fb2   : > { %v1841_v52 = vadd.f32 %v1840_v23, %v1839_v51 }
0x1fb4   : > { %v1843_v49 = vmul.f32 0.0625, %v1841_v52 }
0x1fb6   : > { %v1844_v53 = vsub.f32 %v1831_v44, %v1843_v49  ;;  %v1845_v56 = vsub.f32 %v1832_v36, %v1843_v49 }
0x1fb8   : > { %1846 = vst.msk [vmem:[%s386_s28] sm:$0xff] %vm2730_vm5, %v1844_v53 }
0x1fb9   : > { %1847 = vst.msk [vmem:[%s386_s28 + $0x8] sm:$0xff] %vm2731_vm0, %v1845_v56 }
0x1fba PF: > { %s21_s17 = sadd.s32 1, %s2142_s17  }
0x1fbb   : > { %p18_p4 = scmp.ge.s32.totalorder %s21_s17, 4  }
0x1fbd   :  { %20 = sbr.rel (!%p18_p4) target bundleno = 1 (0x1), region = 94 }

// kernel: _lambda_.9
= control target key start
LH: loop header
LB: loop body
LE: loop exit
PB: predicated region body
PF: predicated region fallthrough
CT: control target
= control target key end

     0   :  { %s5266_s0 = inlined_call_operand.vmem [shape: f32[2,16,32], index: 0, kind: input, shape index: {}]   ;;  %s5267_s1 = inlined_call_operand.vmem [shape: f32[2,16,32], index: 1, kind: input, shape index: {}]   ;;  %s5268_s2 = inlined_call_operand.vmem [shape: bf16[32,96], index: 2, kind: input, shape index: {}]   ;;  %s5269_s3 = inlined_call_operand.vmem [shape: f32[1,96], index: 3, kind: input, shape index: {}]   ;;  %s5270_s4 = inlined_call_operand.vmem [shape: bf16[32,32], index: 4, kind: input, shape index: {}]   ;;  %s5271_s5 = inlined_call_operand.vmem [shape: f32[1,32], index: 5, kind: input, shape index: {}]   ;;  %s5272_s6 = inlined_call_operand.vmem [shape: bf16[32,32], index: 6, kind: input, shape index: {}]   ;;  %s5273_s7 = inlined_call_operand.vmem [shape: f32[1,32], index: 7, kind: input, shape index: {}]   ;;  %s5274_s8 = inlined_call_operand.vmem [shape: bf16[32,64], index: 8, kind: input, shape index: {}]   ;;  %s5275_s9 = inlined_call_operand.vmem [shape: f32[1,64], index: 9, kind: input, shape index: {}]   ;;  %s5276_s10 = inlined_call_operand.vmem [shape: bf16[32,32], index: 10, kind: input, shape index: {}]   ;;  %s5277_s11 = inlined_call_operand.vmem [shape: f32[1,32], index: 11, kind: input, shape index: {}]   ;;  %s5278_s12 = inlined_call_operand.vmem [shape: bf16[32,32], index: 12, kind: input, shape index: {}]   ;;  %s5279_s13 = inlined_call_operand.vmem [shape: bf16[32,32], index: 13, kind: input, shape index: {}]   ;;  %s5280_s14 = inlined_call_operand.vmem [shape: bf16[96,4], index: 14, kind: input, shape index: {}]   ;;  %s5281_s15 = inlined_call_operand.vmem [shape: f32[16,16], index: 15, kind: input, shape index: {}]   ;;  %s5282_s16 = inlined_call_operand.vmem [shape: f32[16,16], index: 16, kind: input, shape index: {}]   ;;  %s5283_s17 = inlined_call_operand.vmem [shape: f32[2,16,4], index: 17, kind: input, shape index: {}]   ;;  %s5284_s18 = inlined_call_operand.vmem [shape: f32[1,32], index: 18, kind: input, shape index: {}]   ;;  %s5285_s19 = inlined_call_operand.vmem [shape: f32[1,32], index: 19, kind: input, shape index: {}]   ;;  %s5286_s20 = inlined_call_operand.vmem [shape: bf16[32,4], index: 20, kind: input, shape index: {}]   ;;  %s5287_s21 = inlined_call_operand.vmem [shape: f32[1,4], index: 21, kind: input, shape index: {}]   ;;  %s5288_s22 = inlined_call_operand.vmem [shape: f32[2,16,4], index: 22, kind: output, shape index: {}]  }
   0x1   :  { %5300 = sst [smem:[#allocation2_spill]] %s5266_s0 }
   0x2   :  { %5301 = sst [smem:[#allocation3_spill]] %s5267_s1 }
   0x3   :  { %5302 = sst [smem:[#allocation4_spill]] %s5268_s2 }
   0x4   :  { %5303 = sst [smem:[#allocation5_spill]] %s5269_s3  ;;  %s4274_s3 = smov 0  }
   0x5   :  { %5304 = sst [smem:[#allocation6_spill]] %s5270_s4 }
   0x6   :  { %5305 = sst [smem:[#allocation7_spill]] %s5271_s5 }
   0x7   :  { %5306 = sst [smem:[#allocation8_spill]] %s5272_s6 }
   0x8 LB: > { %s3659_s28 = sadd.s32 4294967295, %s4151_s3   ;;  %p3663_p0 = scmp.ge.s32.totalorder %s4151_s3, 1  ;;  %s4151_s3 = sphi %s4274_s3, %s32_s3  }
   0x9   : > { %p632_p1 = scmp.lt.s32.totalorder %s4151_s3, 3 }
   0xb   : > { %p633_p2 = pnand %p3663_p0, %p632_p1 }
   0xc   : > { %s5307_s4 = sld [smem:[#allocation4_spill]] (!%p633_p2)  ;;  %v4153_v1 = vmov (!%p633_p2), 0.0   ;;  %vm4154_vm0 = vmmov (!%p633_p2), 0   ;;  %p704_p3 = scmp.lt.s32.totalorder (!%p633_p2), %s3659_s28, 1  ;;  %vm5292_vm1 = vcmask (!%p633_p2), 261120   ;;  %v4306_v6 = vld [vmem:[%s5281_s15] sm:$0xff] (!%p633_p2) }
   0xd   : > { %636 = sbr.rel (%p633_p2) target bundleno = 15501 (0x3c8d), region = 108  ;;  %3860 = vmatprep.subr.bf16.mxu1 (!%p633_p2), %v4153_v1  ;;  %3864 = vmatprep.mubr.msk.bf16.mxu1 (!%p633_p2), %vm4154_vm0, %v4153_v1  ;;  %s5308_s6 = sld [smem:[#allocation2_spill]] (!%p633_p2)  ;;  %vm805_vm2 = vcmask (!%p633_p2), 130048   ;;  %v4313_v7 = vld [vmem:[%s5282_s16] sm:$0xff] (!%p633_p2)  ;;  %v797_v17 = vld [vmem:[%s5281_s15 + $0x8] sm:$0xff] (!%p633_p2) }
   0xe   : > { %3893 = vmatprep.mubr.msk.f32.mxu0 (!%p633_p2), %vm805_vm2, %v4313_v7  ;;  %s5309_s0 = sld [smem:[#allocation5_spill]] (!%p633_p2)  ;;  %s5294_s23 = smov (!%p633_p2), 96   ;;  %v799_v18 = vld [vmem:[%s5282_s16 + $0x8] sm:$0xff] (!%p633_p2) }
   0xf   : > { %s5293_s2 = smov (!%p633_p2), 64   ;;  %s5310_s29 = sld [smem:[#allocation6_spill]] (!%p633_p2) }
  0x10   : > { %s5348_s27 = smov (!%p633_p2), 64  }
  0x12   : > { %v4097_v0 = vld [vmem:[%s5307_s4] sm:$0xff] (!%p633_p2)   ;;  %v4098_v2 = vld [vmem:[%s5307_s4 + $0x8] sm:$0xff] (!%p633_p2)  }
  0x13   : > { %3861 = vmatpush3.bf16.msra.mxu1 (!%p633_p2), %v4097_v0 }
  0x14   : > { %3862 = vmatprep.subr.bf16.mxu1 %v4153_v1  ;;  %s5357_s28 = smov (!%p704_p3, %s3659_s28), 1  ;;  %v3672_v8 = vld [vmem:[%s5309_s0] ss:$0 sm:$0xff]  ;;  %s5315_s0 = sld [smem:[#allocation7_spill]] }
  0x15   : > { %s4292_s1 = sshll.u32 %s5357_s28, 4 }
  0x16   : > { %s4298_s25 = scalar_lea.vmem %s5308_s6, %s4292_s1  ;;  %s5312_s6 = sld [smem:[#allocation8_spill]] }
  0x17   : > { %3863 = vmatpush3.bf16.msra.mxu1 %v4098_v2  ;;  %v725_v3 = vld [vmem:[%s4298_s25] sm:$0xff]  ;;  %v726_v4 = vld [vmem:[%s4298_s25 + $0x8] sm:$0xff] }
  0x18   : > { %v731_v5 = vpack.c.bf16 %v726_v4, %v725_v3 }
  0x1a   : > { %3865 = vmatmul.mubr.msk.bf16.vlgmr.msra.gmra.mrb[0].mxu1 %vm5292_vm1, %v731_v5 }
  0x1b   : > { %3872 = vmatprep.mubr.msk.f32.mxu1 %vm805_vm2, %v4306_v6 }
  0xed   : > { %v789_v9 = vpop.f32.mrb[0].mxu1 }
  0xee   : > { %v3866_v10 = vpop.f32.mrb[1].mxu1  ;;  %v790_v12 = vadd.f32 %v3672_v8, %v789_v9 }
  0xef   : > { %v792_v11 = vpop.f32.mrb[2].mxu1 }
  0xf0   : > { %v793_v13 = vadd.f32 %v3672_v8, %v792_v11  ;;  %v3867_v14 = vpop.f32.mrb[3].mxu1 }
  0xf2   : > { %v4010_v15 = vpack.c.bf16 %v793_v13, %v790_v12  ;;  %v4320_v16 = vpack.i.bf16 %v793_v13, %v790_v12 }
  0xf4   : > { %4073 = vrot.lane.b32.xlu0 %v4320_v16, %s5294_s23  ;;  %4011 = vmatprep.subr.bf16.mxu1 %v4010_v15  ;;  %s5313_s23 = sld [smem:[#allocation3_spill]] }
  0xf5   : > { %4013 = vmatpush3.bf16.msra.mxu1 %v4010_v15 }
  0xf6   : > { %4015 = vmatprep.subr.bf16.mxu1 %v4010_v15 }
  0xf8   : > { %3873 = vmatmul.mubr.msk.f32.vlgmr.msra.gmra.mrb[4].mxu1 %vm805_vm2, %v797_v17 }
  0xf9   : > { %4017 = vmatpush3.bf16.msra.mxu1 %v4010_v15  ;;  %3879 = vmatprep.mubr.msk.f32.mxu1 %vm805_vm2, %v4313_v7 }
  0xfa   : > { %s713_s26 = scalar_lea.vmem %s5313_s23, %s4292_s1 }
  0xfc   : > { %3880 = vmatmul.mubr.msk.f32.vlgmr.msra.gmra.mrb[6].mxu1 %vm805_vm2, %v799_v18 }
  0xfd   : > { %3886 = vmatprep.mubr.msk.f32.mxu1 %vm805_vm2, %v4306_v6 }
 0x166   : > { %v4074_v19 = vpop.permute.xlu0 %4073 }
 0x167   : > { %v4076_v20 = vunpack.i.h.bf16 %v4074_v19  ;;  %v4075_v21 = vunpack.i.l.bf16 %v4074_v19 }
 0x169   : > { %v4018_v22 = vpack.c.bf16 %v4076_v20, %v4075_v21 }
 0x16b   : > { %4019 = vmatprep.subr.bf16.mxu1 %v4018_v22  ;;  %4023 = vmatprep.subr.bf16.mxu0 %v4018_v22 }
 0x16c   : > { %4021 = vmatpush3.bf16.msra.mxu1 %v4018_v22  ;;  %4025 = vmatpush3.bf16.msra.mxu0 %v4018_v22 }
 0x16d   : > { %3903 = vmatprep.subr.bf16.mxu0 %v4153_v1 }
 0x16f   : > { %3887 = vmatmul.mubr.msk.f32.vlgmr.msra.gmra.mrb[8].mxu1 %vm805_vm2, %v797_v17  ;;  %3894 = vmatmul.mubr.msk.f32.vlgmr.msra.gmra.mrb[0].mxu0 %vm805_vm2, %v799_v18 }
 0x170   : > { %3907 = vmatprep.mubr.msk.bf16.mxu0 %vm4154_vm0, %v4153_v1 }
 0x1cb   : > { %v3874_v23 = vpop.f32.mrb[4].mxu1 }
 0x1cc   : > { %v878_v24 = vpop.f32.mrb[5].mxu1 }
 0x1cf   : > { %v3881_v25 = vpop.f32.mrb[6].mxu1 }
 0x1d0   : > { %v959_v26 = vpop.f32.mrb[7].mxu1 }
 0x242   : > { %v3888_v27 = vpop.f32.mrb[8].mxu1  ;;  %v3895_v28 = vpop.f32.mrb[0].mxu0 }
 0x243   : > { %v1127_v29 = vmul.f32 %v3888_v27, %v3874_v23  ;;  %v1141_v30 = vmul.f32 %v3888_v27, %v3881_v25  ;;  %v1129_v31 = vmul.f32 %v3895_v28, %v3881_v25  ;;  %v1139_v32 = vmul.f32 %v3895_v28, %v3874_v23  ;;  %v1042_v33 = vpop.f32.mrb[9].mxu1  ;;  %v1117_v34 = vpop.f32.mrb[1].mxu0 }
 0x244   : > { %v1126_v35 = vmul.f32 %v1042_v33, %v878_v24  ;;  %v1140_v36 = vmul.f32 %v1042_v33, %v959_v26  ;;  %v1128_v37 = vmul.f32 %v1117_v34, %v959_v26  ;;  %v1138_v38 = vmul.f32 %v1117_v34, %v878_v24 }
 0x245   : > { %v1131_v39 = vadd.f32 %v1129_v31, %v1127_v29  ;;  %v1143_v40 = vsub.f32 %v1139_v32, %v1141_v30 }
 0x246   : > { %v1130_v41 = vadd.f32 %v1128_v37, %v1126_v35  ;;  %v1142_v42 = vsub.f32 %v1138_v38, %v1140_v36 }
 0x247   : > { %v1135_v43 = vsel %vm5292_vm1, %v1131_v39, 0.0  ;;  %v1147_v46 = vsel %vm5292_vm1, %v1143_v40, 0.0 }
 0x248   : > { %1136 = vadd.xlane.f32.xlu1 %v1135_v43  ;;  %v1132_v44 = vsel %vm5292_vm1, %v1130_v41, 0.0  ;;  %v1144_v45 = vsel %vm5292_vm1, %v1142_v42, 0.0 }
 0x249   : > { %1133 = vadd.xlane.f32.xlu0 %v1132_v44 }
 0x24c   : > { %1145 = vadd.xlane.f32.xlu1 %v1144_v45 }
 0x250   : > { %1148 = vadd.xlane.f32.xlu1 %v1147_v46 }
 0x2d5   : > { %v1137_v47 = vpop.xlane.xlu1 %1136 }
 0x2d6   : > { %v1134_v48 = vpop.xlane.xlu0 %1133  ;;  %v1151_v53 = vmul.f32 %v1137_v47, %v797_v17 }
 0x2d7   : > { %v1150_v51 = vmul.f32 %v1134_v48, %v4306_v6  ;;  %v1167_v6 = vlaneseq }
 0x2d9   : > { %v1146_v49 = vpop.xlane.xlu1 %1145 }
 0x2da   : > { %v1152_v50 = vmul.f32 %v1146_v49, %v4313_v7  ;;  %v4354_v7 = vand.u32 127, %v1167_v6 }
 0x2dc   : > { %v1154_v54 = vsub.f32 %v1150_v51, %v1152_v50 }
 0x2dd   : > { %v1149_v52 = vpop.xlane.xlu1 %1148 }
 0x2de   : > { %v1153_v55 = vmul.f32 %v1149_v52, %v799_v18  ;;  %v1156_v57 = vsel %vm805_vm2, %v1154_v54, 0.0 }
 0x2e0   : > { %v1155_v56 = vsub.f32 %v1151_v53, %v1153_v55 }
 0x2e2   : > { %v1157_v58 = vsel %vm805_vm2, %v1155_v56, 0.0 }
 0x2e3   : > { %v1158_v59 = vadd.f32 %v1157_v58, %v1156_v57 }
 0x2e5   : > { %v1159_v60 = vrot.slane %v1158_v59, 4 }
 0x2e7   : > { %v1160_v61 = vadd.f32 %v1159_v60, %v1158_v59 }
 0x2e9   : > { %v1161_v62 = vrot.slane %v1160_v61, 2 }
 0x2eb   : > { %v1162_v63 = vadd.f32 %v1161_v62, %v1160_v61 }
 0x2ed   : > { %v1163_v0 = vrot.slane %v1162_v63, 1 }
 0x2ef   : > { %v1164_v2 = vadd.f32 %v1163_v0, %v1162_v63 }
 0x2f1   : > { %v1165_v3 = vmul.f32 0.0625, %v1164_v2 }
 0x2f3   : > { %v4349_v4 = vmul.f32 0.03125, %v1165_v3 }
 0x2f5   : > { %v1180_v5 = vsel %vm805_vm2, %v4349_v4, -inf }
 0x2f6   : > { %1181 = vmax.xlane.f32.xlu1 %v1180_v5 }
 0x383   : > { %v4356_v8 = vpop.xlane.xlu1 %1181 }
 0x384   : > { %vm1183_vm3 = vcmp.eq.f32.partialorder %v4349_v4, %v4356_v8 }
 0x385   : > { %v1184_v9 = vsel %vm1183_vm3, %v4354_v7, 16 }
 0x386   : > { %v1185_v10 = vsel %vm805_vm2, %v1184_v9, 2147483647 }
 0x387   : > { %v1187_v11 = vshra.s32 %v1185_v10, 16  ;;  %v1186_v13 = vand.u32 65535, %v1185_v10 }
 0x389   : > { %v1189_v12 = vcvt.s32.f32 %v1187_v11  ;;  %v1188_v15 = vcvt.s32.f32 %v1186_v13 }
 0x38b   : > { %1190 = vmin.xlane.f32.xlu1 %v1189_v12 }
 0x418   : > { %v1191_v14 = vpop.xlane.xlu1 %1190 }
 0x419   : > { %vm1192_vm4 = vcmp.eq.f32.partialorder %v1189_v12, %v1191_v14  ;;  %v1197_v18 = vcvt.f32.s32 %v1191_v14 }
 0x41a   : > { %v1193_v17 = vsel %vm1192_vm4, %v1188_v15, inf }
 0x41b   : > { %1194 = vmin.xlane.f32.xlu1 %v1193_v17  ;;  %v1198_v20 = vshll.u32 %v1197_v18, 16 }
 0x4a8   : > { %v1195_v19 = vpop.xlane.xlu1 %1194 }
 0x4a9   : > { %v1196_v21 = vcvt.f32.s32 %v1195_v19 }
 0x4ab   : > { %v4362_v22 = vadd.s32 %v1198_v20, %v1196_v21 }
 0x4ad   : > { %vm1200_vm5 = vcmp.eq.s32.totalorder %v4354_v7, %v4362_v22 }
 0x4ae   : > { %v1202_v23 = vsel %vm1200_vm5, -inf, %v4349_v4 }
 0x4af   : > { %v1203_v24 = vsel %vm805_vm2, %v1202_v23, -inf }
 0x4b0   : > { %1204 = vmax.xlane.f32.xlu1 %v1203_v24 }
 0x53d   : > { %v1205_v25 = vpop.xlane.xlu1 %1204 }
 0x53e   : > { %vm1206_vm6 = vcmp.eq.f32.partialorder %v1202_v23, %v1205_v25 }
 0x53f   : > { %v1207_v26 = vsel %vm1206_vm6, %v4354_v7, 16 }
 0x540   : > { %v1208_v27 = vsel %vm805_vm2, %v1207_v26, 2147483647 }
 0x541   : > { %v1210_v28 = vshra.s32 %v1208_v27, 16  ;;  %v1209_v30 = vand.u32 65535, %v1208_v27 }
 0x543   : > { %v1212_v29 = vcvt.s32.f32 %v1210_v28  ;;  %v1211_v32 = vcvt.s32.f32 %v1209_v30 }
 0x545   : > { %1213 = vmin.xlane.f32.xlu1 %v1212_v29 }
 0x5d2   : > { %v1214_v31 = vpop.xlane.xlu1 %1213 }
 0x5d3   : > { %vm1215_vm7 = vcmp.eq.f32.partialorder %v1212_v29, %v1214_v31  ;;  %v1220_v34 = vcvt.f32.s32 %v1214_v31 }
 0x5d4   : > { %v1216_v33 = vsel %vm1215_vm7, %v1211_v32, inf }
 0x5d5   : > { %1217 = vmin.xlane.f32.xlu1 %v1216_v33  ;;  %v1221_v36 = vshll.u32 %v1220_v34, 16 }
 0x662   : > { %v1218_v35 = vpop.xlane.xlu1 %1217 }
 0x663   : > { %v1219_v37 = vcvt.f32.s32 %v1218_v35 }
 0x665   : > { %v4373_v38 = vadd.s32 %v1221_v36, %v1219_v37 }
 0x667   : > { %vm1223_vm8 = vcmp.eq.s32.totalorder %v4354_v7, %v4373_v38 }
 0x668   : > { %v1225_v39 = vsel %vm1223_vm8, -inf, %v1202_v23 }
 0x669   : > { %v1226_v40 = vsel %vm805_vm2, %v1225_v39, -inf }
 0x66a   : > { %1227 = vmax.xlane.f32.xlu0 %v1226_v40 }
 0x6f7   : > { %v1228_v41 = vpop.xlane.xlu0 %1227 }
 0x6f8   : > { %vm1229_vm9 = vcmp.eq.f32.partialorder %v1225_v39, %v1228_v41 }
 0x6f9   : > { %v1230_v42 = vsel %vm1229_vm9, %v4354_v7, 16 }
 0x6fa   : > { %v1231_v43 = vsel %vm805_vm2, %v1230_v42, 2147483647 }
 0x6fb   : > { %v1233_v44 = vshra.s32 %v1231_v43, 16  ;;  %v1232_v46 = vand.u32 65535, %v1231_v43 }
 0x6fd   : > { %v1235_v45 = vcvt.s32.f32 %v1233_v44  ;;  %v1234_v48 = vcvt.s32.f32 %v1232_v46 }
 0x6ff   : > { %1236 = vmin.xlane.f32.xlu1 %v1235_v45 }
 0x78c   : > { %v1237_v47 = vpop.xlane.xlu1 %1236 }
 0x78d   : > { %vm1238_vm10 = vcmp.eq.f32.partialorder %v1235_v45, %v1237_v47  ;;  %v1243_v50 = vcvt.f32.s32 %v1237_v47 }
 0x78e   : > { %v1239_v49 = vsel %vm1238_vm10, %v1234_v48, inf }
 0x78f   : > { %1240 = vmin.xlane.f32.xlu0 %v1239_v49  ;;  %v1244_v52 = vshll.u32 %v1243_v50, 16 }
 0x81c   : > { %v1241_v51 = vpop.xlane.xlu0 %1240 }
 0x81d   : > { %v1242_v53 = vcvt.f32.s32 %v1241_v51 }
 0x81f   : > { %v4383_v54 = vadd.s32 %v1244_v52, %v1242_v53 }
 0x821   : > { %vm1246_vm11 = vcmp.eq.s32.totalorder %v4354_v7, %v4383_v54 }
 0x822   : > { %v1248_v55 = vsel %vm1246_vm11, -inf, %v1225_v39 }
 0x823   : > { %v1249_v56 = vsel %vm805_vm2, %v1248_v55, -inf }
 0x824   : > { %1250 = vmax.xlane.f32.xlu1 %v1249_v56 }
 0x8b1   : > { %v1251_v57 = vpop.xlane.xlu1 %1250 }
 0x8b2   : > { %vm1252_vm12 = vcmp.eq.f32.partialorder %v1248_v55, %v1251_v57 }
 0x8b3   : > { %v1253_v58 = vsel %vm1252_vm12, %v4354_v7, 16 }
 0x8b4   : > { %v1254_v59 = vsel %vm805_vm2, %v1253_v58, 2147483647 }
 0x8b5   : > { %v1256_v60 = vshra.s32 %v1254_v59, 16  ;;  %v1255_v62 = vand.u32 65535, %v1254_v59 }
 0x8b7   : > { %v1258_v61 = vcvt.s32.f32 %v1256_v60  ;;  %v1257_v0 = vcvt.s32.f32 %v1255_v62 }
 0x8b9   : > { %1259 = vmin.xlane.f32.xlu0 %v1258_v61 }
 0x946   : > { %v1260_v63 = vpop.xlane.xlu0 %1259 }
 0x947   : > { %vm1261_vm13 = vcmp.eq.f32.partialorder %v1258_v61, %v1260_v63  ;;  %v1266_v3 = vcvt.f32.s32 %v1260_v63 }
 0x948   : > { %v1262_v2 = vsel %vm1261_vm13, %v1257_v0, inf }
 0x949   : > { %1263 = vmin.xlane.f32.xlu1 %v1262_v2  ;;  %v1267_v9 = vshll.u32 %v1266_v3, 16 }
 0x9d6   : > { %v1264_v5 = vpop.xlane.xlu1 %1263 }
 0x9d7   : > { %v1265_v10 = vcvt.f32.s32 %v1264_v5 }
 0x9d9   : > { %v4393_v11 = vadd.s32 %v1267_v9, %v1265_v10 }
 0x9db   : > { %vm1269_vm14 = vcmp.eq.s32.totalorder %v4354_v7, %v4393_v11 }
 0x9dc   : > { %v1271_v12 = vsel %vm1269_vm14, -inf, %v1248_v55 }
 0x9dd   : > { %v1272_v13 = vsel %vm805_vm2, %v1271_v12, -inf }
 0x9de   : > { %1273 = vmax.xlane.f32.xlu0 %v1272_v13 }
 0xa6b   : > { %v1274_v14 = vpop.xlane.xlu0 %1273 }
 0xa6c   : > { %vm1275_vm15 = vcmp.eq.f32.partialorder %v1271_v12, %v1274_v14 }
 0xa6d   : > { %v1276_v15 = vsel %vm1275_vm15, %v4354_v7, 16 }
 0xa6e   : > { %v1277_v17 = vsel %vm805_vm2, %v1276_v15, 2147483647 }
 0xa6f   : > { %v1279_v18 = vshra.s32 %v1277_v17, 16  ;;  %v1278_v20 = vand.u32 65535, %v1277_v17 }
 0xa71   : > { %v1281_v19 = vcvt.s32.f32 %v1279_v18  ;;  %v1280_v23 = vcvt.s32.f32 %v1278_v20 }
 0xa73   : > { %1282 = vmin.xlane.f32.xlu1 %v1281_v19 }
 0xb00   : > { %v1283_v21 = vpop.xlane.xlu1 %1282 }
 0xb01   : > { %vm1284_vm3 = vcmp.eq.f32.partialorder %v1281_v19, %v1283_v21  ;;  %v1289_v25 = vcvt.f32.s32 %v1283_v21 }
 0xb02   : > { %v1285_v24 = vsel %vm1284_vm3, %v1280_v23, inf }
 0xb03   : > { %1286 = vmin.xlane.f32.xlu0 %v1285_v24  ;;  %v1290_v27 = vshll.u32 %v1289_v25, 16 }
 0xb90   : > { %v1287_v26 = vpop.xlane.xlu0 %1286 }
 0xb91   : > { %v1288_v28 = vcvt.f32.s32 %v1287_v26 }
 0xb93   : > { %v4403_v29 = vadd.s32 %v1290_v27, %v1288_v28 }
 0xb95   : > { %vm1292_vm4 = vcmp.eq.s32.totalorder %v4354_v7, %v4403_v29 }
 0xb96   : > { %v1294_v30 = vsel %vm1292_vm4, -inf, %v1271_v12 }
 0xb97   : > { %v1295_v31 = vsel %vm805_vm2, %v1294_v30, -inf }
 0xb98   : > { %1296 = vmax.xlane.f32.xlu1 %v1295_v31 }
 0xc25   : > { %v1297_v32 = vpop.xlane.xlu1 %1296 }
 0xc26   : > { %vm1298_vm6 = vcmp.eq.f32.partialorder %v1294_v30, %v1297_v32 }
 0xc27   : > { %v1299_v33 = vsel %vm1298_vm6, %v4354_v7, 16 }
 0xc28   : > { %v1300_v34 = vsel %vm805_vm2, %v1299_v33, 2147483647 }
 0xc29   : > { %v1302_v35 = vshra.s32 %v1300_v34, 16  ;;  %v1301_v37 = vand.u32 65535, %v1300_v34 }
 0xc2b   : > { %v1304_v36 = vcvt.s32.f32 %v1302_v35  ;;  %v1303_v40 = vcvt.s32.f32 %v1301_v37 }
 0xc2d   : > { %1305 = vmin.xlane.f32.xlu0 %v1304_v36 }
 0xcba   : > { %v1306_v39 = vpop.xlane.xlu0 %1305 }
 0xcbb   : > { %vm1307_vm7 = vcmp.eq.f32.partialorder %v1304_v36, %v1306_v39  ;;  %v1312_v42 = vcvt.f32.s32 %v1306_v39 }
 0xcbc   : > { %v1308_v41 = vsel %vm1307_vm7, %v1303_v40, inf }
 0xcbd   : > { %1309 = vmin.xlane.f32.xlu1 %v1308_v41  ;;  %v1313_v44 = vshll.u32 %v1312_v42, 16 }
 0xd4a   : > { %v1310_v43 = vpop.xlane.xlu1 %1309 }
 0xd4b   : > { %v1311_v45 = vcvt.f32.s32 %v1310_v43 }
 0xd4d   : > { %v4413_v46 = vadd.s32 %v1313_v44, %v1311_v45 }
 0xd4f   : > { %vm1315_vm9 = vcmp.eq.s32.totalorder %v4354_v7, %v4413_v46 }
 0xd50   : > { %v1317_v47 = vsel %vm1315_vm9, -inf, %v1294_v30 }
 0xd51   : > { %v1318_v48 = vsel %vm805_vm2, %v1317_v47, -inf }
 0xd52   : > { %1319 = vmax.xlane.f32.xlu0 %v1318_v48 }
 0xddf   : > { %v1320_v49 = vpop.xlane.xlu0 %1319 }
 0xde0   : > { %vm1321_vm10 = vcmp.eq.f32.partialorder %v1317_v47, %v1320_v49 }
 0xde1   : > { %v1322_v50 = vsel %vm1321_vm10, %v4354_v7, 16 }
 0xde2   : > { %v1323_v51 = vsel %vm805_vm2, %v1322_v50, 2147483647 }
 0xde3   : > { %v1325_v52 = vshra.s32 %v1323_v51, 16  ;;  %v1324_v55 = vand.u32 65535, %v1323_v51 }
 0xde5   : > { %v1327_v53 = vcvt.s32.f32 %v1325_v52  ;;  %v1326_v57 = vcvt.s32.f32 %v1324_v55 }
 0xde7   : > { %1328 = vmin.xlane.f32.xlu1 %v1327_v53 }
 0xe74   : > { %v1329_v56 = vpop.xlane.xlu1 %1328 }
 0xe75   : > { %vm1330_vm12 = vcmp.eq.f32.partialorder %v1327_v53, %v1329_v56  ;;  %v1335_v59 = vcvt.f32.s32 %v1329_v56 }
 0xe76   : > { %v1331_v58 = vsel %vm1330_vm12, %v1326_v57, inf }
 0xe77   : > { %1332 = vmin.xlane.f32.xlu0 %v1331_v58  ;;  %v1336_v61 = vshll.u32 %v1335_v59, 16 }
 0xf04   : > { %v1333_v60 = vpop.xlane.xlu0 %1332 }
 0xf05   : > { %v1334_v62 = vcvt.f32.s32 %v1333_v60 }
 0xf07   : > { %v4423_v63 = vadd.s32 %v1336_v61, %v1334_v62 }
 0xf09   : > { %vm1338_vm13 = vcmp.eq.s32.totalorder %v4354_v7, %v4423_v63 }
 0xf0a   : > { %v1340_v0 = vsel %vm1338_vm13, -inf, %v1317_v47 }
 0xf0b   : > { %v1341_v2 = vsel %vm805_vm2, %v1340_v0, -inf }
 0xf0c   : > { %1342 = vmax.xlane.f32.xlu1 %v1341_v2 }
 0xf99   : > { %v1343_v3 = vpop.xlane.xlu1 %1342 }
 0xf9a   : > { %vm1344_vm15 = vcmp.eq.f32.partialorder %v1340_v0, %v1343_v3 }
 0xf9b   : > { %v1345_v5 = vsel %vm1344_vm15, %v4354_v7, 16 }
 0xf9c   : > { %v1346_v9 = vsel %vm805_vm2, %v1345_v5, 2147483647 }
 0xf9d   : > { %v1348_v10 = vshra.s32 %v1346_v9, 16  ;;  %v1347_v13 = vand.u32 65535, %v1346_v9 }
 0xf9f   : > { %v1350_v12 = vcvt.s32.f32 %v1348_v10  ;;  %v1349_v15 = vcvt.s32.f32 %v1347_v13 }
 0xfa1   : > { %1351 = vmin.xlane.f32.xlu0 %v1350_v12 }
0x102e   : > { %v1352_v14 = vpop.xlane.xlu0 %1351 }
0x102f   : > { %vm1353_vm3 = vcmp.eq.f32.partialorder %v1350_v12, %v1352_v14  ;;  %v1358_v18 = vcvt.f32.s32 %v1352_v14 }
0x1030   : > { %v1354_v17 = vsel %vm1353_vm3, %v1349_v15, inf }
0x1031   : > { %1355 = vmin.xlane.f32.xlu1 %v1354_v17  ;;  %v1359_v20 = vshll.u32 %v1358_v18, 16 }
0x10be   : > { %v1356_v19 = vpop.xlane.xlu1 %1355 }
0x10bf   : > { %v1357_v21 = vcvt.f32.s32 %v1356_v19 }
0x10c1   : > { %v4433_v23 = vadd.s32 %v1359_v20, %v1357_v21 }
0x10c3   : > { %vm1361_vm6 = vcmp.eq.s32.totalorder %v4354_v7, %v4433_v23 }
0x10c4   : > { %v1363_v24 = vsel %vm1361_vm6, -inf, %v1340_v0 }
0x10c5   : > { %v1364_v25 = vsel %vm805_vm2, %v1363_v24, -inf }
0x10c6   : > { %1365 = vmax.xlane.f32.xlu0 %v1364_v25 }
0x1153   : > { %v1366_v26 = vpop.xlane.xlu0 %1365 }
0x1154   : > { %vm1367_vm7 = vcmp.eq.f32.partialorder %v1363_v24, %v1366_v26 }
0x1155   : > { %v1368_v27 = vsel %vm1367_vm7, %v4354_v7, 16 }
0x1156   : > { %v1369_v28 = vsel %vm805_vm2, %v1368_v27, 2147483647 }
0x1157   : > { %v1371_v30 = vshra.s32 %v1369_v28, 16  ;;  %v1370_v32 = vand.u32 65535, %v1369_v28 }
0x1159   : > { %v1373_v31 = vcvt.s32.f32 %v1371_v30  ;;  %v1372_v34 = vcvt.s32.f32 %v1370_v32 }
0x115b   : > { %1374 = vmin.xlane.f32.xlu1 %v1373_v31 }
0x11e8   : > { %v1375_v33 = vpop.xlane.xlu1 %1374 }
0x11e9   : > { %vm1376_vm10 = vcmp.eq.f32.partialorder %v1373_v31, %v1375_v33  ;;  %v1381_v36 = vcvt.f32.s32 %v1375_v33 }
0x11ea   : > { %v1377_v35 = vsel %vm1376_vm10, %v1372_v34, inf }
0x11eb   : > { %1378 = vmin.xlane.f32.xlu0 %v1377_v35  ;;  %v1382_v39 = vshll.u32 %v1381_v36, 16 }
0x1278   : > { %v1379_v37 = vpop.xlane.xlu0 %1378 }
0x1279   : > { %v1380_v40 = vcvt.f32.s32 %v1379_v37 }
0x127b   : > { %v4443_v41 = vadd.s32 %v1382_v39, %v1380_v40 }
0x127d   : > { %vm1384_vm12 = vcmp.eq.s32.totalorder %v4354_v7, %v4443_v41 }
0x127e   : > { %v1386_v42 = vsel %vm1384_vm12, -inf, %v1363_v24 }
0x127f   : > { %v1387_v43 = vsel %vm805_vm2, %v1386_v42, -inf }
0x1280   : > { %1388 = vmax.xlane.f32.xlu1 %v1387_v43 }
0x130d   : > { %v1389_v44 = vpop.xlane.xlu1 %1388 }
0x130e   : > { %vm1390_vm15 = vcmp.eq.f32.partialorder %v1386_v42, %v1389_v44 }
0x130f   : > { %v1391_v45 = vsel %vm1390_vm15, %v4354_v7, 16 }
0x1310   : > { %v1392_v47 = vsel %vm805_vm2, %v1391_v45, 2147483647 }
0x1311   : > { %v1394_v48 = vshra.s32 %v1392_v47, 16  ;;  %v1393_v50 = vand.u32 65535, %v1392_v47 }
0x1313   : > { %v1396_v49 = vcvt.s32.f32 %v1394_v48  ;;  %v1395_v52 = vcvt.s32.f32 %v1393_v50 }
0x1315   : > { %1397 = vmin.xlane.f32.xlu0 %v1396_v49 }
0x13a2   : > { %v1398_v51 = vpop.xlane.xlu0 %1397 }
0x13a3   : > { %vm1399_vm3 = vcmp.eq.f32.partialorder %v1396_v49, %v1398_v51  ;;  %v1404_v55 = vcvt.f32.s32 %v1398_v51 }
0x13a4   : > { %v1400_v53 = vsel %vm1399_vm3, %v1395_v52, inf }
0x13a5   : > { %1401 = vmin.xlane.f32.xlu1 %v1400_v53  ;;  %v1405_v57 = vshll.u32 %v1404_v55, 16  ;;  %v1478_v53 = vsub.f32 %v4349_v4, %v4356_v8 }
0x13a7   : > { %v1479_v55 = vmul.f32 1.442695, %v1478_v53 }
0x13a9   : > { %4119 = vpow2.f32 %v1479_v55 }
0x1432   : > { %v1402_v56 = vpop.xlane.xlu1 %1401 }
0x1433   : > { %v1403_v58 = vcvt.f32.s32 %v1402_v56  ;;  %v1201_v56 = vsel %vm1200_vm5, 1.0, %v4153_v1 }
0x1435   : > { %v4453_v59 = vadd.s32 %v1405_v57, %v1403_v58  ;;  %v1224_v57 = vsel %vm1223_vm8, 1.0, %v1201_v56 }
0x1436   : > { %v1247_v58 = vsel %vm1246_vm11, 1.0, %v1224_v57 }
0x1437   : > { %vm1407_vm7 = vcmp.eq.s32.totalorder %v4354_v7, %v4453_v59 }
0x1438   : > { %v1409_v60 = vsel %vm1407_vm7, -inf, %v1386_v42 }
0x1439   : > { %v1410_v61 = vsel %vm805_vm2, %v1409_v60, -inf }
0x143a   : > { %1411 = vmax.xlane.f32.xlu0 %v1410_v61 }
0x14c7   : > { %v1412_v62 = vpop.xlane.xlu0 %1411 }
0x14c8   : > { %vm1413_vm10 = vcmp.eq.f32.partialorder %v1409_v60, %v1412_v62 }
0x14c9   : > { %v1414_v0 = vsel %vm1413_vm10, %v4354_v7, 16 }
0x14ca   : > { %v1415_v2 = vsel %vm805_vm2, %v1414_v0, 2147483647 }
0x14cb   : > { %v1417_v3 = vshra.s32 %v1415_v2, 16  ;;  %v1416_v9 = vand.u32 65535, %v1415_v2 }
0x14cd   : > { %v1419_v5 = vcvt.s32.f32 %v1417_v3  ;;  %v1418_v12 = vcvt.s32.f32 %v1416_v9 }
0x14cf   : > { %1420 = vmin.xlane.f32.xlu1 %v1419_v5 }
0x155c   : > { %v1421_v10 = vpop.xlane.xlu1 %1420 }
0x155d   : > { %vm1422_vm15 = vcmp.eq.f32.partialorder %v1419_v5, %v1421_v10  ;;  %v1427_v14 = vcvt.f32.s32 %v1421_v10 }
0x155e   : > { %v1423_v13 = vsel %vm1422_vm15, %v1418_v12, inf }
0x155f   : > { %1424 = vmin.xlane.f32.xlu0 %v1423_v13  ;;  %v1428_v17 = vshll.u32 %v1427_v14, 16 }
0x15ec   : > { %v1425_v15 = vpop.xlane.xlu0 %1424 }
0x15ed   : > { %v1426_v18 = vcvt.f32.s32 %v1425_v15  ;;  %v4120_v15 = vpop.eup %4119 }
0x15ef   : > { %v4463_v19 = vadd.s32 %v1428_v17, %v1426_v18 }
0x15f1   : > { %vm1430_vm3 = vcmp.eq.s32.totalorder %v4354_v7, %v4463_v19 }
0x15f2   : > { %v1432_v20 = vsel %vm1430_vm3, -inf, %v1409_v60  ;;  %v1270_v60 = vsel %vm1269_vm14, 1.0, %v1247_v58  ;;  %v4099_v58 = vld [vmem:[%s5310_s29] sm:$0xff]  }
0x15f3   : > { %v1433_v21 = vsel %vm805_vm2, %v1432_v20, -inf  ;;  %v1293_v8 = vsel %vm1292_vm4, 1.0, %v1270_v60  ;;  %3904 = vmatpush3.bf16.msra.mxu0 %v4099_v58  ;;  %v4589_v60 = vshrl.u32 %v1167_v6, 7 }
0x15f4   : > { %1434 = vmax.xlane.f32.xlu1 %v1433_v21  ;;  %v1316_v61 = vsel %vm1315_vm9, 1.0, %v1293_v8  ;;  %3905 = vmatprep.subr.bf16.mxu0 %v4153_v1 }
0x15f5   : > { %v1339_v62 = vsel %vm1338_vm13, 1.0, %v1316_v61  ;;  %v1172_v8 = vsub.s32 %v4354_v7, %v4589_v60 }
0x15f6   : > { %v1362_v2 = vsel %vm1361_vm6, 1.0, %v1339_v62 }
0x15f7   : > { %v1385_v9 = vsel %vm1384_vm12, 1.0, %v1362_v2  ;;  %v1176_v62 = vadd.s32 16, %v1172_v8 }
0x15f8   : > { %v1408_v12 = vsel %vm1407_vm7, 1.0, %v1385_v9 }
0x15f9   : > { %v1431_v13 = vsel %vm1430_vm3, 1.0, %v1408_v12 }
0x1681   : > { %v1435_v24 = vpop.xlane.xlu1 %1434 }
0x1682   : > { %vm1436_vm10 = vcmp.eq.f32.partialorder %v1432_v20, %v1435_v24 }
0x1683   : > { %v1437_v25 = vsel %vm1436_vm10, %v4354_v7, 16 }
0x1684   : > { %v1438_v26 = vsel %vm805_vm2, %v1437_v25, 2147483647 }
0x1685   : > { %v1440_v27 = vshra.s32 %v1438_v26, 16  ;;  %v1439_v30 = vand.u32 65535, %v1438_v26 }
0x1687   : > { %v1442_v28 = vcvt.s32.f32 %v1440_v27  ;;  %v1441_v32 = vcvt.s32.f32 %v1439_v30 }
0x1689   : > { %1443 = vmin.xlane.f32.xlu0 %v1442_v28 }
0x1716   : > { %v1444_v31 = vpop.xlane.xlu0 %1443 }
0x1717   : > { %vm1445_vm15 = vcmp.eq.f32.partialorder %v1442_v28, %v1444_v31  ;;  %v1450_v34 = vcvt.f32.s32 %v1444_v31 }
0x1718   : > { %v1446_v33 = vsel %vm1445_vm15, %v1441_v32, inf }
0x1719   : > { %1447 = vmin.xlane.f32.xlu1 %v1446_v33  ;;  %v1451_v36 = vshll.u32 %v1450_v34, 16 }
0x17a6   : > { %v1448_v35 = vpop.xlane.xlu1 %1447 }
0x17a7   : > { %v1449_v37 = vcvt.f32.s32 %v1448_v35 }
0x17a9   : > { %v4473_v39 = vadd.s32 %v1451_v36, %v1449_v37 }
0x17ab   : > { %vm1453_vm10 = vcmp.eq.s32.totalorder %v4354_v7, %v4473_v39 }
0x17ac   : > { %v1455_v40 = vsel %vm1453_vm10, -inf, %v1432_v20  ;;  %v1454_v14 = vsel %vm1453_vm10, 1.0, %v1431_v13 }
0x17ad   : > { %v1456_v42 = vsel %vm805_vm2, %v1455_v40, -inf }
0x17ae   : > { %1457 = vmax.xlane.f32.xlu0 %v1456_v42 }
0x183b   : > { %v1458_v43 = vpop.xlane.xlu0 %1457 }
0x183c   : > { %vm1459_vm1 = vcmp.eq.f32.partialorder %v1455_v40, %v1458_v43 }
0x183d   : > { %v1460_v44 = vsel %vm1459_vm1, %v4354_v7, 16 }
0x183e   : > { %v1461_v45 = vsel %vm805_vm2, %v1460_v44, 2147483647 }
0x183f   : > { %v1463_v47 = vshra.s32 %v1461_v45, 16  ;;  %v1462_v49 = vand.u32 65535, %v1461_v45 }
0x1841   : > { %v1465_v48 = vcvt.s32.f32 %v1463_v47  ;;  %v1464_v51 = vcvt.s32.f32 %v1462_v49 }
0x1843   : > { %1466 = vmin.xlane.f32.xlu1 %v1465_v48 }
0x18d0   : > { %v1467_v50 = vpop.xlane.xlu1 %1466 }
0x18d1   : > { %vm1468_vm15 = vcmp.eq.f32.partialorder %v1465_v48, %v1467_v50  ;;  %v1473_v4 = vcvt.f32.s32 %v1467_v50 }
0x18d2   : > { %v1469_v52 = vsel %vm1468_vm15, %v1464_v51, inf }
0x18d3   : > { %1470 = vmin.xlane.f32.xlu0 %v1469_v52  ;;  %v1474_v3 = vshll.u32 %v1473_v4, 16  ;;  %v1171_v4 = vadd.s32 8, %v4589_v60 }
0x18d5   : > { %v1173_v61 = vsub.s32 %v4354_v7, %v1171_v4 }
0x1960   : > { %v1471_v0 = vpop.xlane.xlu0 %1470 }
0x1961   : > { %v1472_v5 = vcvt.f32.s32 %v1471_v0  ;;  %v1177_v0 = vadd.s32 16, %v1173_v61 }
0x1963   : > { %v4513_v10 = vadd.s32 %v1474_v3, %v1472_v5 }
0x1965   : > { %vm1476_vm1 = vcmp.eq.s32.totalorder %v4354_v7, %v4513_v10 }
0x1966   : > { %v1477_v17 = vsel %vm1476_vm1, 1.0, %v1454_v14 }
0x1967   : > { %v1481_v18 = vmul.f32 %v4120_v15, %v1477_v17 }
0x1969   : > { %v1482_v20 = vsel %vm805_vm2, %v1481_v18, 0.0 }
0x196a   : > { %1483 = vadd.xlane.f32.xlu1 %v1482_v20 }
0x19f7   : > { %v1484_v21 = vpop.xlane.xlu1 %1483 }
0x19f8   : > { %4121 = vrcp.f32 %v1484_v21 }
0x1a02   : > { %v4122_v24 = vpop.eup %4121 }
0x1a03   : > { %v1487_v25 = vmul.f32 %v4122_v24, %v1481_v18 }
0x1a05   : > { %v1502_v26 = vsel %vm1223_vm8, %v1487_v25, 0.0  ;;  %v1488_v27 = vsel %vm1200_vm5, %v1487_v25, 0.0  ;;  %v1530_v31 = vsel %vm1269_vm14, %v1487_v25, 0.0  ;;  %v1516_v32 = vsel %vm1246_vm11, %v1487_v25, 0.0 }
0x1a06   : > { %v1503_v28 = vsel %vm805_vm2, %v1502_v26, 0.0  ;;  %v1489_v30 = vsel %vm805_vm2, %v1488_v27, 0.0  ;;  %v1531_v33 = vsel %vm805_vm2, %v1530_v31, 0.0  ;;  %v1517_v34 = vsel %vm805_vm2, %v1516_v32, 0.0 }
0x1a07   : > { %1504 = vadd.xlane.f32.xlu1 %v1503_v28  ;;  %1490 = vadd.xlane.f32.xlu0 %v1489_v30  ;;  %v1558_v35 = vsel %vm1315_vm9, %v1487_v25, 0.0  ;;  %v1544_v36 = vsel %vm1292_vm4, %v1487_v25, 0.0  ;;  %v1586_v42 = vsel %vm1361_vm6, %v1487_v25, 0.0  ;;  %v1572_v43 = vsel %vm1338_vm13, %v1487_v25, 0.0 }
0x1a08   : > { %v1559_v37 = vsel %vm805_vm2, %v1558_v35, 0.0  ;;  %v1545_v40 = vsel %vm805_vm2, %v1544_v36, 0.0  ;;  %v1587_v44 = vsel %vm805_vm2, %v1586_v42, 0.0  ;;  %v1573_v45 = vsel %vm805_vm2, %v1572_v43, 0.0 }
0x1a09   : > { %v1614_v47 = vsel %vm1407_vm7, %v1487_v25, 0.0  ;;  %v1600_v48 = vsel %vm1384_vm12, %v1487_v25, 0.0  ;;  %v1642_v51 = vsel %vm1453_vm10, %v1487_v25, 0.0  ;;  %v1628_v52 = vsel %vm1430_vm3, %v1487_v25, 0.0 }
0x1a0a   : > { %v1615_v49 = vsel %vm805_vm2, %v1614_v47, 0.0  ;;  %v1601_v50 = vsel %vm805_vm2, %v1600_v48, 0.0  ;;  %v1643_v53 = vsel %vm805_vm2, %v1642_v51, 0.0  ;;  %v1629_v55 = vsel %vm805_vm2, %v1628_v52, 0.0 }
0x1a0b   : > { %1532 = vadd.xlane.f32.xlu1 %v1531_v33  ;;  %1518 = vadd.xlane.f32.xlu0 %v1517_v34  ;;  %v1656_v56 = vsel %vm1476_vm1, %v1487_v25, 0.0  ;;  %vm1174_vm5 = vcmp.ge.s32.totalorder %v1172_v8, 0  ;;  %vm1175_vm8 = vcmp.ge.s32.totalorder %v1173_v61, 0 }
0x1a0c   : > { %v1657_v57 = vsel %vm805_vm2, %v1656_v56, 0.0  ;;  %v4597_v2 = vsel %vm1175_vm8, %v1173_v61, %v1177_v0 }
0x1a0d   : > { %vm1493_vm14 = vcmp.eq.s32.totalorder %v4597_v2, %v4362_v22  ;;  %vm1507_vm9 = vcmp.eq.s32.totalorder %v4597_v2, %v4373_v38  ;;  %vm1521_vm6 = vcmp.eq.s32.totalorder %v4597_v2, %v4383_v54  ;;  %vm1535_vm7 = vcmp.eq.s32.totalorder %v4597_v2, %v4393_v11 }
0x1a0e   : > { %v3685_v3 = vsel %vm1493_vm14, 1.0, %v4153_v1  ;;  %v3687_v9 = vsel %vm1507_vm9, 1.0, %v4153_v1  ;;  %v3689_v24 = vsel %vm1521_vm6, 1.0, %v4153_v1  ;;  %vm1549_vm10 = vcmp.eq.s32.totalorder %v4597_v2, %v4403_v29 }
0x1a0f   : > { %1560 = vadd.xlane.f32.xlu1 %v1559_v37  ;;  %1546 = vadd.xlane.f32.xlu0 %v1545_v40  ;;  %v3691_v28 = vsel %vm1535_vm7, 1.0, %v4153_v1  ;;  %vm1563_vm1 = vcmp.eq.s32.totalorder %v4597_v2, %v4413_v46  ;;  %v3693_v35 = vsel %vm1549_vm10, 1.0, %v4153_v1  ;;  %vm1577_vm8 = vcmp.eq.s32.totalorder %v4597_v2, %v4423_v63 }
0x1a10   : > { %vm1591_vm14 = vcmp.eq.s32.totalorder %v4597_v2, %v4433_v23  ;;  %vm1605_vm9 = vcmp.eq.s32.totalorder %v4597_v2, %v4443_v41  ;;  %vm1619_vm6 = vcmp.eq.s32.totalorder %v4597_v2, %v4453_v59  ;;  %vm1633_vm7 = vcmp.eq.s32.totalorder %v4597_v2, %v4463_v19 }
0x1a11   : > { %v3701_v4 = vsel %vm1605_vm9, 1.0, %v4153_v1  ;;  %vm1647_vm10 = vcmp.eq.s32.totalorder %v4597_v2, %v4473_v39  ;;  %vm5296_vm9 = vcmask 1044480  }
0x1a13   : > { %1588 = vadd.xlane.f32.xlu1 %v1587_v44  ;;  %1574 = vadd.xlane.f32.xlu0 %v1573_v45  ;;  %v3697_v45 = vsel %vm1577_vm8, 1.0, %v4153_v1 }
0x1a17   : > { %1616 = vadd.xlane.f32.xlu1 %v1615_v49  ;;  %1602 = vadd.xlane.f32.xlu0 %v1601_v50 }
0x1a1b   : > { %1644 = vadd.xlane.f32.xlu1 %v1643_v53  ;;  %1630 = vadd.xlane.f32.xlu0 %v1629_v55 }
0x1a1f   : > { %1658 = vadd.xlane.f32.xlu0 %v1657_v57 }
0x1a2c   : > { %4078 = vrot.lane.b32.xlu1 %v4320_v16, %s5293_s2  ;;  %v4595_v16 = vsel %vm1174_vm5, %v1172_v8, %v1176_v62 }
0x1a2d   : > { %vm1492_vm11 = vcmp.eq.s32.totalorder %v4595_v16, %v4362_v22  ;;  %vm1506_vm4 = vcmp.eq.s32.totalorder %v4595_v16, %v4373_v38  ;;  %vm1520_vm13 = vcmp.eq.s32.totalorder %v4595_v16, %v4383_v54  ;;  %vm1534_vm12 = vcmp.eq.s32.totalorder %v4595_v16, %v4393_v11 }
0x1a2e   : > { %v3684_v6 = vsel %vm1492_vm11, 1.0, %v4153_v1  ;;  %v3686_v5 = vsel %vm1506_vm4, 1.0, %v4153_v1  ;;  %v3688_v21 = vsel %vm1520_vm13, 1.0, %v4153_v1  ;;  %vm1548_vm3 = vcmp.eq.s32.totalorder %v4595_v16, %v4403_v29 }
0x1a2f   : > { %v3690_v27 = vsel %vm1534_vm12, 1.0, %v4153_v1  ;;  %vm1562_vm15 = vcmp.eq.s32.totalorder %v4595_v16, %v4413_v46  ;;  %v3692_v34 = vsel %vm1548_vm3, 1.0, %v4153_v1  ;;  %vm1576_vm5 = vcmp.eq.s32.totalorder %v4595_v16, %v4423_v63 }
0x1a30   : > { %v3694_v36 = vsel %vm1562_vm15, 1.0, %v4153_v1  ;;  %v3695_v46 = vsel %vm1563_vm1, 1.0, %v4153_v1  ;;  %vm1590_vm11 = vcmp.eq.s32.totalorder %v4595_v16, %v4433_v23  ;;  %v3696_v44 = vsel %vm1576_vm5, 1.0, %v4153_v1 }
0x1a31   : > { %vm1604_vm4 = vcmp.eq.s32.totalorder %v4595_v16, %v4443_v41  ;;  %v3698_v52 = vsel %vm1590_vm11, 1.0, %v4153_v1  ;;  %v3699_v23 = vsel %vm1591_vm14, 1.0, %v4153_v1  ;;  %vm1618_vm13 = vcmp.eq.s32.totalorder %v4595_v16, %v4453_v59 }
0x1a32   : > { %v3700_v58 = vsel %vm1604_vm4, 1.0, %v4153_v1  ;;  %vm1632_vm12 = vcmp.eq.s32.totalorder %v4595_v16, %v4463_v19  ;;  %vm1646_vm3 = vcmp.eq.s32.totalorder %v4595_v16, %v4473_v39  ;;  %vm1660_vm15 = vcmp.eq.s32.totalorder %v4595_v16, %v4513_v10 }
0x1a33   : > { %vm1661_vm1 = vcmp.eq.s32.totalorder %v4597_v2, %v4513_v10  ;;  %v3707_v39 = vsel %vm1647_vm10, 1.0, %v4153_v1  ;;  %vm5311_vm5 = vcmask 261120   ;;  %vm5299_vm11 = vcmask 1041408  }
0x1a34   : > { %vm5314_vm8 = vmmov %vm5311_vm5  ;;  %vm5298_vm14 = vcmask 1046528   ;;  %vm5297_vm4 = vcmask 1045504  }
0x1a94   : > { %v1505_v12 = vpop.xlane.xlu1 %1504  ;;  %v1491_v13 = vpop.xlane.xlu0 %1490 }
0x1a95   : > { %v1512_v22 = vmul.f32 %v3686_v5, %v1505_v12  ;;  %v1513_v14 = vmul.f32 %v3687_v9, %v1505_v12  ;;  %v1498_v15 = vmul.f32 %v3684_v6, %v1491_v13  ;;  %v1499_v38 = vmul.f32 %v3685_v3, %v1491_v13 }
0x1a96   : > { %v3702_v3 = vsel %vm1618_vm13, 1.0, %v4153_v1  ;;  %v3703_v5 = vsel %vm1619_vm6, 1.0, %v4153_v1  ;;  %vm5295_vm13 = vcmask 1043456   ;;  %vm5316_vm6 = vmmov %vm5311_vm5 }
0x1a97   : > { %v1514_v17 = vadd.f32 %v1512_v22, %v1498_v15  ;;  %v1515_v18 = vadd.f32 %v1513_v14, %v1499_v38  ;;  %v3704_v22 = vsel %vm1632_vm12, 1.0, %v4153_v1  ;;  %v3705_v14 = vsel %vm1633_vm7, 1.0, %v4153_v1  ;;  %vm5317_vm12 = vmmov %vm5311_vm5 }
0x1a98   : > { %v1533_v20 = vpop.xlane.xlu1 %1532  ;;  %v1519_v25 = vpop.xlane.xlu0 %1518  ;;  %vm5318_vm7 = vmmov %vm5311_vm5 }
0x1a99   : > { %v1526_v26 = vmul.f32 %v3688_v21, %v1519_v25  ;;  %v1527_v54 = vmul.f32 %v3689_v24, %v1519_v25  ;;  %v1540_v11 = vmul.f32 %v3690_v27, %v1533_v20  ;;  %v1541_v30 = vmul.f32 %v3691_v28, %v1533_v20 }
0x1a9a   : > { %v3708_v27 = vsel %vm1660_vm15, 1.0, %v4153_v1  ;;  %v3709_v28 = vsel %vm1661_vm1, 1.0, %v4153_v1 }
0x1a9b   : > { %v1528_v31 = vadd.f32 %v1526_v26, %v1514_v17  ;;  %v1529_v32 = vadd.f32 %v1527_v54, %v1515_v18  ;;  %v3706_v54 = vsel %vm1646_vm3, 1.0, %v4153_v1  ;;  %vm5319_vm3 = vmmov %vm5311_vm5 }
0x1a9c   : > { %v1561_v33 = vpop.xlane.xlu1 %1560  ;;  %v1547_v29 = vpop.xlane.xlu0 %1546  ;;  %vm5320_vm10 = vmmov %vm5319_vm3 }
0x1a9d   : > { %v1542_v37 = vadd.f32 %v1540_v11, %v1528_v31  ;;  %v1543_v40 = vadd.f32 %v1541_v30, %v1529_v32  ;;  %v1554_v42 = vmul.f32 %v3692_v34, %v1547_v29  ;;  %v1555_v43 = vmul.f32 %v3693_v35, %v1547_v29 }
0x1a9e   : > { %v1568_v63 = vmul.f32 %v3694_v36, %v1561_v33  ;;  %v1569_v47 = vmul.f32 %v3695_v46, %v1561_v33 }
0x1a9f   : > { %v1556_v48 = vadd.f32 %v1554_v42, %v1542_v37  ;;  %v1557_v49 = vadd.f32 %v1555_v43, %v1543_v40 }
0x1aa0   : > { %v1589_v50 = vpop.xlane.xlu1 %1588  ;;  %v1575_v51 = vpop.xlane.xlu0 %1574 }
0x1aa1   : > { %v1582_v53 = vmul.f32 %v3696_v44, %v1575_v51  ;;  %v1583_v55 = vmul.f32 %v3697_v45, %v1575_v51  ;;  %v1570_v56 = vadd.f32 %v1568_v63, %v1556_v48  ;;  %v1571_v57 = vadd.f32 %v1569_v47, %v1557_v49  ;;  %v4100_v44 = vld [vmem:[%s5310_s29 + $0x8] sm:$0xff]   ;;  %v4101_v48 = vld [vmem:[%s5312_s6] sm:$0xff]  }
0x1aa2   : > { %v1596_v8 = vmul.f32 %v3698_v52, %v1589_v50  ;;  %v1597_v61 = vmul.f32 %v3699_v23, %v1589_v50  ;;  %3906 = vmatpush3.bf16.msra.mxu0 %v4100_v44  ;;  %v4102_v49 = vld [vmem:[%s5274_s8] sm:$0xff]   ;;  %v4103_v50 = vld [vmem:[%s5312_s6 + $0x8] sm:$0xff]  }
0x1aa3   : > { %v1584_v62 = vadd.f32 %v1582_v53, %v1570_v56  ;;  %v1585_v59 = vadd.f32 %v1583_v55, %v1571_v57  ;;  %3919 = vmatprep.subr.bf16.mxu0 %v4153_v1  ;;  %v4104_v51 = vld [vmem:[%s5274_s8 + $0x8] sm:$0xff]   ;;  %v1955_v52 = vld [vmem:[%s713_s26] sm:$0xff] }
0x1aa4   : > { %v1617_v0 = vpop.xlane.xlu1 %1616  ;;  %v1603_v6 = vpop.xlane.xlu0 %1602  ;;  %v1956_v23 = vld [vmem:[%s713_s26 + $0x8] sm:$0xff]  ;;  %v4717_v55 = vld [vmem:[%s5281_s15] sm:$0xff]  ;;  %s4158_s26 = smov 32  }
0x1aa5   : > { %v1610_v9 = vmul.f32 %v3700_v58, %v1603_v6  ;;  %v1611_v12 = vmul.f32 %v3701_v4, %v1603_v6  ;;  %v1598_v41 = vadd.f32 %v1596_v8, %v1584_v62  ;;  %v1599_v13 = vadd.f32 %v1597_v61, %v1585_v59  ;;  %v3712_v56 = vld [vmem:[%s5315_s0] ss:$0 sm:$0xff]  ;;  %s718_s0 = scalar_lea.vmem %s5283_s17, %s4292_s1 }
0x1aa6   : > { %v1624_v19 = vmul.f32 %v3702_v3, %v1617_v0  ;;  %v1625_v15 = vmul.f32 %v3703_v5, %v1617_v0  ;;  %v1961_v53 = vpack.c.bf16 %v1956_v23, %v1955_v52  ;;  %v4725_v4 = vsub.s32 0, %v4589_v60  ;;  %v4140_v62 = vld [vmem:[%s4298_s25] sm:$0xff] }
0x1aa7   : > { %v1612_v38 = vadd.f32 %v1610_v9, %v1598_v41  ;;  %v1613_v17 = vadd.f32 %v1611_v12, %v1599_v13  ;;  %v4729_v6 = vsub.s32 7, %v4589_v60  ;;  %v4141_v12 = vld [vmem:[%s4298_s25 + $0x8] sm:$0xff]  ;;  %s5321_s25 = smov 96  }
0x1aa8   : > { %v1645_v18 = vpop.xlane.xlu1 %1644  ;;  %v1631_v20 = vpop.xlane.xlu0 %1630 }
0x1aa9   : > { %v1638_v21 = vmul.f32 %v3704_v22, %v1631_v20  ;;  %v1639_v24 = vmul.f32 %v3705_v14, %v1631_v20  ;;  %v1626_v25 = vadd.f32 %v1624_v19, %v1612_v38  ;;  %v1627_v26 = vadd.f32 %v1625_v15, %v1613_v17 }
0x1aaa   : > { %v1652_v11 = vmul.f32 %v3706_v54, %v1645_v18  ;;  %v1653_v10 = vmul.f32 %v3707_v39, %v1645_v18 }
0x1aab   : > { %v1640_v30 = vadd.f32 %v1638_v21, %v1626_v25  ;;  %v1641_v31 = vadd.f32 %v1639_v24, %v1627_v26 }
0x1aac   : > { %v4079_v32 = vpop.permute.xlu1 %4078  ;;  %v1659_v33 = vpop.xlane.xlu0 %1658 }
0x1aad   : > { %v4081_v34 = vunpack.i.h.bf16 %v4079_v32  ;;  %v4080_v35 = vunpack.i.l.bf16 %v4079_v32  ;;  %v1666_v29 = vmul.f32 %v3708_v27, %v1659_v33  ;;  %v1667_v36 = vmul.f32 %v3709_v28, %v1659_v33 }
0x1aae   : > { %v1654_v46 = vadd.f32 %v1652_v11, %v1640_v30  ;;  %v1655_v37 = vadd.f32 %v1653_v10, %v1641_v31 }
0x1aaf   : > { %v4026_v40 = vpack.c.bf16 %v4081_v34, %v4080_v35 }
0x1ab0   : > { %v1668_v42 = vadd.f32 %v1666_v29, %v1654_v46  ;;  %v1669_v43 = vadd.f32 %v1667_v36, %v1655_v37 }
0x1ab1   : > { %4027 = vmatprep.subr.bf16.mxu1 %v4026_v40 }
0x1ab2   : > { %3900 = vmatprep.mubr.msk.f32.mxu1 %vm805_vm2, %v1668_v42  ;;  %4029 = vmatpush3.bf16.msra.mxu1 %v4026_v40 }
0x1ab3   : > { %3911 = vmatprep.subr.bf16.mxu1 %v4153_v1 }
0x1ab5   : > { %3901 = vmatmul.mubr.msk.f32.vlgmr.msra.gmra.mrb[10].mxu1 %vm805_vm2, %v1669_v43 }
0x1ab6   : > { %3915 = vmatprep.mubr.msk.bf16.mxu1 %vm4154_vm0, %v4153_v1  ;;  %3912 = vmatpush3.bf16.msra.mxu1 %v4101_v48 }
0x1ab7   : > { %3913 = vmatprep.subr.bf16.mxu1 %v4153_v1 }
0x1aba   : > { %3914 = vmatpush3.bf16.msra.mxu1 %v4103_v50 }
0x1b88   : > { %v3902_v45 = vpop.f32.mrb[10].mxu1 }
0x1b89   : > { %v1748_v63 = vpop.f32.mrb[11].mxu1 }
0x1b8a   : > { %v1757_v47 = vpack.c.bf16 %v3902_v45, %v1748_v63 }
0x1b8c   : > { %3908 = vmatmul.mubr.msk.bf16.vlgmr.msra.gmra.mrb[4].mxu0 %vm5311_vm5, %v1757_v47 }
0x1b8d   : > { %3923 = vmatprep.mubr.msk.bf16.mxu0 %vm4154_vm0, %v4153_v1  ;;  %3920 = vmatpush3.bf16.msra.mxu0 %v4102_v49  ;;  %v3720_v49 = vld [vmem:[%s5275_s9] ss:$0 sm:$0xff] }
0x1b8e   : > { %3921 = vmatprep.subr.bf16.mxu0 %v4153_v1 }
0x1b91   : > { %3922 = vmatpush3.bf16.msra.mxu0 %v4104_v51 }
0x1b94   : > { %3924 = vmatmul.mubr.msk.bf16.vlgmr.msra.gmra.mrb[8].mxu0 %vm5314_vm8, %v1961_v53 }
0x1b95   : > { %3945 = vmatprep.mubr.msk.f32.mxu0 %vm805_vm2, %v4717_v55 }
0x1c5f   : > { %v1813_v57 = vpop.f32.mrb[4].mxu0 }
0x1c60   : > { %v1814_v58 = vadd.f32 %v3712_v56, %v1813_v57  ;;  %v3909_v8 = vpop.f32.mrb[5].mxu0 }
0x1c61   : > { %v1816_v61 = vpop.f32.mrb[6].mxu0  ;;  %v4142_v8 = vld [vmem:[%s5281_s15 + $0x8] sm:$0xff] }
0x1c62   : > { %v1820_v59 = vadd.f32 %v4140_v62, %v1814_v58  ;;  %v1817_v0 = vadd.f32 %v3712_v56, %v1816_v61  ;;  %v3910_v3 = vpop.f32.mrb[7].mxu0  ;;  %v3716_v61 = vld [vmem:[%s5273_s7] ss:$0 sm:$0xff] }
0x1c64   : > { %v1825_v5 = vrot.slane %v1820_v59, %v4725_v4  ;;  %v1833_v9 = vrot.slane %v1820_v59, 6  ;;  %v1821_v41 = vadd.f32 %v4141_v12, %v1817_v0 }
0x1c66   : > { %v1839_v13 = vsel %vm5299_vm11, %v1825_v5, %v1833_v9  ;;  %v1829_v22 = vrot.slane %v1821_v41, %v4729_v6  ;;  %v1834_v14 = vrot.slane %v1821_v41, 6 }
0x1c67   : > { %v1844_v19 = vrot.slane %v1839_v13, 1  ;;  %v1854_v15 = vrot.slane %v1839_v13, 2  ;;  %v1864_v60 = vrot.slane %v1839_v13, 3  ;;  %v1874_v38 = vrot.slane %v1839_v13, 4  ;;  %v2018_v50 = vpop.f32.mrb[8].mxu0 }
0x1c68   : > { %v1835_v17 = vsel %vm5299_vm11, %v1833_v9, %v1834_v14  ;;  %v1840_v18 = vsel %vm5299_vm11, %v1834_v14, %v1829_v22  ;;  %v4763_v51 = vadd.f32 %v3720_v49, %v2018_v50  ;;  %v3925_v52 = vpop.f32.mrb[9].mxu0 }
0x1c69   : > { %v1845_v20 = vrot.slane %v1835_v17, 1  ;;  %v1847_v21 = vrot.slane %v1840_v18, 1  ;;  %v1855_v24 = vrot.slane %v1835_v17, 2  ;;  %v1857_v25 = vrot.slane %v1840_v18, 2  ;;  %v2021_v23 = vpop.f32.mrb[10].mxu0 }
0x1c6a   : > { %v1865_v26 = vrot.slane %v1835_v17, 3  ;;  %v1867_v54 = vrot.slane %v1840_v18, 3  ;;  %v1875_v39 = vrot.slane %v1835_v17, 4  ;;  %v1877_v27 = vrot.slane %v1840_v18, 4  ;;  %v3926_v56 = vpop.f32.mrb[11].mxu0 }
0x1c6b   : > { %v1846_v28 = vsel %vm5298_vm14, %v1844_v19, %v1845_v20  ;;  %v1848_v11 = vsel %vm5298_vm14, %v1845_v20, %v1847_v21  ;;  %v1856_v10 = vsel %vm5297_vm4, %v1854_v15, %v1855_v24  ;;  %v1858_v30 = vsel %vm5297_vm4, %v1855_v24, %v1857_v25 }
0x1c6c   : > { %v1851_v31 = vadd.f32 %v1846_v28, %v1839_v13  ;;  %v1852_v32 = vadd.f32 %v1848_v11, %v1835_v17  ;;  %v1866_v33 = vsel %vm5296_vm9, %v1864_v60, %v1865_v26  ;;  %v1868_v34 = vsel %vm5296_vm9, %v1865_v26, %v1867_v54  ;;  %v4144_v13 = vld [vmem:[%s5282_s16 + $0x8] sm:$0xff] }
0x1c6d   : > { %v1876_v35 = vsel %vm5295_vm13, %v1874_v38, %v1875_v39  ;;  %v1878_v29 = vsel %vm5295_vm13, %v1875_v39, %v1877_v27  ;;  %v4765_v53 = vadd.f32 %v3720_v49, %v2021_v23 }
0x1c6e   : > { %v1861_v36 = vadd.f32 %v1856_v10, %v1851_v31  ;;  %v1862_v46 = vadd.f32 %v1858_v30, %v1852_v32 }
0x1c6f   : > { %v4082_v57 = vpack.i.bf16 %v4765_v53, %v4763_v51  ;;  %v4038_v58 = vpack.c.bf16 %v4765_v53, %v4763_v51 }
0x1c70   : > { %v1871_v37 = vadd.f32 %v1866_v33, %v1861_v36  ;;  %v1872_v40 = vadd.f32 %v1868_v34, %v1862_v46 }
0x1c71   : > { %4039 = vmatprep.subr.bf16.mxu0 %v4038_v58 }
0x1c72   : > { %v1881_v42 = vadd.f32 %v1876_v35, %v1871_v37  ;;  %v1882_v43 = vadd.f32 %v1878_v29, %v1872_v40  ;;  %4041 = vmatpush3.bf16.msra.mxu0 %v4038_v58 }
0x1c74   : > { %v4745_v44 = vmul.f32 0.2, %v1881_v42  ;;  %v4747_v45 = vmul.f32 0.2, %v1882_v43 }
0x1c75   : > { %3946 = vmatmul.mubr.msk.f32.vlgmr.msra.gmra.mrb[2].mxu0 %vm805_vm2, %v4142_v8 }
0x1c76   : > { %v4750_v63 = vsub.f32 %v1820_v59, %v4745_v44  ;;  %v4753_v47 = vsub.f32 %v1821_v41, %v4747_v45  ;;  %v4143_v41 = vld [vmem:[%s5282_s16] sm:$0xff] }
0x1c78   : > { %v1891_v48 = vpack.c.bf16 %v4753_v47, %v4750_v63 }
0x1c7a   : > { %3916 = vmatmul.mubr.msk.bf16.vlgmr.msra.gmra.mrb[12].mxu1 %vm5316_vm6, %v1891_v48 }
0x1c7b   : > { %3931 = vmatprep.mubr.msk.f32.mxu1 %vm805_vm2, %v4717_v55 }
0x1d48   : > { %v3947_v22 = vpop.f32.mrb[2].mxu0 }
0x1d49   : > { %v2246_v14 = vpop.f32.mrb[3].mxu0 }
0x1d4d   : > { %v1948_v62 = vpop.f32.mrb[12].mxu1 }
0x1d4e   : > { %v3917_v59 = vpop.f32.mrb[13].mxu1  ;;  %v1949_v3 = vadd.f32 %v3716_v61, %v1948_v62 }
0x1d4f   : > { %v1951_v0 = vpop.f32.mrb[14].mxu1 }
0x1d50   : > { %v1952_v5 = vadd.f32 %v3716_v61, %v1951_v0  ;;  %v3918_v9 = vpop.f32.mrb[15].mxu1 }
0x1d52   : > { %v4030_v12 = vpack.c.bf16 %v1952_v5, %v1949_v3 }
0x1d54   : > { %4031 = vmatprep.subr.bf16.mxu1 %v4030_v12 }
0x1d55   : > { %4033 = vmatpush3.bf16.msra.mxu1 %v4030_v12 }
0x1d56   : > { %4035 = vmatprep.subr.bf16.mxu1 %v4030_v12 }
0x1d58   : > { %3932 = vmatmul.mubr.msk.f32.vlgmr.msra.gmra.mrb[16].mxu1 %vm805_vm2, %v4142_v8 }
0x1d59   : > { %4037 = vmatpush3.bf16.msra.mxu1 %v4030_v12  ;;  %3938 = vmatprep.mubr.msk.f32.mxu1 %vm805_vm2, %v4143_v41 }
0x1d5a   : > { %4043 = vmatprep.subr.bf16.mxu1 %v4038_v58 }
0x1d5c   : > { %3939 = vmatmul.mubr.msk.f32.vlgmr.msra.gmra.mrb[18].mxu1 %vm805_vm2, %v4144_v13 }
0x1d5d   : > { %4045 = vmatpush3.bf16.msra.mxu1 %v4038_v58  ;;  %3952 = vmatprep.mubr.msk.f32.mxu1 %vm805_vm2, %v4143_v41 }
0x1d5e   : > { %3962 = vmatprep.subr.bf16.mxu1 %v4153_v1 }
0x1d60   : > { %3953 = vmatmul.mubr.msk.f32.vlgmr.msra.gmra.mrb[20].mxu1 %vm805_vm2, %v4144_v13 }
0x1d61   : > { %3966 = vmatprep.mubr.msk.bf16.mxu1 %vm4154_vm0, %v4153_v1 }
0x1e2b   : > { %v3933_v19 = vpop.f32.mrb[16].mxu1 }
0x1e2c   : > { %v2331_v15 = vmul.f32 %v3947_v22, %v3933_v19  ;;  %v2096_v60 = vpop.f32.mrb[17].mxu1 }
0x1e2d   : > { %v2330_v38 = vmul.f32 %v2246_v14, %v2096_v60 }
0x1e2f   : > { %v3940_v17 = vpop.f32.mrb[18].mxu1 }
0x1e30   : > { %v2345_v18 = vmul.f32 %v3947_v22, %v3940_v17  ;;  %v2171_v20 = vpop.f32.mrb[19].mxu1 }
0x1e31   : > { %v2344_v21 = vmul.f32 %v2246_v14, %v2171_v20 }
0x1e33   : > { %v3954_v24 = vpop.f32.mrb[20].mxu1 }
0x1e34   : > { %v2333_v25 = vmul.f32 %v3954_v24, %v3940_v17  ;;  %v2343_v26 = vmul.f32 %v3954_v24, %v3933_v19  ;;  %v2321_v54 = vpop.f32.mrb[21].mxu1 }
0x1e35   : > { %v2332_v39 = vmul.f32 %v2321_v54, %v2171_v20  ;;  %v2342_v27 = vmul.f32 %v2321_v54, %v2096_v60 }
0x1e36   : > { %v2335_v28 = vadd.f32 %v2333_v25, %v2331_v15  ;;  %v2347_v11 = vsub.f32 %v2343_v26, %v2345_v18 }
0x1e37   : > { %v2334_v10 = vadd.f32 %v2332_v39, %v2330_v38  ;;  %v2346_v30 = vsub.f32 %v2342_v27, %v2344_v21 }
0x1e38   : > { %v2339_v31 = vsel %vm5317_vm12, %v2335_v28, 0.0  ;;  %v2351_v34 = vsel %vm5320_vm10, %v2347_v11, 0.0 }
0x1e39   : > { %2340 = vadd.xlane.f32.xlu0 %v2339_v31  ;;  %v2336_v32 = vsel %vm5318_vm7, %v2334_v10, 0.0  ;;  %v2348_v33 = vsel %vm5319_vm3, %v2346_v30, 0.0 }
0x1e3d   : > { %2337 = vadd.xlane.f32.xlu0 %v2336_v32 }
0x1e41   : > { %2349 = vadd.xlane.f32.xlu0 %v2348_v33 }
0x1e45   : > { %2352 = vadd.xlane.f32.xlu0 %v2351_v34 }
0x1ec6   : > { %v2341_v35 = vpop.xlane.xlu0 %2340 }
0x1ec7   : > { %v2355_v42 = vmul.f32 %v4142_v8, %v2341_v35 }
0x1eca   : > { %v2338_v29 = vpop.xlane.xlu0 %2337 }
0x1ecb   : > { %v2354_v37 = vmul.f32 %v4717_v55, %v2338_v29 }
0x1ece   : > { %v2350_v36 = vpop.xlane.xlu0 %2349 }
0x1ecf   : > { %v2356_v46 = vmul.f32 %v4143_v41, %v2350_v36 }
0x1ed1   : > { %v2358_v43 = vsub.f32 %v2354_v37, %v2356_v46 }
0x1ed2   : > { %v2353_v40 = vpop.xlane.xlu0 %2352 }
0x1ed3   : > { %v2357_v48 = vmul.f32 %v4144_v13, %v2353_v40  ;;  %v2360_v50 = vsel %vm805_vm2, %v2358_v43, 0.0 }
0x1ed5   : > { %v2359_v49 = vsub.f32 %v2355_v42, %v2357_v48 }
0x1ed7   : > { %v2361_v52 = vsel %vm805_vm2, %v2359_v49, 0.0 }
0x1ed8   : > { %v2362_v23 = vadd.f32 %v2361_v52, %v2360_v50 }
0x1eda   : > { %v2363_v56 = vrot.slane %v2362_v23, 4 }
0x1edc   : > { %v2364_v58 = vadd.f32 %v2363_v56, %v2362_v23 }
0x1ede   : > { %v2365_v61 = vrot.slane %v2364_v58, 2 }
0x1ee0   : > { %v2366_v62 = vadd.f32 %v2365_v61, %v2364_v58 }
0x1ee2   : > { %v2367_v59 = vrot.slane %v2366_v62, 1 }
0x1ee4   : > { %v2368_v0 = vadd.f32 %v2367_v59, %v2366_v62 }
0x1ee6   : > { %v2369_v3 = vmul.f32 0.0625, %v2368_v0 }
0x1ee8   : > { %v4799_v5 = vmul.f32 0.03125, %v2369_v3 }
0x1eea   : > { %v2371_v55 = vsel %vm805_vm2, %v4799_v5, -inf }
0x1eeb   : > { %2372 = vmax.xlane.f32.xlu1 %v2371_v55 }
0x1f78   : > { %v4803_v8 = vpop.xlane.xlu1 %2372 }
0x1f79   : > { %vm2374_vm15 = vcmp.eq.f32.partialorder %v4799_v5, %v4803_v8 }
0x1f7a   : > { %v2375_v9 = vsel %vm2374_vm15, %v4354_v7, 16 }
0x1f7b   : > { %v2376_v12 = vsel %vm805_vm2, %v2375_v9, 2147483647 }
0x1f7c   : > { %v2378_v41 = vshra.s32 %v2376_v12, 16  ;;  %v2377_v22 = vand.u32 65535, %v2376_v12 }
0x1f7e   : > { %v2380_v13 = vcvt.s32.f32 %v2378_v41  ;;  %v2379_v19 = vcvt.s32.f32 %v2377_v22 }
0x1f80   : > { %2381 = vmin.xlane.f32.xlu0 %v2380_v13 }
0x200d   : > { %v2382_v14 = vpop.xlane.xlu0 %2381 }
0x200e   : > { %vm2383_vm1 = vcmp.eq.f32.partialorder %v2380_v13, %v2382_v14  ;;  %v2388_v60 = vcvt.f32.s32 %v2382_v14 }
0x200f   : > { %v2384_v15 = vsel %vm2383_vm1, %v2379_v19, inf }
0x2010   : > { %2385 = vmin.xlane.f32.xlu0 %v2384_v15  ;;  %v2389_v17 = vshll.u32 %v2388_v60, 16 }
0x209d   : > { %v2386_v38 = vpop.xlane.xlu0 %2385 }
0x209e   : > { %v2387_v18 = vcvt.f32.s32 %v2386_v38 }
0x20a0   : > { %v4809_v20 = vadd.s32 %v2389_v17, %v2387_v18 }
0x20a2   : > { %vm2391_vm5 = vcmp.eq.s32.totalorder %v4354_v7, %v4809_v20 }
0x20a3   : > { %v2393_v21 = vsel %vm2391_vm5, -inf, %v4799_v5 }
0x20a4   : > { %v2394_v24 = vsel %vm805_vm2, %v2393_v21, -inf }
0x20a5   : > { %2395 = vmax.xlane.f32.xlu0 %v2394_v24 }
0x2132   : > { %v2396_v25 = vpop.xlane.xlu0 %2395 }
0x2133   : > { %vm2397_vm8 = vcmp.eq.f32.partialorder %v2393_v21, %v2396_v25 }
0x2134   : > { %v2398_v26 = vsel %vm2397_vm8, %v4354_v7, 16 }
0x2135   : > { %v2399_v54 = vsel %vm805_vm2, %v2398_v26, 2147483647 }
0x2136   : > { %v2401_v39 = vshra.s32 %v2399_v54, 16  ;;  %v2400_v28 = vand.u32 65535, %v2399_v54 }
0x2138   : > { %v2403_v27 = vcvt.s32.f32 %v2401_v39  ;;  %v2402_v10 = vcvt.s32.f32 %v2400_v28 }
0x213a   : > { %2404 = vmin.xlane.f32.xlu0 %v2403_v27 }
0x21c7   : > { %v2405_v11 = vpop.xlane.xlu0 %2404 }
0x21c8   : > { %vm2406_vm6 = vcmp.eq.f32.partialorder %v2403_v27, %v2405_v11  ;;  %v2411_v31 = vcvt.f32.s32 %v2405_v11 }
0x21c9   : > { %v2407_v30 = vsel %vm2406_vm6, %v2402_v10, inf }
0x21ca   : > { %2408 = vmin.xlane.f32.xlu0 %v2407_v30  ;;  %v2412_v33 = vshll.u32 %v2411_v31, 16 }
0x2257   : > { %v2409_v32 = vpop.xlane.xlu0 %2408 }
0x2258   : > { %v2410_v34 = vcvt.f32.s32 %v2409_v32 }
0x225a   : > { %v4820_v35 = vadd.s32 %v2412_v33, %v2410_v34 }
0x225c   : > { %vm2414_vm12 = vcmp.eq.s32.totalorder %v4354_v7, %v4820_v35 }
0x225d   : > { %v2416_v29 = vsel %vm2414_vm12, -inf, %v2393_v21 }
0x225e   : > { %v2417_v36 = vsel %vm805_vm2, %v2416_v29, -inf }
0x225f   : > { %2418 = vmax.xlane.f32.xlu0 %v2417_v36 }
0x22ec   : > { %v2419_v46 = vpop.xlane.xlu0 %2418 }
0x22ed   : > { %vm2420_vm7 = vcmp.eq.f32.partialorder %v2416_v29, %v2419_v46 }
0x22ee   : > { %v2421_v37 = vsel %vm2420_vm7, %v4354_v7, 16 }
0x22ef   : > { %v2422_v40 = vsel %vm805_vm2, %v2421_v37, 2147483647 }
0x22f0   : > { %v2424_v42 = vshra.s32 %v2422_v40, 16  ;;  %v2423_v48 = vand.u32 65535, %v2422_v40 }
0x22f2   : > { %v2426_v43 = vcvt.s32.f32 %v2424_v42  ;;  %v2425_v50 = vcvt.s32.f32 %v2423_v48 }
0x22f4   : > { %2427 = vmin.xlane.f32.xlu0 %v2426_v43 }
0x2381   : > { %v2428_v49 = vpop.xlane.xlu0 %2427 }
0x2382   : > { %vm2429_vm3 = vcmp.eq.f32.partialorder %v2426_v43, %v2428_v49  ;;  %v2434_v23 = vcvt.f32.s32 %v2428_v49 }
0x2383   : > { %v2430_v52 = vsel %vm2429_vm3, %v2425_v50, inf }
0x2384   : > { %2431 = vmin.xlane.f32.xlu0 %v2430_v52  ;;  %v2435_v58 = vshll.u32 %v2434_v23, 16 }
0x2411   : > { %v2432_v56 = vpop.xlane.xlu0 %2431 }
0x2412   : > { %v2433_v61 = vcvt.f32.s32 %v2432_v56 }
0x2414   : > { %v4830_v62 = vadd.s32 %v2435_v58, %v2433_v61 }
0x2416   : > { %vm2437_vm10 = vcmp.eq.s32.totalorder %v4354_v7, %v4830_v62 }
0x2417   : > { %v2439_v59 = vsel %vm2437_vm10, -inf, %v2416_v29 }
0x2418   : > { %v2440_v0 = vsel %vm805_vm2, %v2439_v59, -inf }
0x2419   : > { %2441 = vmax.xlane.f32.xlu0 %v2440_v0 }
0x24a6   : > { %v2442_v3 = vpop.xlane.xlu0 %2441 }
0x24a7   : > { %vm2443_vm15 = vcmp.eq.f32.partialorder %v2439_v59, %v2442_v3 }
0x24a8   : > { %v2444_v55 = vsel %vm2443_vm15, %v4354_v7, 16 }
0x24a9   : > { %v2445_v9 = vsel %vm805_vm2, %v2444_v55, 2147483647 }
0x24aa   : > { %v2447_v12 = vshra.s32 %v2445_v9, 16  ;;  %v2446_v13 = vand.u32 65535, %v2445_v9 }
0x24ac   : > { %v2449_v41 = vcvt.s32.f32 %v2447_v12  ;;  %v2448_v14 = vcvt.s32.f32 %v2446_v13 }
0x24ae   : > { %2450 = vmin.xlane.f32.xlu1 %v2449_v41 }
0x253b   : > { %v2451_v22 = vpop.xlane.xlu1 %2450 }
0x253c   : > { %vm2452_vm1 = vcmp.eq.f32.partialorder %v2449_v41, %v2451_v22  ;;  %v2457_v15 = vcvt.f32.s32 %v2451_v22 }
0x253d   : > { %v2453_v19 = vsel %vm2452_vm1, %v2448_v14, inf }
0x253e   : > { %2454 = vmin.xlane.f32.xlu0 %v2453_v19  ;;  %v2458_v38 = vshll.u32 %v2457_v15, 16 }
0x25cb   : > { %v2455_v60 = vpop.xlane.xlu0 %2454 }
0x25cc   : > { %v2456_v17 = vcvt.f32.s32 %v2455_v60 }
0x25ce   : > { %v4840_v18 = vadd.s32 %v2458_v38, %v2456_v17 }
0x25d0   : > { %vm2460_vm8 = vcmp.eq.s32.totalorder %v4354_v7, %v4840_v18 }
0x25d1   : > { %v2462_v21 = vsel %vm2460_vm8, -inf, %v2439_v59 }
0x25d2   : > { %v2463_v24 = vsel %vm805_vm2, %v2462_v21, -inf }
0x25d3   : > { %2464 = vmax.xlane.f32.xlu1 %v2463_v24 }
0x2660   : > { %v2465_v25 = vpop.xlane.xlu1 %2464 }
0x2661   : > { %vm2466_vm6 = vcmp.eq.f32.partialorder %v2462_v21, %v2465_v25 }
0x2662   : > { %v2467_v26 = vsel %vm2466_vm6, %v4354_v7, 16 }
0x2663   : > { %v2468_v54 = vsel %vm805_vm2, %v2467_v26, 2147483647 }
0x2664   : > { %v2470_v39 = vshra.s32 %v2468_v54, 16  ;;  %v2469_v28 = vand.u32 65535, %v2468_v54 }
0x2666   : > { %v2472_v27 = vcvt.s32.f32 %v2470_v39  ;;  %v2471_v10 = vcvt.s32.f32 %v2469_v28 }
0x2668   : > { %2473 = vmin.xlane.f32.xlu0 %v2472_v27 }
0x26f5   : > { %v2474_v11 = vpop.xlane.xlu0 %2473 }
0x26f6   : > { %vm2475_vm7 = vcmp.eq.f32.partialorder %v2472_v27, %v2474_v11  ;;  %v2480_v31 = vcvt.f32.s32 %v2474_v11 }
0x26f7   : > { %v2476_v30 = vsel %vm2475_vm7, %v2471_v10, inf }
0x26f8   : > { %2477 = vmin.xlane.f32.xlu1 %v2476_v30  ;;  %v2481_v33 = vshll.u32 %v2480_v31, 16 }
0x2785   : > { %v2478_v32 = vpop.xlane.xlu1 %2477 }
0x2786   : > { %v2479_v34 = vcvt.f32.s32 %v2478_v32 }
0x2788   : > { %v4850_v29 = vadd.s32 %v2481_v33, %v2479_v34 }
0x278a   : > { %vm2483_vm3 = vcmp.eq.s32.totalorder %v4354_v7, %v4850_v29 }
0x278b   : > { %v2485_v36 = vsel %vm2483_vm3, -inf, %v2462_v21 }
0x278c   : > { %v2486_v46 = vsel %vm805_vm2, %v2485_v36, -inf }
0x278d   : > { %2487 = vmax.xlane.f32.xlu0 %v2486_v46 }
0x281a   : > { %v2488_v37 = vpop.xlane.xlu0 %2487 }
0x281b   : > { %vm2489_vm15 = vcmp.eq.f32.partialorder %v2485_v36, %v2488_v37 }
0x281c   : > { %v2490_v40 = vsel %vm2489_vm15, %v4354_v7, 16 }
0x281d   : > { %v2491_v42 = vsel %vm805_vm2, %v2490_v40, 2147483647 }
0x281e   : > { %v2493_v43 = vshra.s32 %v2491_v42, 16  ;;  %v2492_v49 = vand.u32 65535, %v2491_v42 }
0x2820   : > { %v2495_v48 = vcvt.s32.f32 %v2493_v43  ;;  %v2494_v52 = vcvt.s32.f32 %v2492_v49 }
0x2822   : > { %2496 = vmin.xlane.f32.xlu1 %v2495_v48 }
0x28af   : > { %v2497_v50 = vpop.xlane.xlu1 %2496 }
0x28b0   : > { %vm2498_vm1 = vcmp.eq.f32.partialorder %v2495_v48, %v2497_v50  ;;  %v2503_v56 = vcvt.f32.s32 %v2497_v50 }
0x28b1   : > { %v2499_v23 = vsel %vm2498_vm1, %v2494_v52, inf }
0x28b2   : > { %2500 = vmin.xlane.f32.xlu0 %v2499_v23  ;;  %v2504_v61 = vshll.u32 %v2503_v56, 16 }
0x293f   : > { %v2501_v58 = vpop.xlane.xlu0 %2500 }
0x2940   : > { %v2502_v59 = vcvt.f32.s32 %v2501_v58 }
0x2942   : > { %v4860_v0 = vadd.s32 %v2504_v61, %v2502_v59 }
0x2944   : > { %vm2506_vm6 = vcmp.eq.s32.totalorder %v4354_v7, %v4860_v0 }
0x2945   : > { %v2508_v3 = vsel %vm2506_vm6, -inf, %v2485_v36 }
0x2946   : > { %v2509_v55 = vsel %vm805_vm2, %v2508_v3, -inf }
0x2947   : > { %2510 = vmax.xlane.f32.xlu1 %v2509_v55 }
0x29d4   : > { %v2511_v9 = vpop.xlane.xlu1 %2510 }
0x29d5   : > { %vm2512_vm7 = vcmp.eq.f32.partialorder %v2508_v3, %v2511_v9 }
0x29d6   : > { %v2513_v12 = vsel %vm2512_vm7, %v4354_v7, 16 }
0x29d7   : > { %v2514_v41 = vsel %vm805_vm2, %v2513_v12, 2147483647 }
0x29d8   : > { %v2516_v13 = vshra.s32 %v2514_v41, 16  ;;  %v2515_v14 = vand.u32 65535, %v2514_v41 }
0x29da   : > { %v2518_v22 = vcvt.s32.f32 %v2516_v13  ;;  %v2517_v15 = vcvt.s32.f32 %v2515_v14 }
0x29dc   : > { %2519 = vmin.xlane.f32.xlu0 %v2518_v22 }
0x2a69   : > { %v2520_v19 = vpop.xlane.xlu0 %2519 }
0x2a6a   : > { %vm2521_vm15 = vcmp.eq.f32.partialorder %v2518_v22, %v2520_v19  ;;  %v2526_v38 = vcvt.f32.s32 %v2520_v19 }
0x2a6b   : > { %v2522_v60 = vsel %vm2521_vm15, %v2517_v15, inf }
0x2a6c   : > { %2523 = vmin.xlane.f32.xlu1 %v2522_v60  ;;  %v2527_v21 = vshll.u32 %v2526_v38, 16 }
0x2af9   : > { %v2524_v17 = vpop.xlane.xlu1 %2523 }
0x2afa   : > { %v2525_v24 = vcvt.f32.s32 %v2524_v17 }
0x2afc   : > { %v4870_v25 = vadd.s32 %v2527_v21, %v2525_v24 }
0x2afe   : > { %vm2529_vm1 = vcmp.eq.s32.totalorder %v4354_v7, %v4870_v25 }
0x2aff   : > { %v2531_v26 = vsel %vm2529_vm1, -inf, %v2508_v3 }
0x2b00   : > { %v2532_v54 = vsel %vm805_vm2, %v2531_v26, -inf }
0x2b01   : > { %2533 = vmax.xlane.f32.xlu0 %v2532_v54 }
0x2b8e   : > { %v2534_v39 = vpop.xlane.xlu0 %2533 }
0x2b8f   : > { %vm2535_vm7 = vcmp.eq.f32.partialorder %v2531_v26, %v2534_v39 }
0x2b90   : > { %v2536_v27 = vsel %vm2535_vm7, %v4354_v7, 16 }
0x2b91   : > { %v2537_v28 = vsel %vm805_vm2, %v2536_v27, 2147483647 }
0x2b92   : > { %v2539_v11 = vshra.s32 %v2537_v28, 16  ;;  %v2538_v30 = vand.u32 65535, %v2537_v28 }
0x2b94   : > { %v2541_v10 = vcvt.s32.f32 %v2539_v11  ;;  %v2540_v32 = vcvt.s32.f32 %v2538_v30 }
0x2b96   : > { %2542 = vmin.xlane.f32.xlu1 %v2541_v10 }
0x2c23   : > { %v2543_v31 = vpop.xlane.xlu1 %2542 }
0x2c24   : > { %vm2544_vm15 = vcmp.eq.f32.partialorder %v2541_v10, %v2543_v31  ;;  %v2549_v34 = vcvt.f32.s32 %v2543_v31 }
0x2c25   : > { %v2545_v33 = vsel %vm2544_vm15, %v2540_v32, inf }
0x2c26   : > { %2546 = vmin.xlane.f32.xlu0 %v2545_v33  ;;  %v2550_v46 = vshll.u32 %v2549_v34, 16 }
0x2cb3   : > { %v2547_v36 = vpop.xlane.xlu0 %2546 }
0x2cb4   : > { %v2548_v37 = vcvt.f32.s32 %v2547_v36 }
0x2cb6   : > { %v4880_v40 = vadd.s32 %v2550_v46, %v2548_v37 }
0x2cb8   : > { %vm2552_vm7 = vcmp.eq.s32.totalorder %v4354_v7, %v4880_v40 }
0x2cb9   : > { %v2554_v42 = vsel %vm2552_vm7, -inf, %v2531_v26 }
0x2cba   : > { %v2555_v43 = vsel %vm805_vm2, %v2554_v42, -inf }
0x2cbb   : > { %2556 = vmax.xlane.f32.xlu1 %v2555_v43 }
0x2d48   : > { %v2557_v48 = vpop.xlane.xlu1 %2556 }
0x2d49   : > { %vm2558_vm13 = vcmp.eq.f32.partialorder %v2554_v42, %v2557_v48 }
0x2d4a   : > { %v2559_v49 = vsel %vm2558_vm13, %v4354_v7, 16 }
0x2d4b   : > { %v2560_v50 = vsel %vm805_vm2, %v2559_v49, 2147483647 }
0x2d4c   : > { %v2562_v52 = vshra.s32 %v2560_v50, 16  ;;  %v2561_v56 = vand.u32 65535, %v2560_v50 }
0x2d4e   : > { %v2564_v23 = vcvt.s32.f32 %v2562_v52  ;;  %v2563_v61 = vcvt.s32.f32 %v2561_v56 }
0x2d50   : > { %2565 = vmin.xlane.f32.xlu0 %v2564_v23 }
0x2ddd   : > { %v2566_v58 = vpop.xlane.xlu0 %2565 }
0x2dde   : > { %vm2567_vm15 = vcmp.eq.f32.partialorder %v2564_v23, %v2566_v58  ;;  %v2572_v3 = vcvt.f32.s32 %v2566_v58 }
0x2ddf   : > { %v2568_v59 = vsel %vm2567_vm15, %v2563_v61, inf }
0x2de0   : > { %2569 = vmin.xlane.f32.xlu1 %v2568_v59  ;;  %v2573_v9 = vshll.u32 %v2572_v3, 16 }
0x2e6d   : > { %v2570_v55 = vpop.xlane.xlu1 %2569 }
0x2e6e   : > { %v2571_v12 = vcvt.f32.s32 %v2570_v55 }
0x2e70   : > { %v4890_v41 = vadd.s32 %v2573_v9, %v2571_v12 }
0x2e72   : > { %vm2575_vm13 = vcmp.eq.s32.totalorder %v4354_v7, %v4890_v41 }
0x2e73   : > { %v2577_v13 = vsel %vm2575_vm13, -inf, %v2554_v42 }
0x2e74   : > { %v2578_v22 = vsel %vm805_vm2, %v2577_v13, -inf }
0x2e75   : > { %2579 = vmax.xlane.f32.xlu0 %v2578_v22 }
0x2f02   : > { %v2580_v14 = vpop.xlane.xlu0 %2579 }
0x2f03   : > { %vm2581_vm9 = vcmp.eq.f32.partialorder %v2577_v13, %v2580_v14 }
0x2f04   : > { %v2582_v19 = vsel %vm2581_vm9, %v4354_v7, 16 }
0x2f05   : > { %v2583_v15 = vsel %vm805_vm2, %v2582_v19, 2147483647 }
0x2f06   : > { %v2585_v60 = vshra.s32 %v2583_v15, 16  ;;  %v2584_v17 = vand.u32 65535, %v2583_v15 }
0x2f08   : > { %v2587_v38 = vcvt.s32.f32 %v2585_v60  ;;  %v2586_v24 = vcvt.s32.f32 %v2584_v17 }
0x2f0a   : > { %2588 = vmin.xlane.f32.xlu1 %v2587_v38 }
0x2f97   : > { %v2589_v21 = vpop.xlane.xlu1 %2588 }
0x2f98   : > { %vm2590_vm15 = vcmp.eq.f32.partialorder %v2587_v38, %v2589_v21  ;;  %v2595_v54 = vcvt.f32.s32 %v2589_v21 }
0x2f99   : > { %v2591_v26 = vsel %vm2590_vm15, %v2586_v24, inf }
0x2f9a   : > { %2592 = vmin.xlane.f32.xlu0 %v2591_v26  ;;  %v2596_v27 = vshll.u32 %v2595_v54, 16 }
0x3027   : > { %v2593_v39 = vpop.xlane.xlu0 %2592 }
0x3028   : > { %v2594_v28 = vcvt.f32.s32 %v2593_v39 }
0x302a   : > { %v4900_v11 = vadd.s32 %v2596_v27, %v2594_v28 }
0x302c   : > { %vm2598_vm9 = vcmp.eq.s32.totalorder %v4354_v7, %v4900_v11 }
0x302d   : > { %v2600_v10 = vsel %vm2598_vm9, -inf, %v2577_v13 }
0x302e   : > { %v2601_v30 = vsel %vm805_vm2, %v2600_v10, -inf }
0x302f   : > { %2602 = vmax.xlane.f32.xlu1 %v2601_v30 }
0x30bc   : > { %v2603_v31 = vpop.xlane.xlu1 %2602 }
0x30bd   : > { %vm2604_vm4 = vcmp.eq.f32.partialorder %v2600_v10, %v2603_v31 }
0x30be   : > { %v2605_v32 = vsel %vm2604_vm4, %v4354_v7, 16 }
0x30bf   : > { %v2606_v33 = vsel %vm805_vm2, %v2605_v32, 2147483647 }
0x30c0   : > { %v2608_v34 = vshra.s32 %v2606_v33, 16  ;;  %v2607_v46 = vand.u32 65535, %v2606_v33  ;;  %v2669_v33 = vsub.f32 %v4799_v5, %v4803_v8 }
0x30c2   : > { %v2610_v36 = vcvt.s32.f32 %v2608_v34  ;;  %v2609_v42 = vcvt.s32.f32 %v2607_v46  ;;  %v2670_v34 = vmul.f32 1.442695, %v2669_v33 }
0x30c4   : > { %2611 = vmin.xlane.f32.xlu0 %v2610_v36  ;;  %4123 = vpow2.f32 %v2670_v34 }
0x3151   : > { %v2612_v37 = vpop.xlane.xlu0 %2611 }
0x3152   : > { %vm2613_vm15 = vcmp.eq.f32.partialorder %v2610_v36, %v2612_v37  ;;  %v2618_v48 = vcvt.f32.s32 %v2612_v37  ;;  %v2392_v36 = vsel %vm2391_vm5, 1.0, %v4153_v1 }
0x3153   : > { %v2614_v43 = vsel %vm2613_vm15, %v2609_v42, inf  ;;  %v2415_v46 = vsel %vm2414_vm12, 1.0, %v2392_v36 }
0x3154   : > { %2615 = vmin.xlane.f32.xlu1 %v2614_v43  ;;  %v2619_v50 = vshll.u32 %v2618_v48, 16  ;;  %v2438_v37 = vsel %vm2437_vm10, 1.0, %v2415_v46 }
0x3155   : > { %v2461_v42 = vsel %vm2460_vm8, 1.0, %v2438_v37 }
0x3156   : > { %v2484_v8 = vsel %vm2483_vm3, 1.0, %v2461_v42 }
0x3157   : > { %v2507_v43 = vsel %vm2506_vm6, 1.0, %v2484_v8 }
0x3158   : > { %v2530_v48 = vsel %vm2529_vm1, 1.0, %v2507_v43 }
0x31e1   : > { %v2616_v49 = vpop.xlane.xlu1 %2615 }
0x31e2   : > { %v2617_v52 = vcvt.f32.s32 %v2616_v49 }
0x31e4   : > { %v4910_v23 = vadd.s32 %v2619_v50, %v2617_v52  ;;  %v2553_v50 = vsel %vm2552_vm7, 1.0, %v2530_v48 }
0x31e6   : > { %vm2621_vm4 = vcmp.eq.s32.totalorder %v4354_v7, %v4910_v23 }
0x31e7   : > { %v2623_v56 = vsel %vm2621_vm4, -inf, %v2600_v10 }
0x31e8   : > { %v2624_v58 = vsel %vm805_vm2, %v2623_v56, -inf }
0x31e9   : > { %2625 = vmax.xlane.f32.xlu0 %v2624_v58  ;;  %v2576_v58 = vsel %vm2575_vm13, 1.0, %v2553_v50 }
0x3276   : > { %v2626_v61 = vpop.xlane.xlu0 %2625 }
0x3277   : > { %vm2627_vm14 = vcmp.eq.f32.partialorder %v2623_v56, %v2626_v61  ;;  %v2599_v61 = vsel %vm2598_vm9, 1.0, %v2576_v58 }
0x3278   : > { %v2628_v59 = vsel %vm2627_vm14, %v4354_v7, 16 }
0x3279   : > { %v2629_v3 = vsel %vm805_vm2, %v2628_v59, 2147483647 }
0x327a   : > { %v2631_v55 = vshra.s32 %v2629_v3, 16  ;;  %v2630_v12 = vand.u32 65535, %v2629_v3  ;;  %v2622_v3 = vsel %vm2621_vm4, 1.0, %v2599_v61 }
0x327c   : > { %v2633_v9 = vcvt.s32.f32 %v2631_v55  ;;  %v2632_v22 = vcvt.s32.f32 %v2630_v12 }
0x327e   : > { %2634 = vmin.xlane.f32.xlu1 %v2633_v9 }
0x330b   : > { %v2635_v13 = vpop.xlane.xlu1 %2634 }
0x330c   : > { %vm2636_vm15 = vcmp.eq.f32.partialorder %v2633_v9, %v2635_v13  ;;  %v2641_v19 = vcvt.f32.s32 %v2635_v13  ;;  %v4124_v9 = vpop.eup %4123 }
0x330d   : > { %v2637_v14 = vsel %vm2636_vm15, %v2632_v22, inf }
0x330e   : > { %2638 = vmin.xlane.f32.xlu0 %v2637_v14  ;;  %v2642_v60 = vshll.u32 %v2641_v19, 16 }
0x339b   : > { %v2639_v15 = vpop.xlane.xlu0 %2638 }
0x339c   : > { %v2640_v38 = vcvt.f32.s32 %v2639_v15 }
0x339e   : > { %v4920_v17 = vadd.s32 %v2642_v60, %v2640_v38 }
0x33a0   : > { %vm2644_vm14 = vcmp.eq.s32.totalorder %v4354_v7, %v4920_v17 }
0x33a1   : > { %v2646_v21 = vsel %vm2644_vm14, -inf, %v2623_v56  ;;  %v2645_v55 = vsel %vm2644_vm14, 1.0, %v2622_v3 }
0x33a2   : > { %v2647_v24 = vsel %vm805_vm2, %v2646_v21, -inf }
0x33a3   : > { %2648 = vmax.xlane.f32.xlu1 %v2647_v24 }
0x3430   : > { %v2649_v26 = vpop.xlane.xlu1 %2648 }
0x3431   : > { %vm2650_vm11 = vcmp.eq.f32.partialorder %v2646_v21, %v2649_v26 }
0x3432   : > { %v2651_v54 = vsel %vm2650_vm11, %v4354_v7, 16 }
0x3433   : > { %v2652_v39 = vsel %vm805_vm2, %v2651_v54, 2147483647 }
0x3434   : > { %v2654_v27 = vshra.s32 %v2652_v39, 16  ;;  %v2653_v10 = vand.u32 65535, %v2652_v39 }
0x3436   : > { %v2656_v28 = vcvt.s32.f32 %v2654_v27  ;;  %v2655_v31 = vcvt.s32.f32 %v2653_v10 }
0x3438   : > { %2657 = vmin.xlane.f32.xlu0 %v2656_v28 }
0x34c5   : > { %v2658_v30 = vpop.xlane.xlu0 %2657 }
0x34c6   : > { %vm2659_vm15 = vcmp.eq.f32.partialorder %v2656_v28, %v2658_v30  ;;  %v2664_v5 = vcvt.f32.s32 %v2658_v30 }
0x34c7   : > { %v2660_v32 = vsel %vm2659_vm15, %v2655_v31, inf  ;;  %vm2767_vm15 = vcmp.eq.s32.totalorder %v4595_v16, %v4870_v25 }
0x34c8   : > { %2661 = vmin.xlane.f32.xlu1 %v2660_v32  ;;  %v2665_v52 = vshll.u32 %v2664_v5, 16 }
0x3555   : > { %v2662_v49 = vpop.xlane.xlu1 %2661 }
0x3556   : > { %v2663_v56 = vcvt.f32.s32 %v2662_v49 }
0x3558   : > { %v4963_v59 = vadd.s32 %v2665_v52, %v2663_v56  ;;  %v4105_v56 = vld [vmem:[%s5276_s10] sm:$0xff]  }
0x3559   : > { %3963 = vmatpush3.bf16.msra.mxu1 %v4105_v56 }
0x355a   : > { %vm2667_vm11 = vcmp.eq.s32.totalorder %v4354_v7, %v4963_v59  ;;  %3964 = vmatprep.subr.bf16.mxu1 %v4153_v1 }
0x355b   : > { %v2668_v12 = vsel %vm2667_vm11, 1.0, %v2645_v55 }
0x355c   : > { %v2672_v13 = vmul.f32 %v4124_v9, %v2668_v12 }
0x355e   : > { %v2673_v22 = vsel %vm805_vm2, %v2672_v13, 0.0 }
0x355f   : > { %2674 = vadd.xlane.f32.xlu0 %v2673_v22 }
0x35ec   : > { %v2675_v14 = vpop.xlane.xlu0 %2674 }
0x35ed   : > { %4125 = vrcp.f32 %v2675_v14 }
0x35f7   : > { %v4126_v19 = vpop.eup %4125 }
0x35f8   : > { %v2678_v15 = vmul.f32 %v4126_v19, %v2672_v13 }
0x35fa   : > { %v2693_v60 = vsel %vm2414_vm12, %v2678_v15, 0.0  ;;  %v2679_v38 = vsel %vm2391_vm5, %v2678_v15, 0.0  ;;  %v2721_v26 = vsel %vm2460_vm8, %v2678_v15, 0.0  ;;  %v2707_v54 = vsel %vm2437_vm10, %v2678_v15, 0.0 }
0x35fb   : > { %v2694_v21 = vsel %vm805_vm2, %v2693_v60, 0.0  ;;  %v2680_v24 = vsel %vm805_vm2, %v2679_v38, 0.0  ;;  %v2722_v39 = vsel %vm805_vm2, %v2721_v26, 0.0  ;;  %v2708_v27 = vsel %vm805_vm2, %v2707_v54, 0.0 }
0x35fc   : > { %2695 = vadd.xlane.f32.xlu0 %v2694_v21  ;;  %2681 = vadd.xlane.f32.xlu1 %v2680_v24  ;;  %v2749_v28 = vsel %vm2506_vm6, %v2678_v15, 0.0  ;;  %v2735_v10 = vsel %vm2483_vm3, %v2678_v15, 0.0  ;;  %v2777_v32 = vsel %vm2552_vm7, %v2678_v15, 0.0  ;;  %v2763_v33 = vsel %vm2529_vm1, %v2678_v15, 0.0 }
0x35fd   : > { %v2750_v30 = vsel %vm805_vm2, %v2749_v28, 0.0  ;;  %v2736_v31 = vsel %vm805_vm2, %v2735_v10, 0.0  ;;  %v2778_v34 = vsel %vm805_vm2, %v2777_v32, 0.0  ;;  %v2764_v36 = vsel %vm805_vm2, %v2763_v33, 0.0 }
0x35fe   : > { %v2805_v46 = vsel %vm2598_vm9, %v2678_v15, 0.0  ;;  %v2791_v37 = vsel %vm2575_vm13, %v2678_v15, 0.0  ;;  %v2833_v8 = vsel %vm2644_vm14, %v2678_v15, 0.0  ;;  %v2819_v43 = vsel %vm2621_vm4, %v2678_v15, 0.0 }
0x35ff   : > { %v2806_v42 = vsel %vm805_vm2, %v2805_v46, 0.0  ;;  %v2792_v5 = vsel %vm805_vm2, %v2791_v37, 0.0  ;;  %v2834_v48 = vsel %vm805_vm2, %v2833_v8, 0.0  ;;  %v2820_v49 = vsel %vm805_vm2, %v2819_v43, 0.0 }
0x3600   : > { %2723 = vadd.xlane.f32.xlu0 %v2722_v39  ;;  %2709 = vadd.xlane.f32.xlu1 %v2708_v27  ;;  %v2847_v50 = vsel %vm2667_vm11, %v2678_v15, 0.0  ;;  %vm2683_vm5 = vcmp.eq.s32.totalorder %v4595_v16, %v4809_v20  ;;  %vm2684_vm12 = vcmp.eq.s32.totalorder %v4597_v2, %v4809_v20  ;;  %vm2697_vm10 = vcmp.eq.s32.totalorder %v4595_v16, %v4820_v35 }
0x3601   : > { %v2848_v52 = vsel %vm805_vm2, %v2847_v50, 0.0  ;;  %vm2698_vm8 = vcmp.eq.s32.totalorder %v4597_v2, %v4820_v35  ;;  %v3732_v7 = vsel %vm2683_vm5, 1.0, %v4153_v1  ;;  %v3733_v51 = vsel %vm2684_vm12, 1.0, %v4153_v1 }
0x3602   : > { %v3734_v53 = vsel %vm2697_vm10, 1.0, %v4153_v1  ;;  %vm2711_vm3 = vcmp.eq.s32.totalorder %v4595_v16, %v4830_v62  ;;  %vm2712_vm6 = vcmp.eq.s32.totalorder %v4597_v2, %v4830_v62  ;;  %vm2725_vm1 = vcmp.eq.s32.totalorder %v4595_v16, %v4840_v18 }
0x3603   : > { %vm2726_vm7 = vcmp.eq.s32.totalorder %v4597_v2, %v4840_v18  ;;  %v3736_v22 = vsel %vm2711_vm3, 1.0, %v4153_v1  ;;  %v3737_v14 = vsel %vm2712_vm6, 1.0, %v4153_v1  ;;  %vm2739_vm13 = vcmp.eq.s32.totalorder %v4595_v16, %v4850_v29 }
0x3604   : > { %2751 = vadd.xlane.f32.xlu0 %v2750_v30  ;;  %2737 = vadd.xlane.f32.xlu1 %v2736_v31  ;;  %vm2740_vm9 = vcmp.eq.s32.totalorder %v4597_v2, %v4850_v29  ;;  %v3738_v60 = vsel %vm2725_vm1, 1.0, %v4153_v1  ;;  %v3739_v38 = vsel %vm2726_vm7, 1.0, %v4153_v1  ;;  %vm2753_vm4 = vcmp.eq.s32.totalorder %v4595_v16, %v4860_v0 }
0x3605   : > { %vm2754_vm14 = vcmp.eq.s32.totalorder %v4597_v2, %v4860_v0  ;;  %v3740_v39 = vsel %vm2739_vm13, 1.0, %v4153_v1  ;;  %v3741_v27 = vsel %vm2740_vm9, 1.0, %v4153_v1  ;;  %vm2768_vm11 = vcmp.eq.s32.totalorder %v4597_v2, %v4870_v25 }
0x3606   : > { %v3742_v28 = vsel %vm2753_vm4, 1.0, %v4153_v1  ;;  %v3743_v0 = vsel %vm2754_vm14, 1.0, %v4153_v1  ;;  %vm2781_vm5 = vcmp.eq.s32.totalorder %v4595_v16, %v4880_v40  ;;  %vm2782_vm12 = vcmp.eq.s32.totalorder %v4597_v2, %v4880_v40 }
0x3607   : > { %v3744_v33 = vsel %vm2767_vm15, 1.0, %v4153_v1  ;;  %vm2795_vm10 = vcmp.eq.s32.totalorder %v4595_v16, %v4890_v41  ;;  %v3746_v8 = vsel %vm2781_vm5, 1.0, %v4153_v1  ;;  %v3747_v40 = vsel %vm2782_vm12, 1.0, %v4153_v1 }
0x3608   : > { %2779 = vadd.xlane.f32.xlu0 %v2778_v34  ;;  %2765 = vadd.xlane.f32.xlu1 %v2764_v36  ;;  %v3745_v34 = vsel %vm2768_vm11, 1.0, %v4153_v1  ;;  %vm2809_vm3 = vcmp.eq.s32.totalorder %v4595_v16, %v4900_v11  ;;  %vm2810_vm6 = vcmp.eq.s32.totalorder %v4597_v2, %v4900_v11  ;;  %vm2823_vm1 = vcmp.eq.s32.totalorder %v4595_v16, %v4910_v23 }
0x3609   : > { %vm2824_vm7 = vcmp.eq.s32.totalorder %v4597_v2, %v4910_v23  ;;  %vm2837_vm13 = vcmp.eq.s32.totalorder %v4595_v16, %v4920_v17  ;;  %vm2838_vm9 = vcmp.eq.s32.totalorder %v4597_v2, %v4920_v17  ;;  %vm2851_vm4 = vcmp.eq.s32.totalorder %v4595_v16, %v4963_v59 }
0x360a   : > { %vm2852_vm14 = vcmp.eq.s32.totalorder %v4597_v2, %v4963_v59  ;;  %v3755_v17 = vsel %vm2838_vm9, 1.0, %v4153_v1  ;;  %vm5322_vm15 = vcmask 261120   ;;  %vm5326_vm12 = vcmask 1046528  }
0x360b   : > { %v3757_v16 = vsel %vm2852_vm14, 1.0, %v4153_v1  ;;  %vm5334_vm9 = vmmov %vm5322_vm15 }
0x360c   : > { %2807 = vadd.xlane.f32.xlu0 %v2806_v42  ;;  %2793 = vadd.xlane.f32.xlu1 %v2792_v5 }
0x3610   : > { %2835 = vadd.xlane.f32.xlu0 %v2834_v48  ;;  %2821 = vadd.xlane.f32.xlu1 %v2820_v49 }
0x3614   : > { %2849 = vadd.xlane.f32.xlu1 %v2848_v52  ;;  %v3748_v52 = vsel %vm2795_vm10, 1.0, %v4153_v1  ;;  %vm5327_vm10 = vmmov %vm5326_vm12 }
0x3626   : > { %4083 = vrot.lane.b32.xlu0 %v4082_v57, %s5321_s25  ;;  %v3735_v57 = vsel %vm2698_vm8, 1.0, %v4153_v1  ;;  %vm2796_vm8 = vcmp.eq.s32.totalorder %v4597_v2, %v4890_v41 }
0x3627   : > { %v3749_v56 = vsel %vm2796_vm8, 1.0, %v4153_v1  ;;  %vm5328_vm8 = vcmask 1045504  }
0x3689   : > { %v2696_v58 = vpop.xlane.xlu0 %2695  ;;  %v2682_v61 = vpop.xlane.xlu1 %2681 }
0x368a   : > { %v2703_v20 = vmul.f32 %v3734_v53, %v2696_v58  ;;  %v2704_v3 = vmul.f32 %v3735_v57, %v2696_v58  ;;  %v2689_v55 = vmul.f32 %v3732_v7, %v2682_v61  ;;  %v2690_v35 = vmul.f32 %v3733_v51, %v2682_v61 }
0x368b   : > { %v3750_v61 = vsel %vm2809_vm3, 1.0, %v4153_v1  ;;  %vm5329_vm3 = vmmov %vm5328_vm8 }
0x368c   : > { %v2705_v9 = vadd.f32 %v2703_v20, %v2689_v55  ;;  %v2706_v12 = vadd.f32 %v2704_v3, %v2690_v35  ;;  %v3751_v20 = vsel %vm2810_vm6, 1.0, %v4153_v1  ;;  %vm5330_vm6 = vcmask 1044480  }
0x368d   : > { %v2724_v13 = vpop.xlane.xlu0 %2723  ;;  %v2710_v19 = vpop.xlane.xlu1 %2709 }
0x368e   : > { %v2717_v15 = vmul.f32 %v3736_v22, %v2710_v19  ;;  %v2718_v62 = vmul.f32 %v3737_v14, %v2710_v19  ;;  %v2731_v18 = vmul.f32 %v3738_v60, %v2724_v13  ;;  %v2732_v21 = vmul.f32 %v3739_v38, %v2724_v13 }
0x3690   : > { %v2719_v24 = vadd.f32 %v2717_v15, %v2705_v9  ;;  %v2720_v26 = vadd.f32 %v2718_v62, %v2706_v12  ;;  %v3752_v9 = vsel %vm2823_vm1, 1.0, %v4153_v1  ;;  %v3753_v12 = vsel %vm2824_vm7, 1.0, %v4153_v1  ;;  %vm5331_vm1 = vmmov %vm5330_vm6 }
0x3691   : > { %v2752_v54 = vpop.xlane.xlu0 %2751  ;;  %v2738_v29 = vpop.xlane.xlu1 %2737  ;;  %vm5332_vm7 = vcmask 1043456  }
0x3692   : > { %v2733_v10 = vadd.f32 %v2731_v18, %v2719_v24  ;;  %v2734_v30 = vadd.f32 %v2732_v21, %v2720_v26  ;;  %v2745_v31 = vmul.f32 %v3740_v39, %v2738_v29  ;;  %v2746_v32 = vmul.f32 %v3741_v27, %v2738_v29 }
0x3693   : > { %v2759_v25 = vmul.f32 %v3742_v28, %v2752_v54  ;;  %v2760_v36 = vmul.f32 %v3743_v0, %v2752_v54  ;;  %v3754_v21 = vsel %vm2837_vm13, 1.0, %v4153_v1  ;;  %v3756_v24 = vsel %vm2851_vm4, 1.0, %v4153_v1  ;;  %vm5333_vm13 = vmmov %vm5332_vm7 }
0x3694   : > { %v2747_v46 = vadd.f32 %v2745_v31, %v2733_v10  ;;  %v2748_v37 = vadd.f32 %v2746_v32, %v2734_v30 }
0x3695   : > { %v2780_v42 = vpop.xlane.xlu0 %2779  ;;  %v2766_v5 = vpop.xlane.xlu1 %2765 }
0x3696   : > { %v2773_v43 = vmul.f32 %v3744_v33, %v2766_v5  ;;  %v2774_v48 = vmul.f32 %v3745_v34, %v2766_v5  ;;  %v2761_v49 = vadd.f32 %v2759_v25, %v2747_v46  ;;  %v2762_v50 = vadd.f32 %v2760_v36, %v2748_v37  ;;  %v4106_v25 = vld [vmem:[%s5276_s10 + $0x8] sm:$0xff]  }
0x3697   : > { %v2787_v7 = vmul.f32 %v3746_v8, %v2780_v42  ;;  %v2788_v51 = vmul.f32 %v3747_v40, %v2780_v42  ;;  %3965 = vmatpush3.bf16.msra.mxu1 %v4106_v25  ;;  %v4107_v42 = vld [vmem:[%s5278_s12] sm:$0xff]   ;;  %v4108_v5 = vld [vmem:[%s5278_s12 + $0x8] sm:$0xff]  }
0x3698   : > { %v2775_v53 = vadd.f32 %v2773_v43, %v2761_v49  ;;  %v2776_v11 = vadd.f32 %v2774_v48, %v2762_v50  ;;  %3978 = vmatprep.subr.bf16.mxu1 %v4153_v1  ;;  %v3760_v8 = vld [vmem:[%s5277_s11] ss:$0 sm:$0xff] }
0x3699   : > { %v2808_v57 = vpop.xlane.xlu0 %2807  ;;  %v2794_v58 = vpop.xlane.xlu1 %2793 }
0x369a   : > { %v2801_v3 = vmul.f32 %v3748_v52, %v2794_v58  ;;  %v2802_v55 = vmul.f32 %v3749_v56, %v2794_v58  ;;  %v2789_v41 = vadd.f32 %v2787_v7, %v2775_v53  ;;  %v2790_v35 = vadd.f32 %v2788_v51, %v2776_v11 }
0x369b   : > { %v2815_v23 = vmul.f32 %v3750_v61, %v2808_v57  ;;  %v2816_v13 = vmul.f32 %v3751_v20, %v2808_v57 }
0x369c   : > { %v2803_v22 = vadd.f32 %v2801_v3, %v2789_v41  ;;  %v2804_v14 = vadd.f32 %v2802_v55, %v2790_v35 }
0x369d   : > { %v2836_v19 = vpop.xlane.xlu0 %2835  ;;  %v2822_v15 = vpop.xlane.xlu1 %2821 }
0x369e   : > { %v2829_v62 = vmul.f32 %v3752_v9, %v2822_v15  ;;  %v2830_v60 = vmul.f32 %v3753_v12, %v2822_v15  ;;  %v2817_v38 = vadd.f32 %v2815_v23, %v2803_v22  ;;  %v2818_v18 = vadd.f32 %v2816_v13, %v2804_v14 }
0x369f   : > { %v2843_v26 = vmul.f32 %v3754_v21, %v2836_v19  ;;  %v2844_v2 = vmul.f32 %v3755_v17, %v2836_v19 }
0x36a0   : > { %v2831_v59 = vadd.f32 %v2829_v62, %v2817_v38  ;;  %v2832_v54 = vadd.f32 %v2830_v60, %v2818_v18 }
0x36a1   : > { %v4084_v39 = vpop.permute.xlu0 %4083  ;;  %v2850_v27 = vpop.xlane.xlu1 %2849 }
0x36a2   : > { %v4086_v29 = vunpack.i.h.bf16 %v4084_v39  ;;  %v4085_v28 = vunpack.i.l.bf16 %v4084_v39  ;;  %v2857_v0 = vmul.f32 %v3756_v24, %v2850_v27  ;;  %v2858_v10 = vmul.f32 %v3757_v16, %v2850_v27 }
0x36a3   : > { %v2845_v30 = vadd.f32 %v2843_v26, %v2831_v59  ;;  %v2846_v31 = vadd.f32 %v2844_v2, %v2832_v54 }
0x36a4   : > { %v4046_v32 = vpack.c.bf16 %v4086_v29, %v4085_v28 }
0x36a5   : > { %v2859_v33 = vadd.f32 %v2857_v0, %v2845_v30  ;;  %v2860_v34 = vadd.f32 %v2858_v10, %v2846_v31  ;;  %v4109_v31 = vld [vmem:[%s5279_s13] sm:$0xff]  }
0x36a6   : > { %4047 = vmatprep.subr.bf16.mxu0 %v4046_v32 }
0x36a7   : > { %3959 = vmatprep.mubr.msk.f32.mxu0 %vm805_vm2, %v2859_v33  ;;  %4049 = vmatpush3.bf16.msra.mxu0 %v4046_v32  ;;  %v4110_v32 = vld [vmem:[%s5279_s13 + $0x8] sm:$0xff]  }
0x36a8   : > { %3970 = vmatprep.subr.bf16.mxu0 %v4153_v1 }
0x36aa   : > { %3960 = vmatmul.mubr.msk.f32.vlgmr.msra.gmra.mrb[12].mxu0 %vm805_vm2, %v2860_v34  ;;  %vm5323_vm2 = vcmask 1041408  }
0x36ab   : > { %3974 = vmatprep.mubr.msk.bf16.mxu0 %vm4154_vm0, %v4153_v1  ;;  %3971 = vmatpush3.bf16.msra.mxu0 %v4107_v42  ;;  %vm5324_vm11 = vmmov %vm5323_vm2 }
0x36ac   : > { %3972 = vmatprep.subr.bf16.mxu0 %v4153_v1  ;;  %vm5325_vm5 = vmmov %vm5323_vm2 }
0x36af   : > { %3973 = vmatpush3.bf16.msra.mxu0 %v4108_v5 }
0x36b0   : > { %3986 = vmatprep.subr.bf16.mxu0 %v4153_v1 }
0x377d   : > { %v3961_v36 = vpop.f32.mrb[12].mxu0 }
0x377e   : > { %v2941_v46 = vpop.f32.mrb[13].mxu0 }
0x377f   : > { %v2950_v37 = vpack.c.bf16 %v3961_v36, %v2941_v46 }
0x3781   : > { %3967 = vmatmul.mubr.msk.bf16.vlgmr.msra.gmra.mrb[24].mxu1 %vm5322_vm15, %v2950_v37  ;;  %vm5335_vm15 = vmmov %vm5334_vm9 }
0x3782   : > { %3982 = vmatprep.mubr.msk.bf16.mxu1 %vm4154_vm0, %v4153_v1  ;;  %3979 = vmatpush3.bf16.msra.mxu1 %v4109_v31 }
0x3783   : > { %3980 = vmatprep.subr.bf16.mxu1 %v4153_v1 }
0x3786   : > { %3981 = vmatpush3.bf16.msra.mxu1 %v4110_v32 }
0x3854   : > { %v3006_v40 = vpop.f32.mrb[24].mxu1 }
0x3855   : > { %v3007_v43 = vadd.f32 %v3760_v8, %v3006_v40  ;;  %v3968_v48 = vpop.f32.mrb[25].mxu1 }
0x3856   : > { %v3009_v49 = vpop.f32.mrb[26].mxu1 }
0x3857   : > { %v3013_v50 = vadd.f32 %v3007_v43, %v4750_v63  ;;  %v3010_v52 = vadd.f32 %v3760_v8, %v3009_v49  ;;  %v3969_v56 = vpop.f32.mrb[27].mxu1 }
0x3859   : > { %v3018_v7 = vrot.slane %v3013_v50, %v4725_v4  ;;  %v3025_v51 = vrot.slane %v3013_v50, 6  ;;  %v3014_v53 = vadd.f32 %v3010_v52, %v4753_v47 }
0x385b   : > { %v3031_v11 = vsel %vm5323_vm2, %v3018_v7, %v3025_v51  ;;  %v3022_v57 = vrot.slane %v3014_v53, %v4729_v6  ;;  %v3026_v58 = vrot.slane %v3014_v53, 6 }
0x385c   : > { %v3035_v61 = vrot.slane %v3031_v11, 1  ;;  %v3044_v20 = vrot.slane %v3031_v11, 2  ;;  %v3053_v3 = vrot.slane %v3031_v11, 3  ;;  %v3062_v55 = vrot.slane %v3031_v11, 4 }
0x385d   : > { %v3027_v41 = vsel %vm5324_vm11, %v3025_v51, %v3026_v58  ;;  %v3032_v63 = vsel %vm5325_vm5, %v3026_v58, %v3022_v57  ;;  %vm5336_vm11 = vmmov %vm5323_vm2 }
0x385e   : > { %v3036_v35 = vrot.slane %v3027_v41, 1  ;;  %v3038_v9 = vrot.slane %v3032_v63, 1  ;;  %v3045_v12 = vrot.slane %v3027_v41, 2  ;;  %v3047_v23 = vrot.slane %v3032_v63, 2  ;;  %vm5337_vm5 = vmmov %vm5323_vm2 }
0x385f   : > { %v3054_v13 = vrot.slane %v3027_v41, 3  ;;  %v3056_v22 = vrot.slane %v3032_v63, 3  ;;  %v3063_v47 = vrot.slane %v3027_v41, 4  ;;  %v3065_v14 = vrot.slane %v3032_v63, 4 }
0x3860   : > { %v3037_v19 = vsel %vm5326_vm12, %v3035_v61, %v3036_v35  ;;  %v3039_v15 = vsel %vm5327_vm10, %v3036_v35, %v3038_v9  ;;  %v3046_v62 = vsel %vm5328_vm8, %v3044_v20, %v3045_v12  ;;  %v3048_v60 = vsel %vm5329_vm3, %v3045_v12, %v3047_v23  ;;  %vm5338_vm12 = vmmov %vm5327_vm10 }
0x3861   : > { %v3042_v38 = vadd.f32 %v3037_v19, %v3031_v11  ;;  %v3043_v18 = vadd.f32 %v3039_v15, %v3027_v41  ;;  %v3055_v21 = vsel %vm5330_vm6, %v3053_v3, %v3054_v13  ;;  %v3057_v17 = vsel %vm5331_vm1, %v3054_v13, %v3056_v22  ;;  %vm5339_vm8 = vmmov %vm5329_vm3 }
0x3862   : > { %v3064_v24 = vsel %vm5332_vm7, %v3062_v55, %v3063_v47  ;;  %v3066_v16 = vsel %vm5333_vm13, %v3063_v47, %v3065_v14  ;;  %vm5340_vm3 = vmmov %vm5331_vm1 }
0x3863   : > { %v3051_v26 = vadd.f32 %v3046_v62, %v3042_v38  ;;  %v3052_v2 = vadd.f32 %v3048_v60, %v3043_v18  ;;  %vm5341_vm6 = vmmov %vm5332_vm7 }
0x3864   : > { %vm5342_vm1 = vmmov %vm5339_vm8 }
0x3865   : > { %v3060_v59 = vadd.f32 %v3055_v21, %v3051_v26  ;;  %v3061_v54 = vadd.f32 %v3057_v17, %v3052_v2  ;;  %v4157_v21 = vmov -1.0   ;;  %vm5343_vm7 = vmmov %vm5340_vm3 }
0x3866   : > { %vm5344_vm13 = vmmov %vm5341_vm6 }
0x3867   : > { %v3069_v39 = vadd.f32 %v3064_v24, %v3060_v59  ;;  %v3070_v27 = vadd.f32 %v3066_v16, %v3061_v54 }
0x3869   : > { %v5159_v29 = vmul.f32 0.2, %v3069_v39  ;;  %v5161_v28 = vmul.f32 0.2, %v3070_v27 }
0x386b   : > { %v5164_v0 = vsub.f32 %v3013_v50, %v5159_v29  ;;  %v5167_v10 = vsub.f32 %v3014_v53, %v5161_v28 }
0x386d   : > { %v3079_v30 = vpack.c.bf16 %v5167_v10, %v5164_v0 }
0x386f   : > { %3975 = vmatmul.mubr.msk.bf16.vlgmr.msra.gmra.mrb[16].mxu0 %vm5334_vm9, %v3079_v30 }
0x3870   : > { %3998 = vmatprep.mubr.msk.bf16.mxu0 %vm4154_vm0, %v4153_v1 }
0x3942   : > { %v3129_v33 = vpop.f32.mrb[16].mxu0 }
0x3943   : > { %v3138_v34 = vmul.f32 0.70710677, %v3129_v33  ;;  %v3976_v25 = vpop.f32.mrb[17].mxu0  ;;  %v3136_v39 = vmul.f32 0.5, %v3129_v33 }
0x3944   : > { %v3132_v36 = vpop.f32.mrb[18].mxu0 }
0x3945   : > { %v3144_v46 = vand.u32 2147483647, %v3138_v34  ;;  %v3139_v37 = vmul.f32 0.70710677, %v3132_v36  ;;  %v3977_v42 = vpop.f32.mrb[19].mxu0  ;;  %vm3140_vm4 = vcmp.ge.f32.partialorder %v3138_v34, 0.0 }
0x3946   : > { %v3142_v17 = vsel %vm3140_vm4, 1.0, %v4157_v21  ;;  %v3137_v27 = vmul.f32 0.5, %v3132_v36  ;;  %vm3333_vm4 = vcmask 1040384  }
0x3947   : > { %v3146_v5 = vmul.f32 0.3275911, %v3144_v46  ;;  %v3145_v8 = vand.u32 2147483647, %v3139_v37  ;;  %v3172_v49 = vsub.f32 0.0, %v3144_v46  ;;  %vm3141_vm14 = vcmp.ge.f32.partialorder %v3139_v37, 0.0 }
0x3948   : > { %v3143_v2 = vsel %vm3141_vm14, 1.0, %v4157_v21  ;;  %vm5345_vm14 = vmmov %vm5327_vm10 }
0x3949   : > { %v3148_v40 = vadd.f32 1.0, %v3146_v5  ;;  %v3147_v43 = vmul.f32 0.3275911, %v3145_v8  ;;  %v3173_v50 = vsub.f32 0.0, %v3145_v8  ;;  %v3174_v56 = vmul.f32 %v3172_v49, %v3144_v46 }
0x394b   : > { %4127 = vrcp.f32 %v3148_v40  ;;  %v3149_v48 = vadd.f32 1.0, %v3147_v43  ;;  %v3175_v11 = vmul.f32 %v3173_v50, %v3145_v8  ;;  %v3176_v57 = vmul.f32 1.442695, %v3174_v56 }
0x394d   : > { %4129 = vrcp.f32 %v3149_v48  ;;  %v3178_v55 = vmul.f32 1.442695, %v3175_v11 }
0x394e   : > { %4131 = vpow2.f32 %v3176_v57 }
0x394f   : > { %4133 = vpow2.f32 %v3178_v55 }
0x3955   : > { %v4128_v52 = vpop.eup %4127 }
0x3956   : > { %v3154_v7 = vmul.f32 1.0614054, %v4128_v52 }
0x3957   : > { %v4130_v51 = vpop.eup %4129 }
0x3958   : > { %v3156_v53 = vadd.f32 -1.4531521, %v3154_v7  ;;  %v3155_v58 = vmul.f32 1.0614054, %v4130_v51  ;;  %v4132_v19 = vpop.eup %4131 }
0x3959   : > { %v4134_v38 = vpop.eup %4133 }
0x395a   : > { %v3158_v61 = vmul.f32 %v4128_v52, %v3156_v53  ;;  %v3157_v20 = vadd.f32 -1.4531521, %v3155_v58 }
0x395c   : > { %v3160_v3 = vadd.f32 1.4214138, %v3158_v61  ;;  %v3159_v41 = vmul.f32 %v4130_v51, %v3157_v20 }
0x395e   : > { %v3162_v63 = vmul.f32 %v4128_v52, %v3160_v3  ;;  %v3161_v35 = vadd.f32 1.4214138, %v3159_v41 }
0x3960   : > { %v3164_v9 = vadd.f32 -0.28449672, %v3162_v63  ;;  %v3163_v12 = vmul.f32 %v4130_v51, %v3161_v35 }
0x3962   : > { %v3166_v23 = vmul.f32 %v4128_v52, %v3164_v9  ;;  %v3165_v13 = vadd.f32 -0.28449672, %v3163_v12 }
0x3964   : > { %v3168_v22 = vadd.f32 0.2548296, %v3166_v23  ;;  %v3167_v47 = vmul.f32 %v4130_v51, %v3165_v13 }
0x3966   : > { %v3170_v14 = vmul.f32 %v4128_v52, %v3168_v22  ;;  %v3169_v15 = vadd.f32 0.2548296, %v3167_v47 }
0x3968   : > { %v3180_v62 = vmul.f32 %v4132_v19, %v3170_v14  ;;  %v3171_v60 = vmul.f32 %v4130_v51, %v3169_v15 }
0x396a   : > { %v3182_v18 = vsub.f32 1.0, %v3180_v62  ;;  %v3181_v24 = vmul.f32 %v4134_v38, %v3171_v60  ;;  %v3314_v62 = vadd.f32 %v5161_v28, %v4747_v45  ;;  %v3313_v38 = vadd.f32 %v5159_v29, %v4745_v44 }
0x396c   : > { %v3184_v16 = vmul.f32 %v3182_v18, %v3142_v17  ;;  %v3183_v26 = vsub.f32 1.0, %v3181_v24 }
0x396e   : > { %v3186_v59 = vadd.f32 1.0, %v3184_v16  ;;  %v3185_v54 = vmul.f32 %v3183_v26, %v3143_v2 }
0x3970   : > { %v3187_v30 = vadd.f32 1.0, %v3185_v54  ;;  %v3188_v31 = vmul.f32 %v3186_v59, %v3136_v39 }
0x3972   : > { %v3189_v32 = vmul.f32 %v3187_v30, %v3137_v27 }
0x3974   : > { %v3194_v25 = vpack.c.bf16 %v3189_v32, %v3188_v31  ;;  %v4111_v32 = vld [vmem:[%s5280_s14] sm:$0xff]  }
0x3975   : > { %3987 = vmatpush3.bf16.msra.mxu0 %v4111_v32  ;;  %v3572_v32 = vld [vmem:[%s718_s0 + $0x8] sm:$0xff] }
0x3976   : > { %3983 = vmatmul.mubr.msk.bf16.vlgmr.msra.gmra.mrb[28].mxu1 %vm5335_vm15, %v3194_v25  ;;  %vm5346_vm15 = vmmov %vm5327_vm10  ;;  %v4112_v25 = vld [vmem:[%s5280_s14 + $0x8] sm:$0xff]   ;;  %3988 = vmatprep.subr.bf16.mxu0 %v4153_v1 }
0x3979   : > { %3989 = vmatpush3.bf16.msra.mxu0 %v4112_v25 }
0x397a   : > { %3990 = vmatprep.subr.bf16.mxu0 %v4153_v1 }
0x3a49   : > { %v3244_v34 = vpop.f32.mrb[28].mxu1 }
0x3a4a   : > { %v3251_v46 = vadd.f32 %v3244_v34, %v5164_v0  ;;  %v3984_v42 = vpop.f32.mrb[29].mxu1  ;;  %v4113_v34 = vld [vmem:[%s5280_s14 + $0x10] sm:$0xff]  }
0x3a4b   : > { %v3247_v5 = vpop.f32.mrb[30].mxu1  ;;  %3991 = vmatpush3.bf16.msra.mxu0 %v4113_v34 }
0x3a4c   : > { %v3256_v37 = vrot.slane %v3251_v46, %v4725_v4  ;;  %v3263_v8 = vrot.slane %v3251_v46, 6  ;;  %v3252_v40 = vadd.f32 %v3247_v5, %v5167_v10  ;;  %v3985_v43 = vpop.f32.mrb[31].mxu1  ;;  %3992 = vmatprep.subr.bf16.mxu0 %v4153_v1 }
0x3a4e   : > { %v3269_v33 = vsel %vm5323_vm2, %v3256_v37, %v3263_v8  ;;  %v3260_v36 = vrot.slane %v3252_v40, %v4729_v6  ;;  %v3264_v48 = vrot.slane %v3252_v40, 6  ;;  %vm5347_vm2 = vmmov %vm5334_vm9 }
0x3a4f   : > { %v3273_v49 = vrot.slane %v3269_v33, 1  ;;  %v3282_v56 = vrot.slane %v3269_v33, 2  ;;  %v3291_v0 = vrot.slane %v3269_v33, 3  ;;  %v3300_v20 = vrot.slane %v3269_v33, 4 }
0x3a50   : > { %v3265_v50 = vsel %vm5336_vm11, %v3263_v8, %v3264_v48  ;;  %v3270_v52 = vsel %vm5337_vm5, %v3264_v48, %v3260_v36  ;;  %vm5349_vm11 = vmmov %vm5347_vm2 }
0x3a51   : > { %v3274_v7 = vrot.slane %v3265_v50, 1  ;;  %v3276_v51 = vrot.slane %v3270_v52, 1  ;;  %v3285_v53 = vrot.slane %v3270_v52, 2  ;;  %v3294_v4 = vrot.slane %v3270_v52, 3  ;;  %vm5350_vm5 = vmmov %vm5347_vm2 }
0x3a52   : > { %v3303_v11 = vrot.slane %v3270_v52, 4  ;;  %v3283_v57 = vrot.slane %v3265_v50, 2  ;;  %v3292_v10 = vrot.slane %v3265_v50, 3  ;;  %v3301_v58 = vrot.slane %v3265_v50, 4  ;;  %v4116_v52 = vld [vmem:[%s5280_s14 + $0x28] sm:$0xff]  }
0x3a53   : > { %v3277_v61 = vsel %vm5338_vm12, %v3274_v7, %v3276_v51  ;;  %v3275_v6 = vsel %vm5327_vm10, %v3273_v49, %v3274_v7  ;;  %v4114_v49 = vld [vmem:[%s5280_s14 + $0x18] sm:$0xff]   ;;  %vm3360_vm12 = vcmask 523264   ;;  %vm5351_vm10 = vmmov %vm5347_vm2 }
0x3a54   : > { %v3281_v3 = vadd.f32 %v3277_v61, %v3265_v50  ;;  %v3280_v55 = vadd.f32 %v3275_v6, %v3269_v33  ;;  %v3284_v41 = vsel %vm5339_vm8, %v3282_v56, %v3283_v57  ;;  %v3293_v63 = vsel %vm5340_vm3, %v3291_v0, %v3292_v10  ;;  %3993 = vmatpush3.bf16.msra.mxu0 %v4114_v49  ;;  %v4115_v50 = vld [vmem:[%s5280_s14 + $0x20] sm:$0xff]   ;;  %vm5352_vm8 = vmmov %vm5347_vm2 }
0x3a55   : > { %v3302_v35 = vsel %vm5341_vm6, %v3300_v20, %v3301_v58  ;;  %v3286_v9 = vsel %vm5342_vm1, %v3283_v57, %v3285_v53  ;;  %v3295_v12 = vsel %vm5343_vm7, %v3292_v10, %v3294_v4  ;;  %v3304_v23 = vsel %vm5344_vm13, %v3301_v58, %v3303_v11  ;;  %3994 = vmatprep.subr.bf16.mxu0 %v4153_v1  ;;  %vm5353_vm6 = vmmov %vm5347_vm2 }
0x3a56   : > { %v3289_v13 = vadd.f32 %v3284_v41, %v3280_v55  ;;  %v3290_v22 = vadd.f32 %v3286_v9, %v3281_v3  ;;  %vm3400_vm3 = vcmask 785408   ;;  %vm5354_vm1 = vmmov %vm5347_vm2  ;;  %vm3577_vm7 = vcmask 31744  }
0x3a58   : > { %v3298_v47 = vadd.f32 %v3293_v63, %v3289_v13  ;;  %v3299_v14 = vadd.f32 %v3295_v12, %v3290_v22  ;;  %3995 = vmatpush3.bf16.msra.mxu0 %v4115_v50  ;;  %v4117_v63 = vld [vmem:[%s5286_s20] sm:$0xff]   ;;  %v4118_v13 = vld [vmem:[%s5286_s20 + $0x8] sm:$0xff]  }
0x3a59   : > { %3996 = vmatprep.subr.bf16.mxu0 %v4153_v1  ;;  %v3777_v12 = vld [vmem:[%s5284_s18] ss:$0 sm:$0xff] }
0x3a5a   : > { %v3307_v19 = vadd.f32 %v3302_v35, %v3298_v47  ;;  %v3308_v15 = vadd.f32 %v3304_v23, %v3299_v14  ;;  %v3778_v14 = vld [vmem:[%s5285_s19] ss:$0 sm:$0xff] }
0x3a5c   : > { %v3309_v60 = vmul.f32 0.2, %v3307_v19  ;;  %v3310_v18 = vmul.f32 0.2, %v3308_v15  ;;  %3997 = vmatpush3.bf16.msra.mxu0 %v4116_v52 }
0x3a5d   : > { %4002 = vmatprep.subr.bf16.mxu0 %v4153_v1 }
0x3a5e   : > { %v3311_v21 = vsub.f32 %v3251_v46, %v3309_v60  ;;  %v3315_v17 = vadd.f32 %v3313_v38, %v3309_v60  ;;  %v3316_v24 = vadd.f32 %v3314_v62, %v3310_v18  ;;  %v3312_v16 = vsub.f32 %v3252_v40, %v3310_v18 }
0x3a60   : > { %v3339_v26 = vrot.slane %v3315_v17, 1  ;;  %v3447_v2 = vsel %vm5334_vm9, %v3311_v21, 0.0  ;;  %v3340_v59 = vrot.slane %v3316_v24, 1  ;;  %v4087_v54 = vpack.i.bf16 %v3316_v24, %v3315_v17 }
0x3a61   : > { %3448 = vadd.xlane.f32.xlu1 %v3447_v2  ;;  %v3330_v39 = vrot.slane %v3316_v24, 7  ;;  %v3334_v27 = vrot.slane %v3315_v17, 7  ;;  %v3450_v31 = vsel %vm5347_vm2, %v3312_v16, 0.0 }
0x3a62   : > { %v3341_v45 = vsel %vm5345_vm14, %v3339_v26, %v3340_v59  ;;  %v3344_v28 = vsel %vm5346_vm15, %v3340_v59, %v3339_v26 }
0x3a63   : > { %v4092_v30 = vpack.i.bf16 %v3344_v28, %v3341_v45  ;;  %v3335_v44 = vsel %vm3333_vm4, %v3334_v27, %v3330_v39  ;;  %v3338_v29 = vsel %vm3333_vm4, %v3330_v39, %v3334_v27  ;;  %v3779_v45 = vld [vmem:[%s5287_s21] ss:$0 sm:$0xff] }
0x3a65   : > { %4093 = vrot.lane.b32.xlu0 %v4092_v30, %s5348_s27  ;;  %3451 = vadd.xlane.f32.xlu1 %v3450_v31  ;;  %v3571_v30 = vld [vmem:[%s718_s0] sm:$0xff] }
0x3ad7   : > { %v4094_v4 = vpop.permute.xlu0 %4093 }
0x3ad8   : > { %v4096_v61 = vunpack.i.h.bf16 %v4094_v4  ;;  %v4095_v6 = vunpack.i.l.bf16 %v4094_v4 }
0x3aee   : > { %v3449_v46 = vpop.xlane.xlu1 %3448 }
0x3aef   : > { %v3454_v42 = vmul.f32 0.03125, %v3449_v46 }
0x3af1   : > { %v3456_v5 = vsub.f32 %v3311_v21, %v3454_v42 }
0x3af2   : > { %v3452_v37 = vpop.xlane.xlu1 %3451 }
0x3af3   : > { %v3455_v8 = vmul.f32 0.03125, %v3452_v37  ;;  %v3458_v40 = vmul.f32 %v3456_v5, %v3456_v5 }
0x3af5   : > { %v3457_v43 = vsub.f32 %v3312_v16, %v3455_v8  ;;  %v3460_v33 = vsel %vm5349_vm11, %v3458_v40, 0.0 }
0x3af6   : > { %3461 = vadd.xlane.f32.xlu1 %v3460_v33 }
0x3af7   : > { %v3459_v36 = vmul.f32 %v3457_v43, %v3457_v43 }
0x3af9   : > { %v3463_v48 = vsel %vm5350_vm5, %v3459_v36, 0.0 }
0x3afa   : > { %3464 = vadd.xlane.f32.xlu1 %v3463_v48 }
0x3b0b   : > { %4088 = vrot.lane.b32.xlu1 %v4087_v54, %s4158_s26  ;;  %s723_s26 = scalar_lea.vmem %s5288_s22, %s4292_s1 }
0x3b83   : > { %v3462_v56 = vpop.xlane.xlu1 %3461 }
0x3b84   : > { %v3466_v0 = vmul.f32 0.03125, %v3462_v56 }
0x3b86   : > { %v3468_v7 = vadd.f32 1e-05, %v3466_v0 }
0x3b87   : > { %v3465_v51 = vpop.xlane.xlu1 %3464 }
0x3b88   : > { %4135 = vrsqrt.f32 %v3468_v7  ;;  %v3467_v53 = vmul.f32 0.03125, %v3465_v51 }
0x3b8a   : > { %v3469_v11 = vadd.f32 1e-05, %v3467_v53 }
0x3b8b   : > { %v4089_v57 = vpop.permute.xlu1 %4088 }
0x3b8c   : > { %4137 = vrsqrt.f32 %v3469_v11  ;;  %v4091_v10 = vunpack.i.h.bf16 %v4089_v57  ;;  %v4090_v58 = vunpack.i.l.bf16 %v4089_v57 }
0x3b8e   : > { %v3359_v20 = vsel %vm5351_vm10, %v3335_v44, %v4091_v10  ;;  %v3358_v3 = vsel %vm5352_vm8, %v3338_v29, %v4090_v58 }
0x3b8f   : > { %v3362_v55 = vsel %vm3360_vm12, %v3359_v20, %v4096_v61  ;;  %v3361_v41 = vsel %vm3360_vm12, %v3358_v3, %v4095_v6 }
0x3b90   : > { %v3363_v35 = vpack.c.bf16 %v3362_v55, %v3361_v41 }
0x3b92   : > { %v4136_v9 = vpop.eup %4135  ;;  %3999 = vmatmul.mubr.msk.bf16.vlgmr.msra.gmra.mrb[20].mxu0 %vm3400_vm3, %v3363_v35 }
0x3b93   : > { %v3472_v23 = vmul.f32 %v4136_v9, %v3456_v5  ;;  %4003 = vmatpush3.bf16.msra.mxu0 %v4117_v63  ;;  %4006 = vmatprep.mubr.msk.bf16.mxu0 %vm4154_vm0, %v4153_v1  ;;  %vm5355_vm0 = vmmov %vm5354_vm1 }
0x3b94   : > { %4004 = vmatprep.subr.bf16.mxu0 %v4153_v1 }
0x3b95   : > { %v3480_v22 = vmul.f32 %v3777_v12, %v3472_v23 }
0x3b96   : > { %v4138_v47 = vpop.eup %4137 }
0x3b97   : > { %v3473_v19 = vmul.f32 %v4138_v47, %v3457_v43  ;;  %4005 = vmatpush3.bf16.msra.mxu0 %v4118_v13  ;;  %v3488_v62 = vadd.f32 %v3778_v14, %v3480_v22 }
0x3b99   : > { %v3481_v15 = vmul.f32 %v3777_v12, %v3473_v19  ;;  %v3490_v38 = vsel %vm5353_vm6, %v3488_v62, 0.0 }
0x3b9b   : > { %v3489_v60 = vadd.f32 %v3778_v14, %v3481_v15 }
0x3b9d   : > { %v3491_v18 = vsel %vm5354_vm1, %v3489_v60, 0.0 }
0x3b9e   : > { %v3492_v21 = vadd.f32 %v3491_v18, %v3490_v38 }
0x3ba0   : > { %v3493_v17 = vrot.slane %v3492_v21, 4 }
0x3ba2   : > { %v3494_v24 = vadd.f32 %v3493_v17, %v3492_v21 }
0x3ba4   : > { %v3495_v1 = vrot.slane %v3494_v24, 2 }
0x3ba6   : > { %v3496_v16 = vadd.f32 %v3495_v1, %v3494_v24 }
0x3ba8   : > { %v3497_v26 = vrot.slane %v3496_v16, 1 }
0x3baa   : > { %v3498_v2 = vadd.f32 %v3497_v26, %v3496_v16 }
0x3bac   : > { %v3500_v59 = vmul.f32 0.0625, %v3498_v2 }
0x3bae   : > { %v3501_v54 = vsub.f32 %v3488_v62, %v3500_v59  ;;  %v3502_v39 = vsub.f32 %v3489_v60, %v3500_v59 }
0x3bb0   : > { %v3507_v27 = vpack.c.bf16 %v3502_v39, %v3501_v54 }
0x3bb2   : > { %4007 = vmatmul.mubr.msk.bf16.vlgmr.msra.gmra.mrb[20].mxu0 %vm5355_vm0, %v3507_v27 }
0x3c85   : > { %v3564_v28 = vpop.f32.mrb[20].mxu0 }
0x3c86   : > { %v3565_v44 = vadd.f32 %v3779_v45, %v3564_v28  ;;  %v4008_v29 = vpop.f32.mrb[21].mxu0 }
0x3c87   : > { %v3567_v31 = vpop.f32.mrb[22].mxu0 }
0x3c88   : > { %v4051_v25 = vadd.f32 %v3571_v30, %v3565_v44  ;;  %v3568_v34 = vadd.f32 %v3779_v45, %v3567_v31  ;;  %v4009_v46 = vpop.f32.mrb[23].mxu0 }
0x3c8a   : > { %3578 = vst.msk [vmem:[%s723_s26] sm:$0xff] %vm3577_vm7, %v4051_v25  ;;  %v4053_v42 = vadd.f32 %v3572_v32, %v3568_v34 }
0x3c8c   : > { %3579 = vst.msk [vmem:[%s723_s26 + $0x8] sm:$0xff] %vm3577_vm7, %v4053_v42 }
0x3c8d PF: > { %s32_s3 = sadd.s32 1, %s4151_s3  }
0x3c8e   : > { %p29_p4 = scmp.ge.s32.totalorder %s32_s3, 4  }
0x3c90   :  { %31 = sbr.rel (!%p29_p4) target bundleno = 8 (0x8), region = 144 }

</bundles_post_ra>
